<compile_context>
chip_gen: v6e
topology: v6e:2x2x1
jax: 0.10.0
libtpu: 0.0.40
codegen_flags: <defaults>
</compile_context>

<pallas_src>
import functools
import math

import jax
import jax.numpy as jnp
from jax.experimental import pallas as pl
from jax.experimental.pallas import tpu as pltpu


def _round_up(x, m):
    return ((x + m - 1) // m) * m


# ----------------------------------------------------------------------------
# Pallas kernels
# ----------------------------------------------------------------------------

def _matmul_bias_kernel(x_ref, w_ref, b_ref, o_ref, *, relu):
    # x_ref: (TM, Kp) bf16, w_ref: (Kp, TN) bf16, b_ref: (1, TN) f32,
    # o_ref: (TM, TN) f32.  MXU matmul with f32 accumulate, fused bias + ReLU.
    acc = jnp.dot(x_ref[...], w_ref[...], preferred_element_type=jnp.float32)
    acc = acc + b_ref[...]
    if relu:
        acc = jnp.maximum(acc, 0.0)
    o_ref[...] = acc.astype(o_ref.dtype)


def _max4_kernel(a_ref, b_ref, c_ref, d_ref, o_ref):
    o_ref[...] = jnp.maximum(jnp.maximum(a_ref[...], b_ref[...]),
                             jnp.maximum(c_ref[...], d_ref[...]))


# ----------------------------------------------------------------------------
# Pallas-backed layers
# ----------------------------------------------------------------------------

def linear_pallas(x, w_pad, b_pad, n_out, relu):
    """y = x @ W + b (optional ReLU).

    x:      (M, K) f32 activation (unpadded).
    w_pad:  (Kp, Np) bf16, pre-padded at init (Kp, Np multiples of 128).
    b_pad:  (1, Np) f32, pre-padded at init.
    Returns (M, n_out) f32.
    """
    M, K = x.shape
    Kp, Np = w_pad.shape

    # M tiling: 256-row tiles for the big conv GEMMs; single full-extent
    # (8-row) block for the tiny-batch FC layers (avoid padding M to 128).
    if M > 128:
        TM = 256
        Mp = _round_up(M, TM)
    else:
        Mp = _round_up(max(M, 1), 8)
        TM = Mp

    # N tiling: 512-wide tiles when possible -> parallel axis for megacore.
    TN = 512 if Np % 512 == 0 else Np

    xb = x.astype(jnp.bfloat16)
    if (Mp, Kp) != (M, K):
        xp = jnp.zeros((Mp, Kp), jnp.bfloat16).at[:M, :K].set(xb)
    else:
        xp = xb

    kernel = functools.partial(_matmul_bias_kernel, relu=relu)
    out = pl.pallas_call(
        kernel,
        out_shape=jax.ShapeDtypeStruct((Mp, Np), jnp.float32),
        grid=(Mp // TM, Np // TN),
        in_specs=[
            pl.BlockSpec((TM, Kp), lambda i, j: (i, 0)),
            pl.BlockSpec((Kp, TN), lambda i, j: (0, j)),
            pl.BlockSpec((1, TN), lambda i, j: (0, j)),
        ],
        out_specs=pl.BlockSpec((TM, TN), lambda i, j: (i, j)),
        compiler_params=pltpu.CompilerParams(
            dimension_semantics=("parallel", "parallel"),
            vmem_limit_bytes=32 * 1024 * 1024,
        ),
    )(xp, w_pad, b_pad)
    return out[:M, :n_out]


def maxpool2x2_pallas(x):
    """MaxPool2d(kernel=2, stride=2) on an NHWC tensor (even H, W)."""
    B, H, W, C = x.shape
    OH, OW = H // 2, W // 2
    a = x[:, 0::2, 0::2, :]
    b = x[:, 0::2, 1::2, :]
    c = x[:, 1::2, 0::2, :]
    d = x[:, 1::2, 1::2, :]

    # Lane-dense 2-D layout: channel dim is innermost (NHWC), so a flat
    # (rows, 128) reshape of the contiguous corner views is free and gives
    # unmasked full-lane stores.
    total = B * OH * OW * C
    lanes = 128 if total % 128 == 0 else C
    rows = total // lanes
    a2, b2, c2, d2 = (t.reshape(rows, lanes) for t in (a, b, c, d))

    # Row tiling (pipelined, parallel) when rows is large; single full block
    # otherwise (block == full array dims is always legal).
    TR = rows
    for cand in (2048, 1024, 512, 256):
        if rows % cand == 0:
            TR = cand
            break

    out = pl.pallas_call(
        _max4_kernel,
        out_shape=jax.ShapeDtypeStruct((rows, lanes), x.dtype),
        grid=(rows // TR,),
        in_specs=[pl.BlockSpec((TR, lanes), lambda i: (i, 0))] * 4,
        out_specs=pl.BlockSpec((TR, lanes), lambda i: (i, 0)),
        compiler_params=pltpu.CompilerParams(
            dimension_semantics=("parallel",)),
    )(a2, b2, c2, d2)
    return out.reshape(B, OH, OW, C)


def conv_relu_pool_pallas(x, p, cfg):
    """Conv2d(valid, stride 1) + ReLU + MaxPool2x2 on an NHWC tensor."""
    B, H, W, C = x.shape
    KH, KW, O = cfg["kh"], cfg["kw"], cfg["n_out"]
    OH, OW = H - KH + 1, W - KW + 1

    # NHWC im2col: feature order (kh, kw, c), matching the weight layout built
    # at init.  Slice + stack only -- no runtime transpose.
    slabs = [x[:, kh:kh + OH, kw:kw + OW, :]
             for kh in range(KH) for kw in range(KW)]
    patches = jnp.stack(slabs, axis=3).reshape(B * OH * OW, KH * KW * C)

    y = linear_pallas(patches, p["w"], p["b"], O, relu=True)     # (B*OH*OW, O)
    y = y.reshape(B, OH, OW, O)
    return maxpool2x2_pallas(y)


# ----------------------------------------------------------------------------
# Parameter init (deterministic, PyTorch-default-like uniform bounds).
# All padding / dtype casts / layout permutations happen HERE, once.
# ----------------------------------------------------------------------------

def _uniform(key, shape, bound):
    return jax.random.uniform(key, shape, jnp.float32, -bound, bound)


def _pad_weight(w, Kp, Np):
    K, N = w.shape
    return jnp.zeros((Kp, Np), jnp.bfloat16).at[:K, :N].set(
        w.astype(jnp.bfloat16))


def _pad_bias(b, Np):
    return jnp.zeros((1, Np), jnp.float32).at[0, :b.shape[0]].set(
        b.astype(jnp.float32))


def _init_linear(key, in_f, out_f):
    k1, k2 = jax.random.split(key)
    bound = 1.0 / math.sqrt(in_f)
    w = _uniform(k1, (in_f, out_f), bound)        # == PyTorch weight.T
    b = _uniform(k2, (out_f,), bound)
    Kp, Np = _round_up(in_f, 128), _round_up(out_f, 128)
    return {"w": _pad_weight(w, Kp, Np), "b": _pad_bias(b, Np)}


def _init_fc1_nhwc(key, c, h, w, out_f):
    """fc1 that consumes an NHWC flatten instead of PyTorch's NCHW flatten.

    PyTorch's .view() flattens (c, h, w); we keep activations NHWC, so the
    weight rows are permuted to (h, w, c) order once at init (zero runtime
    cost, identical semantics when porting PyTorch weights).
    """
    k1, k2 = jax.random.split(key)
    in_f = c * h * w
    bound = 1.0 / math.sqrt(in_f)
    w_pt = _uniform(k1, (in_f, out_f), bound)                 # rows: (c, h, w)
    w_nhwc = (w_pt.reshape(c, h, w, out_f)
                  .transpose(1, 2, 0, 3)
                  .reshape(in_f, out_f))                      # rows: (h, w, c)
    b = _uniform(k2, (out_f,), bound)
    Kp, Np = _round_up(in_f, 128), _round_up(out_f, 128)
    return {"w": _pad_weight(w_nhwc, Kp, Np), "b": _pad_bias(b, Np)}


def _init_conv(key, in_c, out_c, k):
    k1, k2 = jax.random.split(key)
    fan_in = in_c * k * k
    bound = 1.0 / math.sqrt(fan_in)
    w = _uniform(k1, (out_c, in_c, k, k), bound)              # PyTorch OIHW
    b = _uniform(k2, (out_c,), bound)
    # (kh, kw, c) row order to match the NHWC im2col feature order.
    w_mat = w.transpose(2, 3, 1, 0).reshape(k * k * in_c, out_c)
    Kp, Np = _round_up(k * k * in_c, 128), _round_up(out_c, 128)
    return {"w": _pad_weight(w_mat, Kp, Np), "b": _pad_bias(b, Np)}


def init_model(dataset, key):
    """Returns (params, config): params = arrays only, config = static ints."""
    keys = jax.random.split(key, 8)
    if dataset == 'EMNIST':
        params = {"fc1": _init_linear(keys[0], 28 * 28, 1024),
                  "fc2": _init_linear(keys[1], 1024, 1024),
                  "fc3": _init_linear(keys[2], 1024, 10)}
        config = {"fc1": {"n_out": 1024}, "fc2": {"n_out": 1024},
                  "fc3": {"n_out": 10}}
        return params, config
    if dataset == 'FMNIST':
        c1, c2, pooled, n_cls = (1, 4), (4, 12), (12, 4, 4), 10
    elif dataset in ('CIFAR10', 'CIFAR100'):
        c1, c2 = (3, 64), (64, 64)
        pooled = (64, 5, 5)
        n_cls = 10 if dataset == 'CIFAR10' else 100
    else:
        raise ValueError(dataset)

    params = {
        "conv1": _init_conv(keys[0], c1[0], c1[1], 5),
        "conv2": _init_conv(keys[1], c2[0], c2[1], 5),
        "fc1": _init_fc1_nhwc(keys[2], pooled[0], pooled[1], pooled[2], 1024),
        "fc2": _init_linear(keys[3], 1024, 1024),
        "fc3": _init_linear(keys[4], 1024, n_cls),
    }
    config = {
        "conv1": {"kh": 5, "kw": 5, "n_out": c1[1]},
        "conv2": {"kh": 5, "kw": 5, "n_out": c2[1]},
        "fc1": {"n_out": 1024},
        "fc2": {"n_out": 1024},
        "fc3": {"n_out": n_cls},
    }
    return params, config


# ----------------------------------------------------------------------------
# Forward pass (mirrors model_net.forward).  Input x is NCHW like PyTorch.
# ----------------------------------------------------------------------------

def model_net_forward(params, x, *, dataset, config):
    def fc(name, h, relu):
        return linear_pallas(h, params[name]["w"], params[name]["b"],
                             config[name]["n_out"], relu=relu)

    if dataset == 'EMNIST':
        h = x.reshape(-1, 28 * 28)
        h = fc("fc1", h, True)
        h = fc("fc2", h, True)
        return fc("fc3", h, False)

    # Conv variants (FMNIST / CIFAR10 / CIFAR100).
    h = jnp.transpose(x, (0, 2, 3, 1))          # NCHW -> NHWC, once (tiny)
    h = conv_relu_pool_pallas(h, params["conv1"], config["conv1"])
    h = conv_relu_pool_pallas(h, params["conv2"], config["conv2"])
    h = h.reshape(h.shape[0], -1)               # NHWC flatten; fc1 rows permuted at init
    h = fc("fc1", h, True)
    h = fc("fc2", h, True)
    return fc("fc3", h, False)


if __name__ == "__main__":
    dataset = "CIFAR10"
    key = jax.random.PRNGKey(0)
    pkey, xkey = jax.random.split(key)

    params, config = init_model(dataset, pkey)
    x = jax.random.normal(xkey, (2, 3, 32, 32), jnp.float32)   # NCHW input

    fwd = jax.jit(functools.partial(model_net_forward,
                                    dataset=dataset, config=config))
    out = jax.block_until_ready(fwd(params, x))

    assert out.shape == (2, 10), out.shape
    assert bool(jnp.all(jnp.isfinite(out)))
    print("KERNEL_OK")
</pallas_src>

<mosaic_0001>
module attributes {stable_mosaic.version = 11 : i64} {
  func.func @_matmul_bias_kernel(%arg0: i32, %arg1: i32, %arg2: memref<256x128xbf16, #tpu.memory_space<vmem>>, %arg3: memref<128x128xbf16, #tpu.memory_space<vmem>>, %arg4: memref<1x128xf32, #tpu.memory_space<vmem>>, %arg5: memref<256x128xf32, #tpu.memory_space<vmem>>) attributes {dimension_semantics = [#tpu.dimension_semantics<parallel>, #tpu.dimension_semantics<parallel>], iteration_bounds = array<i64: 7, 1>, scalar_prefetch = 0 : i64, scratch_operands = 0 : i64, tpu.core_type = #tpu.core_type<tc>, window_params = [{transform_indices = @transform_0, window_bounds = array<i64: 256, 128>}, {transform_indices = @transform_1, window_bounds = array<i64: 128, 128>}, {transform_indices = @transform_2, window_bounds = array<i64: 1, 128>}, {transform_indices = @transform_3, window_bounds = array<i64: 256, 128>}]} {
    %c0 = arith.constant 0 : index
    %c0_0 = arith.constant 0 : index
    %0 = vector.load %arg2[%c0, %c0_0] : memref<256x128xbf16, #tpu.memory_space<vmem>>, vector<256x128xbf16>
    %c0_1 = arith.constant 0 : index
    %c0_2 = arith.constant 0 : index
    %1 = vector.load %arg3[%c0_1, %c0_2] : memref<128x128xbf16, #tpu.memory_space<vmem>>, vector<128x128xbf16>
    %cst = arith.constant dense<0.000000e+00> : vector<256x128xf32>
    %2 = tpu.matmul %0, %1, %cst {dimension_numbers = #tpu.dot_dimension_numbers<[1], [0], [0], [1], [0, 0, 1, 1], [], []>} : vector<256x128xbf16>, vector<128x128xbf16>, vector<256x128xf32> -> vector<256x128xf32>
    %c0_3 = arith.constant 0 : index
    %c0_4 = arith.constant 0 : index
    %3 = vector.load %arg4[%c0_3, %c0_4] : memref<1x128xf32, #tpu.memory_space<vmem>>, vector<1x128xf32>
    %4 = vector.broadcast %3 : vector<1x128xf32> to vector<256x128xf32>
    %5 = arith.addf %2, %4 : vector<256x128xf32>
    %cst_5 = arith.constant 0.000000e+00 : f32
    %6 = vector.broadcast %cst_5 : f32 to vector<256x128xf32>
    %7 = arith.maximumf %5, %6 : vector<256x128xf32>
    %c0_6 = arith.constant 0 : index
    %c0_7 = arith.constant 0 : index
    %8 = vector.load %arg5[%c0_6, %c0_7] : memref<256x128xf32, #tpu.memory_space<vmem>>, vector<256x128xf32>
    tpu.vector_store %arg5[%c0_6, %c0_7], %7 {strides = array<i32>} : memref<256x128xf32, #tpu.memory_space<vmem>>, vector<256x128xf32>,
    return
  }
  func.func @transform_0(%arg0: i32, %arg1: i32) -> (i32, i32) {
    %c0_i32 = arith.constant 0 : i32
    %c0_i32_0 = arith.constant 0 : i32
    return %arg0, %c0_i32 : i32, i32
  }
  func.func @transform_1(%arg0: i32, %arg1: i32) -> (i32, i32) {
    %c0_i32 = arith.constant 0 : i32
    %c0_i32_0 = arith.constant 0 : i32
    return %c0_i32, %arg1 : i32, i32
  }
  func.func @transform_2(%arg0: i32, %arg1: i32) -> (i32, i32) {
    %c0_i32 = arith.constant 0 : i32
    %c0_i32_0 = arith.constant 0 : i32
    return %c0_i32, %arg1 : i32, i32
  }
  func.func @transform_3(%arg0: i32, %arg1: i32) -> (i32, i32) {
    %c0_i32 = arith.constant 0 : i32
    return %arg0, %arg1 : i32, i32
  }
}

module attributes {stable_mosaic.version = 11 : i64} {
  func.func @_max4_kernel(%arg0: i32, %arg1: memref<196x128xf32, #tpu.memory_space<vmem>>, %arg2: memref<196x128xf32, #tpu.memory_space<vmem>>, %arg3: memref<196x128xf32, #tpu.memory_space<vmem>>, %arg4: memref<196x128xf32, #tpu.memory_space<vmem>>, %arg5: memref<196x128xf32, #tpu.memory_space<vmem>>) attributes {dimension_semantics = [#tpu.dimension_semantics<parallel>], iteration_bounds = array<i64: 1>, scalar_prefetch = 0 : i64, scratch_operands = 0 : i64, tpu.core_type = #tpu.core_type<tc>, window_params = [{transform_indices = @transform_0, window_bounds = array<i64: 196, 128>}, {transform_indices = @transform_1, window_bounds = array<i64: 196, 128>}, {transform_indices = @transform_2, window_bounds = array<i64: 196, 128>}, {transform_indices = @transform_3, window_bounds = array<i64: 196, 128>}, {transform_indices = @transform_4, window_bounds = array<i64: 196, 128>}]} {
    %c0 = arith.constant 0 : index
    %c0_0 = arith.constant 0 : index
    %0 = vector.load %arg1[%c0, %c0_0] : memref<196x128xf32, #tpu.memory_space<vmem>>, vector<196x128xf32>
    %c0_1 = arith.constant 0 : index
    %c0_2 = arith.constant 0 : index
    %1 = vector.load %arg2[%c0_1, %c0_2] : memref<196x128xf32, #tpu.memory_space<vmem>>, vector<196x128xf32>
    %2 = arith.maximumf %0, %1 : vector<196x128xf32>
    %c0_3 = arith.constant 0 : index
    %c0_4 = arith.constant 0 : index
    %3 = vector.load %arg3[%c0_3, %c0_4] : memref<196x128xf32, #tpu.memory_space<vmem>>, vector<196x128xf32>
    %c0_5 = arith.constant 0 : index
    %c0_6 = arith.constant 0 : index
    %4 = vector.load %arg4[%c0_5, %c0_6] : memref<196x128xf32, #tpu.memory_space<vmem>>, vector<196x128xf32>
    %5 = arith.maximumf %3, %4 : vector<196x128xf32>
    %6 = arith.maximumf %2, %5 : vector<196x128xf32>
    %c0_7 = arith.constant 0 : index
    %c0_8 = arith.constant 0 : index
    %7 = vector.load %arg5[%c0_7, %c0_8] : memref<196x128xf32, #tpu.memory_space<vmem>>, vector<196x128xf32>
    tpu.vector_store %arg5[%c0_7, %c0_8], %6 {strides = array<i32>} : memref<196x128xf32, #tpu.memory_space<vmem>>, vector<196x128xf32>,
    return
  }
  func.func @transform_0(%arg0: i32) -> (i32, i32) {
    %c0_i32 = arith.constant 0 : i32
    %c0_i32_0 = arith.constant 0 : i32
    return %arg0, %c0_i32 : i32, i32
  }
  func.func @transform_1(%arg0: i32) -> (i32, i32) {
    %c0_i32 = arith.constant 0 : i32
    %c0_i32_0 = arith.constant 0 : i32
    return %arg0, %c0_i32 : i32, i32
  }
  func.func @transform_2(%arg0: i32) -> (i32, i32) {
    %c0_i32 = arith.constant 0 : i32
    %c0_i32_0 = arith.constant 0 : i32
    return %arg0, %c0_i32 : i32, i32
  }
  func.func @transform_3(%arg0: i32) -> (i32, i32) {
    %c0_i32 = arith.constant 0 : i32
    %c0_i32_0 = arith.constant 0 : i32
    return %arg0, %c0_i32 : i32, i32
  }
  func.func @transform_4(%arg0: i32) -> (i32, i32) {
    %c0_i32 = arith.constant 0 : i32
    %c0_i32_0 = arith.constant 0 : i32
    return %arg0, %c0_i32 : i32, i32
  }
}

module attributes {stable_mosaic.version = 11 : i64} {
  func.func @_matmul_bias_kernel(%arg0: i32, %arg1: i32, %arg2: memref<256x1664xbf16, #tpu.memory_space<vmem>>, %arg3: memref<1664x128xbf16, #tpu.memory_space<vmem>>, %arg4: memref<1x128xf32, #tpu.memory_space<vmem>>, %arg5: memref<256x128xf32, #tpu.memory_space<vmem>>) attributes {dimension_semantics = [#tpu.dimension_semantics<parallel>, #tpu.dimension_semantics<parallel>], iteration_bounds = array<i64: 1, 1>, scalar_prefetch = 0 : i64, scratch_operands = 0 : i64, tpu.core_type = #tpu.core_type<tc>, window_params = [{transform_indices = @transform_0, window_bounds = array<i64: 256, 1664>}, {transform_indices = @transform_1, window_bounds = array<i64: 1664, 128>}, {transform_indices = @transform_2, window_bounds = array<i64: 1, 128>}, {transform_indices = @transform_3, window_bounds = array<i64: 256, 128>}]} {
    %c0 = arith.constant 0 : index
    %c0_0 = arith.constant 0 : index
    %0 = vector.load %arg2[%c0, %c0_0] : memref<256x1664xbf16, #tpu.memory_space<vmem>>, vector<256x1664xbf16>
    %c0_1 = arith.constant 0 : index
    %c0_2 = arith.constant 0 : index
    %1 = vector.load %arg3[%c0_1, %c0_2] : memref<1664x128xbf16, #tpu.memory_space<vmem>>, vector<1664x128xbf16>
    %cst = arith.constant dense<0.000000e+00> : vector<256x128xf32>
    %2 = tpu.matmul %0, %1, %cst {dimension_numbers = #tpu.dot_dimension_numbers<[1], [0], [0], [1], [0, 0, 1, 1], [], []>} : vector<256x1664xbf16>, vector<1664x128xbf16>, vector<256x128xf32> -> vector<256x128xf32>
    %c0_3 = arith.constant 0 : index
    %c0_4 = arith.constant 0 : index
    %3 = vector.load %arg4[%c0_3, %c0_4] : memref<1x128xf32, #tpu.memory_space<vmem>>, vector<1x128xf32>
    %4 = vector.broadcast %3 : vector<1x128xf32> to vector<256x128xf32>
    %5 = arith.addf %2, %4 : vector<256x128xf32>
    %cst_5 = arith.constant 0.000000e+00 : f32
    %6 = vector.broadcast %cst_5 : f32 to vector<256x128xf32>
    %7 = arith.maximumf %5, %6 : vector<256x128xf32>
    %c0_6 = arith.constant 0 : index
    %c0_7 = arith.constant 0 : index
    %8 = vector.load %arg5[%c0_6, %c0_7] : memref<256x128xf32, #tpu.memory_space<vmem>>, vector<256x128xf32>
    tpu.vector_store %arg5[%c0_6, %c0_7], %7 {strides = array<i32>} : memref<256x128xf32, #tpu.memory_space<vmem>>, vector<256x128xf32>,
    return
  }
  func.func @transform_0(%arg0: i32, %arg1: i32) -> (i32, i32) {
    %c0_i32 = arith.constant 0 : i32
    %c0_i32_0 = arith.constant 0 : i32
    return %arg0, %c0_i32 : i32, i32
  }
  func.func @transform_1(%arg0: i32, %arg1: i32) -> (i32, i32) {
    %c0_i32 = arith.constant 0 : i32
    %c0_i32_0 = arith.constant 0 : i32
    return %c0_i32, %arg1 : i32, i32
  }
  func.func @transform_2(%arg0: i32, %arg1: i32) -> (i32, i32) {
    %c0_i32 = arith.constant 0 : i32
    %c0_i32_0 = arith.constant 0 : i32
    return %c0_i32, %arg1 : i32, i32
  }
  func.func @transform_3(%arg0: i32, %arg1: i32) -> (i32, i32) {
    %c0_i32 = arith.constant 0 : i32
    return %arg0, %arg1 : i32, i32
  }
}

module attributes {stable_mosaic.version = 11 : i64} {
  func.func @_max4_kernel(%arg0: i32, %arg1: memref<25x128xf32, #tpu.memory_space<vmem>>, %arg2: memref<25x128xf32, #tpu.memory_space<vmem>>, %arg3: memref<25x128xf32, #tpu.memory_space<vmem>>, %arg4: memref<25x128xf32, #tpu.memory_space<vmem>>, %arg5: memref<25x128xf32, #tpu.memory_space<vmem>>) attributes {dimension_semantics = [#tpu.dimension_semantics<parallel>], iteration_bounds = array<i64: 1>, scalar_prefetch = 0 : i64, scratch_operands = 0 : i64, tpu.core_type = #tpu.core_type<tc>, window_params = [{transform_indices = @transform_0, window_bounds = array<i64: 25, 128>}, {transform_indices = @transform_1, window_bounds = array<i64: 25, 128>}, {transform_indices = @transform_2, window_bounds = array<i64: 25, 128>}, {transform_indices = @transform_3, window_bounds = array<i64: 25, 128>}, {transform_indices = @transform_4, window_bounds = array<i64: 25, 128>}]} {
    %c0 = arith.constant 0 : index
    %c0_0 = arith.constant 0 : index
    %0 = vector.load %arg1[%c0, %c0_0] : memref<25x128xf32, #tpu.memory_space<vmem>>, vector<25x128xf32>
    %c0_1 = arith.constant 0 : index
    %c0_2 = arith.constant 0 : index
    %1 = vector.load %arg2[%c0_1, %c0_2] : memref<25x128xf32, #tpu.memory_space<vmem>>, vector<25x128xf32>
    %2 = arith.maximumf %0, %1 : vector<25x128xf32>
    %c0_3 = arith.constant 0 : index
    %c0_4 = arith.constant 0 : index
    %3 = vector.load %arg3[%c0_3, %c0_4] : memref<25x128xf32, #tpu.memory_space<vmem>>, vector<25x128xf32>
    %c0_5 = arith.constant 0 : index
    %c0_6 = arith.constant 0 : index
    %4 = vector.load %arg4[%c0_5, %c0_6] : memref<25x128xf32, #tpu.memory_space<vmem>>, vector<25x128xf32>
    %5 = arith.maximumf %3, %4 : vector<25x128xf32>
    %6 = arith.maximumf %2, %5 : vector<25x128xf32>
    %c0_7 = arith.constant 0 : index
    %c0_8 = arith.constant 0 : index
    %7 = vector.load %arg5[%c0_7, %c0_8] : memref<25x128xf32, #tpu.memory_space<vmem>>, vector<25x128xf32>
    tpu.vector_store %arg5[%c0_7, %c0_8], %6 {strides = array<i32>} : memref<25x128xf32, #tpu.memory_space<vmem>>, vector<25x128xf32>,
    return
  }
  func.func @transform_0(%arg0: i32) -> (i32, i32) {
    %c0_i32 = arith.constant 0 : i32
    %c0_i32_0 = arith.constant 0 : i32
    return %arg0, %c0_i32 : i32, i32
  }
  func.func @transform_1(%arg0: i32) -> (i32, i32) {
    %c0_i32 = arith.constant 0 : i32
    %c0_i32_0 = arith.constant 0 : i32
    return %arg0, %c0_i32 : i32, i32
  }
  func.func @transform_2(%arg0: i32) -> (i32, i32) {
    %c0_i32 = arith.constant 0 : i32
    %c0_i32_0 = arith.constant 0 : i32
    return %arg0, %c0_i32 : i32, i32
  }
  func.func @transform_3(%arg0: i32) -> (i32, i32) {
    %c0_i32 = arith.constant 0 : i32
    %c0_i32_0 = arith.constant 0 : i32
    return %arg0, %c0_i32 : i32, i32
  }
  func.func @transform_4(%arg0: i32) -> (i32, i32) {
    %c0_i32 = arith.constant 0 : i32
    %c0_i32_0 = arith.constant 0 : i32
    return %arg0, %c0_i32 : i32, i32
  }
}

module attributes {stable_mosaic.version = 11 : i64} {
  func.func @_matmul_bias_kernel(%arg0: i32, %arg1: i32, %arg2: memref<8x1664xbf16, #tpu.memory_space<vmem>>, %arg3: memref<1664x512xbf16, #tpu.memory_space<vmem>>, %arg4: memref<1x512xf32, #tpu.memory_space<vmem>>, %arg5: memref<8x512xf32, #tpu.memory_space<vmem>>) attributes {dimension_semantics = [#tpu.dimension_semantics<parallel>, #tpu.dimension_semantics<parallel>], iteration_bounds = array<i64: 1, 2>, scalar_prefetch = 0 : i64, scratch_operands = 0 : i64, tpu.core_type = #tpu.core_type<tc>, window_params = [{transform_indices = @transform_0, window_bounds = array<i64: 8, 1664>}, {transform_indices = @transform_1, window_bounds = array<i64: 1664, 512>}, {transform_indices = @transform_2, window_bounds = array<i64: 1, 512>}, {transform_indices = @transform_3, window_bounds = array<i64: 8, 512>}]} {
    %c0 = arith.constant 0 : index
    %c0_0 = arith.constant 0 : index
    %0 = vector.load %arg2[%c0, %c0_0] : memref<8x1664xbf16, #tpu.memory_space<vmem>>, vector<8x1664xbf16>
    %c0_1 = arith.constant 0 : index
    %c0_2 = arith.constant 0 : index
    %1 = vector.load %arg3[%c0_1, %c0_2] : memref<1664x512xbf16, #tpu.memory_space<vmem>>, vector<1664x512xbf16>
    %cst = arith.constant dense<0.000000e+00> : vector<8x512xf32>
    %2 = tpu.matmul %0, %1, %cst {dimension_numbers = #tpu.dot_dimension_numbers<[1], [0], [0], [1], [0, 0, 1, 1], [], []>} : vector<8x1664xbf16>, vector<1664x512xbf16>, vector<8x512xf32> -> vector<8x512xf32>
    %c0_3 = arith.constant 0 : index
    %c0_4 = arith.constant 0 : index
    %3 = vector.load %arg4[%c0_3, %c0_4] : memref<1x512xf32, #tpu.memory_space<vmem>>, vector<1x512xf32>
    %4 = vector.broadcast %3 : vector<1x512xf32> to vector<8x512xf32>
    %5 = arith.addf %2, %4 : vector<8x512xf32>
    %cst_5 = arith.constant 0.000000e+00 : f32
    %6 = vector.broadcast %cst_5 : f32 to vector<8x512xf32>
    %7 = arith.maximumf %5, %6 : vector<8x512xf32>
    %c0_6 = arith.constant 0 : index
    %c0_7 = arith.constant 0 : index
    %8 = vector.load %arg5[%c0_6, %c0_7] : memref<8x512xf32, #tpu.memory_space<vmem>>, vector<8x512xf32>
    tpu.vector_store %arg5[%c0_6, %c0_7], %7 {strides = array<i32>} : memref<8x512xf32, #tpu.memory_space<vmem>>, vector<8x512xf32>,
    return
  }
  func.func @transform_0(%arg0: i32, %arg1: i32) -> (i32, i32) {
    %c0_i32 = arith.constant 0 : i32
    %c0_i32_0 = arith.constant 0 : i32
    return %arg0, %c0_i32 : i32, i32
  }
  func.func @transform_1(%arg0: i32, %arg1: i32) -> (i32, i32) {
    %c0_i32 = arith.constant 0 : i32
    %c0_i32_0 = arith.constant 0 : i32
    return %c0_i32, %arg1 : i32, i32
  }
  func.func @transform_2(%arg0: i32, %arg1: i32) -> (i32, i32) {
    %c0_i32 = arith.constant 0 : i32
    %c0_i32_0 = arith.constant 0 : i32
    return %c0_i32, %arg1 : i32, i32
  }
  func.func @transform_3(%arg0: i32, %arg1: i32) -> (i32, i32) {
    %c0_i32 = arith.constant 0 : i32
    return %arg0, %arg1 : i32, i32
  }
}

module attributes {stable_mosaic.version = 11 : i64} {
  func.func @_matmul_bias_kernel(%arg0: i32, %arg1: i32, %arg2: memref<8x1024xbf16, #tpu.memory_space<vmem>>, %arg3: memref<1024x512xbf16, #tpu.memory_space<vmem>>, %arg4: memref<1x512xf32, #tpu.memory_space<vmem>>, %arg5: memref<8x512xf32, #tpu.memory_space<vmem>>) attributes {dimension_semantics = [#tpu.dimension_semantics<parallel>, #tpu.dimension_semantics<parallel>], iteration_bounds = array<i64: 1, 2>, scalar_prefetch = 0 : i64, scratch_operands = 0 : i64, tpu.core_type = #tpu.core_type<tc>, window_params = [{transform_indices = @transform_0, window_bounds = array<i64: 8, 1024>}, {transform_indices = @transform_1, window_bounds = array<i64: 1024, 512>}, {transform_indices = @transform_2, window_bounds = array<i64: 1, 512>}, {transform_indices = @transform_3, window_bounds = array<i64: 8, 512>}]} {
    %c0 = arith.constant 0 : index
    %c0_0 = arith.constant 0 : index
    %0 = vector.load %arg2[%c0, %c0_0] : memref<8x1024xbf16, #tpu.memory_space<vmem>>, vector<8x1024xbf16>
    %c0_1 = arith.constant 0 : index
    %c0_2 = arith.constant 0 : index
    %1 = vector.load %arg3[%c0_1, %c0_2] : memref<1024x512xbf16, #tpu.memory_space<vmem>>, vector<1024x512xbf16>
    %cst = arith.constant dense<0.000000e+00> : vector<8x512xf32>
    %2 = tpu.matmul %0, %1, %cst {dimension_numbers = #tpu.dot_dimension_numbers<[1], [0], [0], [1], [0, 0, 1, 1], [], []>} : vector<8x1024xbf16>, vector<1024x512xbf16>, vector<8x512xf32> -> vector<8x512xf32>
    %c0_3 = arith.constant 0 : index
    %c0_4 = arith.constant 0 : index
    %3 = vector.load %arg4[%c0_3, %c0_4] : memref<1x512xf32, #tpu.memory_space<vmem>>, vector<1x512xf32>
    %4 = vector.broadcast %3 : vector<1x512xf32> to vector<8x512xf32>
    %5 = arith.addf %2, %4 : vector<8x512xf32>
    %cst_5 = arith.constant 0.000000e+00 : f32
    %6 = vector.broadcast %cst_5 : f32 to vector<8x512xf32>
    %7 = arith.maximumf %5, %6 : vector<8x512xf32>
    %c0_6 = arith.constant 0 : index
    %c0_7 = arith.constant 0 : index
    %8 = vector.load %arg5[%c0_6, %c0_7] : memref<8x512xf32, #tpu.memory_space<vmem>>, vector<8x512xf32>
    tpu.vector_store %arg5[%c0_6, %c0_7], %7 {strides = array<i32>} : memref<8x512xf32, #tpu.memory_space<vmem>>, vector<8x512xf32>,
    return
  }
  func.func @transform_0(%arg0: i32, %arg1: i32) -> (i32, i32) {
    %c0_i32 = arith.constant 0 : i32
    %c0_i32_0 = arith.constant 0 : i32
    return %arg0, %c0_i32 : i32, i32
  }
  func.func @transform_1(%arg0: i32, %arg1: i32) -> (i32, i32) {
    %c0_i32 = arith.constant 0 : i32
    %c0_i32_0 = arith.constant 0 : i32
    return %c0_i32, %arg1 : i32, i32
  }
  func.func @transform_2(%arg0: i32, %arg1: i32) -> (i32, i32) {
    %c0_i32 = arith.constant 0 : i32
    %c0_i32_0 = arith.constant 0 : i32
    return %c0_i32, %arg1 : i32, i32
  }
  func.func @transform_3(%arg0: i32, %arg1: i32) -> (i32, i32) {
    %c0_i32 = arith.constant 0 : i32
    return %arg0, %arg1 : i32, i32
  }
}

module attributes {stable_mosaic.version = 11 : i64} {
  func.func @_matmul_bias_kernel(%arg0: i32, %arg1: i32, %arg2: memref<8x1024xbf16, #tpu.memory_space<vmem>>, %arg3: memref<1024x128xbf16, #tpu.memory_space<vmem>>, %arg4: memref<1x128xf32, #tpu.memory_space<vmem>>, %arg5: memref<8x128xf32, #tpu.memory_space<vmem>>) attributes {dimension_semantics = [#tpu.dimension_semantics<parallel>, #tpu.dimension_semantics<parallel>], iteration_bounds = array<i64: 1, 1>, scalar_prefetch = 0 : i64, scratch_operands = 0 : i64, tpu.core_type = #tpu.core_type<tc>, window_params = [{transform_indices = @transform_0, window_bounds = array<i64: 8, 1024>}, {transform_indices = @transform_1, window_bounds = array<i64: 1024, 128>}, {transform_indices = @transform_2, window_bounds = array<i64: 1, 128>}, {transform_indices = @transform_3, window_bounds = array<i64: 8, 128>}]} {
    %c0 = arith.constant 0 : index
    %c0_0 = arith.constant 0 : index
    %0 = vector.load %arg2[%c0, %c0_0] : memref<8x1024xbf16, #tpu.memory_space<vmem>>, vector<8x1024xbf16>
    %c0_1 = arith.constant 0 : index
    %c0_2 = arith.constant 0 : index
    %1 = vector.load %arg3[%c0_1, %c0_2] : memref<1024x128xbf16, #tpu.memory_space<vmem>>, vector<1024x128xbf16>
    %cst = arith.constant dense<0.000000e+00> : vector<8x128xf32>
    %2 = tpu.matmul %0, %1, %cst {dimension_numbers = #tpu.dot_dimension_numbers<[1], [0], [0], [1], [0, 0, 1, 1], [], []>} : vector<8x1024xbf16>, vector<1024x128xbf16>, vector<8x128xf32> -> vector<8x128xf32>
    %c0_3 = arith.constant 0 : index
    %c0_4 = arith.constant 0 : index
    %3 = vector.load %arg4[%c0_3, %c0_4] : memref<1x128xf32, #tpu.memory_space<vmem>>, vector<1x128xf32>
    %4 = vector.broadcast %3 : vector<1x128xf32> to vector<8x128xf32>
    %5 = arith.addf %2, %4 : vector<8x128xf32>
    %c0_5 = arith.constant 0 : index
    %c0_6 = arith.constant 0 : index
    %6 = vector.load %arg5[%c0_5, %c0_6] : memref<8x128xf32, #tpu.memory_space<vmem>>, vector<8x128xf32>
    tpu.vector_store %arg5[%c0_5, %c0_6], %5 {strides = array<i32>} : memref<8x128xf32, #tpu.memory_space<vmem>>, vector<8x128xf32>,
    return
  }
  func.func @transform_0(%arg0: i32, %arg1: i32) -> (i32, i32) {
    %c0_i32 = arith.constant 0 : i32
    %c0_i32_0 = arith.constant 0 : i32
    return %arg0, %c0_i32 : i32, i32
  }
  func.func @transform_1(%arg0: i32, %arg1: i32) -> (i32, i32) {
    %c0_i32 = arith.constant 0 : i32
    %c0_i32_0 = arith.constant 0 : i32
    return %c0_i32, %arg1 : i32, i32
  }
  func.func @transform_2(%arg0: i32, %arg1: i32) -> (i32, i32) {
    %c0_i32 = arith.constant 0 : i32
    %c0_i32_0 = arith.constant 0 : i32
    return %c0_i32, %arg1 : i32, i32
  }
  func.func @transform_3(%arg0: i32, %arg1: i32) -> (i32, i32) {
    %c0_i32 = arith.constant 0 : i32
    return %arg0, %arg1 : i32, i32
  }
}

</mosaic_0001>

<bundles_post_ra>
// kernel: model_net_forward.7
= control target key start
LH: loop header
LB: loop body
LE: loop exit
PB: predicated region body
PF: predicated region fallthrough
CT: control target
= control target key end

     0   :  { %s970_s12 = smov 0   ;;  %s972_s13 = smov 0   ;;  %s1120_s0 = inlined_call_operand.vmem [shape: bf16[1792,128], index: 0, kind: input, shape index: {}]   ;;  %s1121_s1 = inlined_call_operand.vmem [shape: bf16[128,128], index: 1, kind: input, shape index: {}]   ;;  %s1122_s2 = inlined_call_operand.vmem [shape: f32[1,128], index: 2, kind: input, shape index: {}]   ;;  %s1123_s3 = inlined_call_operand.vmem [shape: f32[1792,128], index: 3, kind: output, shape index: {}]  }
   0x1   :  { %s974_s14 = smov 0  }
   0x2 LB: > { %s25_s15 = sadd.s32 1, %s944_s13  ;;  %p758_p0 = scmp.ge.s32.totalorder %s948_s14, 1  ;;  %s948_s14 = sphi %s974_s14, %s13_s14   ;;  %s944_s13 = sphi %s972_s13, %s1125_s13   ;;  %s940_s12 = sphi %s970_s12, %s1124_s12  }
   0x3   : > { %p27_p1 = scmp.ge.s32.totalorder %s25_s15, 7  ;;  %p169_p2 = scmp.lt.s32.totalorder %s948_s14, 8 }
   0x5   : > { %s1127_s15 = smov (%p27_p1, %s25_s15), 0  ;;  %p170_p3 = pnand %p758_p0, %p169_p2 }
   0x6   : > { %s759_s18 = sshll.u32 (!%p170_p3), %s940_s12, 5 }
   0x7   : > { %173 = sbr.rel (%p170_p3) target bundleno = 273 (0x111), region = 32  ;;  %p204_p4 = scmp.lt.s32.totalorder (!%p170_p3), %s759_s18, 223 }
   0xc   : > { %v902_v0 = vld [vmem:[%s1121_s1 + $0x38] sm:$0xff]   ;;  %v903_v1 = vld [vmem:[%s1121_s1 + $0x30] sm:$0xff]   ;;  %s1129_s18 = smov (!%p204_p4, %s759_s18), 223  ;;  %v904_v2 = vld [vmem:[%s1121_s1 + $0x28] sm:$0xff]  }
   0xd   : > { %814 = vmatprep.subr.bf16.mxu0 %v902_v0  ;;  %862 = vmatprep.subr.bf16.mxu1 %v902_v0  ;;  %s760_s23 = sshll.u32 %s1129_s18, 2  ;;  %v905_v3 = vld [vmem:[%s1121_s1 + $0x20] sm:$0xff]   ;;  %v906_v6 = vld [vmem:[%s1121_s1 + $0x18] sm:$0xff]   ;;  %v907_v7 = vld [vmem:[%s1121_s1 + $0x10] sm:$0xff]   ;;  %s762_s12 = sshll.u32 %s1129_s18, 3 }
   0xe   : > { %815 = vmatpush3.bf16.msra.mxu0 %v902_v0  ;;  %870 = vmatpush3.bf16.msra.mxu1 %v902_v0  ;;  %s1003_s26 = scalar_lea.vmem %s1120_s0, %s760_s23  ;;  %v908_v8 = vld [vmem:[%s1121_s1 + $0x8] sm:$0xff]   ;;  %v909_v9 = vld [vmem:[%s1121_s1] sm:$0xff]   ;;  %s1047_s19 = scalar_lea.vmem %s1123_s3, %s762_s12 }
   0xf   : > { %816 = vmatprep.subr.bf16.mxu0 %v903_v1  ;;  %863 = vmatprep.subr.bf16.mxu1 %v903_v1  ;;  %v910_v4 = vld [vmem:[%s1003_s26] sm:$0xff]   ;;  %v912_v10 = vld [vmem:[%s1003_s26 + $0x8] sm:$0xff]   ;;  %v914_v12 = vld [vmem:[%s1003_s26 + $0x10] sm:$0xff]  }
  0x10   : > { %v911_v5 = vld [vmem:[%s1003_s26 + $0x40] sm:$0xff]   ;;  %830 = vmatprep.mubr.bf16.mxu0 %v910_v4  ;;  %v913_v11 = vld [vmem:[%s1003_s26 + $0x48] sm:$0xff]   ;;  %v915_v13 = vld [vmem:[%s1003_s26 + $0x50] sm:$0xff]  }
  0x11   : > { %846 = vmatprep.mubr.bf16.mxu1 %v911_v5  ;;  %v916_v14 = vld [vmem:[%s1003_s26 + $0x18] sm:$0xff]   ;;  %v918_v16 = vld [vmem:[%s1003_s26 + $0x20] sm:$0xff]   ;;  %v920_v18 = vld [vmem:[%s1003_s26 + $0x28] sm:$0xff]  }
  0x12   : > { %817 = vmatpush3.bf16.msra.mxu0 %v903_v1  ;;  %871 = vmatpush3.bf16.msra.mxu1 %v903_v1  ;;  %v917_v15 = vld [vmem:[%s1003_s26 + $0x58] sm:$0xff]   ;;  %v919_v17 = vld [vmem:[%s1003_s26 + $0x60] sm:$0xff]   ;;  %v921_v19 = vld [vmem:[%s1003_s26 + $0x68] sm:$0xff]  }
  0x13   : > { %818 = vmatprep.subr.bf16.mxu0 %v904_v2  ;;  %864 = vmatprep.subr.bf16.mxu1 %v904_v2  ;;  %v922_v20 = vld [vmem:[%s1003_s26 + $0x30] sm:$0xff]   ;;  %v924_v22 = vld [vmem:[%s1003_s26 + $0x38] sm:$0xff]   ;;  %v1039_v24 = vld [vmem:[%s1122_s2] ss:$0 sm:$0xff] }
  0x14   : > { %v923_v21 = vld [vmem:[%s1003_s26 + $0x70] sm:$0xff]   ;;  %v925_v23 = vld [vmem:[%s1003_s26 + $0x78] sm:$0xff]  }
  0x16   : > { %819 = vmatpush3.bf16.msra.mxu0 %v904_v2  ;;  %872 = vmatpush3.bf16.msra.mxu1 %v904_v2 }
  0x17   : > { %820 = vmatprep.subr.bf16.mxu0 %v905_v3  ;;  %865 = vmatprep.subr.bf16.mxu1 %v905_v3 }
  0x1a   : > { %821 = vmatpush3.bf16.msra.mxu0 %v905_v3  ;;  %873 = vmatpush3.bf16.msra.mxu1 %v905_v3 }
  0x1b   : > { %822 = vmatprep.subr.bf16.mxu0 %v906_v6  ;;  %866 = vmatprep.subr.bf16.mxu1 %v906_v6 }
  0x1e   : > { %823 = vmatpush3.bf16.msra.mxu0 %v906_v6  ;;  %874 = vmatpush3.bf16.msra.mxu1 %v906_v6 }
  0x1f   : > { %824 = vmatprep.subr.bf16.mxu0 %v907_v7  ;;  %867 = vmatprep.subr.bf16.mxu1 %v907_v7 }
  0x22   : > { %825 = vmatpush3.bf16.msra.mxu0 %v907_v7  ;;  %875 = vmatpush3.bf16.msra.mxu1 %v907_v7 }
  0x23   : > { %826 = vmatprep.subr.bf16.mxu0 %v908_v8  ;;  %868 = vmatprep.subr.bf16.mxu1 %v908_v8 }
  0x26   : > { %827 = vmatpush3.bf16.msra.mxu0 %v908_v8  ;;  %876 = vmatpush3.bf16.msra.mxu1 %v908_v8 }
  0x27   : > { %828 = vmatprep.subr.bf16.mxu0 %v909_v9  ;;  %869 = vmatprep.subr.bf16.mxu1 %v909_v9 }
  0x2a   : > { %829 = vmatpush3.bf16.msra.mxu0 %v909_v9  ;;  %877 = vmatpush3.bf16.msra.mxu1 %v909_v9 }
  0x2d   : > { %831 = vmatmul.mubr.bf16.vlgmr.msra.gmra.mxu0 %v912_v10  ;;  %847 = vmatmul.mubr.bf16.vlgmr.msra.gmra.mxu1 %v913_v11 }
  0x2e   : > { %834 = vmatprep.mubr.bf16.mxu0 %v914_v12  ;;  %850 = vmatprep.mubr.bf16.mxu1 %v915_v13 }
  0x35   : > { %835 = vmatmul.mubr.bf16.gmra.mxu0 %v916_v14  ;;  %851 = vmatmul.mubr.bf16.gmra.mxu1 %v917_v15 }
  0x36   : > { %838 = vmatprep.mubr.bf16.mxu0 %v918_v16  ;;  %854 = vmatprep.mubr.bf16.mxu1 %v919_v17 }
  0x3d   : > { %839 = vmatmul.mubr.bf16.gmra.mxu0 %v920_v18  ;;  %855 = vmatmul.mubr.bf16.gmra.mxu1 %v921_v19 }
  0x3e   : > { %842 = vmatprep.mubr.bf16.mxu0 %v922_v20  ;;  %858 = vmatprep.mubr.bf16.mxu1 %v923_v21 }
  0x45   : > { %843 = vmatmul.mubr.bf16.gmra.mxu0 %v924_v22  ;;  %859 = vmatmul.mubr.bf16.gmra.mxu1 %v925_v23 }
  0xed   : > { %v832_v25 = vpop.f32.mrf.mxu0  ;;  %v848_v26 = vpop.f32.mrf.mxu1 }
  0xee   : > { %v468_v27 = vadd.f32 %v832_v25, %v1039_v24  ;;  %v532_v28 = vadd.f32 %v848_v26, %v1039_v24 }
  0xef   : > { %v459_v29 = vpop.f32.mrf.mxu0  ;;  %v523_v30 = vpop.f32.mrf.mxu1 }
  0xf0   : > { %v588_v31 = vmax.f32 %v468_v27, 0.0  ;;  %v604_v32 = vmax.f32 %v532_v28, 0.0  ;;  %v460_v33 = vadd.f32 %v1039_v24, %v459_v29  ;;  %v524_v34 = vadd.f32 %v1039_v24, %v523_v30 }
  0xf1   : > { %v833_v35 = vpop.f32.mrf.mxu0  ;;  %v849_v36 = vpop.f32.mrf.mxu1 }
  0xf2   : > { %620 = vst [vmem:[%s1047_s19 + $0x10] sm:$0xff] %v588_v31  ;;  %636 = vst [vmem:[%s1047_s19 + $0x90] sm:$0xff] %v604_v32  ;;  %v586_v37 = vmax.f32 %v460_v33, 0.0  ;;  %v602_v38 = vmax.f32 %v524_v34, 0.0  ;;  %v471_v39 = vadd.f32 %v833_v35, %v1039_v24  ;;  %v535_v40 = vadd.f32 %v849_v36, %v1039_v24 }
  0xf3   : > { %v462_v41 = vpop.f32.mrf.mxu0  ;;  %v526_v42 = vpop.f32.mrf.mxu1 }
  0xf4   : > { %618 = vst [vmem:[%s1047_s19] sm:$0xff] %v586_v37  ;;  %634 = vst [vmem:[%s1047_s19 + $0x80] sm:$0xff] %v602_v38  ;;  %v589_v43 = vmax.f32 %v471_v39, 0.0  ;;  %v605_v44 = vmax.f32 %v535_v40, 0.0  ;;  %v463_v45 = vadd.f32 %v1039_v24, %v462_v41  ;;  %v527_v46 = vadd.f32 %v1039_v24, %v526_v42 }
  0xf5   : > { %v836_v47 = vpop.f32.mrf.mxu0  ;;  %v852_v48 = vpop.f32.mrf.mxu1 }
  0xf6   : > { %621 = vst [vmem:[%s1047_s19 + $0x18] sm:$0xff] %v589_v43  ;;  %637 = vst [vmem:[%s1047_s19 + $0x98] sm:$0xff] %v605_v44  ;;  %v587_v49 = vmax.f32 %v463_v45, 0.0  ;;  %v603_v50 = vmax.f32 %v527_v46, 0.0  ;;  %v484_v51 = vadd.f32 %v836_v47, %v1039_v24  ;;  %v548_v52 = vadd.f32 %v852_v48, %v1039_v24 }
  0xf7   : > { %v475_v53 = vpop.f32.mrf.mxu0  ;;  %v539_v54 = vpop.f32.mrf.mxu1 }
  0xf8   : > { %619 = vst [vmem:[%s1047_s19 + $0x8] sm:$0xff] %v587_v49  ;;  %635 = vst [vmem:[%s1047_s19 + $0x88] sm:$0xff] %v603_v50  ;;  %v592_v55 = vmax.f32 %v484_v51, 0.0  ;;  %v608_v56 = vmax.f32 %v548_v52, 0.0  ;;  %v476_v57 = vadd.f32 %v1039_v24, %v475_v53  ;;  %v540_v58 = vadd.f32 %v1039_v24, %v539_v54 }
  0xf9   : > { %v837_v59 = vpop.f32.mrf.mxu0  ;;  %v853_v60 = vpop.f32.mrf.mxu1 }
  0xfa   : > { %624 = vst [vmem:[%s1047_s19 + $0x30] sm:$0xff] %v592_v55  ;;  %640 = vst [vmem:[%s1047_s19 + $0xb0] sm:$0xff] %v608_v56  ;;  %v590_v61 = vmax.f32 %v476_v57, 0.0  ;;  %v606_v62 = vmax.f32 %v540_v58, 0.0  ;;  %v487_v63 = vadd.f32 %v837_v59, %v1039_v24  ;;  %v551_v0 = vadd.f32 %v853_v60, %v1039_v24 }
  0xfb   : > { %v478_v1 = vpop.f32.mrf.mxu0  ;;  %v542_v2 = vpop.f32.mrf.mxu1 }
  0xfc   : > { %622 = vst [vmem:[%s1047_s19 + $0x20] sm:$0xff] %v590_v61  ;;  %638 = vst [vmem:[%s1047_s19 + $0xa0] sm:$0xff] %v606_v62  ;;  %v593_v3 = vmax.f32 %v487_v63, 0.0  ;;  %v609_v4 = vmax.f32 %v551_v0, 0.0  ;;  %v479_v5 = vadd.f32 %v1039_v24, %v478_v1  ;;  %v543_v6 = vadd.f32 %v1039_v24, %v542_v2 }
  0xfd   : > { %v840_v7 = vpop.f32.mrf.mxu0  ;;  %v856_v8 = vpop.f32.mrf.mxu1 }
  0xfe   : > { %625 = vst [vmem:[%s1047_s19 + $0x38] sm:$0xff] %v593_v3  ;;  %641 = vst [vmem:[%s1047_s19 + $0xb8] sm:$0xff] %v609_v4  ;;  %v591_v9 = vmax.f32 %v479_v5, 0.0  ;;  %v607_v10 = vmax.f32 %v543_v6, 0.0  ;;  %v500_v11 = vadd.f32 %v840_v7, %v1039_v24  ;;  %v564_v12 = vadd.f32 %v856_v8, %v1039_v24 }
  0xff   : > { %v491_v13 = vpop.f32.mrf.mxu0  ;;  %v555_v14 = vpop.f32.mrf.mxu1 }
 0x100   : > { %623 = vst [vmem:[%s1047_s19 + $0x28] sm:$0xff] %v591_v9  ;;  %639 = vst [vmem:[%s1047_s19 + $0xa8] sm:$0xff] %v607_v10  ;;  %v596_v15 = vmax.f32 %v500_v11, 0.0  ;;  %v612_v16 = vmax.f32 %v564_v12, 0.0  ;;  %v492_v17 = vadd.f32 %v1039_v24, %v491_v13  ;;  %v556_v18 = vadd.f32 %v1039_v24, %v555_v14 }
 0x101   : > { %v841_v19 = vpop.f32.mrf.mxu0  ;;  %v857_v20 = vpop.f32.mrf.mxu1 }
 0x102   : > { %628 = vst [vmem:[%s1047_s19 + $0x50] sm:$0xff] %v596_v15  ;;  %644 = vst [vmem:[%s1047_s19 + $0xd0] sm:$0xff] %v612_v16  ;;  %v594_v21 = vmax.f32 %v492_v17, 0.0  ;;  %v610_v22 = vmax.f32 %v556_v18, 0.0  ;;  %v503_v23 = vadd.f32 %v841_v19, %v1039_v24  ;;  %v567_v25 = vadd.f32 %v857_v20, %v1039_v24 }
 0x103   : > { %v494_v26 = vpop.f32.mrf.mxu0  ;;  %v558_v27 = vpop.f32.mrf.mxu1 }
 0x104   : > { %626 = vst [vmem:[%s1047_s19 + $0x40] sm:$0xff] %v594_v21  ;;  %642 = vst [vmem:[%s1047_s19 + $0xc0] sm:$0xff] %v610_v22  ;;  %v597_v28 = vmax.f32 %v503_v23, 0.0  ;;  %v613_v29 = vmax.f32 %v567_v25, 0.0  ;;  %v495_v30 = vadd.f32 %v1039_v24, %v494_v26  ;;  %v559_v31 = vadd.f32 %v1039_v24, %v558_v27 }
 0x105   : > { %v844_v32 = vpop.f32.mrf.mxu0  ;;  %v860_v33 = vpop.f32.mrf.mxu1 }
 0x106   : > { %629 = vst [vmem:[%s1047_s19 + $0x58] sm:$0xff] %v597_v28  ;;  %645 = vst [vmem:[%s1047_s19 + $0xd8] sm:$0xff] %v613_v29  ;;  %v595_v34 = vmax.f32 %v495_v30, 0.0  ;;  %v611_v35 = vmax.f32 %v559_v31, 0.0  ;;  %v516_v36 = vadd.f32 %v844_v32, %v1039_v24  ;;  %v580_v37 = vadd.f32 %v860_v33, %v1039_v24 }
 0x107   : > { %v507_v38 = vpop.f32.mrf.mxu0  ;;  %v571_v39 = vpop.f32.mrf.mxu1 }
 0x108   : > { %627 = vst [vmem:[%s1047_s19 + $0x48] sm:$0xff] %v595_v34  ;;  %643 = vst [vmem:[%s1047_s19 + $0xc8] sm:$0xff] %v611_v35  ;;  %v600_v40 = vmax.f32 %v516_v36, 0.0  ;;  %v616_v41 = vmax.f32 %v580_v37, 0.0  ;;  %v508_v42 = vadd.f32 %v1039_v24, %v507_v38  ;;  %v572_v43 = vadd.f32 %v1039_v24, %v571_v39 }
 0x109   : > { %v845_v44 = vpop.f32.mrf.mxu0  ;;  %v861_v45 = vpop.f32.mrf.mxu1 }
 0x10a   : > { %632 = vst [vmem:[%s1047_s19 + $0x70] sm:$0xff] %v600_v40  ;;  %648 = vst [vmem:[%s1047_s19 + $0xf0] sm:$0xff] %v616_v41  ;;  %v598_v46 = vmax.f32 %v508_v42, 0.0  ;;  %v614_v47 = vmax.f32 %v572_v43, 0.0  ;;  %v519_v48 = vadd.f32 %v845_v44, %v1039_v24  ;;  %v583_v49 = vadd.f32 %v861_v45, %v1039_v24 }
 0x10b   : > { %v510_v50 = vpop.f32.mrf.mxu0  ;;  %v574_v51 = vpop.f32.mrf.mxu1 }
 0x10c   : > { %630 = vst [vmem:[%s1047_s19 + $0x60] sm:$0xff] %v598_v46  ;;  %646 = vst [vmem:[%s1047_s19 + $0xe0] sm:$0xff] %v614_v47  ;;  %v601_v52 = vmax.f32 %v519_v48, 0.0  ;;  %v617_v53 = vmax.f32 %v583_v49, 0.0  ;;  %v511_v54 = vadd.f32 %v1039_v24, %v510_v50  ;;  %v575_v55 = vadd.f32 %v1039_v24, %v574_v51 }
 0x10e   : > { %633 = vst [vmem:[%s1047_s19 + $0x78] sm:$0xff] %v601_v52  ;;  %649 = vst [vmem:[%s1047_s19 + $0xf8] sm:$0xff] %v617_v53  ;;  %v599_v56 = vmax.f32 %v511_v54, 0.0  ;;  %v615_v57 = vmax.f32 %v575_v55, 0.0 }
 0x110   : > { %631 = vst [vmem:[%s1047_s19 + $0x68] sm:$0xff] %v599_v56  ;;  %647 = vst [vmem:[%s1047_s19 + $0xe8] sm:$0xff] %v615_v57 }
 0x111 PF: > { %s13_s14 = sadd.s32 1, %s948_s14   ;;  %s1124_s12 = smov %s944_s13 }
 0x112   : > { %p10_p5 = scmp.ge.s32.totalorder %s13_s14, 9   ;;  %s1125_s13 = smov %s1127_s15 }
 0x114   :  { %12 = sbr.rel (!%p10_p5) target bundleno = 2 (0x2), region = 68 }

// kernel: model_net_forward.8
= control target key start
LH: loop header
LB: loop body
LE: loop exit
PB: predicated region body
PF: predicated region fallthrough
CT: control target
= control target key end

     0   :  { %s621_s0 = inlined_call_operand.vmem [shape: f32[196,128], index: 0, kind: input, shape index: {}]   ;;  %s622_s1 = inlined_call_operand.vmem [shape: f32[196,128], index: 1, kind: input, shape index: {}]   ;;  %s623_s2 = inlined_call_operand.vmem [shape: f32[196,128], index: 2, kind: input, shape index: {}]   ;;  %s624_s3 = inlined_call_operand.vmem [shape: f32[196,128], index: 3, kind: input, shape index: {}]   ;;  %s625_s4 = inlined_call_operand.vmem [shape: f32[196,128], index: 4, kind: output, shape index: {}]  }
   0x1   :  { %v17_v0 = vld [vmem:[%s621_s0] sm:$0xff]  ;;  %v18_v5 = vld [vmem:[%s621_s0 + $0x8] sm:$0xff]  ;;  %v19_v11 = vld [vmem:[%s621_s0 + $0x10] sm:$0xff] }
   0x2   :  { %v42_v1 = vld [vmem:[%s622_s1] sm:$0xff]  ;;  %v43_v6 = vld [vmem:[%s622_s1 + $0x8] sm:$0xff]  ;;  %v44_v13 = vld [vmem:[%s622_s1 + $0x10] sm:$0xff] }
   0x3   :  { %v92_v2 = vld [vmem:[%s623_s2] sm:$0xff]  ;;  %v67_v3 = vmax.f32 %v17_v0, %v42_v1  ;;  %v68_v8 = vmax.f32 %v18_v5, %v43_v6  ;;  %v93_v9 = vld [vmem:[%s623_s2 + $0x8] sm:$0xff]  ;;  %v94_v14 = vld [vmem:[%s623_s2 + $0x10] sm:$0xff]  ;;  %v69_v17 = vmax.f32 %v19_v11, %v44_v13 }
   0x4   :  { %v117_v4 = vld [vmem:[%s624_s3] sm:$0xff]  ;;  %v118_v10 = vld [vmem:[%s624_s3 + $0x8] sm:$0xff]  ;;  %v119_v15 = vld [vmem:[%s624_s3 + $0x10] sm:$0xff] }
   0x5   :  { %v142_v7 = vmax.f32 %v92_v2, %v117_v4  ;;  %v143_v12 = vmax.f32 %v93_v9, %v118_v10  ;;  %v144_v18 = vmax.f32 %v94_v14, %v119_v15  ;;  %v20_v19 = vld [vmem:[%s621_s0 + $0x18] sm:$0xff]  ;;  %v21_v25 = vld [vmem:[%s621_s0 + $0x20] sm:$0xff]  ;;  %v22_v32 = vld [vmem:[%s621_s0 + $0x28] sm:$0xff] }
   0x6   :  { %v45_v20 = vld [vmem:[%s622_s1 + $0x18] sm:$0xff]  ;;  %v46_v26 = vld [vmem:[%s622_s1 + $0x20] sm:$0xff]  ;;  %v47_v34 = vld [vmem:[%s622_s1 + $0x28] sm:$0xff] }
   0x7   :  { %v167_v16 = vmax.f32 %v67_v3, %v142_v7  ;;  %v95_v21 = vld [vmem:[%s623_s2 + $0x18] sm:$0xff]  ;;  %v168_v22 = vmax.f32 %v68_v8, %v143_v12  ;;  %v70_v23 = vmax.f32 %v20_v19, %v45_v20  ;;  %v169_v27 = vmax.f32 %v69_v17, %v144_v18  ;;  %v96_v30 = vld [vmem:[%s623_s2 + $0x20] sm:$0xff]  ;;  %v97_v35 = vld [vmem:[%s623_s2 + $0x28] sm:$0xff] }
   0x8   :  { %v120_v24 = vld [vmem:[%s624_s3 + $0x18] sm:$0xff]  ;;  %v71_v29 = vmax.f32 %v21_v25, %v46_v26  ;;  %v121_v31 = vld [vmem:[%s624_s3 + $0x20] sm:$0xff]  ;;  %v122_v36 = vld [vmem:[%s624_s3 + $0x28] sm:$0xff]  ;;  %v72_v38 = vmax.f32 %v22_v32, %v47_v34 }
   0x9   :  { %192 = vst [vmem:[%s625_s4] sm:$0xff] %v167_v16  ;;  %v145_v28 = vmax.f32 %v95_v21, %v120_v24  ;;  %193 = vst [vmem:[%s625_s4 + $0x8] sm:$0xff] %v168_v22  ;;  %v146_v33 = vmax.f32 %v96_v30, %v121_v31  ;;  %v147_v39 = vmax.f32 %v97_v35, %v122_v36  ;;  %v23_v40 = vld [vmem:[%s621_s0 + $0x30] sm:$0xff]  ;;  %v24_v46 = vld [vmem:[%s621_s0 + $0x38] sm:$0xff] }
   0xa   :  { %194 = vst [vmem:[%s625_s4 + $0x10] sm:$0xff] %v169_v27  ;;  %v48_v41 = vld [vmem:[%s622_s1 + $0x30] sm:$0xff]  ;;  %v49_v47 = vld [vmem:[%s622_s1 + $0x38] sm:$0xff]  ;;  %v25_v53 = vld [vmem:[%s621_s0 + $0x40] sm:$0xff] }
   0xb   :  { %v170_v37 = vmax.f32 %v70_v23, %v145_v28  ;;  %v98_v42 = vld [vmem:[%s623_s2 + $0x30] sm:$0xff]  ;;  %v171_v43 = vmax.f32 %v71_v29, %v146_v33  ;;  %v73_v44 = vmax.f32 %v23_v40, %v48_v41  ;;  %v172_v48 = vmax.f32 %v72_v38, %v147_v39  ;;  %v99_v51 = vld [vmem:[%s623_s2 + $0x38] sm:$0xff]  ;;  %v50_v55 = vld [vmem:[%s622_s1 + $0x40] sm:$0xff] }
   0xc   :  { %v123_v45 = vld [vmem:[%s624_s3 + $0x30] sm:$0xff]  ;;  %v74_v50 = vmax.f32 %v24_v46, %v49_v47  ;;  %v124_v52 = vld [vmem:[%s624_s3 + $0x38] sm:$0xff]  ;;  %v100_v56 = vld [vmem:[%s623_s2 + $0x40] sm:$0xff]  ;;  %v75_v59 = vmax.f32 %v25_v53, %v50_v55 }
   0xd   :  { %195 = vst [vmem:[%s625_s4 + $0x18] sm:$0xff] %v170_v37  ;;  %v148_v49 = vmax.f32 %v98_v42, %v123_v45  ;;  %196 = vst [vmem:[%s625_s4 + $0x20] sm:$0xff] %v171_v43  ;;  %v149_v54 = vmax.f32 %v99_v51, %v124_v52  ;;  %v125_v57 = vld [vmem:[%s624_s3 + $0x40] sm:$0xff]  ;;  %v26_v61 = vld [vmem:[%s621_s0 + $0x48] sm:$0xff] }
   0xe   :  { %197 = vst [vmem:[%s625_s4 + $0x28] sm:$0xff] %v172_v48  ;;  %v150_v60 = vmax.f32 %v100_v56, %v125_v57  ;;  %v51_v62 = vld [vmem:[%s622_s1 + $0x48] sm:$0xff]  ;;  %v27_v3 = vld [vmem:[%s621_s0 + $0x50] sm:$0xff]  ;;  %v28_v10 = vld [vmem:[%s621_s0 + $0x58] sm:$0xff] }
   0xf   :  { %v173_v58 = vmax.f32 %v73_v44, %v148_v49  ;;  %v101_v63 = vld [vmem:[%s623_s2 + $0x48] sm:$0xff]  ;;  %v174_v0 = vmax.f32 %v74_v50, %v149_v54  ;;  %v76_v1 = vmax.f32 %v26_v61, %v51_v62  ;;  %v52_v4 = vld [vmem:[%s622_s1 + $0x50] sm:$0xff]  ;;  %v53_v12 = vld [vmem:[%s622_s1 + $0x58] sm:$0xff] }
  0x10   :  { %v126_v2 = vld [vmem:[%s624_s3 + $0x48] sm:$0xff]  ;;  %v175_v5 = vmax.f32 %v75_v59, %v150_v60  ;;  %v77_v7 = vmax.f32 %v27_v3, %v52_v4  ;;  %v102_v8 = vld [vmem:[%s623_s2 + $0x50] sm:$0xff]  ;;  %v103_v13 = vld [vmem:[%s623_s2 + $0x58] sm:$0xff]  ;;  %v78_v16 = vmax.f32 %v28_v10, %v53_v12 }
  0x11   :  { %198 = vst [vmem:[%s625_s4 + $0x30] sm:$0xff] %v173_v58  ;;  %v151_v6 = vmax.f32 %v101_v63, %v126_v2  ;;  %v127_v9 = vld [vmem:[%s624_s3 + $0x50] sm:$0xff]  ;;  %199 = vst [vmem:[%s625_s4 + $0x38] sm:$0xff] %v174_v0  ;;  %v128_v14 = vld [vmem:[%s624_s3 + $0x58] sm:$0xff] }
  0x12   :  { %v152_v11 = vmax.f32 %v102_v8, %v127_v9  ;;  %200 = vst [vmem:[%s625_s4 + $0x40] sm:$0xff] %v175_v5  ;;  %v153_v17 = vmax.f32 %v103_v13, %v128_v14  ;;  %v29_v18 = vld [vmem:[%s621_s0 + $0x60] sm:$0xff]  ;;  %v30_v24 = vld [vmem:[%s621_s0 + $0x68] sm:$0xff]  ;;  %v31_v31 = vld [vmem:[%s621_s0 + $0x70] sm:$0xff] }
  0x13   :  { %v176_v15 = vmax.f32 %v76_v1, %v151_v6  ;;  %v54_v19 = vld [vmem:[%s622_s1 + $0x60] sm:$0xff]  ;;  %v55_v25 = vld [vmem:[%s622_s1 + $0x68] sm:$0xff]  ;;  %v56_v33 = vld [vmem:[%s622_s1 + $0x70] sm:$0xff] }
  0x14   :  { %v104_v20 = vld [vmem:[%s623_s2 + $0x60] sm:$0xff]  ;;  %v177_v21 = vmax.f32 %v77_v7, %v152_v11  ;;  %v79_v22 = vmax.f32 %v29_v18, %v54_v19  ;;  %v178_v26 = vmax.f32 %v78_v16, %v153_v17  ;;  %v80_v28 = vmax.f32 %v30_v24, %v55_v25  ;;  %v105_v29 = vld [vmem:[%s623_s2 + $0x68] sm:$0xff]  ;;  %v106_v34 = vld [vmem:[%s623_s2 + $0x70] sm:$0xff] }
  0x15   :  { %v129_v23 = vld [vmem:[%s624_s3 + $0x60] sm:$0xff]  ;;  %201 = vst [vmem:[%s625_s4 + $0x48] sm:$0xff] %v176_v15  ;;  %v130_v30 = vld [vmem:[%s624_s3 + $0x68] sm:$0xff]  ;;  %v131_v35 = vld [vmem:[%s624_s3 + $0x70] sm:$0xff]  ;;  %v81_v37 = vmax.f32 %v31_v31, %v56_v33 }
  0x16   :  { %v154_v27 = vmax.f32 %v104_v20, %v129_v23  ;;  %202 = vst [vmem:[%s625_s4 + $0x50] sm:$0xff] %v177_v21  ;;  %v155_v32 = vmax.f32 %v105_v29, %v130_v30  ;;  %203 = vst [vmem:[%s625_s4 + $0x58] sm:$0xff] %v178_v26  ;;  %v156_v38 = vmax.f32 %v106_v34, %v131_v35  ;;  %v32_v39 = vld [vmem:[%s621_s0 + $0x78] sm:$0xff]  ;;  %v33_v45 = vld [vmem:[%s621_s0 + $0x80] sm:$0xff] }
  0x17   :  { %v57_v40 = vld [vmem:[%s622_s1 + $0x78] sm:$0xff]  ;;  %v58_v46 = vld [vmem:[%s622_s1 + $0x80] sm:$0xff]  ;;  %v34_v52 = vld [vmem:[%s621_s0 + $0x88] sm:$0xff] }
  0x18   :  { %v179_v36 = vmax.f32 %v79_v22, %v154_v27  ;;  %v107_v41 = vld [vmem:[%s623_s2 + $0x78] sm:$0xff]  ;;  %v180_v42 = vmax.f32 %v80_v28, %v155_v32  ;;  %v82_v43 = vmax.f32 %v32_v39, %v57_v40  ;;  %v181_v47 = vmax.f32 %v81_v37, %v156_v38  ;;  %v108_v50 = vld [vmem:[%s623_s2 + $0x80] sm:$0xff]  ;;  %v59_v54 = vld [vmem:[%s622_s1 + $0x88] sm:$0xff] }
  0x19   :  { %v132_v44 = vld [vmem:[%s624_s3 + $0x78] sm:$0xff]  ;;  %v83_v49 = vmax.f32 %v33_v45, %v58_v46  ;;  %v133_v51 = vld [vmem:[%s624_s3 + $0x80] sm:$0xff]  ;;  %v109_v55 = vld [vmem:[%s623_s2 + $0x88] sm:$0xff]  ;;  %v84_v58 = vmax.f32 %v34_v52, %v59_v54 }
  0x1a   :  { %204 = vst [vmem:[%s625_s4 + $0x60] sm:$0xff] %v179_v36  ;;  %v157_v48 = vmax.f32 %v107_v41, %v132_v44  ;;  %205 = vst [vmem:[%s625_s4 + $0x68] sm:$0xff] %v180_v42  ;;  %v158_v53 = vmax.f32 %v108_v50, %v133_v51  ;;  %v134_v56 = vld [vmem:[%s624_s3 + $0x88] sm:$0xff]  ;;  %v35_v60 = vld [vmem:[%s621_s0 + $0x90] sm:$0xff] }
  0x1b   :  { %206 = vst [vmem:[%s625_s4 + $0x70] sm:$0xff] %v181_v47  ;;  %v159_v59 = vmax.f32 %v109_v55, %v134_v56  ;;  %v60_v61 = vld [vmem:[%s622_s1 + $0x90] sm:$0xff]  ;;  %v36_v2 = vld [vmem:[%s621_s0 + $0x98] sm:$0xff]  ;;  %v37_v9 = vld [vmem:[%s621_s0 + $0xa0] sm:$0xff] }
  0x1c   :  { %v182_v57 = vmax.f32 %v82_v43, %v157_v48  ;;  %v110_v62 = vld [vmem:[%s623_s2 + $0x90] sm:$0xff]  ;;  %v183_v63 = vmax.f32 %v83_v49, %v158_v53  ;;  %v85_v0 = vmax.f32 %v35_v60, %v60_v61  ;;  %v61_v3 = vld [vmem:[%s622_s1 + $0x98] sm:$0xff]  ;;  %v62_v11 = vld [vmem:[%s622_s1 + $0xa0] sm:$0xff] }
  0x1d   :  { %v135_v1 = vld [vmem:[%s624_s3 + $0x90] sm:$0xff]  ;;  %v184_v4 = vmax.f32 %v84_v58, %v159_v59  ;;  %v86_v6 = vmax.f32 %v36_v2, %v61_v3  ;;  %v111_v7 = vld [vmem:[%s623_s2 + $0x98] sm:$0xff]  ;;  %v112_v12 = vld [vmem:[%s623_s2 + $0xa0] sm:$0xff]  ;;  %v87_v15 = vmax.f32 %v37_v9, %v62_v11 }
  0x1e   :  { %207 = vst [vmem:[%s625_s4 + $0x78] sm:$0xff] %v182_v57  ;;  %v160_v5 = vmax.f32 %v110_v62, %v135_v1  ;;  %v136_v8 = vld [vmem:[%s624_s3 + $0x98] sm:$0xff]  ;;  %208 = vst [vmem:[%s625_s4 + $0x80] sm:$0xff] %v183_v63  ;;  %v137_v13 = vld [vmem:[%s624_s3 + $0xa0] sm:$0xff] }
  0x1f   :  { %v161_v10 = vmax.f32 %v111_v7, %v136_v8  ;;  %209 = vst [vmem:[%s625_s4 + $0x88] sm:$0xff] %v184_v4  ;;  %v162_v16 = vmax.f32 %v112_v12, %v137_v13  ;;  %v38_v17 = vld [vmem:[%s621_s0 + $0xa8] sm:$0xff]  ;;  %v39_v23 = vld [vmem:[%s621_s0 + $0xb0] sm:$0xff]  ;;  %v40_v30 = vld [vmem:[%s621_s0 + $0xb8] sm:$0xff] }
  0x20   :  { %v185_v14 = vmax.f32 %v85_v0, %v160_v5  ;;  %v63_v18 = vld [vmem:[%s622_s1 + $0xa8] sm:$0xff]  ;;  %v64_v24 = vld [vmem:[%s622_s1 + $0xb0] sm:$0xff]  ;;  %v65_v32 = vld [vmem:[%s622_s1 + $0xb8] sm:$0xff] }
  0x21   :  { %v113_v19 = vld [vmem:[%s623_s2 + $0xa8] sm:$0xff]  ;;  %v186_v20 = vmax.f32 %v86_v6, %v161_v10  ;;  %v88_v21 = vmax.f32 %v38_v17, %v63_v18  ;;  %v187_v25 = vmax.f32 %v87_v15, %v162_v16  ;;  %v89_v27 = vmax.f32 %v39_v23, %v64_v24  ;;  %v114_v28 = vld [vmem:[%s623_s2 + $0xb0] sm:$0xff]  ;;  %v115_v33 = vld [vmem:[%s623_s2 + $0xb8] sm:$0xff] }
  0x22   :  { %v138_v22 = vld [vmem:[%s624_s3 + $0xa8] sm:$0xff]  ;;  %210 = vst [vmem:[%s625_s4 + $0x90] sm:$0xff] %v185_v14  ;;  %v139_v29 = vld [vmem:[%s624_s3 + $0xb0] sm:$0xff]  ;;  %v140_v34 = vld [vmem:[%s624_s3 + $0xb8] sm:$0xff]  ;;  %v90_v36 = vmax.f32 %v40_v30, %v65_v32 }
  0x23   :  { %v163_v26 = vmax.f32 %v113_v19, %v138_v22  ;;  %211 = vst [vmem:[%s625_s4 + $0x98] sm:$0xff] %v186_v20  ;;  %v164_v31 = vmax.f32 %v114_v28, %v139_v29  ;;  %212 = vst [vmem:[%s625_s4 + $0xa0] sm:$0xff] %v187_v25  ;;  %v165_v37 = vmax.f32 %v115_v33, %v140_v34  ;;  %v41_v38 = vld [vmem:[%s621_s0 + $0xc0] sm:$0xf] }
  0x24   :  { %v66_v39 = vld [vmem:[%s622_s1 + $0xc0] sm:$0xf] }
  0x25   :  { %v188_v35 = vmax.f32 %v88_v21, %v163_v26  ;;  %v116_v40 = vld [vmem:[%s623_s2 + $0xc0] sm:$0xf]  ;;  %v189_v41 = vmax.f32 %v89_v27, %v164_v31  ;;  %v91_v42 = vmax.f32 %v41_v38, %v66_v39  ;;  %v190_v44 = vmax.f32 %v90_v36, %v165_v37 }
  0x26   :  { %v141_v43 = vld [vmem:[%s624_s3 + $0xc0] sm:$0xf] }
  0x27   :  { %213 = vst [vmem:[%s625_s4 + $0xa8] sm:$0xff] %v188_v35  ;;  %v166_v45 = vmax.f32 %v116_v40, %v141_v43  ;;  %214 = vst [vmem:[%s625_s4 + $0xb0] sm:$0xff] %v189_v41 }
  0x28   :  { %215 = vst [vmem:[%s625_s4 + $0xb8] sm:$0xff] %v190_v44 }
  0x29   :  { %v191_v46 = vmax.f32 %v91_v42, %v166_v45 }
  0x2b   :  { %216 = vst [vmem:[%s625_s4 + $0xc0] sm:$0xf] %v191_v46 }

// kernel: model_net_forward.9
= control target key start
LH: loop header
LB: loop body
LE: loop exit
PB: predicated region body
PF: predicated region fallthrough
CT: control target
= control target key end

     0   :  { %s6509_s1 = inlined_call_operand.vmem [shape: bf16[1664,128], index: 1, kind: input, shape index: {}]   ;;  %s6510_s0 = inlined_call_operand.vmem [shape: bf16[256,1664], index: 0, kind: input, shape index: {}]   ;;  %s6511_s2 = inlined_call_operand.vmem [shape: f32[1,128], index: 2, kind: input, shape index: {}]   ;;  %s6512_s3 = inlined_call_operand.vmem [shape: f32[256,128], index: 3, kind: output, shape index: {}]  }
   0x1   :  { %v4402_v0 = vld [vmem:[%s6509_s1 + $0x78] sm:$0xff]   ;;  %v4404_v2 = vld [vmem:[%s6509_s1 + $0x70] sm:$0xff]   ;;  %v4406_v4 = vld [vmem:[%s6509_s1 + $0x68] sm:$0xff]  }
   0x2   :  { %v4403_v1 = vld [vmem:[%s6509_s1 + $0x38] sm:$0xff]   ;;  %3642 = vmatprep.subr.bf16.mxu0 %v4402_v0  ;;  %4386 = vmatprep.subr.bf16.mxu1 %v4402_v0  ;;  %v4405_v3 = vld [vmem:[%s6509_s1 + $0x30] sm:$0xff]   ;;  %v4407_v5 = vld [vmem:[%s6509_s1 + $0x28] sm:$0xff]  }
   0x3   :  { %3643 = vmatpush3.bf16.msra.mxu0 %v4403_v1  ;;  %4394 = vmatpush3.bf16.msra.mxu1 %v4403_v1  ;;  %v4408_v6 = vld [vmem:[%s6509_s1 + $0x60] sm:$0xff]   ;;  %v4410_v8 = vld [vmem:[%s6509_s1 + $0x58] sm:$0xff]   ;;  %v4412_v10 = vld [vmem:[%s6509_s1 + $0x50] sm:$0xff]  }
   0x4   :  { %3644 = vmatprep.subr.bf16.mxu0 %v4404_v2  ;;  %4387 = vmatprep.subr.bf16.mxu1 %v4404_v2  ;;  %v4409_v7 = vld [vmem:[%s6509_s1 + $0x20] sm:$0xff]   ;;  %v4411_v9 = vld [vmem:[%s6509_s1 + $0x18] sm:$0xff]   ;;  %v4413_v13 = vld [vmem:[%s6509_s1 + $0x10] sm:$0xff]  }
   0x5   :  { %v4420_v11 = vld [vmem:[%s6510_s0 + $0x4] ss:$52 sps:$4 sm:$0xff]   ;;  %v4414_v14 = vld [vmem:[%s6509_s1 + $0x48] sm:$0xff]   ;;  %v4418_v19 = vld [vmem:[%s6510_s0] ss:$52 sps:$4 sm:$0xff]  }
   0x6   :  { %v4423_v12 = vld [vmem:[%s6510_s0 + $0x4e4] ss:$52 sps:$4 sm:$0xff]   ;;  %2166 = vmatprep.mubr.bf16.mxu0 %v4420_v11  ;;  %v4415_v15 = vld [vmem:[%s6509_s1 + $0x8] sm:$0xff]   ;;  %v4421_v20 = vld [vmem:[%s6510_s0 + $0x4e0] ss:$52 sps:$4 sm:$0xff]  }
   0x7   :  { %3645 = vmatpush3.bf16.msra.mxu0 %v4405_v3  ;;  %4395 = vmatpush3.bf16.msra.mxu1 %v4405_v3  ;;  %v4416_v16 = vld [vmem:[%s6509_s1 + $0x40] sm:$0xff]   ;;  %v4424_v18 = vld [vmem:[%s6509_s1 + $0xf8] sm:$0xff]   ;;  %v4426_v23 = vld [vmem:[%s6509_s1 + $0xf0] sm:$0xff]  }
   0x8   :  { %3646 = vmatprep.subr.bf16.mxu0 %v4406_v4  ;;  %4388 = vmatprep.subr.bf16.mxu1 %v4406_v4  ;;  %v4417_v17 = vld [vmem:[%s6509_s1] sm:$0xff]   ;;  %v4427_v21 = vld [vmem:[%s6509_s1 + $0x178] sm:$0xff]   ;;  %v4428_v27 = vld [vmem:[%s6509_s1 + $0xb0] sm:$0xff]  }
   0x9   :  { %2262 = vmatprep.mubr.bf16.mxu1 %v4423_v12  ;;  %v4425_v22 = vld [vmem:[%s6509_s1 + $0xb8] sm:$0xff]   ;;  %v4430_v25 = vld [vmem:[%s6510_s0 + $0x6c] ss:$52 sps:$4 sm:$0xff]   ;;  %v4447_v28 = vld [vmem:[%s6509_s1 + $0x170] sm:$0xff]  }
   0xa   :  { %v4429_v24 = vld [vmem:[%s6509_s1 + $0x138] sm:$0xff]   ;;  %v4432_v26 = vld [vmem:[%s6510_s0 + $0x54c] ss:$52 sps:$4 sm:$0xff]   ;;  %v4449_v33 = vld [vmem:[%s6509_s1 + $0x130] sm:$0xff]  }
   0xb   :  { %3647 = vmatpush3.bf16.msra.mxu0 %v4407_v5  ;;  %4396 = vmatpush3.bf16.msra.mxu1 %v4407_v5  ;;  %v4434_v29 = vld [vmem:[%s6510_s0 + $0x68] ss:$52 sps:$4 sm:$0xff]   ;;  %v4438_v34 = vld [vmem:[%s6509_s1 + $0xe0] sm:$0xff]   ;;  %v4450_v42 = vld [vmem:[%s6509_s1 + $0xd0] sm:$0xff]  }
   0xc   :  { %3648 = vmatprep.subr.bf16.mxu0 %v4408_v6  ;;  %4389 = vmatprep.subr.bf16.mxu1 %v4408_v6  ;;  %v4435_v30 = vld [vmem:[%s6510_s0 + $0x548] ss:$52 sps:$4 sm:$0xff]   ;;  %v4439_v37 = vld [vmem:[%s6509_s1 + $0xa0] sm:$0xff]   ;;  %v4451_v47 = vld [vmem:[%s6509_s1 + $0x90] sm:$0xff]  }
   0xd   :  { %v4436_v31 = vld [vmem:[%s6509_s1 + $0xe8] sm:$0xff]   ;;  %v4444_v38 = vld [vmem:[%s6510_s0 + $0xd0] ss:$52 sps:$4 sm:$0xff]   ;;  %v4446_v40 = vld [vmem:[%s6509_s1 + $0xd8] sm:$0xff]  }
   0xe   :  { %v4437_v32 = vld [vmem:[%s6509_s1 + $0xa8] sm:$0xff]   ;;  %v4445_v39 = vld [vmem:[%s6510_s0 + $0x5b0] ss:$52 sps:$4 sm:$0xff]   ;;  %v4448_v41 = vld [vmem:[%s6509_s1 + $0x98] sm:$0xff]  }
   0xf   :  { %3649 = vmatpush3.bf16.msra.mxu0 %v4409_v7  ;;  %4397 = vmatpush3.bf16.msra.mxu1 %v4409_v7  ;;  %v4440_v35 = vld [vmem:[%s6510_s0 + $0xd4] ss:$52 sps:$4 sm:$0xff]   ;;  %v4452_v44 = vld [vmem:[%s6510_s0 + $0x13c] ss:$52 sps:$4 sm:$0xff]   ;;  %v4456_v49 = vld [vmem:[%s6510_s0 + $0x138] ss:$52 sps:$4 sm:$0xff]  }
  0x10   :  { %3650 = vmatprep.subr.bf16.mxu0 %v4410_v8  ;;  %4390 = vmatprep.subr.bf16.mxu1 %v4410_v8  ;;  %v4442_v36 = vld [vmem:[%s6510_s0 + $0x5b4] ss:$52 sps:$4 sm:$0xff]   ;;  %v4454_v45 = vld [vmem:[%s6510_s0 + $0x61c] ss:$52 sps:$4 sm:$0xff]   ;;  %v4457_v50 = vld [vmem:[%s6510_s0 + $0x618] ss:$52 sps:$4 sm:$0xff]  }
  0x11   :  { %v4461_v43 = vld [vmem:[%s6509_s1 + $0x168] sm:$0xff]   ;;  %v4460_v52 = vld [vmem:[%s6509_s1 + $0xc0] sm:$0xff]   ;;  %v4470_v60 = vld [vmem:[%s6509_s1 + $0x1f8] sm:$0xff]  }
  0x12   :  { %v4463_v46 = vld [vmem:[%s6509_s1 + $0x128] sm:$0xff]   ;;  %v4464_v53 = vld [vmem:[%s6510_s0 + $0x1a4] ss:$52 sps:$4 sm:$0xff]   ;;  %v4469_v59 = vld [vmem:[%s6510_s0 + $0x1a0] ss:$52 sps:$4 sm:$0xff]  }
  0x13   :  { %3651 = vmatpush3.bf16.msra.mxu0 %v4411_v9  ;;  %4398 = vmatpush3.bf16.msra.mxu1 %v4411_v9  ;;  %v4458_v48 = vld [vmem:[%s6509_s1 + $0xc8] sm:$0xff]   ;;  %v4478_v55 = vld [vmem:[%s6509_s1 + $0x160] sm:$0xff]   ;;  %v4471_v61 = vld [vmem:[%s6509_s1 + $0x1b8] sm:$0xff]  }
  0x14   :  { %3652 = vmatprep.subr.bf16.mxu0 %v4412_v10  ;;  %4391 = vmatprep.subr.bf16.mxu1 %v4412_v10  ;;  %v4459_v51 = vld [vmem:[%s6509_s1 + $0x88] sm:$0xff]   ;;  %v4479_v56 = vld [vmem:[%s6509_s1 + $0x120] sm:$0xff]   ;;  %v4488_v0 = vld [vmem:[%s6509_s1 + $0x158] sm:$0xff]  }
  0x15   :  { %v4468_v54 = vld [vmem:[%s6510_s0 + $0xc] ss:$52 sps:$4 sm:$0xff]   ;;  %v4466_v58 = vld [vmem:[%s6510_s0 + $0x8] ss:$52 sps:$4 sm:$0xff]   ;;  %v4486_v1 = vld [vmem:[%s6509_s1 + $0x1f0] sm:$0xff]  }
  0x16   :  { %v4462_v57 = vld [vmem:[%s6509_s1 + $0x80] sm:$0xff]   ;;  %v4474_v63 = vld [vmem:[%s6510_s0 + $0x74] ss:$52 sps:$4 sm:$0xff]   ;;  %v4489_v2 = vld [vmem:[%s6509_s1 + $0x118] sm:$0xff]  }
  0x17   :  { %3653 = vmatpush3.bf16.msra.mxu0 %v4413_v13  ;;  %4399 = vmatpush3.bf16.msra.mxu1 %v4413_v13  ;;  %v4472_v62 = vld [vmem:[%s6510_s0 + $0x20c] ss:$52 sps:$4 sm:$0xff]   ;;  %v4487_v3 = vld [vmem:[%s6509_s1 + $0x1b0] sm:$0xff]   ;;  %v4476_v4 = vld [vmem:[%s6510_s0 + $0x208] ss:$52 sps:$4 sm:$0xff]  }
  0x18   :  { %3654 = vmatprep.subr.bf16.mxu0 %v4414_v14  ;;  %4392 = vmatprep.subr.bf16.mxu1 %v4414_v14  ;;  %v4477_v5 = vld [vmem:[%s6510_s0 + $0x70] ss:$52 sps:$4 sm:$0xff]   ;;  %v4480_v6 = vld [vmem:[%s6510_s0 + $0x274] ss:$52 sps:$4 sm:$0xff]   ;;  %v4485_v13 = vld [vmem:[%s6510_s0 + $0xd8] ss:$52 sps:$4 sm:$0xff]  }
  0x19   :  { %v4482_v7 = vld [vmem:[%s6510_s0 + $0xdc] ss:$52 sps:$4 sm:$0xff]   ;;  %v4503_v9 = vld [vmem:[%s6509_s1 + $0x1e8] sm:$0xff]  }
  0x1a   :  { %v4502_v8 = vld [vmem:[%s6509_s1 + $0x150] sm:$0xff]   ;;  %v4505_v11 = vld [vmem:[%s6509_s1 + $0x1a8] sm:$0xff]  }
  0x1b   :  { %3655 = vmatpush3.bf16.msra.mxu0 %v4415_v15  ;;  %4400 = vmatpush3.bf16.msra.mxu1 %v4415_v15  ;;  %v4504_v10 = vld [vmem:[%s6509_s1 + $0x110] sm:$0xff]   ;;  %v4512_v15 = vld [vmem:[%s6509_s1 + $0x148] sm:$0xff]  }
  0x1c   :  { %3656 = vmatprep.subr.bf16.mxu0 %v4416_v16  ;;  %4393 = vmatprep.subr.bf16.mxu1 %v4416_v16  ;;  %v4484_v12 = vld [vmem:[%s6510_s0 + $0x270] ss:$52 sps:$4 sm:$0xff]   ;;  %v4513_v16 = vld [vmem:[%s6509_s1 + $0x108] sm:$0xff]  }
  0x1d   :  { %v4490_v14 = vld [vmem:[%s6510_s0 + $0x2dc] ss:$52 sps:$4 sm:$0xff]  }
  0x1f   :  { %3657 = vmatpush3.bf16.msra.mxu0 %v4417_v17  ;;  %4401 = vmatpush3.bf16.msra.mxu1 %v4417_v17  ;;  %v4492_v17 = vld [vmem:[%s6510_s0 + $0x144] ss:$52 sps:$4 sm:$0xff]  }
  0x20   :  { %3754 = vmatprep.subr.bf16.mxu1 %v4424_v18  ;;  %3866 = vmatprep.subr.bf16.mxu0 %v4427_v21  ;;  %v4520_v18 = vld [vmem:[%s6509_s1 + $0x1e0] sm:$0xff]  }
  0x21   :  { %v4495_v21 = vld [vmem:[%s6510_s0 + $0x140] ss:$52 sps:$4 sm:$0xff]  }
  0x22   :  { %2167 = vmatmul.mubr.bf16.vlgmr.msra.gmra.mxu0 %v4418_v19  ;;  %2263 = vmatmul.mubr.bf16.vlgmr.msra.gmra.mxu1 %v4421_v20  ;;  %v4521_v19 = vld [vmem:[%s6509_s1 + $0x1a0] sm:$0xff]   ;;  %v4494_v20 = vld [vmem:[%s6510_s0 + $0x2d8] ss:$52 sps:$4 sm:$0xff]  }
  0x23   :  { %3755 = vmatpush3.bf16.msra.mxu1 %v4425_v22  ;;  %3867 = vmatpush3.bf16.msra.mxu0 %v4429_v24  ;;  %v4496_v22 = vld [vmem:[%s6510_s0 + $0x344] ss:$52 sps:$4 sm:$0xff]  }
  0x24   :  { %3756 = vmatprep.subr.bf16.mxu1 %v4426_v23  ;;  %2174 = vmatprep.mubr.bf16.mxu0 %v4430_v25  ;;  %v4498_v23 = vld [vmem:[%s6510_s0 + $0x1ac] ss:$52 sps:$4 sm:$0xff]  }
  0x25   :  { %2270 = vmatprep.mubr.bf16.mxu1 %v4432_v26  ;;  %3868 = vmatprep.subr.bf16.mxu0 %v4447_v28  ;;  %v4528_v24 = vld [vmem:[%s6509_s1 + $0x140] sm:$0xff]   ;;  %v4536_v26 = vld [vmem:[%s6509_s1 + $0x1d8] sm:$0xff]  }
  0x26   :  { %v4529_v25 = vld [vmem:[%s6509_s1 + $0x100] sm:$0xff]   ;;  %v4501_v28 = vld [vmem:[%s6510_s0 + $0x1a8] ss:$52 sps:$4 sm:$0xff]  }
  0x27   :  { %3757 = vmatpush3.bf16.msra.mxu1 %v4428_v27  ;;  %3869 = vmatpush3.bf16.msra.mxu0 %v4449_v33  ;;  %v4500_v27 = vld [vmem:[%s6510_s0 + $0x340] ss:$52 sps:$4 sm:$0xff]   ;;  %v4510_v33 = vld [vmem:[%s6510_s0 + $0x3a8] ss:$52 sps:$4 sm:$0xff]  }
  0x28   :  { %3758 = vmatprep.subr.bf16.mxu1 %v4436_v31  ;;  %3870 = vmatprep.subr.bf16.mxu0 %v4461_v43  ;;  %v4506_v31 = vld [vmem:[%s6510_s0 + $0x3ac] ss:$52 sps:$4 sm:$0xff]  }
  0x29   :  { %v4568_v43 = vld [vmem:[%s6509_s1 + $0x1c8] sm:$0xff]  }
  0x2a   :  { %2175 = vmatmul.mubr.bf16.gmra.mxu0 %v4434_v29  ;;  %2271 = vmatmul.mubr.bf16.gmra.mxu1 %v4435_v30  ;;  %v4537_v29 = vld [vmem:[%s6509_s1 + $0x198] sm:$0xff]  }
  0x2b   :  { %3759 = vmatpush3.bf16.msra.mxu1 %v4437_v32  ;;  %2182 = vmatprep.mubr.bf16.mxu0 %v4440_v35  ;;  %v4538_v30 = vld [vmem:[%s6509_s1 + $0x278] sm:$0xff]   ;;  %v4508_v32 = vld [vmem:[%s6510_s0 + $0x214] ss:$52 sps:$4 sm:$0xff]  }
  0x2c   :  { %3760 = vmatprep.subr.bf16.mxu1 %v4438_v34  ;;  %2278 = vmatprep.mubr.bf16.mxu1 %v4442_v36  ;;  %v4511_v34 = vld [vmem:[%s6510_s0 + $0x210] ss:$52 sps:$4 sm:$0xff]  }
  0x2d   :  { %3871 = vmatpush3.bf16.msra.mxu0 %v4463_v46  ;;  %v4552_v35 = vld [vmem:[%s6509_s1 + $0x1d0] sm:$0xff]  }
  0x2e   :  { %3872 = vmatprep.subr.bf16.mxu0 %v4478_v55  ;;  %v4553_v36 = vld [vmem:[%s6509_s1 + $0x190] sm:$0xff]  }
  0x2f   :  { %3761 = vmatpush3.bf16.msra.mxu1 %v4439_v37  ;;  %v4514_v37 = vld [vmem:[%s6510_s0 + $0x414] ss:$52 sps:$4 sm:$0xff]   ;;  %v4542_v55 = vld [vmem:[%s6510_s0 + $0x7c] ss:$52 sps:$4 sm:$0xff]  }
  0x30   :  { %3762 = vmatprep.subr.bf16.mxu1 %v4446_v40  ;;  %v4519_v40 = vld [vmem:[%s6510_s0 + $0x278] ss:$52 sps:$4 sm:$0xff]   ;;  %v4527_v46 = vld [vmem:[%s6510_s0 + $0x2e0] ss:$52 sps:$4 sm:$0xff]  }
  0x31   :  { %3873 = vmatpush3.bf16.msra.mxu0 %v4479_v56  ;;  %v4554_v56 = vld [vmem:[%s6509_s1 + $0x270] sm:$0xff]  }
  0x32   :  { %2183 = vmatmul.mubr.bf16.gmra.mxu0 %v4444_v38  ;;  %2279 = vmatmul.mubr.bf16.gmra.mxu1 %v4445_v39  ;;  %v4516_v38 = vld [vmem:[%s6510_s0 + $0x27c] ss:$52 sps:$4 sm:$0xff]  }
  0x33   :  { %3763 = vmatpush3.bf16.msra.mxu1 %v4448_v41  ;;  %2190 = vmatprep.mubr.bf16.mxu0 %v4452_v44  ;;  %v4518_v39 = vld [vmem:[%s6510_s0 + $0x410] ss:$52 sps:$4 sm:$0xff]   ;;  %v4569_v44 = vld [vmem:[%s6509_s1 + $0x188] sm:$0xff]  }
  0x34   :  { %3764 = vmatprep.subr.bf16.mxu1 %v4450_v42  ;;  %2286 = vmatprep.mubr.bf16.mxu1 %v4454_v45  ;;  %v4522_v41 = vld [vmem:[%s6510_s0 + $0x47c] ss:$52 sps:$4 sm:$0xff]   ;;  %v4524_v42 = vld [vmem:[%s6510_s0 + $0x2e4] ss:$52 sps:$4 sm:$0xff]  }
  0x35   :  { %3874 = vmatprep.subr.bf16.mxu0 %v4488_v0  ;;  %v4526_v45 = vld [vmem:[%s6510_s0 + $0x478] ss:$52 sps:$4 sm:$0xff]  }
  0x36   :  { %3875 = vmatpush3.bf16.msra.mxu0 %v4489_v2  ;;  %v4571_v0 = vld [vmem:[%s6509_s1 + $0x228] sm:$0xff]  }
  0x37   :  { %3765 = vmatpush3.bf16.msra.mxu1 %v4451_v47  ;;  %3876 = vmatprep.subr.bf16.mxu0 %v4502_v8  ;;  %v4530_v47 = vld [vmem:[%s6510_s0 + $0x34c] ss:$52 sps:$4 sm:$0xff]   ;;  %v4603_v8 = vld [vmem:[%s6509_s1 + $0x218] sm:$0xff]  }
  0x38   :  { %3766 = vmatprep.subr.bf16.mxu1 %v4458_v48  ;;  %v4534_v48 = vld [vmem:[%s6510_s0 + $0x14] ss:$52 sps:$4 sm:$0xff]   ;;  %v4550_v2 = vld [vmem:[%s6510_s0 + $0x418] ss:$52 sps:$4 sm:$0xff]  }
  0x3a   :  { %2191 = vmatmul.mubr.bf16.gmra.mxu0 %v4456_v49  ;;  %2287 = vmatmul.mubr.bf16.gmra.mxu1 %v4457_v50  ;;  %v4584_v49 = vld [vmem:[%s6509_s1 + $0x1c0] sm:$0xff]  }
  0x3b   :  { %3767 = vmatpush3.bf16.msra.mxu1 %v4459_v51  ;;  %2198 = vmatprep.mubr.bf16.mxu0 %v4464_v53  ;;  %v4585_v50 = vld [vmem:[%s6509_s1 + $0x180] sm:$0xff]   ;;  %v4539_v53 = vld [vmem:[%s6509_s1 + $0x238] sm:$0xff]  }
  0x3c   :  { %3768 = vmatprep.subr.bf16.mxu1 %v4460_v52  ;;  %2327 = vmatprep.mubr.bf16.mxu1 %v4468_v54  ;;  %v4532_v51 = vld [vmem:[%s6510_s0 + $0x10] ss:$52 sps:$4 sm:$0xff]   ;;  %v4535_v52 = vld [vmem:[%s6510_s0 + $0x348] ss:$52 sps:$4 sm:$0xff]  }
  0x3d   :  { %3877 = vmatpush3.bf16.msra.mxu0 %v4504_v10  ;;  %v4540_v54 = vld [vmem:[%s6510_s0 + $0x3b4] ss:$52 sps:$4 sm:$0xff]  }
  0x3e   :  { %3878 = vmatprep.subr.bf16.mxu0 %v4512_v15  ;;  %v4560_v10 = vld [vmem:[%s6510_s0 + $0x480] ss:$52 sps:$4 sm:$0xff]  }
  0x3f   :  { %3769 = vmatpush3.bf16.msra.mxu1 %v4462_v57  ;;  %v4600_v57 = vld [vmem:[%s6509_s1 + $0x2f8] sm:$0xff]   ;;  %v4564_v15 = vld [vmem:[%s6510_s0 + $0x1b4] ss:$52 sps:$4 sm:$0xff]  }
  0x40   :  { %3978 = vmatprep.subr.bf16.mxu1 %v4470_v60  ;;  %v4544_v60 = vld [vmem:[%s6510_s0 + $0x3b0] ss:$52 sps:$4 sm:$0xff]  }
  0x41   :  { %3879 = vmatpush3.bf16.msra.mxu0 %v4513_v16  ;;  %v4635_v16 = vld [vmem:[%s6509_s1 + $0x208] sm:$0xff]  }
  0x42   :  { %2199 = vmatmul.mubr.bf16.gmra.mxu0 %v4469_v59  ;;  %2328 = vmatmul.mubr.bf16.vlgmr.msra.gmra.mxu1 %v4466_v58  ;;  %v4555_v58 = vld [vmem:[%s6509_s1 + $0x230] sm:$0xff]   ;;  %v4570_v59 = vld [vmem:[%s6509_s1 + $0x268] sm:$0xff]  }
  0x43   :  { %3979 = vmatpush3.bf16.msra.mxu1 %v4471_v61  ;;  %2206 = vmatprep.mubr.bf16.mxu0 %v4472_v62  ;;  %v4545_v61 = vld [vmem:[%s6510_s0 + $0x78] ss:$52 sps:$4 sm:$0xff]   ;;  %v4546_v62 = vld [vmem:[%s6510_s0 + $0x41c] ss:$52 sps:$4 sm:$0xff]  }
  0x44   :  { %2335 = vmatprep.mubr.bf16.mxu1 %v4474_v63  ;;  %3980 = vmatprep.subr.bf16.mxu1 %v4486_v1  ;;  %v4548_v63 = vld [vmem:[%s6510_s0 + $0xe4] ss:$52 sps:$4 sm:$0xff]  }
  0x45   :  { %3880 = vmatprep.subr.bf16.mxu0 %v4528_v24  ;;  %v4586_v1 = vld [vmem:[%s6509_s1 + $0x260] sm:$0xff]   ;;  %v4577_v24 = vld [vmem:[%s6510_s0 + $0x218] ss:$52 sps:$4 sm:$0xff]  }
  0x46   :  { %3881 = vmatpush3.bf16.msra.mxu0 %v4529_v25  ;;  %v4578_v25 = vld [vmem:[%s6510_s0 + $0x5bc] ss:$52 sps:$4 sm:$0xff]  }
  0x47   :  { %3981 = vmatpush3.bf16.msra.mxu1 %v4487_v3  ;;  %4090 = vmatprep.subr.bf16.mxu0 %v4538_v30  ;;  %v4587_v3 = vld [vmem:[%s6509_s1 + $0x220] sm:$0xff]  }
  0x48   :  { %3982 = vmatprep.subr.bf16.mxu1 %v4503_v9  ;;  %v4618_v9 = vld [vmem:[%s6509_s1 + $0x250] sm:$0xff]   ;;  %v4588_v30 = vld [vmem:[%s6510_s0 + $0x624] ss:$52 sps:$4 sm:$0xff]  }
  0x4a   :  { %2207 = vmatmul.mubr.bf16.gmra.mxu0 %v4476_v4  ;;  %2336 = vmatmul.mubr.bf16.gmra.mxu1 %v4477_v5  ;;  %v4602_v4 = vld [vmem:[%s6509_s1 + $0x258] sm:$0xff]   ;;  %v4551_v5 = vld [vmem:[%s6510_s0 + $0xe0] ss:$52 sps:$4 sm:$0xff]  }
  0x4b   :  { %2214 = vmatprep.mubr.bf16.mxu0 %v4480_v6  ;;  %2343 = vmatprep.mubr.bf16.mxu1 %v4482_v7  ;;  %v4556_v6 = vld [vmem:[%s6510_s0 + $0x484] ss:$52 sps:$4 sm:$0xff]   ;;  %v4558_v7 = vld [vmem:[%s6510_s0 + $0x14c] ss:$52 sps:$4 sm:$0xff]  }
  0x4c   :  { %3983 = vmatpush3.bf16.msra.mxu1 %v4505_v11  ;;  %v4561_v11 = vld [vmem:[%s6510_s0 + $0x148] ss:$52 sps:$4 sm:$0xff]  }
  0x4d   :  { %3984 = vmatprep.subr.bf16.mxu1 %v4520_v18  ;;  %v4567_v18 = vld [vmem:[%s6510_s0 + $0x1b0] ss:$52 sps:$4 sm:$0xff]  }
  0x50   :  { %3985 = vmatpush3.bf16.msra.mxu1 %v4521_v19  ;;  %v4572_v19 = vld [vmem:[%s6510_s0 + $0x554] ss:$52 sps:$4 sm:$0xff]  }
  0x51   :  { %3986 = vmatprep.subr.bf16.mxu1 %v4536_v26  ;;  %v4580_v26 = vld [vmem:[%s6510_s0 + $0x284] ss:$52 sps:$4 sm:$0xff]  }
  0x52   :  { %2215 = vmatmul.mubr.bf16.gmra.mxu0 %v4484_v12  ;;  %2344 = vmatmul.mubr.bf16.gmra.mxu1 %v4485_v13  ;;  %v4619_v12 = vld [vmem:[%s6509_s1 + $0x210] sm:$0xff]   ;;  %v4634_v13 = vld [vmem:[%s6509_s1 + $0x248] sm:$0xff]  }
  0x53   :  { %2222 = vmatprep.mubr.bf16.mxu0 %v4490_v14  ;;  %2351 = vmatprep.mubr.bf16.mxu1 %v4492_v17  ;;  %v4562_v14 = vld [vmem:[%s6510_s0 + $0x4ec] ss:$52 sps:$4 sm:$0xff]   ;;  %v4566_v17 = vld [vmem:[%s6510_s0 + $0x4e8] ss:$52 sps:$4 sm:$0xff]  }
  0x54   :  { %3987 = vmatpush3.bf16.msra.mxu1 %v4537_v29  ;;  %v4583_v29 = vld [vmem:[%s6510_s0 + $0x280] ss:$52 sps:$4 sm:$0xff]  }
  0x55   :  { %3988 = vmatprep.subr.bf16.mxu1 %v4552_v35  ;;  %v4598_v35 = vld [vmem:[%s6510_s0 + $0x1c] ss:$52 sps:$4 sm:$0xff]  }
  0x58   :  { %3989 = vmatpush3.bf16.msra.mxu1 %v4553_v36  ;;  %v4596_v36 = vld [vmem:[%s6510_s0 + $0x18] ss:$52 sps:$4 sm:$0xff]  }
  0x59   :  { %3990 = vmatprep.subr.bf16.mxu1 %v4568_v43  ;;  %v4632_v43 = vld [vmem:[%s6509_s1 + $0x2e8] sm:$0xff]  }
  0x5a   :  { %2223 = vmatmul.mubr.bf16.gmra.mxu0 %v4494_v20  ;;  %2352 = vmatmul.mubr.bf16.gmra.mxu1 %v4495_v21  ;;  %v4574_v20 = vld [vmem:[%s6510_s0 + $0x21c] ss:$52 sps:$4 sm:$0xff]   ;;  %v4650_v21 = vld [vmem:[%s6509_s1 + $0x240] sm:$0xff]  }
  0x5b   :  { %2230 = vmatprep.mubr.bf16.mxu0 %v4496_v22  ;;  %2359 = vmatprep.mubr.bf16.mxu1 %v4498_v23  ;;  %v4651_v22 = vld [vmem:[%s6509_s1 + $0x200] sm:$0xff]  }
  0x5c   :  { %3991 = vmatpush3.bf16.msra.mxu1 %v4569_v44  ;;  %v4576_v23 = vld [vmem:[%s6510_s0 + $0x550] ss:$52 sps:$4 sm:$0xff]   ;;  %v4608_v44 = vld [vmem:[%s6510_s0 + $0x3b8] ss:$52 sps:$4 sm:$0xff]  }
  0x5d   :  { %3992 = vmatprep.subr.bf16.mxu1 %v4584_v49  ;;  %v4648_v49 = vld [vmem:[%s6509_s1 + $0x2e0] sm:$0xff]  }
  0x60   :  { %3993 = vmatpush3.bf16.msra.mxu1 %v4585_v50  ;;  %v4649_v50 = vld [vmem:[%s6509_s1 + $0x2a0] sm:$0xff]  }
  0x61   :  { %4202 = vmatprep.subr.bf16.mxu1 %v4600_v57  ;;  %v4679_v57 = vld [vmem:[%s6509_s1 + $0x2d0] sm:$0xff]  }
  0x62   :  { %2231 = vmatmul.mubr.bf16.gmra.mxu0 %v4500_v27  ;;  %2360 = vmatmul.mubr.bf16.gmra.mxu1 %v4501_v28  ;;  %v5298_v27 = vld [vmem:[%s6509_s1 + $0x338] sm:$0xff]  }
  0x63   :  { %2238 = vmatprep.mubr.bf16.mxu0 %v4506_v31  ;;  %2367 = vmatprep.mubr.bf16.mxu1 %v4508_v32  ;;  %v4582_v28 = vld [vmem:[%s6510_s0 + $0x5b8] ss:$52 sps:$4 sm:$0xff]   ;;  %v4592_v32 = vld [vmem:[%s6510_s0 + $0x620] ss:$52 sps:$4 sm:$0xff]  }
  0x64   :  { %v4590_v31 = vld [vmem:[%s6510_s0 + $0x2ec] ss:$52 sps:$4 sm:$0xff]  }
  0x6a   :  { %2239 = vmatmul.mubr.bf16.gmra.mxu0 %v4510_v33  ;;  %2368 = vmatmul.mubr.bf16.gmra.mxu1 %v4511_v34  ;;  %v4593_v33 = vld [vmem:[%s6510_s0 + $0x2e8] ss:$52 sps:$4 sm:$0xff]  }
  0x6b   :  { %2246 = vmatprep.mubr.bf16.mxu0 %v4514_v37  ;;  %2375 = vmatprep.mubr.bf16.mxu1 %v4516_v38  ;;  %v4594_v34 = vld [vmem:[%s6510_s0 + $0x354] ss:$52 sps:$4 sm:$0xff]   ;;  %v4599_v37 = vld [vmem:[%s6510_s0 + $0x350] ss:$52 sps:$4 sm:$0xff]   ;;  %v4601_v38 = vld [vmem:[%s6509_s1 + $0x2b8] sm:$0xff]  }
  0x72   :  { %2247 = vmatmul.mubr.bf16.gmra.mxu0 %v4518_v39  ;;  %2376 = vmatmul.mubr.bf16.gmra.mxu1 %v4519_v40  ;;  %v4604_v39 = vld [vmem:[%s6510_s0 + $0x3bc] ss:$52 sps:$4 sm:$0xff]   ;;  %v4606_v40 = vld [vmem:[%s6510_s0 + $0x84] ss:$52 sps:$4 sm:$0xff]  }
  0x73   :  { %2254 = vmatprep.mubr.bf16.mxu0 %v4522_v41  ;;  %2383 = vmatprep.mubr.bf16.mxu1 %v4524_v42  ;;  %v4616_v41 = vld [vmem:[%s6509_s1 + $0x2f0] sm:$0xff]  }
  0x74   :  { %v4617_v42 = vld [vmem:[%s6509_s1 + $0x2b0] sm:$0xff]  }
  0x7a   :  { %2255 = vmatmul.mubr.bf16.gmra.mxu0 %v4526_v45  ;;  %2384 = vmatmul.mubr.bf16.gmra.mxu1 %v4527_v46  ;;  %v4609_v45 = vld [vmem:[%s6510_s0 + $0x80] ss:$52 sps:$4 sm:$0xff]   ;;  %v4610_v46 = vld [vmem:[%s6510_s0 + $0x424] ss:$52 sps:$4 sm:$0xff]  }
  0x7b   :  { %2391 = vmatprep.mubr.bf16.mxu1 %v4530_v47  ;;  %2488 = vmatprep.mubr.bf16.mxu0 %v4534_v48  ;;  %v4612_v47 = vld [vmem:[%s6510_s0 + $0xec] ss:$52 sps:$4 sm:$0xff]  }
  0x7c   :  { %v4633_v48 = vld [vmem:[%s6509_s1 + $0x2a8] sm:$0xff]  }
  0x82   :  { %2392 = vmatmul.mubr.bf16.gmra.mxu1 %v4535_v52  ;;  %2489 = vmatmul.mubr.bf16.vlgmr.msra.gmra.mxu0 %v4532_v51  ;;  %v4664_v51 = vld [vmem:[%s6509_s1 + $0x2d8] sm:$0xff]   ;;  %v4614_v52 = vld [vmem:[%s6510_s0 + $0x420] ss:$52 sps:$4 sm:$0xff]  }
  0x83   :  { %4091 = vmatpush3.bf16.msra.mxu0 %v4539_v53  ;;  %2399 = vmatprep.mubr.bf16.mxu1 %v4540_v54  ;;  %v4615_v53 = vld [vmem:[%s6510_s0 + $0xe8] ss:$52 sps:$4 sm:$0xff]   ;;  %v4620_v54 = vld [vmem:[%s6510_s0 + $0x48c] ss:$52 sps:$4 sm:$0xff]  }
  0x84   :  { %2496 = vmatprep.mubr.bf16.mxu0 %v4542_v55  ;;  %4092 = vmatprep.subr.bf16.mxu0 %v4554_v56  ;;  %v4622_v55 = vld [vmem:[%s6510_s0 + $0x154] ss:$52 sps:$4 sm:$0xff]   ;;  %v4665_v56 = vld [vmem:[%s6509_s1 + $0x298] sm:$0xff]  }
  0x87   :  { %4093 = vmatpush3.bf16.msra.mxu0 %v4555_v58  ;;  %v4680_v58 = vld [vmem:[%s6509_s1 + $0x290] sm:$0xff]  }
  0x88   :  { %4094 = vmatprep.subr.bf16.mxu0 %v4570_v59  ;;  %v4694_v59 = vld [vmem:[%s6509_s1 + $0x2c8] sm:$0xff]  }
  0x8a   :  { %2400 = vmatmul.mubr.bf16.gmra.mxu1 %v4544_v60  ;;  %2497 = vmatmul.mubr.bf16.gmra.mxu0 %v4545_v61  ;;  %v4624_v60 = vld [vmem:[%s6510_s0 + $0x488] ss:$52 sps:$4 sm:$0xff]   ;;  %v4625_v61 = vld [vmem:[%s6510_s0 + $0x150] ss:$52 sps:$4 sm:$0xff]  }
  0x8b   :  { %2407 = vmatprep.mubr.bf16.mxu1 %v4546_v62  ;;  %2504 = vmatprep.mubr.bf16.mxu0 %v4548_v63  ;;  %v4626_v62 = vld [vmem:[%s6510_s0 + $0x4f4] ss:$52 sps:$4 sm:$0xff]   ;;  %v4628_v63 = vld [vmem:[%s6510_s0 + $0x1bc] ss:$52 sps:$4 sm:$0xff]  }
  0x8c   :  { %4095 = vmatpush3.bf16.msra.mxu0 %v4571_v0  ;;  %v4695_v0 = vld [vmem:[%s6509_s1 + $0x288] sm:$0xff]  }
  0x8d   :  { %4096 = vmatprep.subr.bf16.mxu0 %v4586_v1  ;;  %v4709_v1 = vld [vmem:[%s6509_s1 + $0x2c0] sm:$0xff]  }
  0x90   :  { %4097 = vmatpush3.bf16.msra.mxu0 %v4587_v3  ;;  %v4630_v3 = vld [vmem:[%s6510_s0 + $0x4f0] ss:$52 sps:$4 sm:$0xff]  }
  0x91   :  { %4098 = vmatprep.subr.bf16.mxu0 %v4602_v4  ;;  %v4631_v4 = vld [vmem:[%s6510_s0 + $0x1b8] ss:$52 sps:$4 sm:$0xff]  }
  0x92   :  { %2408 = vmatmul.mubr.bf16.gmra.mxu1 %v4550_v2  ;;  %2505 = vmatmul.mubr.bf16.gmra.mxu0 %v4551_v5  ;;  %v4710_v2 = vld [vmem:[%s6509_s1 + $0x280] sm:$0xff]   ;;  %v4636_v5 = vld [vmem:[%s6510_s0 + $0x55c] ss:$52 sps:$4 sm:$0xff]  }
  0x93   :  { %2415 = vmatprep.mubr.bf16.mxu1 %v4556_v6  ;;  %2512 = vmatprep.mubr.bf16.mxu0 %v4558_v7  ;;  %v4638_v6 = vld [vmem:[%s6510_s0 + $0x224] ss:$52 sps:$4 sm:$0xff]  }
  0x94   :  { %4099 = vmatpush3.bf16.msra.mxu0 %v4603_v8 }
  0x95   :  { %4100 = vmatprep.subr.bf16.mxu0 %v4618_v9 }
  0x98   :  { %4101 = vmatpush3.bf16.msra.mxu0 %v4619_v12  ;;  %v4641_v12 = vld [vmem:[%s6510_s0 + $0x220] ss:$52 sps:$4 sm:$0xff]  }
  0x99   :  { %4102 = vmatprep.subr.bf16.mxu0 %v4634_v13 }
  0x9a   :  { %2416 = vmatmul.mubr.bf16.gmra.mxu1 %v4560_v10  ;;  %2513 = vmatmul.mubr.bf16.gmra.mxu0 %v4561_v11  ;;  %v4640_v11 = vld [vmem:[%s6510_s0 + $0x558] ss:$52 sps:$4 sm:$0xff]  }
  0x9b   :  { %2423 = vmatprep.mubr.bf16.mxu1 %v4562_v14  ;;  %2520 = vmatprep.mubr.bf16.mxu0 %v4564_v15 }
  0x9c   :  { %4103 = vmatpush3.bf16.msra.mxu0 %v4635_v16 }
  0x9d   :  { %4104 = vmatprep.subr.bf16.mxu0 %v4650_v21 }
  0xa0   :  { %4105 = vmatpush3.bf16.msra.mxu0 %v4651_v22 }
  0xa1   :  { %4338 = vmatprep.subr.bf16.mxu0 %v5298_v27 }
  0xa2   :  { %2424 = vmatmul.mubr.bf16.gmra.mxu1 %v4566_v17  ;;  %2521 = vmatmul.mubr.bf16.gmra.mxu0 %v4567_v18  ;;  %v4642_v17 = vld [vmem:[%s6510_s0 + $0x5c4] ss:$52 sps:$4 sm:$0xff]   ;;  %v4644_v18 = vld [vmem:[%s6510_s0 + $0x28c] ss:$52 sps:$4 sm:$0xff]  }
  0xa3   :  { %2431 = vmatprep.mubr.bf16.mxu1 %v4572_v19  ;;  %2528 = vmatprep.mubr.bf16.mxu0 %v4574_v20 }
  0xaa   :  { %2432 = vmatmul.mubr.bf16.gmra.mxu1 %v4576_v23  ;;  %2529 = vmatmul.mubr.bf16.gmra.mxu0 %v4577_v24 }
  0xab   :  { %2439 = vmatprep.mubr.bf16.mxu1 %v4578_v25  ;;  %2536 = vmatprep.mubr.bf16.mxu0 %v4580_v26 }
  0xb2   :  { %2440 = vmatmul.mubr.bf16.gmra.mxu1 %v4582_v28  ;;  %2537 = vmatmul.mubr.bf16.gmra.mxu0 %v4583_v29 }
  0xb3   :  { %2447 = vmatprep.mubr.bf16.mxu1 %v4588_v30  ;;  %2544 = vmatprep.mubr.bf16.mxu0 %v4590_v31 }
  0xba   :  { %2448 = vmatmul.mubr.bf16.gmra.mxu1 %v4592_v32  ;;  %2545 = vmatmul.mubr.bf16.gmra.mxu0 %v4593_v33  ;;  %v4646_v32 = vld [vmem:[%s6510_s0 + $0x5c0] ss:$52 sps:$4 sm:$0xff]   ;;  %v4647_v33 = vld [vmem:[%s6510_s0 + $0x288] ss:$52 sps:$4 sm:$0xff]  }
  0xbb   :  { %2552 = vmatprep.mubr.bf16.mxu0 %v4594_v34  ;;  %2649 = vmatprep.mubr.bf16.mxu1 %v4598_v35  ;;  %v4652_v34 = vld [vmem:[%s6510_s0 + $0x62c] ss:$52 sps:$4 sm:$0xff]   ;;  %v4654_v35 = vld [vmem:[%s6510_s0 + $0x2f4] ss:$52 sps:$4 sm:$0xff]  }
  0xc2   :  { %2553 = vmatmul.mubr.bf16.gmra.mxu0 %v4599_v37  ;;  %2650 = vmatmul.mubr.bf16.vlgmr.msra.gmra.mxu1 %v4596_v36 }
  0xc3   :  { %4203 = vmatpush3.bf16.msra.mxu1 %v4601_v38  ;;  %2560 = vmatprep.mubr.bf16.mxu0 %v4604_v39 }
  0xc4   :  { %2657 = vmatprep.mubr.bf16.mxu1 %v4606_v40  ;;  %4204 = vmatprep.subr.bf16.mxu1 %v4616_v41 }
  0xc7   :  { %4205 = vmatpush3.bf16.msra.mxu1 %v4617_v42 }
  0xc8   :  { %4206 = vmatprep.subr.bf16.mxu1 %v4632_v43 }
  0xca   :  { %2561 = vmatmul.mubr.bf16.gmra.mxu0 %v4608_v44  ;;  %2658 = vmatmul.mubr.bf16.gmra.mxu1 %v4609_v45 }
  0xcb   :  { %2568 = vmatprep.mubr.bf16.mxu0 %v4610_v46  ;;  %2665 = vmatprep.mubr.bf16.mxu1 %v4612_v47 }
  0xcc   :  { %4207 = vmatpush3.bf16.msra.mxu1 %v4633_v48  ;;  %v4656_v48 = vld [vmem:[%s6510_s0 + $0x628] ss:$52 sps:$4 sm:$0xff]  }
  0xcd   :  { %4208 = vmatprep.subr.bf16.mxu1 %v4648_v49  ;;  %v4657_v49 = vld [vmem:[%s6510_s0 + $0x2f0] ss:$52 sps:$4 sm:$0xff]  }
  0xd0   :  { %4209 = vmatpush3.bf16.msra.mxu1 %v4649_v50  ;;  %v4660_v50 = vld [vmem:[%s6510_s0 + $0x35c] ss:$52 sps:$4 sm:$0xff]  }
  0xd1   :  { %4210 = vmatprep.subr.bf16.mxu1 %v4664_v51  ;;  %v4663_v51 = vld [vmem:[%s6510_s0 + $0x24] ss:$52 sps:$4 sm:$0xff]  }
  0xd2   :  { %2569 = vmatmul.mubr.bf16.gmra.mxu0 %v4614_v52  ;;  %2666 = vmatmul.mubr.bf16.gmra.mxu1 %v4615_v53 }
  0xd3   :  { %2576 = vmatprep.mubr.bf16.mxu0 %v4620_v54  ;;  %2673 = vmatprep.mubr.bf16.mxu1 %v4622_v55 }
  0xd4   :  { %4211 = vmatpush3.bf16.msra.mxu1 %v4665_v56 }
  0xd5   :  { %4212 = vmatprep.subr.bf16.mxu1 %v4679_v57 }
  0xd8   :  { %4213 = vmatpush3.bf16.msra.mxu1 %v4680_v58 }
  0xd9   :  { %4214 = vmatprep.subr.bf16.mxu1 %v4694_v59 }
  0xda   :  { %2577 = vmatmul.mubr.bf16.gmra.mxu0 %v4624_v60  ;;  %2674 = vmatmul.mubr.bf16.gmra.mxu1 %v4625_v61 }
  0xdb   :  { %2584 = vmatprep.mubr.bf16.mxu0 %v4626_v62  ;;  %2681 = vmatprep.mubr.bf16.mxu1 %v4628_v63 }
  0xdc   :  { %4215 = vmatpush3.bf16.msra.mxu1 %v4695_v0  ;;  %v4658_v0 = vld [vmem:[%s6510_s0 + $0x358] ss:$52 sps:$4 sm:$0xff]  }
  0xdd   :  { %4216 = vmatprep.subr.bf16.mxu1 %v4709_v1  ;;  %v4661_v1 = vld [vmem:[%s6510_s0 + $0x20] ss:$52 sps:$4 sm:$0xff]  }
  0xe0   :  { %4217 = vmatpush3.bf16.msra.mxu1 %v4710_v2  ;;  %v4669_v2 = vld [vmem:[%s6510_s0 + $0x3c4] ss:$52 sps:$4 sm:$0xff]  }
  0xe2   :  { %v3658_v7 = vpop.f32.mrf.mxu0  ;;  %v3730_v8 = vpop.f32.mrf.mxu1  ;;  %2585 = vmatmul.mubr.bf16.gmra.mxu0 %v4630_v3  ;;  %2682 = vmatmul.mubr.bf16.gmra.mxu1 %v4631_v4 }
  0xe3   :  { %2592 = vmatprep.mubr.bf16.mxu0 %v4636_v5  ;;  %2689 = vmatprep.mubr.bf16.mxu1 %v4638_v6  ;;  %v4672_v5 = vld [vmem:[%s6510_s0 + $0x8c] ss:$52 sps:$4 sm:$0xff]   ;;  %v4681_v6 = vld [vmem:[%s6509_s1 + $0x330] sm:$0xff]  }
  0xe4   :  { %v3659_v9 = vpop.f32.mrf.mxu0  ;;  %v3731_v10 = vpop.f32.mrf.mxu1 }
  0xe5   :  { %v5436_v13 = vadd.f32 %v3659_v9, %v3658_v7  ;;  %v5438_v14 = vadd.f32 %v3731_v10, %v3730_v8 }
  0xe6   :  { %v3661_v15 = vpop.f32.mrf.mxu0  ;;  %v3733_v16 = vpop.f32.mrf.mxu1 }
  0xe8   :  { %v3662_v19 = vpop.f32.mrf.mxu0  ;;  %v3734_v20 = vpop.f32.mrf.mxu1 }
  0xe9   :  { %v5446_v21 = vadd.f32 %v3662_v19, %v3661_v15  ;;  %v5448_v22 = vadd.f32 %v3734_v20, %v3733_v16  ;;  %v4696_v16 = vld [vmem:[%s6509_s1 + $0x328] sm:$0xff]  }
  0xea   :  { %v3664_v23 = vpop.f32.mrf.mxu0  ;;  %v3736_v24 = vpop.f32.mrf.mxu1  ;;  %2593 = vmatmul.mubr.bf16.gmra.mxu0 %v4640_v11  ;;  %2690 = vmatmul.mubr.bf16.gmra.mxu1 %v4641_v12  ;;  %v5517_v11 = vld [vmem:[%s6511_s2] ss:$0 sm:$0xff] }
  0xeb   :  { %2600 = vmatprep.mubr.bf16.mxu0 %v4642_v17  ;;  %2697 = vmatprep.mubr.bf16.mxu1 %v4644_v18  ;;  %v2169_v17 = vadd.f32 %v5436_v13, %v5517_v11  ;;  %v4678_v13 = vld [vmem:[%s6510_s0 + $0xf4] ss:$52 sps:$4 sm:$0xff]  }
  0xec   :  { %v3665_v25 = vpop.f32.mrf.mxu0  ;;  %v3737_v26 = vpop.f32.mrf.mxu1 }
  0xed   :  { %v5450_v28 = vadd.f32 %v3665_v25, %v3664_v23  ;;  %v5452_v29 = vadd.f32 %v3737_v26, %v3736_v24  ;;  %v4667_v23 = vld [vmem:[%s6510_s0 + $0x3c0] ss:$52 sps:$4 sm:$0xff]   ;;  %v4670_v24 = vld [vmem:[%s6510_s0 + $0x88] ss:$52 sps:$4 sm:$0xff]  }
  0xee   :  { %v3667_v30 = vpop.f32.mrf.mxu0  ;;  %v3739_v31 = vpop.f32.mrf.mxu1  ;;  %v4675_v26 = vld [vmem:[%s6510_s0 + $0x42c] ss:$52 sps:$4 sm:$0xff]  }
  0xf0   :  { %v3668_v36 = vpop.f32.mrf.mxu0  ;;  %v3740_v37 = vpop.f32.mrf.mxu1 }
  0xf1   :  { %v5466_v38 = vadd.f32 %v3668_v36, %v3667_v30  ;;  %v5468_v39 = vadd.f32 %v3740_v37, %v3739_v31 }
  0xf2   :  { %v3670_v40 = vpop.f32.mrf.mxu0  ;;  %v3742_v41 = vpop.f32.mrf.mxu1  ;;  %2601 = vmatmul.mubr.bf16.gmra.mxu0 %v4646_v32  ;;  %2698 = vmatmul.mubr.bf16.gmra.mxu1 %v4647_v33  ;;  %v2172_v32 = vadd.f32 %v5446_v21, %v5517_v11  ;;  %v2177_v21 = vadd.f32 %v5450_v28, %v5517_v11  ;;  %v4684_v28 = vld [vmem:[%s6510_s0 + $0x494] ss:$52 sps:$4 sm:$0xff]  }
  0xf3   :  { %2608 = vmatprep.mubr.bf16.mxu0 %v4652_v34  ;;  %2705 = vmatprep.mubr.bf16.mxu1 %v4654_v35  ;;  %v4711_v35 = vld [vmem:[%s6509_s1 + $0x320] sm:$0xff]  }
  0xf4   :  { %v3671_v42 = vpop.f32.mrf.mxu0  ;;  %v3743_v43 = vpop.f32.mrf.mxu1 }
  0xf5   :  { %v5470_v44 = vadd.f32 %v3671_v42, %v3670_v40  ;;  %v5472_v45 = vadd.f32 %v3743_v43, %v3742_v41 }
  0xf6   :  { %v3673_v46 = vpop.f32.mrf.mxu0  ;;  %v3745_v47 = vpop.f32.mrf.mxu1 }
  0xf8   :  { %v3674_v52 = vpop.f32.mrf.mxu0  ;;  %v3746_v53 = vpop.f32.mrf.mxu1 }
  0xf9   :  { %v5486_v54 = vadd.f32 %v3674_v52, %v3673_v46  ;;  %v5488_v55 = vadd.f32 %v3746_v53, %v3745_v47  ;;  %v4724_v47 = vld [vmem:[%s6509_s1 + $0x318] sm:$0xff]  }
  0xfa   :  { %v3676_v56 = vpop.f32.mrf.mxu0  ;;  %v3748_v57 = vpop.f32.mrf.mxu1  ;;  %2609 = vmatmul.mubr.bf16.gmra.mxu0 %v4656_v48  ;;  %2706 = vmatmul.mubr.bf16.gmra.mxu1 %v4657_v49  ;;  %v4687_v53 = vld [vmem:[%s6510_s0 + $0x15c] ss:$52 sps:$4 sm:$0xff]  }
  0xfb   :  { %2713 = vmatprep.mubr.bf16.mxu1 %v4660_v50  ;;  %2810 = vmatprep.mubr.bf16.mxu0 %v4663_v51  ;;  %v4673_v50 = vld [vmem:[%s6510_s0 + $0x428] ss:$52 sps:$4 sm:$0xff]   ;;  %v4676_v51 = vld [vmem:[%s6510_s0 + $0xf0] ss:$52 sps:$4 sm:$0xff]  }
  0xfc   :  { %v3677_v58 = vpop.f32.mrf.mxu0  ;;  %v3749_v59 = vpop.f32.mrf.mxu1 }
  0xfd   :  { %v5490_v60 = vadd.f32 %v3677_v58, %v3676_v56  ;;  %v5492_v61 = vadd.f32 %v3749_v59, %v3748_v57  ;;  %v2180_v58 = vadd.f32 %v5466_v38, %v5517_v11  ;;  %v2185_v38 = vadd.f32 %v5470_v44, %v5517_v11  ;;  %v4690_v44 = vld [vmem:[%s6510_s0 + $0x4fc] ss:$52 sps:$4 sm:$0xff]  }
  0xfe   :  { %v3679_v62 = vpop.f32.mrf.mxu0  ;;  %v3751_v63 = vpop.f32.mrf.mxu1 }
 0x100   :  { %v3680_v3 = vpop.f32.mrf.mxu0  ;;  %v3752_v4 = vpop.f32.mrf.mxu1 }
 0x101   :  { %v5509_v7 = vadd.f32 %v3680_v3, %v3679_v62  ;;  %v5511_v8 = vadd.f32 %v3752_v4, %v3751_v63  ;;  %v4737_v63 = vld [vmem:[%s6509_s1 + $0x310] sm:$0xff]  }
 0x102   :  { %v3682_v9 = vpop.f32.mrf.mxu0  ;;  %v3770_v10 = vpop.f32.mrf.mxu1  ;;  %2714 = vmatmul.mubr.bf16.gmra.mxu1 %v4658_v0  ;;  %2811 = vmatmul.mubr.bf16.vlgmr.msra.gmra.mxu0 %v4661_v1 }
 0x103   :  { %4339 = vmatpush3.bf16.msra.mxu0 %v5298_v27  ;;  %2721 = vmatprep.mubr.bf16.mxu1 %v4669_v2 }
 0x104   :  { %v3683_v12 = vpop.f32.mrf.mxu0  ;;  %v3771_v15 = vpop.f32.mrf.mxu1  ;;  %2818 = vmatprep.mubr.bf16.mxu0 %v4672_v5  ;;  %4340 = vmatprep.subr.bf16.mxu0 %v4681_v6 }
 0x105   :  { %v5524_v18 = vadd.f32 %v3683_v12, %v3682_v9  ;;  %v3772_v27 = vadd.f32 %v3771_v15, %v3770_v10  ;;  %v4750_v9 = vld [vmem:[%s6509_s1 + $0x308] sm:$0xff]   ;;  %v4682_v15 = vld [vmem:[%s6510_s0 + $0x490] ss:$52 sps:$4 sm:$0xff]  }
 0x106   :  { %v3685_v19 = vpop.f32.mrf.mxu0  ;;  %v3773_v20 = vpop.f32.mrf.mxu1 }
 0x107   :  { %v5532_v25 = vadd.f32 %v3772_v27, %v2169_v17  ;;  %4341 = vmatpush3.bf16.msra.mxu0 %v4681_v6  ;;  %v4693_v27 = vld [vmem:[%s6510_s0 + $0x1c4] ss:$52 sps:$4 sm:$0xff]  }
 0x108   :  { %v3686_v30 = vpop.f32.mrf.mxu0  ;;  %v3774_v31 = vpop.f32.mrf.mxu1  ;;  %4342 = vmatprep.subr.bf16.mxu0 %v4696_v16 }
 0x109   :  { %v5542_v33 = vadd.f32 %v3686_v30, %v3685_v19  ;;  %v3775_v34 = vadd.f32 %v3774_v31, %v3773_v20 }
 0x10a   :  { %v3688_v36 = vpop.f32.mrf.mxu0  ;;  %v3776_v37 = vpop.f32.mrf.mxu1  ;;  %2722 = vmatmul.mubr.bf16.gmra.mxu1 %v4667_v23  ;;  %2819 = vmatmul.mubr.bf16.gmra.mxu0 %v4670_v24  ;;  %v2188_v23 = vadd.f32 %v5486_v54, %v5517_v11  ;;  %v2193_v54 = vadd.f32 %v5490_v60, %v5517_v11  ;;  %v4699_v60 = vld [vmem:[%s6510_s0 + $0x564] ss:$52 sps:$4 sm:$0xff]  }
 0x10b   :  { %v5547_v40 = vadd.f32 %v3775_v34, %v2172_v32  ;;  %2729 = vmatprep.mubr.bf16.mxu1 %v4675_v26  ;;  %2826 = vmatprep.mubr.bf16.mxu0 %v4678_v13  ;;  %v4763_v13 = vld [vmem:[%s6509_s1 + $0x300] sm:$0xff]  }
 0x10c   :  { %v3689_v41 = vpop.f32.mrf.mxu0  ;;  %v3777_v42 = vpop.f32.mrf.mxu1  ;;  %4343 = vmatpush3.bf16.msra.mxu0 %v4696_v16  ;;  %v4685_v16 = vld [vmem:[%s6510_s0 + $0x158] ss:$52 sps:$4 sm:$0xff]  }
 0x10d   :  { %v5551_v43 = vadd.f32 %v3689_v41, %v3688_v36  ;;  %v3778_v46 = vadd.f32 %v3777_v42, %v3776_v37  ;;  %4344 = vmatprep.subr.bf16.mxu0 %v4711_v35 }
 0x10e   :  { %v3691_v48 = vpop.f32.mrf.mxu0  ;;  %v3779_v49 = vpop.f32.mrf.mxu1 }
 0x10f   :  { %v5562_v52 = vadd.f32 %v3778_v46, %v2177_v21  ;;  %v4688_v21 = vld [vmem:[%s6510_s0 + $0x4f8] ss:$52 sps:$4 sm:$0xff]   ;;  %v4691_v46 = vld [vmem:[%s6510_s0 + $0x1c0] ss:$52 sps:$4 sm:$0xff]  }
 0x110   :  { %v3692_v56 = vpop.f32.mrf.mxu0  ;;  %v3780_v57 = vpop.f32.mrf.mxu1  ;;  %4345 = vmatpush3.bf16.msra.mxu0 %v4711_v35 }
 0x111   :  { %v5572_v59 = vadd.f32 %v3692_v56, %v3691_v48  ;;  %v3781_v62 = vadd.f32 %v3780_v57, %v3779_v49  ;;  %4346 = vmatprep.subr.bf16.mxu0 %v4724_v47  ;;  %v4702_v48 = vld [vmem:[%s6510_s0 + $0x22c] ss:$52 sps:$4 sm:$0xff]  }
 0x112   :  { %v3694_v0 = vpop.f32.mrf.mxu0  ;;  %v3782_v1 = vpop.f32.mrf.mxu1  ;;  %2730 = vmatmul.mubr.bf16.gmra.mxu1 %v4673_v50  ;;  %2827 = vmatmul.mubr.bf16.gmra.mxu0 %v4676_v51  ;;  %v2196_v51 = vadd.f32 %v5509_v7, %v5517_v11 }
 0x113   :  { %v5577_v2 = vadd.f32 %v3781_v62, %v2180_v58  ;;  %2737 = vmatprep.mubr.bf16.mxu1 %v4684_v28  ;;  %2834 = vmatprep.mubr.bf16.mxu0 %v4687_v53 }
 0x114   :  { %v3695_v3 = vpop.f32.mrf.mxu0  ;;  %v3783_v4 = vpop.f32.mrf.mxu1  ;;  %4347 = vmatpush3.bf16.msra.mxu0 %v4724_v47 }
 0x115   :  { %v5581_v5 = vadd.f32 %v3695_v3, %v3694_v0  ;;  %v3784_v6 = vadd.f32 %v3783_v4, %v3782_v1  ;;  %4348 = vmatprep.subr.bf16.mxu0 %v4737_v63  ;;  %v2201_v0 = vadd.f32 %v5524_v18, %v5517_v11  ;;  %v4708_v18 = vld [vmem:[%s6510_s0 + $0x294] ss:$52 sps:$4 sm:$0xff]  }
 0x116   :  { %v3697_v10 = vpop.f32.mrf.mxu0  ;;  %v3785_v12 = vpop.f32.mrf.mxu1 }
 0x117   :  { %v5592_v17 = vadd.f32 %v3784_v6, %v2185_v38  ;;  %v4697_v38 = vld [vmem:[%s6510_s0 + $0x560] ss:$52 sps:$4 sm:$0xff]   ;;  %v4700_v6 = vld [vmem:[%s6510_s0 + $0x228] ss:$52 sps:$4 sm:$0xff]  }
 0x118   :  { %v3698_v19 = vpop.f32.mrf.mxu0  ;;  %v3786_v20 = vpop.f32.mrf.mxu1  ;;  %4349 = vmatpush3.bf16.msra.mxu0 %v4737_v63 }
 0x119   :  { %v5602_v24 = vadd.f32 %v3698_v19, %v3697_v10  ;;  %v3787_v26 = vadd.f32 %v3786_v20, %v3785_v12  ;;  %4350 = vmatprep.subr.bf16.mxu0 %v4750_v9  ;;  %v4705_v10 = vld [vmem:[%s6510_s0 + $0x5cc] ss:$52 sps:$4 sm:$0xff]  }
 0x11a   :  { %v3700_v30 = vpop.f32.mrf.mxu0  ;;  %v3788_v31 = vpop.f32.mrf.mxu1  ;;  %2738 = vmatmul.mubr.bf16.gmra.mxu1 %v4682_v15  ;;  %2835 = vmatmul.mubr.bf16.gmra.mxu0 %v4685_v16  ;;  %v2204_v16 = vadd.f32 %v5542_v33, %v5517_v11 }
 0x11b   :  { %v5607_v32 = vadd.f32 %v3787_v26, %v2188_v23  ;;  %2745 = vmatprep.mubr.bf16.mxu1 %v4690_v44  ;;  %2842 = vmatprep.mubr.bf16.mxu0 %v4693_v27 }
 0x11c   :  { %v3701_v34 = vpop.f32.mrf.mxu0  ;;  %v3789_v35 = vpop.f32.mrf.mxu1  ;;  %4351 = vmatpush3.bf16.msra.mxu0 %v4750_v9 }
 0x11d   :  { %v5611_v36 = vadd.f32 %v3701_v34, %v3700_v30  ;;  %v3790_v37 = vadd.f32 %v3789_v35, %v3788_v31  ;;  %4352 = vmatprep.subr.bf16.mxu0 %v4763_v13  ;;  %v2209_v30 = vadd.f32 %v5551_v43, %v5517_v11  ;;  %v4717_v43 = vld [vmem:[%s6510_s0 + $0x2fc] ss:$52 sps:$4 sm:$0xff]  }
 0x11e   :  { %v3703_v41 = vpop.f32.mrf.mxu0  ;;  %v3791_v42 = vpop.f32.mrf.mxu1 }
 0x11f   :  { %v5619_v47 = vadd.f32 %v3790_v37, %v2193_v54  ;;  %v4703_v54 = vld [vmem:[%s6510_s0 + $0x5c8] ss:$52 sps:$4 sm:$0xff]   ;;  %v4706_v37 = vld [vmem:[%s6510_s0 + $0x290] ss:$52 sps:$4 sm:$0xff]  }
 0x120   :  { %v3704_v49 = vpop.f32.mrf.mxu0  ;;  %v3792_v50 = vpop.f32.mrf.mxu1  ;;  %4353 = vmatpush3.bf16.msra.mxu0 %v4763_v13 }
 0x121   :  { %v5629_v28 = vadd.f32 %v3704_v49, %v3703_v41  ;;  %v3793_v53 = vadd.f32 %v3792_v50, %v3791_v42  ;;  %v4714_v42 = vld [vmem:[%s6510_s0 + $0x634] ss:$52 sps:$4 sm:$0xff]  }
 0x122   :  { %v3706_v56 = vpop.f32.mrf.mxu0  ;;  %v3794_v57 = vpop.f32.mrf.mxu1  ;;  %2746 = vmatmul.mubr.bf16.gmra.mxu1 %v4688_v21  ;;  %2843 = vmatmul.mubr.bf16.gmra.mxu0 %v4691_v46 }
 0x123   :  { %v5631_v58 = vadd.f32 %v3793_v53, %v2196_v51  ;;  %2753 = vmatprep.mubr.bf16.mxu1 %v4699_v60  ;;  %2850 = vmatprep.mubr.bf16.mxu0 %v4702_v48  ;;  %v2212_v60 = vadd.f32 %v5572_v59, %v5517_v11 }
 0x124   :  { %v3707_v62 = vpop.f32.mrf.mxu0  ;;  %v3795_v63 = vpop.f32.mrf.mxu1 }
 0x125   :  { %v5635_v1 = vadd.f32 %v3707_v62, %v3706_v56  ;;  %v3796_v3 = vadd.f32 %v3795_v63, %v3794_v57  ;;  %v2217_v62 = vadd.f32 %v5581_v5, %v5517_v11  ;;  %v4723_v5 = vld [vmem:[%s6510_s0 + $0x2c] ss:$52 sps:$4 sm:$0xff]  }
 0x126   :  { %v3709_v7 = vpop.f32.mrf.mxu0  ;;  %v3797_v4 = vpop.f32.mrf.mxu1 }
 0x127   :  { %v5643_v9 = vadd.f32 %v3796_v3, %v2201_v0 }
 0x128   :  { %v3710_v12 = vpop.f32.mrf.mxu0  ;;  %v3798_v15 = vpop.f32.mrf.mxu1 }
 0x129   :  { %v5653_v44 = vadd.f32 %v3710_v12, %v3709_v7  ;;  %v3799_v27 = vadd.f32 %v3798_v15, %v3797_v4  ;;  %v4712_v7 = vld [vmem:[%s6510_s0 + $0x630] ss:$52 sps:$4 sm:$0xff]   ;;  %v4715_v4 = vld [vmem:[%s6510_s0 + $0x2f8] ss:$52 sps:$4 sm:$0xff]   ;;  %v2220_v12 = vadd.f32 %v5602_v24, %v5517_v11 }
 0x12a   :  { %v3712_v19 = vpop.f32.mrf.mxu0  ;;  %v3800_v20 = vpop.f32.mrf.mxu1  ;;  %2754 = vmatmul.mubr.bf16.gmra.mxu1 %v4697_v38  ;;  %2851 = vmatmul.mubr.bf16.gmra.mxu0 %v4700_v6  ;;  %v4720_v6 = vld [vmem:[%s6510_s0 + $0x364] ss:$52 sps:$4 sm:$0xff]  }
 0x12b   :  { %v5655_v23 = vadd.f32 %v3799_v27, %v2204_v16  ;;  %2761 = vmatprep.mubr.bf16.mxu1 %v4705_v10  ;;  %2858 = vmatprep.mubr.bf16.mxu0 %v4708_v18 }
 0x12c   :  { %v3713_v26 = vpop.f32.mrf.mxu0  ;;  %v3801_v13 = vpop.f32.mrf.mxu1 }
 0x12d   :  { %v5659_v31 = vadd.f32 %v3713_v26, %v3712_v19  ;;  %v3802_v34 = vadd.f32 %v3801_v13, %v3800_v20 }
 0x12e   :  { %v3715_v33 = vpop.f32.mrf.mxu0  ;;  %v3803_v35 = vpop.f32.mrf.mxu1 }
 0x12f   :  { %v5667_v41 = vadd.f32 %v3802_v34, %v2209_v30  ;;  %v2225_v30 = vadd.f32 %v5611_v36, %v5517_v11  ;;  %v4730_v36 = vld [vmem:[%s6510_s0 + $0x94] ss:$52 sps:$4 sm:$0xff]  }
 0x130   :  { %v3716_v21 = vpop.f32.mrf.mxu0  ;;  %v3804_v46 = vpop.f32.mrf.mxu1 }
 0x131   :  { %v5677_v48 = vadd.f32 %v3716_v21, %v3715_v33  ;;  %v3805_v49 = vadd.f32 %v3804_v46, %v3803_v35 }
 0x132   :  { %v3718_v50 = vpop.f32.mrf.mxu0  ;;  %v3806_v51 = vpop.f32.mrf.mxu1  ;;  %2762 = vmatmul.mubr.bf16.gmra.mxu1 %v4703_v54  ;;  %2859 = vmatmul.mubr.bf16.gmra.mxu0 %v4706_v37  ;;  %v4718_v54 = vld [vmem:[%s6510_s0 + $0x360] ss:$52 sps:$4 sm:$0xff]   ;;  %v4721_v37 = vld [vmem:[%s6510_s0 + $0x28] ss:$52 sps:$4 sm:$0xff]  }
 0x133   :  { %v5679_v53 = vadd.f32 %v3805_v49, %v2212_v60  ;;  %2769 = vmatprep.mubr.bf16.mxu1 %v4714_v42  ;;  %2866 = vmatprep.mubr.bf16.mxu0 %v4717_v43  ;;  %v4727_v43 = vld [vmem:[%s6510_s0 + $0x3cc] ss:$52 sps:$4 sm:$0xff]   ;;  %v2228_v60 = vadd.f32 %v5629_v28, %v5517_v11 }
 0x134   :  { %v3719_v56 = vpop.f32.mrf.mxu0  ;;  %v3807_v57 = vpop.f32.mrf.mxu1 }
 0x135   :  { %v5683_v63 = vadd.f32 %v3719_v56, %v3718_v50  ;;  %v3808_v0 = vadd.f32 %v3807_v57, %v3806_v51 }
 0x136   :  { %v3721_v59 = vpop.f32.mrf.mxu0  ;;  %v3809_v3 = vpop.f32.mrf.mxu1 }
 0x137   :  { %v5691_v38 = vadd.f32 %v3808_v0, %v2217_v62 }
 0x138   :  { %v3722_v10 = vpop.f32.mrf.mxu0  ;;  %v3810_v18 = vpop.f32.mrf.mxu1 }
 0x139   :  { %v5701_v15 = vadd.f32 %v3722_v10, %v3721_v59  ;;  %v3811_v16 = vadd.f32 %v3810_v18, %v3809_v3  ;;  %v2233_v59 = vadd.f32 %v5635_v1, %v5517_v11  ;;  %v4733_v1 = vld [vmem:[%s6510_s0 + $0x434] ss:$52 sps:$4 sm:$0xff]  }
 0x13a   :  { %v3724_v27 = vpop.f32.mrf.mxu0  ;;  %v3812_v19 = vpop.f32.mrf.mxu1  ;;  %2770 = vmatmul.mubr.bf16.gmra.mxu1 %v4712_v7  ;;  %2867 = vmatmul.mubr.bf16.gmra.mxu0 %v4715_v4 }
 0x13b   :  { %v5703_v20 = vadd.f32 %v3811_v16, %v2220_v12  ;;  %2874 = vmatprep.mubr.bf16.mxu0 %v4720_v6  ;;  %2971 = vmatprep.mubr.bf16.mxu1 %v4723_v5  ;;  %v4725_v6 = vld [vmem:[%s6510_s0 + $0x3c8] ss:$52 sps:$4 sm:$0xff]   ;;  %v4728_v5 = vld [vmem:[%s6510_s0 + $0x90] ss:$52 sps:$4 sm:$0xff]  }
 0x13c   :  { %v3725_v26 = vpop.f32.mrf.mxu0  ;;  %v3813_v13 = vpop.f32.mrf.mxu1  ;;  %v4736_v12 = vld [vmem:[%s6510_s0 + $0xfc] ss:$52 sps:$4 sm:$0xff]  }
 0x13d   :  { %v5707_v34 = vadd.f32 %v3725_v26, %v3724_v27  ;;  %v3814_v33 = vadd.f32 %v3813_v13, %v3812_v19  ;;  %v2236_v19 = vadd.f32 %v5653_v44, %v5517_v11 }
 0x13e   :  { %v3727_v24 = vpop.f32.mrf.mxu0  ;;  %v3815_v35 = vpop.f32.mrf.mxu1 }
 0x13f   :  { %v5715_v42 = vadd.f32 %v3814_v33, %v2225_v30 }
 0x140   :  { %v3728_v21 = vpop.f32.mrf.mxu0  ;;  %v3816_v46 = vpop.f32.mrf.mxu1 }
 0x141   :  { %v5725_v49 = vadd.f32 %v3728_v21, %v3727_v24  ;;  %v3817_v50 = vadd.f32 %v3816_v46, %v3815_v35  ;;  %v4731_v46 = vld [vmem:[%s6510_s0 + $0x430] ss:$52 sps:$4 sm:$0xff]  }
 0x142   :  { %v3818_v51 = vpop.f32.mrf.mxu1  ;;  %v3882_v56 = vpop.f32.mrf.mxu0  ;;  %2875 = vmatmul.mubr.bf16.gmra.mxu0 %v4718_v54  ;;  %2972 = vmatmul.mubr.bf16.vlgmr.msra.gmra.mxu1 %v4721_v37  ;;  %v2241_v37 = vadd.f32 %v5659_v31, %v5517_v11  ;;  %v4740_v31 = vld [vmem:[%s6510_s0 + $0x49c] ss:$52 sps:$4 sm:$0xff]  }
 0x143   :  { %v5727_v57 = vadd.f32 %v3817_v50, %v2228_v60  ;;  %2882 = vmatprep.mubr.bf16.mxu0 %v4727_v43  ;;  %2979 = vmatprep.mubr.bf16.mxu1 %v4730_v36 }
 0x144   :  { %v3819_v62 = vpop.f32.mrf.mxu1  ;;  %v3883_v0 = vpop.f32.mrf.mxu0 }
 0x145   :  { %v3820_v3 = vadd.f32 %v3819_v62, %v3818_v51  ;;  %v3884_v7 = vadd.f32 %v3883_v0, %v3882_v56  ;;  %v4743_v51 = vld [vmem:[%s6510_s0 + $0x164] ss:$52 sps:$4 sm:$0xff]   ;;  %v2244_v0 = vadd.f32 %v5677_v48, %v5517_v11 }
 0x146   :  { %v3821_v4 = vpop.f32.mrf.mxu1  ;;  %v3885_v28 = vpop.f32.mrf.mxu0 }
 0x147   :  { %v5737_v10 = vadd.f32 %v3820_v3, %v2233_v59  ;;  %v5740_v18 = vadd.f32 %v3884_v7, %v5532_v25 }
 0x148   :  { %v3822_v16 = vpop.f32.mrf.mxu1  ;;  %v3886_v27 = vpop.f32.mrf.mxu0 }
 0x149   :  { %v3823_v26 = vadd.f32 %v3822_v16, %v3821_v4  ;;  %v3887_v13 = vadd.f32 %v3886_v27, %v3885_v28 }
 0x14a   :  { %v3824_v30 = vpop.f32.mrf.mxu1  ;;  %v3888_v33 = vpop.f32.mrf.mxu0  ;;  %2883 = vmatmul.mubr.bf16.gmra.mxu0 %v4725_v6  ;;  %2980 = vmatmul.mubr.bf16.gmra.mxu1 %v4728_v5 }
 0x14b   :  { %v5750_v25 = vadd.f32 %v3823_v26, %v2236_v19  ;;  %v5753_v24 = vadd.f32 %v3887_v13, %v5547_v40  ;;  %2890 = vmatprep.mubr.bf16.mxu0 %v4733_v1  ;;  %2987 = vmatprep.mubr.bf16.mxu1 %v4736_v12  ;;  %v4734_v40 = vld [vmem:[%s6510_s0 + $0xf8] ss:$52 sps:$4 sm:$0xff]   ;;  %v2249_v1 = vadd.f32 %v5683_v63, %v5517_v11 }
 0x14c   :  { %v3825_v35 = vpop.f32.mrf.mxu1  ;;  %v3889_v54 = vpop.f32.mrf.mxu0  ;;  %v4738_v19 = vld [vmem:[%s6510_s0 + $0x498] ss:$52 sps:$4 sm:$0xff]  }
 0x14d   :  { %v3826_v43 = vadd.f32 %v3825_v35, %v3824_v30  ;;  %v3890_v44 = vadd.f32 %v3889_v54, %v3888_v33  ;;  %v4746_v63 = vld [vmem:[%s6510_s0 + $0x504] ss:$52 sps:$4 sm:$0xff]   ;;  %v4749_v30 = vld [vmem:[%s6510_s0 + $0x1cc] ss:$52 sps:$4 sm:$0xff]   ;;  %v2252_v54 = vadd.f32 %v5701_v15, %v5517_v11 }
 0x14e   :  { %v3827_v36 = vpop.f32.mrf.mxu1  ;;  %v3891_v21 = vpop.f32.mrf.mxu0 }
 0x14f   :  { %v5763_v60 = vadd.f32 %v3826_v43, %v2241_v37  ;;  %v5766_v50 = vadd.f32 %v3890_v44, %v5562_v52 }
 0x150   :  { %v3828_v56 = vpop.f32.mrf.mxu1  ;;  %v3892_v62 = vpop.f32.mrf.mxu0 }
 0x151   :  { %v3829_v59 = vadd.f32 %v3828_v56, %v3827_v36  ;;  %v3893_v3 = vadd.f32 %v3892_v62, %v3891_v21 }
 0x152   :  { %v3830_v7 = vpop.f32.mrf.mxu1  ;;  %v3894_v4 = vpop.f32.mrf.mxu0  ;;  %2891 = vmatmul.mubr.bf16.gmra.mxu0 %v4731_v46  ;;  %2988 = vmatmul.mubr.bf16.gmra.mxu1 %v4734_v40 }
 0x153   :  { %v5776_v52 = vadd.f32 %v3829_v59, %v2244_v0  ;;  %v5779_v28 = vadd.f32 %v3893_v3, %v5577_v2  ;;  %2898 = vmatprep.mubr.bf16.mxu0 %v4740_v31  ;;  %2995 = vmatprep.mubr.bf16.mxu1 %v4743_v51  ;;  %v4741_v2 = vld [vmem:[%s6510_s0 + $0x160] ss:$52 sps:$4 sm:$0xff]   ;;  %v2257_v31 = vadd.f32 %v5707_v34, %v5517_v11 }
 0x154   :  { %v3831_v6 = vpop.f32.mrf.mxu1  ;;  %v3895_v5 = vpop.f32.mrf.mxu0  ;;  %v4744_v0 = vld [vmem:[%s6510_s0 + $0x500] ss:$52 sps:$4 sm:$0xff]  }
 0x155   :  { %v3832_v12 = vadd.f32 %v3831_v6, %v3830_v7  ;;  %v3896_v48 = vadd.f32 %v3895_v5, %v3894_v4  ;;  %v4753_v34 = vld [vmem:[%s6510_s0 + $0x56c] ss:$52 sps:$4 sm:$0xff]   ;;  %v4756_v7 = vld [vmem:[%s6510_s0 + $0x234] ss:$52 sps:$4 sm:$0xff]   ;;  %v2260_v5 = vadd.f32 %v5725_v49, %v5517_v11 }
 0x156   :  { %v3833_v16 = vpop.f32.mrf.mxu1  ;;  %v3897_v27 = vpop.f32.mrf.mxu0 }
 0x157   :  { %v5789_v26 = vadd.f32 %v3832_v12, %v2249_v1  ;;  %v5792_v13 = vadd.f32 %v3896_v48, %v5592_v17 }
 0x158   :  { %v3834_v33 = vpop.f32.mrf.mxu1  ;;  %v3898_v35 = vpop.f32.mrf.mxu0 }
 0x159   :  { %v3835_v37 = vadd.f32 %v3834_v33, %v3833_v16  ;;  %v3899_v43 = vadd.f32 %v3898_v35, %v3897_v27 }
 0x15a   :  { %v3836_v44 = vpop.f32.mrf.mxu1  ;;  %v3900_v36 = vpop.f32.mrf.mxu0  ;;  %2899 = vmatmul.mubr.bf16.gmra.mxu0 %v4738_v19  ;;  %2996 = vmatmul.mubr.bf16.gmra.mxu1 %v4741_v2 }
 0x15b   :  { %v5802_v17 = vadd.f32 %v3835_v37, %v2252_v54  ;;  %v5805_v21 = vadd.f32 %v3899_v43, %v5607_v32  ;;  %2906 = vmatprep.mubr.bf16.mxu0 %v4746_v63  ;;  %3003 = vmatprep.mubr.bf16.mxu1 %v4749_v30  ;;  %v4747_v32 = vld [vmem:[%s6510_s0 + $0x1c8] ss:$52 sps:$4 sm:$0xff]   ;;  %v2265_v63 = vadd.f32 %v5438_v14, %v5517_v11 }
 0x15c   :  { %v3837_v46 = vpop.f32.mrf.mxu1  ;;  %v3901_v40 = vpop.f32.mrf.mxu0  ;;  %v4751_v54 = vld [vmem:[%s6510_s0 + $0x568] ss:$52 sps:$4 sm:$0xff]  }
 0x15d   :  { %v3838_v51 = vadd.f32 %v3837_v46, %v3836_v44  ;;  %v3902_v15 = vadd.f32 %v3901_v40, %v3900_v36  ;;  %v4759_v14 = vld [vmem:[%s6510_s0 + $0x5d4] ss:$52 sps:$4 sm:$0xff]   ;;  %v4762_v44 = vld [vmem:[%s6510_s0 + $0x29c] ss:$52 sps:$4 sm:$0xff]   ;;  %v2268_v40 = vadd.f32 %v5448_v22, %v5517_v11 }
 0x15e   :  { %v3839_v56 = vpop.f32.mrf.mxu1  ;;  %v3903_v62 = vpop.f32.mrf.mxu0 }
 0x15f   :  { %v5815_v59 = vadd.f32 %v3838_v51, %v2257_v31  ;;  %v5818_v3 = vadd.f32 %v3902_v15, %v5619_v47 }
 0x160   :  { %v3840_v4 = vpop.f32.mrf.mxu1  ;;  %v3904_v6 = vpop.f32.mrf.mxu0 }
 0x161   :  { %v3841_v1 = vadd.f32 %v3840_v4, %v3839_v56  ;;  %v3905_v12 = vadd.f32 %v3904_v6, %v3903_v62 }
 0x162   :  { %v3842_v48 = vpop.f32.mrf.mxu1  ;;  %v3906_v16 = vpop.f32.mrf.mxu0  ;;  %2907 = vmatmul.mubr.bf16.gmra.mxu0 %v4744_v0  ;;  %3004 = vmatmul.mubr.bf16.gmra.mxu1 %v4747_v32 }
 0x163   :  { %v5828_v47 = vadd.f32 %v3841_v1, %v2260_v5  ;;  %v5831_v27 = vadd.f32 %v3905_v12, %v5631_v58  ;;  %2914 = vmatprep.mubr.bf16.mxu0 %v4753_v34  ;;  %3011 = vmatprep.mubr.bf16.mxu1 %v4756_v7  ;;  %v4754_v58 = vld [vmem:[%s6510_s0 + $0x230] ss:$52 sps:$4 sm:$0xff]   ;;  %v2273_v34 = vadd.f32 %v5452_v29, %v5517_v11 }
 0x164   :  { %v3843_v19 = vpop.f32.mrf.mxu1  ;;  %v3907_v2 = vpop.f32.mrf.mxu0  ;;  %v4757_v5 = vld [vmem:[%s6510_s0 + $0x5d0] ss:$52 sps:$4 sm:$0xff]  }
 0x165   :  { %v3844_v30 = vadd.f32 %v3843_v19, %v3842_v48  ;;  %v3908_v49 = vadd.f32 %v3907_v2, %v3906_v16  ;;  %v4766_v29 = vld [vmem:[%s6510_s0 + $0x63c] ss:$52 sps:$4 sm:$0xff]   ;;  %v4769_v48 = vld [vmem:[%s6510_s0 + $0x304] ss:$52 sps:$4 sm:$0xff]   ;;  %v2276_v2 = vadd.f32 %v5468_v39, %v5517_v11 }
 0x166   :  { %v3845_v33 = vpop.f32.mrf.mxu1  ;;  %v3909_v35 = vpop.f32.mrf.mxu0 }
 0x167   :  { %v5841_v37 = vadd.f32 %v3844_v30, %v2265_v63  ;;  %v5844_v43 = vadd.f32 %v3908_v49, %v5643_v9 }
 0x168   :  { %v3846_v36 = vpop.f32.mrf.mxu1  ;;  %v3910_v46 = vpop.f32.mrf.mxu0 }
 0x169   :  { %v3847_v31 = vadd.f32 %v3846_v36, %v3845_v33  ;;  %v3911_v51 = vadd.f32 %v3910_v46, %v3909_v35 }
 0x16a   :  { %v3848_v15 = vpop.f32.mrf.mxu1  ;;  %v3912_v56 = vpop.f32.mrf.mxu0  ;;  %2915 = vmatmul.mubr.bf16.gmra.mxu0 %v4751_v54  ;;  %3012 = vmatmul.mubr.bf16.gmra.mxu1 %v4754_v58 }
 0x16b   :  { %v5854_v9 = vadd.f32 %v3847_v31, %v2268_v40  ;;  %v5857_v62 = vadd.f32 %v3911_v51, %v5655_v23  ;;  %2922 = vmatprep.mubr.bf16.mxu0 %v4759_v14  ;;  %3019 = vmatprep.mubr.bf16.mxu1 %v4762_v44  ;;  %v4760_v23 = vld [vmem:[%s6510_s0 + $0x298] ss:$52 sps:$4 sm:$0xff]   ;;  %v2281_v14 = vadd.f32 %v5472_v45, %v5517_v11 }
 0x16c   :  { %v3849_v0 = vpop.f32.mrf.mxu1  ;;  %v3913_v32 = vpop.f32.mrf.mxu0  ;;  %v4764_v40 = vld [vmem:[%s6510_s0 + $0x638] ss:$52 sps:$4 sm:$0xff]  }
 0x16d   :  { %v3850_v7 = vadd.f32 %v3849_v0, %v3848_v15  ;;  %v3914_v22 = vadd.f32 %v3913_v32, %v3912_v56  ;;  %v4772_v45 = vld [vmem:[%s6510_s0 + $0x36c] ss:$52 sps:$4 sm:$0xff]   ;;  %v4773_v15 = vld [vmem:[%s6510_s0 + $0x30] ss:$52 sps:$4 sm:$0xff]   ;;  %v2284_v32 = vadd.f32 %v5488_v55, %v5517_v11 }
 0x16e   :  { %v3851_v4 = vpop.f32.mrf.mxu1  ;;  %v3915_v6 = vpop.f32.mrf.mxu0 }
 0x16f   :  { %v5867_v1 = vadd.f32 %v3850_v7, %v2273_v34  ;;  %v5870_v12 = vadd.f32 %v3914_v22, %v5667_v41 }
 0x170   :  { %v3852_v16 = vpop.f32.mrf.mxu1  ;;  %v3916_v19 = vpop.f32.mrf.mxu0 }
 0x171   :  { %v3853_v63 = vadd.f32 %v3852_v16, %v3851_v4  ;;  %v3917_v30 = vadd.f32 %v3916_v19, %v3915_v6 }
 0x172   :  { %v3854_v49 = vpop.f32.mrf.mxu1  ;;  %v3918_v33 = vpop.f32.mrf.mxu0  ;;  %2923 = vmatmul.mubr.bf16.gmra.mxu0 %v4757_v5  ;;  %3020 = vmatmul.mubr.bf16.gmra.mxu1 %v4760_v23 }
 0x173   :  { %v5880_v41 = vadd.f32 %v3853_v63, %v2276_v2  ;;  %v5883_v35 = vadd.f32 %v3917_v30, %v5679_v53  ;;  %2930 = vmatprep.mubr.bf16.mxu0 %v4766_v29  ;;  %3027 = vmatprep.mubr.bf16.mxu1 %v4769_v48  ;;  %v4767_v53 = vld [vmem:[%s6510_s0 + $0x300] ss:$52 sps:$4 sm:$0xff]   ;;  %v2289_v29 = vadd.f32 %v5492_v61, %v5517_v11  ;;  %v4770_v2 = vld [vmem:[%s6510_s0 + $0x368] ss:$52 sps:$4 sm:$0xff]  }
 0x174   :  { %v3855_v54 = vpop.f32.mrf.mxu1  ;;  %v3919_v58 = vpop.f32.mrf.mxu0  ;;  %v4777_v61 = vld [vmem:[%s6510_s0 + $0x3d4] ss:$52 sps:$4 sm:$0xff]  }
 0x175   :  { %v3856_v44 = vadd.f32 %v3855_v54, %v3854_v49  ;;  %v3920_v39 = vadd.f32 %v3919_v58, %v3918_v33  ;;  %v4778_v49 = vld [vmem:[%s6510_s0 + $0x100] ss:$52 sps:$4 sm:$0xff]   ;;  %v2292_v58 = vadd.f32 %v5511_v8, %v5517_v11  ;;  %v4775_v8 = vld [vmem:[%s6510_s0 + $0x3d0] ss:$52 sps:$4 sm:$0xff]   ;;  %v4779_v11 = vld [vmem:[%s6510_s0 + $0x168] ss:$52 sps:$4 sm:$0xff]  }
 0x176   :  { %v3857_v36 = vpop.f32.mrf.mxu1  ;;  %v3921_v46 = vpop.f32.mrf.mxu0 }
 0x177   :  { %v5893_v31 = vadd.f32 %v3856_v44, %v2281_v14  ;;  %v5896_v51 = vadd.f32 %v3920_v39, %v5691_v38 }
 0x178   :  { %v3858_v56 = vpop.f32.mrf.mxu1  ;;  %v3922_v0 = vpop.f32.mrf.mxu0 }
 0x179   :  { %v3859_v34 = vadd.f32 %v3858_v56, %v3857_v36  ;;  %v3923_v7 = vadd.f32 %v3922_v0, %v3921_v46 }
 0x17a   :  { %v3860_v22 = vpop.f32.mrf.mxu1  ;;  %v3924_v4 = vpop.f32.mrf.mxu0  ;;  %2931 = vmatmul.mubr.bf16.gmra.mxu0 %v4764_v40  ;;  %3028 = vmatmul.mubr.bf16.gmra.mxu1 %v4767_v53 }
 0x17b   :  { %v5906_v38 = vadd.f32 %v3859_v34, %v2284_v32  ;;  %v5909_v6 = vadd.f32 %v3923_v7, %v5703_v20  ;;  %3035 = vmatprep.mubr.bf16.mxu1 %v4772_v45  ;;  %4354 = vmatprep.mubr.bf16.mxu0 %v4773_v15  ;;  %v4774_v20 = vld [vmem:[%s6510_s0 + $0x98] ss:$52 sps:$4 sm:$0xff]   ;;  %v4782_v34 = vld [vmem:[%s6510_s0 + $0x43c] ss:$52 sps:$4 sm:$0xff]  }
 0x17c   :  { %v3861_v5 = vpop.f32.mrf.mxu1  ;;  %v3925_v23 = vpop.f32.mrf.mxu0  ;;  %v4783_v7 = vld [vmem:[%s6510_s0 + $0x1d0] ss:$52 sps:$4 sm:$0xff]  }
 0x17d   :  { %v3862_v48 = vadd.f32 %v3861_v5, %v3860_v22  ;;  %v3926_v55 = vadd.f32 %v3925_v23, %v3924_v4 }
 0x17e   :  { %v3863_v16 = vpop.f32.mrf.mxu1  ;;  %v3927_v19 = vpop.f32.mrf.mxu0 }
 0x17f   :  { %v5919_v63 = vadd.f32 %v3862_v48, %v2289_v29  ;;  %v5922_v30 = vadd.f32 %v3926_v55, %v5715_v42 }
 0x180   :  { %v3864_v33 = vpop.f32.mrf.mxu1  ;;  %v3928_v54 = vpop.f32.mrf.mxu0 }
 0x181   :  { %v3865_v14 = vadd.f32 %v3864_v33, %v3863_v16  ;;  %v3929_v44 = vadd.f32 %v3928_v54, %v3927_v19  ;;  %v4787_v54 = vld [vmem:[%s6510_s0 + $0x4a4] ss:$52 sps:$4 sm:$0xff]  }
 0x182   :  { %v3930_v39 = vpop.f32.mrf.mxu0  ;;  %v3994_v36 = vpop.f32.mrf.mxu1  ;;  %3036 = vmatmul.mubr.bf16.gmra.mxu1 %v4770_v2  ;;  %4355 = vmatmul.mubr.bf16.vlgmr.msra.gmra.mxu0 %v4774_v20 }
 0x183   :  { %v5932_v42 = vadd.f32 %v3865_v14, %v2292_v58  ;;  %v5935_v46 = vadd.f32 %v3929_v44, %v5727_v57  ;;  %3043 = vmatprep.mubr.bf16.mxu1 %v4777_v61  ;;  %4358 = vmatprep.mubr.bf16.mxu0 %v4778_v49  ;;  %v4780_v49 = vld [vmem:[%s6510_s0 + $0x438] ss:$52 sps:$4 sm:$0xff]   ;;  %v4788_v58 = vld [vmem:[%s6510_s0 + $0x2a0] ss:$52 sps:$4 sm:$0xff]  }
 0x184   :  { %v3931_v40 = vpop.f32.mrf.mxu0  ;;  %v3995_v53 = vpop.f32.mrf.mxu1 }
 0x185   :  { %v3932_v45 = vadd.f32 %v3931_v40, %v3930_v39  ;;  %v3996_v15 = vadd.f32 %v3995_v53, %v3994_v36 }
 0x186   :  { %v3933_v56 = vpop.f32.mrf.mxu0  ;;  %v3997_v0 = vpop.f32.mrf.mxu1 }
 0x187   :  { %v5944_v32 = vadd.f32 %v3932_v45, %v5737_v10  ;;  %v5947_v57 = vadd.f32 %v3996_v15, %v5740_v18 }
 0x188   :  { %v3934_v22 = vpop.f32.mrf.mxu0  ;;  %v3998_v4 = vpop.f32.mrf.mxu1 }
 0x189   :  { %v3935_v5 = vadd.f32 %v3934_v22, %v3933_v56  ;;  %v3999_v23 = vadd.f32 %v3998_v4, %v3997_v0  ;;  %v4792_v22 = vld [vmem:[%s6510_s0 + $0x50c] ss:$52 sps:$4 sm:$0xff]   ;;  %v4793_v4 = vld [vmem:[%s6510_s0 + $0x370] ss:$52 sps:$4 sm:$0xff]  }
 0x18a   :  { %v3936_v29 = vpop.f32.mrf.mxu0  ;;  %v4000_v48 = vpop.f32.mrf.mxu1  ;;  %3044 = vmatmul.mubr.bf16.gmra.mxu1 %v4775_v8  ;;  %4359 = vmatmul.mubr.bf16.gmra.mxu0 %v4779_v11 }
 0x18b   :  { %v5956_v10 = vadd.f32 %v3935_v5, %v5750_v25  ;;  %v5959_v18 = vadd.f32 %v3999_v23, %v5753_v24  ;;  %3051 = vmatprep.mubr.bf16.mxu1 %v4782_v34  ;;  %4362 = vmatprep.mubr.bf16.mxu0 %v4783_v7  ;;  %v4784_v25 = vld [vmem:[%s6510_s0 + $0x238] ss:$52 sps:$4 sm:$0xff]   ;;  %v4785_v34 = vld [vmem:[%s6510_s0 + $0x4a0] ss:$52 sps:$4 sm:$0xff]  }
 0x18c   :  { %v3937_v55 = vpop.f32.mrf.mxu0  ;;  %v4001_v16 = vpop.f32.mrf.mxu1 }
 0x18d   :  { %v3938_v19 = vadd.f32 %v3937_v55, %v3936_v29  ;;  %v4002_v2 = vadd.f32 %v4001_v16, %v4000_v48 }
 0x18e   :  { %v3939_v20 = vpop.f32.mrf.mxu0  ;;  %v4003_v61 = vpop.f32.mrf.mxu1 }
 0x18f   :  { %v5968_v33 = vadd.f32 %v3938_v19, %v5763_v60  ;;  %v5971_v24 = vadd.f32 %v4002_v2, %v5766_v50 }
 0x190   :  { %v3940_v14 = vpop.f32.mrf.mxu0  ;;  %v4004_v44 = vpop.f32.mrf.mxu1 }
 0x191   :  { %v3941_v39 = vadd.f32 %v3940_v14, %v3939_v20  ;;  %v4005_v36 = vadd.f32 %v4004_v44, %v4003_v61  ;;  %v4797_v14 = vld [vmem:[%s6510_s0 + $0x574] ss:$52 sps:$4 sm:$0xff]  }
 0x192   :  { %v3942_v40 = vpop.f32.mrf.mxu0  ;;  %v4006_v53 = vpop.f32.mrf.mxu1  ;;  %3052 = vmatmul.mubr.bf16.gmra.mxu1 %v4780_v49  ;;  %4363 = vmatmul.mubr.bf16.gmra.mxu0 %v4784_v25  ;;  %v4798_v44 = vld [vmem:[%s6510_s0 + $0x440] ss:$52 sps:$4 sm:$0xff]  }
 0x193   :  { %v5980_v60 = vadd.f32 %v3941_v39, %v5776_v52  ;;  %v5983_v50 = vadd.f32 %v4005_v36, %v5779_v28  ;;  %3059 = vmatprep.mubr.bf16.mxu1 %v4787_v54  ;;  %4366 = vmatprep.mubr.bf16.mxu0 %v4788_v58  ;;  %v4789_v52 = vld [vmem:[%s6510_s0 + $0x308] ss:$52 sps:$4 sm:$0xff]  }
 0x194   :  { %v3943_v45 = vpop.f32.mrf.mxu0  ;;  %v4007_v15 = vpop.f32.mrf.mxu1  ;;  %v4790_v54 = vld [vmem:[%s6510_s0 + $0x508] ss:$52 sps:$4 sm:$0xff]  }
 0x195   :  { %v3944_v56 = vadd.f32 %v3943_v45, %v3942_v40  ;;  %v4008_v0 = vadd.f32 %v4007_v15, %v4006_v53 }
 0x196   :  { %v3945_v8 = vpop.f32.mrf.mxu0  ;;  %v4009_v11 = vpop.f32.mrf.mxu1 }
 0x197   :  { %v5992_v7 = vadd.f32 %v3944_v56, %v5789_v26  ;;  %v5995_v28 = vadd.f32 %v4008_v0, %v5792_v13 }
 0x198   :  { %v3946_v5 = vpop.f32.mrf.mxu0  ;;  %v4010_v23 = vpop.f32.mrf.mxu1 }
 0x199   :  { %v3947_v29 = vadd.f32 %v3946_v5, %v3945_v8  ;;  %v4011_v48 = vadd.f32 %v4010_v23, %v4009_v11  ;;  %v4802_v5 = vld [vmem:[%s6510_s0 + $0x5dc] ss:$52 sps:$4 sm:$0xff]  }
 0x19a   :  { %v3948_v55 = vpop.f32.mrf.mxu0  ;;  %v4012_v16 = vpop.f32.mrf.mxu1  ;;  %3060 = vmatmul.mubr.bf16.gmra.mxu1 %v4785_v34  ;;  %4367 = vmatmul.mubr.bf16.gmra.mxu0 %v4789_v52  ;;  %v4803_v23 = vld [vmem:[%s6510_s0 + $0x510] ss:$52 sps:$4 sm:$0xff]  }
 0x19b   :  { %v6004_v26 = vadd.f32 %v3947_v29, %v5802_v17  ;;  %v6007_v13 = vadd.f32 %v4011_v48, %v5805_v21  ;;  %3067 = vmatprep.mubr.bf16.mxu1 %v4792_v22  ;;  %4370 = vmatprep.mubr.bf16.mxu0 %v4793_v4  ;;  %v4794_v17 = vld [vmem:[%s6510_s0 + $0x3d8] ss:$52 sps:$4 sm:$0xff]   ;;  %v4795_v22 = vld [vmem:[%s6510_s0 + $0x570] ss:$52 sps:$4 sm:$0xff]  }
 0x19c   :  { %v3949_v19 = vpop.f32.mrf.mxu0  ;;  %v4013_v2 = vpop.f32.mrf.mxu1 }
 0x19d   :  { %v3950_v20 = vadd.f32 %v3949_v19, %v3948_v55  ;;  %v4014_v61 = vadd.f32 %v4013_v2, %v4012_v16 }
 0x19e   :  { %v3951_v49 = vpop.f32.mrf.mxu0  ;;  %v4015_v25 = vpop.f32.mrf.mxu1 }
 0x19f   :  { %v6016_v58 = vadd.f32 %v3950_v20, %v5815_v59  ;;  %v6019_v21 = vadd.f32 %v4014_v61, %v5818_v3 }
 0x1a0   :  { %v3952_v39 = vpop.f32.mrf.mxu0  ;;  %v4016_v36 = vpop.f32.mrf.mxu1 }
 0x1a1   :  { %v3953_v40 = vadd.f32 %v3952_v39, %v3951_v49  ;;  %v4017_v53 = vadd.f32 %v4016_v36, %v4015_v25  ;;  %v4807_v39 = vld [vmem:[%s6510_s0 + $0x644] ss:$52 sps:$4 sm:$0xff]   ;;  %v4808_v36 = vld [vmem:[%s6510_s0 + $0x5e0] ss:$52 sps:$4 sm:$0xff]  }
 0x1a2   :  { %v3954_v45 = vpop.f32.mrf.mxu0  ;;  %v4018_v15 = vpop.f32.mrf.mxu1  ;;  %3068 = vmatmul.mubr.bf16.gmra.mxu1 %v4790_v54  ;;  %4371 = vmatmul.mubr.bf16.gmra.mxu0 %v4794_v17 }
 0x1a3   :  { %v6028_v59 = vadd.f32 %v3953_v40, %v5828_v47  ;;  %v6031_v3 = vadd.f32 %v4017_v53, %v5831_v27  ;;  %3075 = vmatprep.mubr.bf16.mxu1 %v4797_v14  ;;  %4374 = vmatprep.mubr.bf16.mxu0 %v4798_v44  ;;  %v4799_v47 = vld [vmem:[%s6510_s0 + $0x4a8] ss:$52 sps:$4 sm:$0xff]   ;;  %v4800_v14 = vld [vmem:[%s6510_s0 + $0x5d8] ss:$52 sps:$4 sm:$0xff]  }
 0x1a4   :  { %v3955_v56 = vpop.f32.mrf.mxu0  ;;  %v4019_v0 = vpop.f32.mrf.mxu1 }
 0x1a5   :  { %v3956_v8 = vadd.f32 %v3955_v56, %v3954_v45  ;;  %v4020_v11 = vadd.f32 %v4019_v0, %v4018_v15 }
 0x1a6   :  { %v3957_v34 = vpop.f32.mrf.mxu0  ;;  %v4021_v52 = vpop.f32.mrf.mxu1 }
 0x1a7   :  { %v6040_v4 = vadd.f32 %v3956_v8, %v5841_v37  ;;  %v6043_v27 = vadd.f32 %v4020_v11, %v5844_v43 }
 0x1a8   :  { %v3958_v29 = vpop.f32.mrf.mxu0  ;;  %v4022_v48 = vpop.f32.mrf.mxu1 }
 0x1a9   :  { %v3959_v55 = vadd.f32 %v3958_v29, %v3957_v34  ;;  %v4023_v16 = vadd.f32 %v4022_v48, %v4021_v52 }
 0x1aa   :  { %v3960_v19 = vpop.f32.mrf.mxu0  ;;  %v4024_v2 = vpop.f32.mrf.mxu1  ;;  %3076 = vmatmul.mubr.bf16.gmra.mxu1 %v4795_v22  ;;  %4375 = vmatmul.mubr.bf16.gmra.mxu0 %v4799_v47 }
 0x1ab   :  { %v6052_v37 = vadd.f32 %v3959_v55, %v5854_v9  ;;  %v6055_v43 = vadd.f32 %v4023_v16, %v5857_v62  ;;  %3083 = vmatprep.mubr.bf16.mxu1 %v4802_v5  ;;  %4378 = vmatprep.mubr.bf16.mxu0 %v4803_v23  ;;  %v4804_v9 = vld [vmem:[%s6510_s0 + $0x578] ss:$52 sps:$4 sm:$0xff]   ;;  %v4805_v5 = vld [vmem:[%s6510_s0 + $0x640] ss:$52 sps:$4 sm:$0xff]  }
 0x1ac   :  { %v3961_v20 = vpop.f32.mrf.mxu0  ;;  %v4025_v61 = vpop.f32.mrf.mxu1 }
 0x1ad   :  { %v3962_v49 = vadd.f32 %v3961_v20, %v3960_v19  ;;  %v4026_v25 = vadd.f32 %v4025_v61, %v4024_v2 }
 0x1ae   :  { %v3963_v54 = vpop.f32.mrf.mxu0  ;;  %v4027_v17 = vpop.f32.mrf.mxu1 }
 0x1af   :  { %v6064_v44 = vadd.f32 %v3962_v49, %v5867_v1  ;;  %v6067_v62 = vadd.f32 %v4026_v25, %v5870_v12 }
 0x1b0   :  { %v3964_v40 = vpop.f32.mrf.mxu0  ;;  %v4028_v53 = vpop.f32.mrf.mxu1 }
 0x1b1   :  { %v3965_v45 = vadd.f32 %v3964_v40, %v3963_v54  ;;  %v4029_v15 = vadd.f32 %v4028_v53, %v4027_v17 }
 0x1b2   :  { %v3966_v56 = vpop.f32.mrf.mxu0  ;;  %v4030_v0 = vpop.f32.mrf.mxu1  ;;  %3084 = vmatmul.mubr.bf16.gmra.mxu1 %v4800_v14  ;;  %4379 = vmatmul.mubr.bf16.gmra.mxu0 %v4804_v9 }
 0x1b3   :  { %v6076_v1 = vadd.f32 %v3965_v45, %v5880_v41  ;;  %v6079_v12 = vadd.f32 %v4029_v15, %v5883_v35  ;;  %3091 = vmatprep.mubr.bf16.mxu1 %v4807_v39  ;;  %4382 = vmatprep.mubr.bf16.mxu0 %v4808_v36  ;;  %v4809_v41 = vld [vmem:[%s6510_s0 + $0x648] ss:$52 sps:$4 sm:$0xff]  }
 0x1b4   :  { %v3967_v8 = vpop.f32.mrf.mxu0  ;;  %v4031_v11 = vpop.f32.mrf.mxu1 }
 0x1b5   :  { %v3968_v34 = vadd.f32 %v3967_v8, %v3966_v56  ;;  %v4032_v52 = vadd.f32 %v4031_v11, %v4030_v0 }
 0x1b6   :  { %v3969_v22 = vpop.f32.mrf.mxu0  ;;  %v4033_v47 = vpop.f32.mrf.mxu1 }
 0x1b7   :  { %v6088_v23 = vadd.f32 %v3968_v34, %v5893_v31  ;;  %v6091_v35 = vadd.f32 %v4032_v52, %v5896_v51 }
 0x1b8   :  { %v3970_v29 = vpop.f32.mrf.mxu0  ;;  %v4034_v48 = vpop.f32.mrf.mxu1 }
 0x1b9   :  { %v3971_v55 = vadd.f32 %v3970_v29, %v3969_v22  ;;  %v4035_v16 = vadd.f32 %v4034_v48, %v4033_v47 }
 0x1ba   :  { %v3972_v19 = vpop.f32.mrf.mxu0  ;;  %v4036_v2 = vpop.f32.mrf.mxu1  ;;  %3092 = vmatmul.mubr.bf16.gmra.mxu1 %v4805_v5  ;;  %4383 = vmatmul.mubr.bf16.gmra.mxu0 %v4809_v41 }
 0x1bb   :  { %v6094_v20 = vadd.f32 %v3971_v55, %v5906_v38  ;;  %v6097_v61 = vadd.f32 %v4035_v16, %v5909_v6 }
 0x1bc   :  { %v3973_v49 = vpop.f32.mrf.mxu0  ;;  %v4037_v31 = vpop.f32.mrf.mxu1 }
 0x1bd   :  { %v3974_v25 = vadd.f32 %v3973_v49, %v3972_v19  ;;  %v4038_v54 = vadd.f32 %v4037_v31, %v4036_v2 }
 0x1be   :  { %v3975_v51 = vpop.f32.mrf.mxu0  ;;  %v4039_v17 = vpop.f32.mrf.mxu1 }
 0x1bf   :  { %v6100_v14 = vadd.f32 %v3974_v25, %v5919_v63  ;;  %v6103_v9 = vadd.f32 %v4038_v54, %v5922_v30 }
 0x1c0   :  { %v3976_v39 = vpop.f32.mrf.mxu0  ;;  %v4040_v36 = vpop.f32.mrf.mxu1 }
 0x1c1   :  { %v3977_v40 = vadd.f32 %v3976_v39, %v3975_v51  ;;  %v4041_v38 = vadd.f32 %v4040_v36, %v4039_v17 }
 0x1c2   :  { %v4042_v53 = vpop.f32.mrf.mxu1  ;;  %v4106_v45 = vpop.f32.mrf.mxu0 }
 0x1c3   :  { %v6106_v6 = vadd.f32 %v3977_v40, %v5932_v42  ;;  %v6109_v15 = vadd.f32 %v4041_v38, %v5935_v46 }
 0x1c4   :  { %v4043_v56 = vpop.f32.mrf.mxu1  ;;  %v4107_v0 = vpop.f32.mrf.mxu0 }
 0x1c5   :  { %v4044_v8 = vadd.f32 %v4043_v56, %v4042_v53  ;;  %v4108_v63 = vadd.f32 %v4107_v0, %v4106_v45 }
 0x1c6   :  { %v4045_v11 = vpop.f32.mrf.mxu1  ;;  %v4109_v34 = vpop.f32.mrf.mxu0 }
 0x1c7   :  { %v6112_v30 = vadd.f32 %v4044_v8, %v5944_v32  ;;  %v6115_v52 = vadd.f32 %v4108_v63, %v5947_v57 }
 0x1c8   :  { %v4046_v22 = vpop.f32.mrf.mxu1  ;;  %v4110_v47 = vpop.f32.mrf.mxu0 }
 0x1c9   :  { %v4047_v5 = vadd.f32 %v4046_v22, %v4045_v11  ;;  %v4111_v42 = vadd.f32 %v4110_v47, %v4109_v34 }
 0x1ca   :  { %v4048_v41 = vpop.f32.mrf.mxu1  ;;  %v4112_v29 = vpop.f32.mrf.mxu0 }
 0x1cb   :  { %v6118_v46 = vadd.f32 %v4047_v5, %v5956_v10  ;;  %v6121_v48 = vadd.f32 %v4111_v42, %v5959_v18 }
 0x1cc   :  { %v4049_v55 = vpop.f32.mrf.mxu1  ;;  %v4113_v16 = vpop.f32.mrf.mxu0 }
 0x1cd   :  { %v4050_v19 = vadd.f32 %v4049_v55, %v4048_v41  ;;  %v4114_v32 = vadd.f32 %v4113_v16, %v4112_v29 }
 0x1ce   :  { %v4051_v2 = vpop.f32.mrf.mxu1  ;;  %v4115_v49 = vpop.f32.mrf.mxu0 }
 0x1cf   :  { %v6124_v57 = vadd.f32 %v4050_v19, %v5968_v33  ;;  %v6127_v31 = vadd.f32 %v4114_v32, %v5971_v24 }
 0x1d0   :  { %v4052_v25 = vpop.f32.mrf.mxu1  ;;  %v4116_v54 = vpop.f32.mrf.mxu0 }
 0x1d1   :  { %v4053_v51 = vadd.f32 %v4052_v25, %v4051_v2  ;;  %v4117_v10 = vadd.f32 %v4116_v54, %v4115_v49 }
 0x1d2   :  { %v4054_v17 = vpop.f32.mrf.mxu1  ;;  %v4118_v39 = vpop.f32.mrf.mxu0 }
 0x1d3   :  { %v6130_v18 = vadd.f32 %v4053_v51, %v5980_v60  ;;  %v6133_v36 = vadd.f32 %v4117_v10, %v5983_v50 }
 0x1d4   :  { %v4055_v40 = vpop.f32.mrf.mxu1  ;;  %v4119_v38 = vpop.f32.mrf.mxu0 }
 0x1d5   :  { %v4056_v53 = vadd.f32 %v4055_v40, %v4054_v17  ;;  %v4120_v33 = vadd.f32 %v4119_v38, %v4118_v39 }
 0x1d6   :  { %v4057_v45 = vpop.f32.mrf.mxu1  ;;  %v4121_v56 = vpop.f32.mrf.mxu0 }
 0x1d7   :  { %v6136_v24 = vadd.f32 %v4056_v53, %v5992_v7  ;;  %v6139_v0 = vadd.f32 %v4120_v33, %v5995_v28 }
 0x1d8   :  { %v4058_v8 = vpop.f32.mrf.mxu1  ;;  %v4122_v63 = vpop.f32.mrf.mxu0 }
 0x1d9   :  { %v4059_v11 = vadd.f32 %v4058_v8, %v4057_v45  ;;  %v4123_v60 = vadd.f32 %v4122_v63, %v4121_v56 }
 0x1da   :  { %v4060_v34 = vpop.f32.mrf.mxu1  ;;  %v4124_v22 = vpop.f32.mrf.mxu0 }
 0x1db   :  { %v6142_v50 = vadd.f32 %v4059_v11, %v6004_v26  ;;  %v6145_v47 = vadd.f32 %v4123_v60, %v6007_v13 }
 0x1dc   :  { %v4061_v5 = vpop.f32.mrf.mxu1  ;;  %v4125_v42 = vpop.f32.mrf.mxu0 }
 0x1dd   :  { %v4062_v41 = vadd.f32 %v4061_v5, %v4060_v34  ;;  %v4126_v7 = vadd.f32 %v4125_v42, %v4124_v22 }
 0x1de   :  { %v4063_v29 = vpop.f32.mrf.mxu1  ;;  %v4127_v55 = vpop.f32.mrf.mxu0 }
 0x1df   :  { %v6148_v28 = vadd.f32 %v4062_v41, %v6016_v58  ;;  %v6151_v16 = vadd.f32 %v4126_v7, %v6019_v21 }
 0x1e0   :  { %v4064_v19 = vpop.f32.mrf.mxu1  ;;  %v4128_v32 = vpop.f32.mrf.mxu0 }
 0x1e1   :  { %v4065_v2 = vadd.f32 %v4064_v19, %v4063_v29  ;;  %v4129_v26 = vadd.f32 %v4128_v32, %v4127_v55 }
 0x1e2   :  { %v4066_v49 = vpop.f32.mrf.mxu1  ;;  %v4130_v25 = vpop.f32.mrf.mxu0 }
 0x1e3   :  { %v6154_v13 = vadd.f32 %v4065_v2, %v6028_v59  ;;  %v6157_v54 = vadd.f32 %v4129_v26, %v6031_v3 }
 0x1e4   :  { %v4067_v51 = vpop.f32.mrf.mxu1  ;;  %v4131_v10 = vpop.f32.mrf.mxu0 }
 0x1e5   :  { %v4068_v17 = vadd.f32 %v4067_v51, %v4066_v49  ;;  %v4132_v58 = vadd.f32 %v4131_v10, %v4130_v25 }
 0x1e6   :  { %v4069_v39 = vpop.f32.mrf.mxu1  ;;  %v4133_v40 = vpop.f32.mrf.mxu0 }
 0x1e7   :  { %v6160_v21 = vadd.f32 %v4068_v17, %v6040_v4  ;;  %v6163_v38 = vadd.f32 %v4132_v58, %v6043_v27 }
 0x1e8   :  { %v4070_v53 = vpop.f32.mrf.mxu1  ;;  %v4134_v33 = vpop.f32.mrf.mxu0 }
 0x1e9   :  { %v4071_v45 = vadd.f32 %v4070_v53, %v4069_v39  ;;  %v4135_v59 = vadd.f32 %v4134_v33, %v4133_v40 }
 0x1ea   :  { %v4072_v56 = vpop.f32.mrf.mxu1  ;;  %v4136_v8 = vpop.f32.mrf.mxu0 }
 0x1eb   :  { %v6166_v3 = vadd.f32 %v4071_v45, %v6052_v37  ;;  %v6169_v63 = vadd.f32 %v4135_v59, %v6055_v43 }
 0x1ec   :  { %v4073_v11 = vpop.f32.mrf.mxu1  ;;  %v4137_v60 = vpop.f32.mrf.mxu0 }
 0x1ed   :  { %v4074_v34 = vadd.f32 %v4073_v11, %v4072_v56  ;;  %v4138_v4 = vadd.f32 %v4137_v60, %v4136_v8 }
 0x1ee   :  { %v4075_v22 = vpop.f32.mrf.mxu1  ;;  %v4139_v5 = vpop.f32.mrf.mxu0 }
 0x1ef   :  { %v6172_v27 = vadd.f32 %v4074_v34, %v6064_v44  ;;  %v6175_v42 = vadd.f32 %v4138_v4, %v6067_v62 }
 0x1f0   :  { %v4076_v41 = vpop.f32.mrf.mxu1  ;;  %v4140_v7 = vpop.f32.mrf.mxu0 }
 0x1f1   :  { %v4077_v29 = vadd.f32 %v4076_v41, %v4075_v22  ;;  %v4141_v37 = vadd.f32 %v4140_v7, %v4139_v5 }
 0x1f2   :  { %v4078_v55 = vpop.f32.mrf.mxu1  ;;  %v4142_v19 = vpop.f32.mrf.mxu0 }
 0x1f3   :  { %v6178_v43 = vadd.f32 %v4077_v29, %v6076_v1  ;;  %v6181_v32 = vadd.f32 %v4141_v37, %v6079_v12 }
 0x1f4   :  { %v4079_v2 = vpop.f32.mrf.mxu1  ;;  %v4143_v26 = vpop.f32.mrf.mxu0 }
 0x1f5   :  { %v4080_v49 = vadd.f32 %v4079_v2, %v4078_v55  ;;  %v4144_v44 = vadd.f32 %v4143_v26, %v4142_v19 }
 0x1f6   :  { %v4081_v25 = vpop.f32.mrf.mxu1  ;;  %v4145_v51 = vpop.f32.mrf.mxu0 }
 0x1f7   :  { %v6184_v62 = vadd.f32 %v4080_v49, %v6088_v23  ;;  %v6187_v10 = vadd.f32 %v4144_v44, %v6091_v35 }
 0x1f8   :  { %v4082_v17 = vpop.f32.mrf.mxu1  ;;  %v4146_v58 = vpop.f32.mrf.mxu0 }
 0x1f9   :  { %v4083_v39 = vadd.f32 %v4082_v17, %v4081_v25  ;;  %v4147_v1 = vadd.f32 %v4146_v58, %v4145_v51 }
 0x1fa   :  { %v4084_v40 = vpop.f32.mrf.mxu1  ;;  %v4148_v53 = vpop.f32.mrf.mxu0 }
 0x1fb   :  { %v6190_v12 = vadd.f32 %v4083_v39, %v6094_v20  ;;  %v6193_v33 = vadd.f32 %v4147_v1, %v6097_v61 }
 0x1fc   :  { %v4085_v45 = vpop.f32.mrf.mxu1  ;;  %v4149_v59 = vpop.f32.mrf.mxu0 }
 0x1fd   :  { %v4086_v56 = vadd.f32 %v4085_v45, %v4084_v40  ;;  %v4150_v23 = vadd.f32 %v4149_v59, %v4148_v53 }
 0x1fe   :  { %v4087_v8 = vpop.f32.mrf.mxu1  ;;  %v4151_v11 = vpop.f32.mrf.mxu0 }
 0x1ff   :  { %v6196_v35 = vadd.f32 %v4086_v56, %v6100_v14  ;;  %v6199_v60 = vadd.f32 %v4150_v23, %v6103_v9 }
 0x200   :  { %v4088_v34 = vpop.f32.mrf.mxu1  ;;  %v4152_v4 = vpop.f32.mrf.mxu0 }
 0x201   :  { %v4089_v22 = vadd.f32 %v4088_v34, %v4087_v8  ;;  %v4153_v20 = vadd.f32 %v4152_v4, %v4151_v11 }
 0x202   :  { %v4154_v5 = vpop.f32.mrf.mxu0  ;;  %v6201_v41 = vpop.f32.mrf.mxu1 }
 0x203   :  { %v6204_v61 = vadd.f32 %v4089_v22, %v6106_v6  ;;  %v6207_v7 = vadd.f32 %v4153_v20, %v6109_v15 }
 0x204   :  { %v4155_v29 = vpop.f32.mrf.mxu0  ;;  %v6209_v37 = vpop.f32.mrf.mxu1 }
 0x205   :  { %v4156_v14 = vadd.f32 %v4155_v29, %v4154_v5 }
 0x206   :  { %v4157_v55 = vpop.f32.mrf.mxu0  ;;  %v6211_v9 = vpop.f32.mrf.mxu1 }
 0x207   :  { %v6214_v19 = vadd.f32 %v4156_v14, %v6112_v30 }
 0x208   :  { %v4158_v2 = vpop.f32.mrf.mxu0  ;;  %v6216_v26 = vpop.f32.mrf.mxu1 }
 0x209   :  { %v4159_v49 = vadd.f32 %v4158_v2, %v4157_v55 }
 0x20a   :  { %v4160_v44 = vpop.f32.mrf.mxu0  ;;  %v6218_v6 = vpop.f32.mrf.mxu1 }
 0x20b   :  { %v6221_v15 = vadd.f32 %v4159_v49, %v6118_v46 }
 0x20c   :  { %v4161_v25 = vpop.f32.mrf.mxu0  ;;  %v6223_v51 = vpop.f32.mrf.mxu1 }
 0x20d   :  { %6513 = vst [vmem:[#allocation2_spill] sm:$0xff] %v6221_v15  ;;  %v4162_v17 = vadd.f32 %v4161_v25, %v4160_v44 }
 0x20e   :  { %v4163_v58 = vpop.f32.mrf.mxu0  ;;  %v6225_v39 = vpop.f32.mrf.mxu1 }
 0x20f   :  { %v6228_v30 = vadd.f32 %v4162_v17, %v6124_v57 }
 0x210   :  { %v4164_v1 = vpop.f32.mrf.mxu0  ;;  %v6230_v40 = vpop.f32.mrf.mxu1 }
 0x211   :  { %v4165_v53 = vadd.f32 %v4164_v1, %v4163_v58 }
 0x212   :  { %v4166_v45 = vpop.f32.mrf.mxu0  ;;  %v6232_v59 = vpop.f32.mrf.mxu1 }
 0x213   :  { %v6235_v46 = vadd.f32 %v4165_v53, %v6130_v18 }
 0x214   :  { %v4167_v56 = vpop.f32.mrf.mxu0  ;;  %v6237_v23 = vpop.f32.mrf.mxu1 }
 0x215   :  { %v4168_v8 = vadd.f32 %v4167_v56, %v4166_v45 }
 0x216   :  { %v4169_v11 = vpop.f32.mrf.mxu0  ;;  %v6239_v34 = vpop.f32.mrf.mxu1 }
 0x217   :  { %v6242_v57 = vadd.f32 %v4168_v8, %v6136_v24 }
 0x218   :  { %v4170_v4 = vpop.f32.mrf.mxu0  ;;  %v6244_v22 = vpop.f32.mrf.mxu1 }
 0x219   :  { %6514 = vst [vmem:[#allocation3_spill] sm:$0xff] %v6242_v57  ;;  %v4171_v20 = vadd.f32 %v4170_v4, %v4169_v11 }
 0x21a   :  { %v4172_v5 = vpop.f32.mrf.mxu0  ;;  %v6246_v29 = vpop.f32.mrf.mxu1 }
 0x21b   :  { %v6249_v18 = vadd.f32 %v4171_v20, %v6142_v50 }
 0x21c   :  { %v4173_v14 = vpop.f32.mrf.mxu0  ;;  %v6251_v55 = vpop.f32.mrf.mxu1 }
 0x21d   :  { %6515 = vst [vmem:[#allocation4_spill] sm:$0xff] %v6249_v18  ;;  %v4174_v2 = vadd.f32 %v4173_v14, %v4172_v5 }
 0x21e   :  { %v4175_v49 = vpop.f32.mrf.mxu0  ;;  %v6253_v44 = vpop.f32.mrf.mxu1 }
 0x21f   :  { %v6256_v24 = vadd.f32 %v4174_v2, %v6148_v28 }
 0x220   :  { %v4176_v25 = vpop.f32.mrf.mxu0  ;;  %v6258_v17 = vpop.f32.mrf.mxu1 }
 0x221   :  { %6516 = vst [vmem:[#allocation5_spill] sm:$0xff] %v6256_v24  ;;  %v4177_v58 = vadd.f32 %v4176_v25, %v4175_v49 }
 0x222   :  { %v4178_v1 = vpop.f32.mrf.mxu0  ;;  %v6260_v53 = vpop.f32.mrf.mxu1 }
 0x223   :  { %v6263_v50 = vadd.f32 %v4177_v58, %v6154_v13 }
 0x224   :  { %v4179_v45 = vpop.f32.mrf.mxu0  ;;  %v6265_v56 = vpop.f32.mrf.mxu1 }
 0x225   :  { %6517 = vst [vmem:[#allocation6_spill] sm:$0xff] %v6263_v50  ;;  %v4180_v8 = vadd.f32 %v4179_v45, %v4178_v1 }
 0x226   :  { %v4181_v11 = vpop.f32.mrf.mxu0  ;;  %v6267_v4 = vpop.f32.mrf.mxu1 }
 0x227   :  { %v6270_v28 = vadd.f32 %v4180_v8, %v6160_v21 }
 0x228   :  { %v4182_v20 = vpop.f32.mrf.mxu0  ;;  %v6272_v5 = vpop.f32.mrf.mxu1 }
 0x229   :  { %6518 = vst [vmem:[#allocation7_spill] sm:$0xff] %v6270_v28  ;;  %v4183_v14 = vadd.f32 %v4182_v20, %v4181_v11 }
 0x22a   :  { %v4184_v2 = vpop.f32.mrf.mxu0  ;;  %v6274_v49 = vpop.f32.mrf.mxu1 }
 0x22b   :  { %v6277_v13 = vadd.f32 %v4183_v14, %v6166_v3 }
 0x22c   :  { %v4185_v25 = vpop.f32.mrf.mxu0  ;;  %v6279_v58 = vpop.f32.mrf.mxu1 }
 0x22d   :  { %6519 = vst [vmem:[#allocation8_spill] sm:$0xff] %v6277_v13  ;;  %v4186_v1 = vadd.f32 %v4185_v25, %v4184_v2 }
 0x22e   :  { %v4187_v45 = vpop.f32.mrf.mxu0  ;;  %v6281_v18 = vpop.f32.mrf.mxu1 }
 0x22f   :  { %v6284_v21 = vadd.f32 %v4186_v1, %v6172_v27 }
 0x230   :  { %v4188_v8 = vpop.f32.mrf.mxu0  ;;  %v6286_v28 = vpop.f32.mrf.mxu1 }
 0x231   :  { %6520 = vst [vmem:[#allocation9_spill] sm:$0xff] %v6284_v21  ;;  %v4189_v11 = vadd.f32 %v4188_v8, %v4187_v45 }
 0x232   :  { %v4190_v20 = vpop.f32.mrf.mxu0  ;;  %v6288_v50 = vpop.f32.mrf.mxu1 }
 0x233   :  { %v6291_v3 = vadd.f32 %v4189_v11, %v6178_v43 }
 0x234   :  { %v4191_v14 = vpop.f32.mrf.mxu0  ;;  %v6293_v13 = vpop.f32.mrf.mxu1 }
 0x235   :  { %6521 = vst [vmem:[#allocation10_spill] sm:$0xff] %v6291_v3  ;;  %v4192_v2 = vadd.f32 %v4191_v14, %v4190_v20  ;;  %v4226_v20 = vadd.f32 %v6223_v51, %v6218_v6 }
 0x236   :  { %v4193_v25 = vpop.f32.mrf.mxu0  ;;  %v6295_v57 = vpop.f32.mrf.mxu1 }
 0x237   :  { %v6298_v27 = vadd.f32 %v4192_v2, %v6184_v62  ;;  %v4220_v2 = vadd.f32 %v6209_v37, %v6201_v41 }
 0x238   :  { %v4194_v1 = vpop.f32.mrf.mxu0  ;;  %v6300_v21 = vpop.f32.mrf.mxu1 }
 0x239   :  { %6522 = vst [vmem:[#allocation11_spill] sm:$0xff] %v6298_v27  ;;  %v4195_v45 = vadd.f32 %v4194_v1, %v4193_v25  ;;  %v2974_v37 = vadd.f32 %v4220_v2, %v6115_v52 }
 0x23a   :  { %v4196_v8 = vpop.f32.mrf.mxu0  ;;  %v6302_v24 = vpop.f32.mrf.mxu1 }
 0x23b   :  { %v6305_v43 = vadd.f32 %v4195_v45, %v6190_v12  ;;  %v4229_v12 = vadd.f32 %v6230_v40, %v6225_v39 }
 0x23c   :  { %v4197_v11 = vpop.f32.mrf.mxu0  ;;  %v6307_v3 = vpop.f32.mrf.mxu1 }
 0x23d   :  { %6523 = vst [vmem:[#allocation12_spill] sm:$0xff] %v6305_v43  ;;  %v4198_v14 = vadd.f32 %v4197_v11, %v4196_v8  ;;  %v2982_v43 = vadd.f32 %v4226_v20, %v6127_v31  ;;  %v4223_v8 = vadd.f32 %v6216_v26, %v6211_v9  ;;  %v2985_v40 = vadd.f32 %v4229_v12, %v6133_v36 }
 0x23e   :  { %v4199_v15 = vpop.f32.mrf.mxu0  ;;  %v6311_v62 = vpop.f32.mrf.mxu1  ;;  %v4241_v36 = vadd.f32 %v6258_v17, %v6253_v44 }
 0x23f   :  { %v6316_v25 = vadd.f32 %v4198_v14, %v6196_v35  ;;  %v2977_v26 = vadd.f32 %v4223_v8, %v6121_v48  ;;  %v4235_v48 = vadd.f32 %v6244_v22, %v6239_v34 }
 0x240   :  { %v4200_v1 = vpop.f32.mrf.mxu0  ;;  %v6318_v27 = vpop.f32.mrf.mxu1  ;;  %v3001_v34 = vadd.f32 %v4241_v36, %v6157_v54 }
 0x241   :  { %v4201_v45 = vadd.f32 %v4200_v1, %v4199_v15  ;;  %v4238_v15 = vadd.f32 %v6251_v55, %v6246_v29 }
 0x242   :  { %v6323_v6 = vpop.f32.mrf.mxu1  ;;  %v4356_v51 = vpop.f32.mrf.mxu0 }
 0x243   :  { %v6328_v41 = vadd.f32 %v4201_v45, %v6204_v61  ;;  %v3143_v35 = vadd.f32 %v4356_v51, %v2982_v43  ;;  %v4232_v61 = vadd.f32 %v6237_v23, %v6232_v59  ;;  %v2998_v23 = vadd.f32 %v4238_v15, %v6151_v16 }
 0x244   :  { %v6331_v11 = vpop.f32.mrf.mxu1  ;;  %v3134_v14 = vpop.f32.mrf.mxu0  ;;  %v4244_v15 = vadd.f32 %v6265_v56, %v6260_v53 }
 0x245   :  { %v3263_v39 = vmax.f32 %v3143_v35, 0.0  ;;  %v3135_v31 = vadd.f32 %v3134_v14, %v2974_v37  ;;  %v2990_v17 = vadd.f32 %v4232_v61, %v6139_v0  ;;  %v4250_v35 = vadd.f32 %v6279_v58, %v6274_v49 }
 0x246   :  { %v6336_v20 = vpop.f32.mrf.mxu1  ;;  %v4357_v1 = vpop.f32.mrf.mxu0  ;;  %v2993_v58 = vadd.f32 %v4235_v48, %v6145_v47 }
 0x247   :  { %3295 = vst [vmem:[%s6512_s3 + $0x10] sm:$0xff] %v3263_v39  ;;  %v3261_v52 = vmax.f32 %v3135_v31, 0.0  ;;  %v3146_v9 = vadd.f32 %v4357_v1, %v2985_v40  ;;  %v4253_v40 = vadd.f32 %v6286_v28, %v6281_v18  ;;  %v3014_v53 = vadd.f32 %v4250_v35, %v6175_v42 }
 0x248   :  { %v6344_v43 = vpop.f32.mrf.mxu1  ;;  %v3137_v29 = vpop.f32.mrf.mxu0  ;;  %v3006_v28 = vadd.f32 %v4244_v15, %v6163_v38  ;;  %v4262_v42 = vadd.f32 %v6307_v3, %v6302_v24  ;;  %v4256_v38 = vadd.f32 %v6293_v13, %v6288_v50 }
 0x249   :  { %3293 = vst [vmem:[%s6512_s3] sm:$0xff] %v3261_v52  ;;  %v3264_v55 = vmax.f32 %v3146_v9, 0.0  ;;  %v3138_v59 = vadd.f32 %v3137_v29, %v2977_v26  ;;  %v4247_v52 = vadd.f32 %v6272_v5, %v6267_v4  ;;  %v3017_v5 = vadd.f32 %v4253_v40, %v6181_v32 }
 0x24a   :  { %v6352_v2 = vpop.f32.mrf.mxu1  ;;  %v4360_v12 = vpop.f32.mrf.mxu0  ;;  %v4265_v32 = vadd.f32 %v6318_v27, %v6311_v62  ;;  %v3030_v13 = vadd.f32 %v4262_v42, %v6199_v60  ;;  %v3022_v27 = vadd.f32 %v4256_v38, %v6187_v10  ;;  %v4271_v40 = vadd.f32 %v6344_v43, %v6336_v20 }
 0x24b   :  { %3296 = vst [vmem:[%s6512_s3 + $0x18] sm:$0xff] %v3264_v55  ;;  %v3262_v45 = vmax.f32 %v3138_v59, 0.0  ;;  %v3159_v44 = vadd.f32 %v4360_v12, %v2998_v23  ;;  %v3009_v3 = vadd.f32 %v4247_v52, %v6169_v63 }
 0x24c   :  { %v4273_v51 = vpop.f32.mrf.mxu1  ;;  %v3150_v8 = vpop.f32.mrf.mxu0 }
 0x24d   :  { %3294 = vst [vmem:[%s6512_s3 + $0x8] sm:$0xff] %v3262_v45  ;;  %v3267_v16 = vmax.f32 %v3159_v44, 0.0  ;;  %v3151_v37 = vadd.f32 %v3150_v8, %v2990_v17  ;;  %v4259_v17 = vadd.f32 %v6300_v21, %v6295_v57  ;;  %v3033_v57 = vadd.f32 %v4265_v32, %v6207_v7 }
 0x24e   :  { %v6366_v22 = vpop.f32.mrf.mxu1  ;;  %v4361_v14 = vpop.f32.mrf.mxu0 }
 0x24f   :  { %3299 = vst [vmem:[%s6512_s3 + $0x30] sm:$0xff] %v3267_v16  ;;  %v3265_v0 = vmax.f32 %v3151_v37, 0.0  ;;  %v3162_v49 = vadd.f32 %v4361_v14, %v3001_v34  ;;  %v4274_v16 = vadd.f32 %v4273_v51, %v6352_v2  ;;  %v4268_v14 = vadd.f32 %v6331_v11, %v6323_v6 }
 0x250   :  { %v4276_v39 = vpop.f32.mrf.mxu1  ;;  %v3153_v31 = vpop.f32.mrf.mxu0  ;;  %v3025_v2 = vadd.f32 %v4259_v17, %v6193_v33  ;;  %v6527_v17 = vld [vmem:[#allocation6_spill] sm:$0xff] }
 0x251   :  { %3297 = vst [vmem:[%s6512_s3 + $0x20] sm:$0xff] %v3265_v0  ;;  %v3268_v54 = vmax.f32 %v3162_v49, 0.0  ;;  %v3154_v1 = vadd.f32 %v3153_v31, %v2993_v58  ;;  %v4277_v49 = vadd.f32 %v4276_v39, %v6366_v22  ;;  %v3046_v6 = vadd.f32 %v4274_v16, %v6228_v30 }
 0x252   :  { %v6380_v56 = vpop.f32.mrf.mxu1  ;;  %v4364_v61 = vpop.f32.mrf.mxu0  ;;  %v3038_v22 = vadd.f32 %v4268_v14, %v6214_v19  ;;  %v6529_v14 = vld [vmem:[#allocation9_spill] sm:$0xff] }
 0x253   :  { %3300 = vst [vmem:[%s6512_s3 + $0x38] sm:$0xff] %v3268_v54  ;;  %v3266_v47 = vmax.f32 %v3154_v1, 0.0  ;;  %v3175_v18 = vadd.f32 %v4364_v61, %v3014_v53  ;;  %v3049_v52 = vadd.f32 %v4277_v49, %v6235_v46 }
 0x254   :  { %v6388_v9 = vpop.f32.mrf.mxu1  ;;  %v3166_v26 = vpop.f32.mrf.mxu0 }
 0x255   :  { %3298 = vst [vmem:[%s6512_s3 + $0x28] sm:$0xff] %v3266_v47  ;;  %v3271_v29 = vmax.f32 %v3175_v18, 0.0  ;;  %v3167_v4 = vadd.f32 %v3166_v26, %v3006_v28  ;;  %v4280_v47 = vadd.f32 %v6388_v9, %v6380_v56  ;;  %v6524_v28 = vld [vmem:[#allocation2_spill] sm:$0xff] }
 0x256   :  { %v6396_v36 = vpop.f32.mrf.mxu1  ;;  %v4365_v55 = vpop.f32.mrf.mxu0  ;;  %v3041_v26 = vadd.f32 %v4271_v40, %v6524_v28 }
 0x257   :  { %3303 = vst [vmem:[%s6512_s3 + $0x50] sm:$0xff] %v3271_v29  ;;  %v3269_v59 = vmax.f32 %v3167_v4, 0.0  ;;  %v3178_v24 = vadd.f32 %v4365_v55, %v3017_v5  ;;  %v6525_v55 = vld [vmem:[#allocation5_spill] sm:$0xff] }
 0x258   :  { %v6404_v23 = vpop.f32.mrf.mxu1  ;;  %v3169_v12 = vpop.f32.mrf.mxu0 }
 0x259   :  { %3301 = vst [vmem:[%s6512_s3 + $0x40] sm:$0xff] %v3269_v59  ;;  %v3272_v48 = vmax.f32 %v3178_v24, 0.0  ;;  %v3170_v50 = vadd.f32 %v3169_v12, %v3009_v3  ;;  %v4283_v59 = vadd.f32 %v6404_v23, %v6396_v36  ;;  %v6526_v12 = vld [vmem:[#allocation3_spill] sm:$0xff] }
 0x25a   :  { %v4284_v45 = vpop.f32.mrf.mxu1  ;;  %v4368_v44 = vpop.f32.mrf.mxu0  ;;  %v3054_v32 = vadd.f32 %v4280_v47, %v6526_v12 }
 0x25b   :  { %3304 = vst [vmem:[%s6512_s3 + $0x58] sm:$0xff] %v3272_v48  ;;  %v3270_v63 = vmax.f32 %v3170_v50, 0.0  ;;  %v3191_v8 = vadd.f32 %v4368_v44, %v3030_v13 }
 0x25c   :  { %v4285_v62 = vpop.f32.mrf.mxu1  ;;  %v3182_v35 = vpop.f32.mrf.mxu0 }
 0x25d   :  { %3302 = vst [vmem:[%s6512_s3 + $0x48] sm:$0xff] %v3270_v63  ;;  %v3275_v60 = vmax.f32 %v3191_v8, 0.0  ;;  %v3183_v37 = vadd.f32 %v3182_v35, %v3022_v27  ;;  %v4286_v53 = vadd.f32 %v4285_v62, %v4284_v45  ;;  %v6528_v35 = vld [vmem:[#allocation4_spill] sm:$0xff] }
 0x25e   :  { %v4287_v21 = vpop.f32.mrf.mxu1  ;;  %v4369_v34 = vpop.f32.mrf.mxu0  ;;  %v3057_v16 = vadd.f32 %v4283_v59, %v6528_v35 }
 0x25f   :  { %3307 = vst [vmem:[%s6512_s3 + $0x70] sm:$0xff] %v3275_v60  ;;  %v3273_v10 = vmax.f32 %v3183_v37, 0.0  ;;  %v3194_v15 = vadd.f32 %v4369_v34, %v3033_v57  ;;  %v3062_v38 = vadd.f32 %v4286_v53, %v6525_v55 }
 0x260   :  { %v4288_v51 = vpop.f32.mrf.mxu1  ;;  %v3185_v0 = vpop.f32.mrf.mxu0 }
 0x261   :  { %3305 = vst [vmem:[%s6512_s3 + $0x60] sm:$0xff] %v3273_v10  ;;  %v3276_v7 = vmax.f32 %v3194_v15, 0.0  ;;  %v3186_v58 = vadd.f32 %v3185_v0, %v3025_v2  ;;  %v4289_v4 = vadd.f32 %v4288_v51, %v4287_v21 }
 0x262   :  { %v4290_v11 = vpop.f32.mrf.mxu1  ;;  %v4372_v31 = vpop.f32.mrf.mxu0 }
 0x263   :  { %3308 = vst [vmem:[%s6512_s3 + $0x78] sm:$0xff] %v3276_v7  ;;  %v3274_v33 = vmax.f32 %v3186_v58, 0.0  ;;  %v3207_v54 = vadd.f32 %v4372_v31, %v3046_v6  ;;  %v3065_v63 = vadd.f32 %v4289_v4, %v6527_v17  ;;  %v6530_v7 = vld [vmem:[#allocation7_spill] sm:$0xff] }
 0x264   :  { %v4291_v39 = vpop.f32.mrf.mxu1  ;;  %v3198_v1 = vpop.f32.mrf.mxu0 }
 0x265   :  { %3306 = vst [vmem:[%s6512_s3 + $0x68] sm:$0xff] %v3274_v33  ;;  %v3279_v30 = vmax.f32 %v3207_v54, 0.0  ;;  %v3199_v61 = vadd.f32 %v3198_v1, %v3038_v22  ;;  %v4292_v8 = vadd.f32 %v4291_v39, %v4290_v11  ;;  %v6531_v33 = vld [vmem:[#allocation10_spill] sm:$0xff] }
 0x266   :  { %v4293_v20 = vpop.f32.mrf.mxu1  ;;  %v4373_v43 = vpop.f32.mrf.mxu0 }
 0x267   :  { %3311 = vst [vmem:[%s6512_s3 + $0x90] sm:$0xff] %v3279_v30  ;;  %v3277_v19 = vmax.f32 %v3199_v61, 0.0  ;;  %v3210_v18 = vadd.f32 %v4373_v43, %v3049_v52  ;;  %v3070_v58 = vadd.f32 %v4292_v8, %v6530_v7  ;;  %v6532_v61 = vld [vmem:[#allocation8_spill] sm:$0xff] }
 0x268   :  { %v4294_v42 = vpop.f32.mrf.mxu1  ;;  %v3201_v29 = vpop.f32.mrf.mxu0 }
 0x269   :  { %3309 = vst [vmem:[%s6512_s3 + $0x80] sm:$0xff] %v3277_v19  ;;  %v3280_v46 = vmax.f32 %v3210_v18, 0.0  ;;  %v3202_v5 = vadd.f32 %v3201_v29, %v3041_v26  ;;  %v4295_v51 = vadd.f32 %v4294_v42, %v4293_v20  ;;  %v6533_v29 = vld [vmem:[#allocation11_spill] sm:$0xff] }
 0x26a   :  { %v4296_v56 = vpop.f32.mrf.mxu1  ;;  %v4376_v9 = vpop.f32.mrf.mxu0 }
 0x26b   :  { %3312 = vst [vmem:[%s6512_s3 + $0x98] sm:$0xff] %v3280_v46  ;;  %v3278_v24 = vmax.f32 %v3202_v5, 0.0  ;;  %v3223_v3 = vadd.f32 %v4376_v9, %v3062_v38  ;;  %v3073_v52 = vadd.f32 %v4295_v51, %v6532_v61 }
 0x26c   :  { %v4297_v48 = vpop.f32.mrf.mxu1  ;;  %v3214_v50 = vpop.f32.mrf.mxu0 }
 0x26d   :  { %3310 = vst [vmem:[%s6512_s3 + $0x88] sm:$0xff] %v3278_v24  ;;  %v3283_v13 = vmax.f32 %v3223_v3, 0.0  ;;  %v4298_v45 = vadd.f32 %v4297_v48, %v4296_v56  ;;  %v3215_v44 = vadd.f32 %v3214_v50, %v3054_v32  ;;  %v6534_v3 = vld [vmem:[#allocation12_spill] sm:$0xff] }
 0x26e   :  { %v4299_v36 = vpop.f32.mrf.mxu1  ;;  %v4377_v23 = vpop.f32.mrf.mxu0 }
 0x26f   :  { %3315 = vst [vmem:[%s6512_s3 + $0xb0] sm:$0xff] %v3283_v13  ;;  %v3281_v27 = vmax.f32 %v3215_v44, 0.0  ;;  %v3226_v62 = vadd.f32 %v4377_v23, %v3065_v63  ;;  %v3078_v10 = vadd.f32 %v4298_v45, %v6529_v14 }
 0x270   :  { %v4300_v60 = vpop.f32.mrf.mxu1  ;;  %v3217_v37 = vpop.f32.mrf.mxu0 }
 0x271   :  { %3313 = vst [vmem:[%s6512_s3 + $0xa0] sm:$0xff] %v3281_v27  ;;  %v3284_v57 = vmax.f32 %v3226_v62, 0.0  ;;  %v4301_v21 = vadd.f32 %v4300_v60, %v4299_v36  ;;  %v3218_v34 = vadd.f32 %v3217_v37, %v3057_v16 }
 0x272   :  { %v4302_v15 = vpop.f32.mrf.mxu1  ;;  %v4380_v2 = vpop.f32.mrf.mxu0 }
 0x273   :  { %3316 = vst [vmem:[%s6512_s3 + $0xb8] sm:$0xff] %v3284_v57  ;;  %v3282_v0 = vmax.f32 %v3218_v34, 0.0  ;;  %v3239_v49 = vadd.f32 %v4380_v2, %v3078_v10  ;;  %v3081_v54 = vadd.f32 %v4301_v21, %v6531_v33 }
 0x274   :  { %v4303_v6 = vpop.f32.mrf.mxu1  ;;  %v3230_v11 = vpop.f32.mrf.mxu0 }
 0x275   :  { %3314 = vst [vmem:[%s6512_s3 + $0xa8] sm:$0xff] %v3282_v0  ;;  %v3287_v31 = vmax.f32 %v3239_v49, 0.0  ;;  %v3231_v40 = vadd.f32 %v3230_v11, %v3070_v58  ;;  %v4304_v1 = vadd.f32 %v4303_v6, %v4302_v15 }
 0x276   :  { %v4305_v22 = vpop.f32.mrf.mxu1  ;;  %v4381_v39 = vpop.f32.mrf.mxu0 }
 0x277   :  { %3319 = vst [vmem:[%s6512_s3 + $0xd0] sm:$0xff] %v3287_v31  ;;  %v3285_v53 = vmax.f32 %v3231_v40, 0.0  ;;  %v3242_v30 = vadd.f32 %v4381_v39, %v3081_v54  ;;  %v3086_v4 = vadd.f32 %v4304_v1, %v6533_v29 }
 0x278   :  { %v4306_v20 = vpop.f32.mrf.mxu1  ;;  %v3233_v43 = vpop.f32.mrf.mxu0 }
 0x279   :  { %3317 = vst [vmem:[%s6512_s3 + $0xc0] sm:$0xff] %v3285_v53  ;;  %v3288_v47 = vmax.f32 %v3242_v30, 0.0  ;;  %v3234_v19 = vadd.f32 %v3233_v43, %v3073_v52  ;;  %v4307_v26 = vadd.f32 %v4306_v20, %v4305_v22 }
 0x27a   :  { %v4308_v18 = vpop.f32.mrf.mxu1  ;;  %v4384_v28 = vpop.f32.mrf.mxu0 }
 0x27b   :  { %3320 = vst [vmem:[%s6512_s3 + $0xd8] sm:$0xff] %v3288_v47  ;;  %v3286_v42 = vmax.f32 %v3234_v19, 0.0  ;;  %v3089_v12 = vadd.f32 %v4307_v26, %v6534_v3 }
 0x27c   :  { %v4309_v46 = vpop.f32.mrf.mxu1  ;;  %v3246_v5 = vpop.f32.mrf.mxu0 }
 0x27d   :  { %3318 = vst [vmem:[%s6512_s3 + $0xc8] sm:$0xff] %v3286_v42  ;;  %v4310_v55 = vadd.f32 %v4309_v46, %v4308_v18  ;;  %v3247_v38 = vadd.f32 %v3246_v5, %v3086_v4 }
 0x27e   :  { %v4311_v56 = vpop.f32.mrf.mxu1  ;;  %v4385_v9 = vpop.f32.mrf.mxu0 }
 0x27f   :  { %v3094_v59 = vadd.f32 %v4310_v55, %v6316_v25  ;;  %v3289_v24 = vmax.f32 %v3247_v38, 0.0 }
 0x280   :  { %v4312_v32 = vpop.f32.mrf.mxu1  ;;  %v3249_v48 = vpop.f32.mrf.mxu0 }
 0x281   :  { %v3255_v50 = vadd.f32 %v4384_v28, %v3094_v59  ;;  %3321 = vst [vmem:[%s6512_s3 + $0xe0] sm:$0xff] %v3289_v24  ;;  %v4313_v13 = vadd.f32 %v4312_v32, %v4311_v56  ;;  %v3250_v45 = vadd.f32 %v3249_v48, %v3089_v12 }
 0x283   :  { %v3291_v44 = vmax.f32 %v3255_v50, 0.0  ;;  %v3097_v17 = vadd.f32 %v4313_v13, %v6328_v41  ;;  %v3290_v63 = vmax.f32 %v3250_v45, 0.0 }
 0x285   :  { %3323 = vst [vmem:[%s6512_s3 + $0xf0] sm:$0xff] %v3291_v44  ;;  %v3258_v25 = vadd.f32 %v4385_v9, %v3097_v17  ;;  %3322 = vst [vmem:[%s6512_s3 + $0xe8] sm:$0xff] %v3290_v63 }
 0x287   :  { %v3292_v36 = vmax.f32 %v3258_v25, 0.0 }
 0x289   :  { %3324 = vst [vmem:[%s6512_s3 + $0xf8] sm:$0xff] %v3292_v36 }

// kernel: model_net_forward.10
= control target key start
LH: loop header
LB: loop body
LE: loop exit
PB: predicated region body
PF: predicated region fallthrough
CT: control target
= control target key end

     0   :  { %s138_s0 = inlined_call_operand.vmem [shape: f32[25,128], index: 0, kind: input, shape index: {}]   ;;  %s139_s1 = inlined_call_operand.vmem [shape: f32[25,128], index: 1, kind: input, shape index: {}]   ;;  %s140_s2 = inlined_call_operand.vmem [shape: f32[25,128], index: 2, kind: input, shape index: {}]   ;;  %s141_s3 = inlined_call_operand.vmem [shape: f32[25,128], index: 3, kind: input, shape index: {}]   ;;  %s142_s4 = inlined_call_operand.vmem [shape: f32[25,128], index: 4, kind: output, shape index: {}]  }
   0x1   :  { %v17_v0 = vld [vmem:[%s138_s0] sm:$0xff]  ;;  %v18_v5 = vld [vmem:[%s138_s0 + $0x8] sm:$0xff]  ;;  %v19_v11 = vld [vmem:[%s138_s0 + $0x10] sm:$0xff] }
   0x2   :  { %v21_v1 = vld [vmem:[%s139_s1] sm:$0xff]  ;;  %v22_v6 = vld [vmem:[%s139_s1 + $0x8] sm:$0xff]  ;;  %v23_v13 = vld [vmem:[%s139_s1 + $0x10] sm:$0xff] }
   0x3   :  { %v29_v2 = vld [vmem:[%s140_s2] sm:$0xff]  ;;  %v25_v3 = vmax.f32 %v17_v0, %v21_v1  ;;  %v26_v8 = vmax.f32 %v18_v5, %v22_v6  ;;  %v30_v9 = vld [vmem:[%s140_s2 + $0x8] sm:$0xff]  ;;  %v31_v14 = vld [vmem:[%s140_s2 + $0x10] sm:$0xff]  ;;  %v27_v17 = vmax.f32 %v19_v11, %v23_v13 }
   0x4   :  { %v33_v4 = vld [vmem:[%s141_s3] sm:$0xff]  ;;  %v34_v10 = vld [vmem:[%s141_s3 + $0x8] sm:$0xff]  ;;  %v35_v15 = vld [vmem:[%s141_s3 + $0x10] sm:$0xff] }
   0x5   :  { %v37_v7 = vmax.f32 %v29_v2, %v33_v4  ;;  %v38_v12 = vmax.f32 %v30_v9, %v34_v10  ;;  %v39_v18 = vmax.f32 %v31_v14, %v35_v15  ;;  %v20_v19 = vld [vmem:[%s138_s0 + $0x18] sm:$0x1] }
   0x6   :  { %v24_v20 = vld [vmem:[%s139_s1 + $0x18] sm:$0x1] }
   0x7   :  { %v41_v16 = vmax.f32 %v25_v3, %v37_v7  ;;  %v32_v21 = vld [vmem:[%s140_s2 + $0x18] sm:$0x1]  ;;  %v42_v22 = vmax.f32 %v26_v8, %v38_v12  ;;  %v28_v23 = vmax.f32 %v20_v19, %v24_v20  ;;  %v43_v25 = vmax.f32 %v27_v17, %v39_v18 }
   0x8   :  { %v36_v24 = vld [vmem:[%s141_s3 + $0x18] sm:$0x1] }
   0x9   :  { %45 = vst [vmem:[%s142_s4] sm:$0xff] %v41_v16  ;;  %v40_v26 = vmax.f32 %v32_v21, %v36_v24  ;;  %46 = vst [vmem:[%s142_s4 + $0x8] sm:$0xff] %v42_v22 }
   0xa   :  { %47 = vst [vmem:[%s142_s4 + $0x10] sm:$0xff] %v43_v25 }
   0xb   :  { %v44_v27 = vmax.f32 %v28_v23, %v40_v26 }
   0xd   :  { %48 = vst [vmem:[%s142_s4 + $0x18] sm:$0x1] %v44_v27 }

// kernel: model_net_forward.11
= control target key start
LH: loop header
LB: loop body
LE: loop exit
PB: predicated region body
PF: predicated region fallthrough
CT: control target
= control target key end

     0   :  { %s5534_s12 = smov 0   ;;  %s5536_s13 = smov 0   ;;  %s7009_s0 = inlined_call_operand.vmem [shape: bf16[8,1664], index: 0, kind: input, shape index: {}]   ;;  %s7010_s1 = inlined_call_operand.vmem [shape: bf16[1664,1024], index: 1, kind: input, shape index: {}]   ;;  %s7011_s2 = inlined_call_operand.vmem [shape: f32[1,1024], index: 2, kind: input, shape index: {}]   ;;  %s7012_s3 = inlined_call_operand.vmem [shape: f32[8,1024], index: 3, kind: output, shape index: {}]  }
   0x1   :  { %s5538_s14 = smov 0   ;;  %s5540_s15 = smov 0  }
   0x2   :  { %s5542_s16 = smov 0  }
   0x3 LB: > { %s22_s17 = sadd.s32 1, %s5507_s15  ;;  %p65_p1 = scmp.ne.s32.totalorder %s5499_s13, %s5495_s12  ;;  %s5511_s16 = sphi %s5542_s16, %s13_s16   ;;  %s5507_s15 = sphi %s5540_s15, %s7016_s15   ;;  %s5503_s14 = sphi %s5538_s14, %s7015_s14   ;;  %s5499_s13 = sphi %s5536_s13, %s7014_s13   ;;  %s5495_s12 = sphi %s5534_s12, %s7013_s12  }
   0x4   : > { %p23_p0 = scmp.ge.s32.totalorder %s22_s17, 2  ;;  %p66_p2 = scmp.eq.s32.totalorder %s5511_s16, 0 }
   0x5   : > { %s58_s19 = sadd.s32 1, %s5499_s13  ;;  %p4353_p5 = scmp.ge.s32.totalorder %s5511_s16, 2 }
   0x6   : > { %s7018_s17 = smov (%p23_p0, %s22_s17), 0  ;;  %p67_p3 = por %p66_p2, %p65_p1 }
   0x7   : > { %s55_s18 = ssub.s32 %s5507_s15, %s7018_s17  ;;  %153 = sbr.rel (%p4353_p5) target bundleno = 224 (0xe0), region = 20 }
   0x8   : > { %p56_p4 = scmp.eq.s32.totalorder %s55_s18, 0 }
   0xa   : > { %s5569_s20 = scalar_select %p56_p4, %s5499_s13, %s58_s19  }
   0xc   : > { %156 = sbr.rel (!%p67_p3) target bundleno = 224 (0xe0), region = 24  ;;  %s158_s21 = sand.u32 (%p67_p3), 1, %s5499_s13  }
   0xd   : > { %s4791_s22 = sshll.u32 (%p67_p3), %s5507_s15, 4  ;;  %s4792_s23 = smul.u32 (%p67_p3), 3328, %s158_s21 }
   0xe   : > { %s5577_s26 = scalar_lea.vmem (%p67_p3), %s7010_s1, %s4791_s22 }
   0xf   : > { %v176_v0 = vld [vmem:[%s5577_s26] sm:$0xff] (%p67_p3)  ;;  %v178_v1 = vld [vmem:[%s5577_s26 + $0x8] sm:$0xff] (%p67_p3)  ;;  %s5585_s27 = scalar_lea.vmem (%p67_p3), [#allocation2], %s4792_s23 }
  0x10   : > { %v180_v2 = vld [vmem:[%s5577_s26 + $0x20] sm:$0xff] (%p67_p3)  ;;  %v182_v3 = vld [vmem:[%s5577_s26 + $0x28] sm:$0xff] (%p67_p3)  ;;  %177 = vst [vmem:[%s5585_s27] sm:$0xff] (%p67_p3), %v176_v0  ;;  %179 = vst [vmem:[%s5585_s27 + $0x8] sm:$0xff] (%p67_p3), %v178_v1 }
  0x11   : > { %v184_v4 = vld [vmem:[%s5577_s26 + $0x40] sm:$0xff]  ;;  %v186_v5 = vld [vmem:[%s5577_s26 + $0x48] sm:$0xff]  ;;  %181 = vst [vmem:[%s5585_s27 + $0x10] sm:$0xff] %v180_v2  ;;  %183 = vst [vmem:[%s5585_s27 + $0x18] sm:$0xff] %v182_v3 }
  0x12   : > { %185 = vst [vmem:[%s5585_s27 + $0x20] sm:$0xff] %v184_v4  ;;  %187 = vst [vmem:[%s5585_s27 + $0x28] sm:$0xff] %v186_v5  ;;  %v188_v6 = vld [vmem:[%s5577_s26 + $0x60] sm:$0xff]  ;;  %v190_v7 = vld [vmem:[%s5577_s26 + $0x68] sm:$0xff] }
  0x13   : > { %v192_v8 = vld [vmem:[%s5577_s26 + $0x80] sm:$0xff]  ;;  %189 = vst [vmem:[%s5585_s27 + $0x30] sm:$0xff] %v188_v6  ;;  %191 = vst [vmem:[%s5585_s27 + $0x38] sm:$0xff] %v190_v7  ;;  %v194_v9 = vld [vmem:[%s5577_s26 + $0x88] sm:$0xff] }
  0x14   : > { %193 = vst [vmem:[%s5585_s27 + $0x40] sm:$0xff] %v192_v8  ;;  %v196_v10 = vld [vmem:[%s5577_s26 + $0xa0] sm:$0xff]  ;;  %v198_v11 = vld [vmem:[%s5577_s26 + $0xa8] sm:$0xff]  ;;  %195 = vst [vmem:[%s5585_s27 + $0x48] sm:$0xff] %v194_v9 }
  0x15   : > { %197 = vst [vmem:[%s5585_s27 + $0x50] sm:$0xff] %v196_v10  ;;  %199 = vst [vmem:[%s5585_s27 + $0x58] sm:$0xff] %v198_v11  ;;  %v200_v12 = vld [vmem:[%s5577_s26 + $0xc0] sm:$0xff]  ;;  %v202_v13 = vld [vmem:[%s5577_s26 + $0xc8] sm:$0xff] }
  0x16   : > { %v204_v14 = vld [vmem:[%s5577_s26 + $0xe0] sm:$0xff]  ;;  %201 = vst [vmem:[%s5585_s27 + $0x60] sm:$0xff] %v200_v12  ;;  %203 = vst [vmem:[%s5585_s27 + $0x68] sm:$0xff] %v202_v13  ;;  %v206_v15 = vld [vmem:[%s5577_s26 + $0xe8] sm:$0xff] }
  0x17   : > { %205 = vst [vmem:[%s5585_s27 + $0x70] sm:$0xff] %v204_v14  ;;  %v208_v16 = vld [vmem:[%s5577_s26 + $0x100] sm:$0xff]  ;;  %v210_v17 = vld [vmem:[%s5577_s26 + $0x108] sm:$0xff]  ;;  %207 = vst [vmem:[%s5585_s27 + $0x78] sm:$0xff] %v206_v15 }
  0x18   : > { %209 = vst [vmem:[%s5585_s27 + $0x80] sm:$0xff] %v208_v16  ;;  %211 = vst [vmem:[%s5585_s27 + $0x88] sm:$0xff] %v210_v17  ;;  %v212_v18 = vld [vmem:[%s5577_s26 + $0x120] sm:$0xff]  ;;  %v214_v19 = vld [vmem:[%s5577_s26 + $0x128] sm:$0xff] }
  0x19   : > { %v216_v20 = vld [vmem:[%s5577_s26 + $0x140] sm:$0xff]  ;;  %213 = vst [vmem:[%s5585_s27 + $0x90] sm:$0xff] %v212_v18  ;;  %215 = vst [vmem:[%s5585_s27 + $0x98] sm:$0xff] %v214_v19  ;;  %v218_v21 = vld [vmem:[%s5577_s26 + $0x148] sm:$0xff] }
  0x1a   : > { %217 = vst [vmem:[%s5585_s27 + $0xa0] sm:$0xff] %v216_v20  ;;  %v220_v22 = vld [vmem:[%s5577_s26 + $0x160] sm:$0xff]  ;;  %v222_v23 = vld [vmem:[%s5577_s26 + $0x168] sm:$0xff]  ;;  %219 = vst [vmem:[%s5585_s27 + $0xa8] sm:$0xff] %v218_v21 }
  0x1b   : > { %221 = vst [vmem:[%s5585_s27 + $0xb0] sm:$0xff] %v220_v22  ;;  %223 = vst [vmem:[%s5585_s27 + $0xb8] sm:$0xff] %v222_v23  ;;  %v224_v24 = vld [vmem:[%s5577_s26 + $0x180] sm:$0xff]  ;;  %v226_v25 = vld [vmem:[%s5577_s26 + $0x188] sm:$0xff] }
  0x1c   : > { %v228_v26 = vld [vmem:[%s5577_s26 + $0x1a0] sm:$0xff]  ;;  %225 = vst [vmem:[%s5585_s27 + $0xc0] sm:$0xff] %v224_v24  ;;  %227 = vst [vmem:[%s5585_s27 + $0xc8] sm:$0xff] %v226_v25  ;;  %v230_v27 = vld [vmem:[%s5577_s26 + $0x1a8] sm:$0xff] }
  0x1d   : > { %229 = vst [vmem:[%s5585_s27 + $0xd0] sm:$0xff] %v228_v26  ;;  %v232_v28 = vld [vmem:[%s5577_s26 + $0x1c0] sm:$0xff]  ;;  %v234_v29 = vld [vmem:[%s5577_s26 + $0x1c8] sm:$0xff]  ;;  %231 = vst [vmem:[%s5585_s27 + $0xd8] sm:$0xff] %v230_v27 }
  0x1e   : > { %233 = vst [vmem:[%s5585_s27 + $0xe0] sm:$0xff] %v232_v28  ;;  %235 = vst [vmem:[%s5585_s27 + $0xe8] sm:$0xff] %v234_v29  ;;  %v236_v30 = vld [vmem:[%s5577_s26 + $0x1e0] sm:$0xff]  ;;  %v238_v31 = vld [vmem:[%s5577_s26 + $0x1e8] sm:$0xff] }
  0x1f   : > { %v240_v32 = vld [vmem:[%s5577_s26 + $0x200] sm:$0xff]  ;;  %237 = vst [vmem:[%s5585_s27 + $0xf0] sm:$0xff] %v236_v30  ;;  %239 = vst [vmem:[%s5585_s27 + $0xf8] sm:$0xff] %v238_v31  ;;  %v242_v33 = vld [vmem:[%s5577_s26 + $0x208] sm:$0xff] }
  0x20   : > { %241 = vst [vmem:[%s5585_s27 + $0x100] sm:$0xff] %v240_v32  ;;  %v244_v34 = vld [vmem:[%s5577_s26 + $0x220] sm:$0xff]  ;;  %v246_v35 = vld [vmem:[%s5577_s26 + $0x228] sm:$0xff]  ;;  %243 = vst [vmem:[%s5585_s27 + $0x108] sm:$0xff] %v242_v33 }
  0x21   : > { %245 = vst [vmem:[%s5585_s27 + $0x110] sm:$0xff] %v244_v34  ;;  %247 = vst [vmem:[%s5585_s27 + $0x118] sm:$0xff] %v246_v35  ;;  %v248_v36 = vld [vmem:[%s5577_s26 + $0x240] sm:$0xff]  ;;  %v250_v37 = vld [vmem:[%s5577_s26 + $0x248] sm:$0xff] }
  0x22   : > { %v252_v38 = vld [vmem:[%s5577_s26 + $0x260] sm:$0xff]  ;;  %249 = vst [vmem:[%s5585_s27 + $0x120] sm:$0xff] %v248_v36  ;;  %251 = vst [vmem:[%s5585_s27 + $0x128] sm:$0xff] %v250_v37  ;;  %v254_v39 = vld [vmem:[%s5577_s26 + $0x268] sm:$0xff] }
  0x23   : > { %253 = vst [vmem:[%s5585_s27 + $0x130] sm:$0xff] %v252_v38  ;;  %v256_v40 = vld [vmem:[%s5577_s26 + $0x280] sm:$0xff]  ;;  %v258_v41 = vld [vmem:[%s5577_s26 + $0x288] sm:$0xff]  ;;  %255 = vst [vmem:[%s5585_s27 + $0x138] sm:$0xff] %v254_v39 }
  0x24   : > { %257 = vst [vmem:[%s5585_s27 + $0x140] sm:$0xff] %v256_v40  ;;  %259 = vst [vmem:[%s5585_s27 + $0x148] sm:$0xff] %v258_v41  ;;  %v260_v42 = vld [vmem:[%s5577_s26 + $0x2a0] sm:$0xff]  ;;  %v262_v43 = vld [vmem:[%s5577_s26 + $0x2a8] sm:$0xff] }
  0x25   : > { %v264_v44 = vld [vmem:[%s5577_s26 + $0x2c0] sm:$0xff]  ;;  %261 = vst [vmem:[%s5585_s27 + $0x150] sm:$0xff] %v260_v42  ;;  %263 = vst [vmem:[%s5585_s27 + $0x158] sm:$0xff] %v262_v43  ;;  %v266_v45 = vld [vmem:[%s5577_s26 + $0x2c8] sm:$0xff] }
  0x26   : > { %265 = vst [vmem:[%s5585_s27 + $0x160] sm:$0xff] %v264_v44  ;;  %v268_v46 = vld [vmem:[%s5577_s26 + $0x2e0] sm:$0xff]  ;;  %v270_v47 = vld [vmem:[%s5577_s26 + $0x2e8] sm:$0xff]  ;;  %267 = vst [vmem:[%s5585_s27 + $0x168] sm:$0xff] %v266_v45 }
  0x27   : > { %269 = vst [vmem:[%s5585_s27 + $0x170] sm:$0xff] %v268_v46  ;;  %271 = vst [vmem:[%s5585_s27 + $0x178] sm:$0xff] %v270_v47  ;;  %v272_v48 = vld [vmem:[%s5577_s26 + $0x300] sm:$0xff]  ;;  %v274_v49 = vld [vmem:[%s5577_s26 + $0x308] sm:$0xff] }
  0x28   : > { %v276_v50 = vld [vmem:[%s5577_s26 + $0x320] sm:$0xff]  ;;  %273 = vst [vmem:[%s5585_s27 + $0x180] sm:$0xff] %v272_v48  ;;  %275 = vst [vmem:[%s5585_s27 + $0x188] sm:$0xff] %v274_v49  ;;  %v278_v51 = vld [vmem:[%s5577_s26 + $0x328] sm:$0xff] }
  0x29   : > { %277 = vst [vmem:[%s5585_s27 + $0x190] sm:$0xff] %v276_v50  ;;  %v280_v52 = vld [vmem:[%s5577_s26 + $0x340] sm:$0xff]  ;;  %v282_v53 = vld [vmem:[%s5577_s26 + $0x348] sm:$0xff]  ;;  %279 = vst [vmem:[%s5585_s27 + $0x198] sm:$0xff] %v278_v51 }
  0x2a   : > { %281 = vst [vmem:[%s5585_s27 + $0x1a0] sm:$0xff] %v280_v52  ;;  %283 = vst [vmem:[%s5585_s27 + $0x1a8] sm:$0xff] %v282_v53  ;;  %v284_v54 = vld [vmem:[%s5577_s26 + $0x360] sm:$0xff]  ;;  %v286_v55 = vld [vmem:[%s5577_s26 + $0x368] sm:$0xff] }
  0x2b   : > { %v288_v56 = vld [vmem:[%s5577_s26 + $0x380] sm:$0xff]  ;;  %285 = vst [vmem:[%s5585_s27 + $0x1b0] sm:$0xff] %v284_v54  ;;  %287 = vst [vmem:[%s5585_s27 + $0x1b8] sm:$0xff] %v286_v55  ;;  %v290_v57 = vld [vmem:[%s5577_s26 + $0x388] sm:$0xff] }
  0x2c   : > { %289 = vst [vmem:[%s5585_s27 + $0x1c0] sm:$0xff] %v288_v56  ;;  %v292_v58 = vld [vmem:[%s5577_s26 + $0x3a0] sm:$0xff]  ;;  %v294_v59 = vld [vmem:[%s5577_s26 + $0x3a8] sm:$0xff]  ;;  %291 = vst [vmem:[%s5585_s27 + $0x1c8] sm:$0xff] %v290_v57 }
  0x2d   : > { %293 = vst [vmem:[%s5585_s27 + $0x1d0] sm:$0xff] %v292_v58  ;;  %295 = vst [vmem:[%s5585_s27 + $0x1d8] sm:$0xff] %v294_v59  ;;  %v296_v60 = vld [vmem:[%s5577_s26 + $0x3c0] sm:$0xff]  ;;  %v298_v61 = vld [vmem:[%s5577_s26 + $0x3c8] sm:$0xff] }
  0x2e   : > { %v300_v62 = vld [vmem:[%s5577_s26 + $0x3e0] sm:$0xff]  ;;  %297 = vst [vmem:[%s5585_s27 + $0x1e0] sm:$0xff] %v296_v60  ;;  %299 = vst [vmem:[%s5585_s27 + $0x1e8] sm:$0xff] %v298_v61  ;;  %v302_v63 = vld [vmem:[%s5577_s26 + $0x3e8] sm:$0xff] }
  0x2f   : > { %301 = vst [vmem:[%s5585_s27 + $0x1f0] sm:$0xff] %v300_v62  ;;  %v304_v0 = vld [vmem:[%s5577_s26 + $0x400] sm:$0xff]  ;;  %v306_v1 = vld [vmem:[%s5577_s26 + $0x408] sm:$0xff]  ;;  %303 = vst [vmem:[%s5585_s27 + $0x1f8] sm:$0xff] %v302_v63 }
  0x30   : > { %305 = vst [vmem:[%s5585_s27 + $0x200] sm:$0xff] %v304_v0  ;;  %307 = vst [vmem:[%s5585_s27 + $0x208] sm:$0xff] %v306_v1  ;;  %v308_v2 = vld [vmem:[%s5577_s26 + $0x420] sm:$0xff]  ;;  %v310_v3 = vld [vmem:[%s5577_s26 + $0x428] sm:$0xff] }
  0x31   : > { %v312_v4 = vld [vmem:[%s5577_s26 + $0x440] sm:$0xff]  ;;  %309 = vst [vmem:[%s5585_s27 + $0x210] sm:$0xff] %v308_v2  ;;  %311 = vst [vmem:[%s5585_s27 + $0x218] sm:$0xff] %v310_v3  ;;  %v314_v5 = vld [vmem:[%s5577_s26 + $0x448] sm:$0xff] }
  0x32   : > { %313 = vst [vmem:[%s5585_s27 + $0x220] sm:$0xff] %v312_v4  ;;  %v316_v6 = vld [vmem:[%s5577_s26 + $0x460] sm:$0xff]  ;;  %v318_v7 = vld [vmem:[%s5577_s26 + $0x468] sm:$0xff]  ;;  %315 = vst [vmem:[%s5585_s27 + $0x228] sm:$0xff] %v314_v5 }
  0x33   : > { %317 = vst [vmem:[%s5585_s27 + $0x230] sm:$0xff] %v316_v6  ;;  %319 = vst [vmem:[%s5585_s27 + $0x238] sm:$0xff] %v318_v7  ;;  %v320_v8 = vld [vmem:[%s5577_s26 + $0x480] sm:$0xff]  ;;  %v322_v9 = vld [vmem:[%s5577_s26 + $0x488] sm:$0xff] }
  0x34   : > { %v324_v10 = vld [vmem:[%s5577_s26 + $0x4a0] sm:$0xff]  ;;  %321 = vst [vmem:[%s5585_s27 + $0x240] sm:$0xff] %v320_v8  ;;  %323 = vst [vmem:[%s5585_s27 + $0x248] sm:$0xff] %v322_v9  ;;  %v326_v11 = vld [vmem:[%s5577_s26 + $0x4a8] sm:$0xff] }
  0x35   : > { %325 = vst [vmem:[%s5585_s27 + $0x250] sm:$0xff] %v324_v10  ;;  %v328_v12 = vld [vmem:[%s5577_s26 + $0x4c0] sm:$0xff]  ;;  %v330_v13 = vld [vmem:[%s5577_s26 + $0x4c8] sm:$0xff]  ;;  %327 = vst [vmem:[%s5585_s27 + $0x258] sm:$0xff] %v326_v11 }
  0x36   : > { %329 = vst [vmem:[%s5585_s27 + $0x260] sm:$0xff] %v328_v12  ;;  %331 = vst [vmem:[%s5585_s27 + $0x268] sm:$0xff] %v330_v13  ;;  %v332_v14 = vld [vmem:[%s5577_s26 + $0x4e0] sm:$0xff]  ;;  %v334_v15 = vld [vmem:[%s5577_s26 + $0x4e8] sm:$0xff] }
  0x37   : > { %v336_v16 = vld [vmem:[%s5577_s26 + $0x500] sm:$0xff]  ;;  %333 = vst [vmem:[%s5585_s27 + $0x270] sm:$0xff] %v332_v14  ;;  %335 = vst [vmem:[%s5585_s27 + $0x278] sm:$0xff] %v334_v15  ;;  %v338_v17 = vld [vmem:[%s5577_s26 + $0x508] sm:$0xff] }
  0x38   : > { %337 = vst [vmem:[%s5585_s27 + $0x280] sm:$0xff] %v336_v16  ;;  %v340_v18 = vld [vmem:[%s5577_s26 + $0x520] sm:$0xff]  ;;  %v342_v19 = vld [vmem:[%s5577_s26 + $0x528] sm:$0xff]  ;;  %339 = vst [vmem:[%s5585_s27 + $0x288] sm:$0xff] %v338_v17 }
  0x39   : > { %341 = vst [vmem:[%s5585_s27 + $0x290] sm:$0xff] %v340_v18  ;;  %343 = vst [vmem:[%s5585_s27 + $0x298] sm:$0xff] %v342_v19  ;;  %v344_v20 = vld [vmem:[%s5577_s26 + $0x540] sm:$0xff]  ;;  %v346_v21 = vld [vmem:[%s5577_s26 + $0x548] sm:$0xff] }
  0x3a   : > { %v348_v22 = vld [vmem:[%s5577_s26 + $0x560] sm:$0xff]  ;;  %345 = vst [vmem:[%s5585_s27 + $0x2a0] sm:$0xff] %v344_v20  ;;  %347 = vst [vmem:[%s5585_s27 + $0x2a8] sm:$0xff] %v346_v21  ;;  %v350_v23 = vld [vmem:[%s5577_s26 + $0x568] sm:$0xff] }
  0x3b   : > { %349 = vst [vmem:[%s5585_s27 + $0x2b0] sm:$0xff] %v348_v22  ;;  %v352_v24 = vld [vmem:[%s5577_s26 + $0x580] sm:$0xff]  ;;  %v354_v25 = vld [vmem:[%s5577_s26 + $0x588] sm:$0xff]  ;;  %351 = vst [vmem:[%s5585_s27 + $0x2b8] sm:$0xff] %v350_v23 }
  0x3c   : > { %353 = vst [vmem:[%s5585_s27 + $0x2c0] sm:$0xff] %v352_v24  ;;  %355 = vst [vmem:[%s5585_s27 + $0x2c8] sm:$0xff] %v354_v25  ;;  %v356_v26 = vld [vmem:[%s5577_s26 + $0x5a0] sm:$0xff]  ;;  %v358_v27 = vld [vmem:[%s5577_s26 + $0x5a8] sm:$0xff] }
  0x3d   : > { %v360_v28 = vld [vmem:[%s5577_s26 + $0x5c0] sm:$0xff]  ;;  %357 = vst [vmem:[%s5585_s27 + $0x2d0] sm:$0xff] %v356_v26  ;;  %359 = vst [vmem:[%s5585_s27 + $0x2d8] sm:$0xff] %v358_v27  ;;  %v362_v29 = vld [vmem:[%s5577_s26 + $0x5c8] sm:$0xff] }
  0x3e   : > { %361 = vst [vmem:[%s5585_s27 + $0x2e0] sm:$0xff] %v360_v28  ;;  %v364_v30 = vld [vmem:[%s5577_s26 + $0x5e0] sm:$0xff]  ;;  %v366_v31 = vld [vmem:[%s5577_s26 + $0x5e8] sm:$0xff]  ;;  %363 = vst [vmem:[%s5585_s27 + $0x2e8] sm:$0xff] %v362_v29 }
  0x3f   : > { %365 = vst [vmem:[%s5585_s27 + $0x2f0] sm:$0xff] %v364_v30  ;;  %367 = vst [vmem:[%s5585_s27 + $0x2f8] sm:$0xff] %v366_v31  ;;  %v368_v32 = vld [vmem:[%s5577_s26 + $0x600] sm:$0xff]  ;;  %v370_v33 = vld [vmem:[%s5577_s26 + $0x608] sm:$0xff] }
  0x40   : > { %v372_v34 = vld [vmem:[%s5577_s26 + $0x620] sm:$0xff]  ;;  %369 = vst [vmem:[%s5585_s27 + $0x300] sm:$0xff] %v368_v32  ;;  %371 = vst [vmem:[%s5585_s27 + $0x308] sm:$0xff] %v370_v33  ;;  %v374_v35 = vld [vmem:[%s5577_s26 + $0x628] sm:$0xff] }
  0x41   : > { %373 = vst [vmem:[%s5585_s27 + $0x310] sm:$0xff] %v372_v34  ;;  %v376_v36 = vld [vmem:[%s5577_s26 + $0x640] sm:$0xff]  ;;  %v378_v37 = vld [vmem:[%s5577_s26 + $0x648] sm:$0xff]  ;;  %375 = vst [vmem:[%s5585_s27 + $0x318] sm:$0xff] %v374_v35 }
  0x42   : > { %377 = vst [vmem:[%s5585_s27 + $0x320] sm:$0xff] %v376_v36  ;;  %379 = vst [vmem:[%s5585_s27 + $0x328] sm:$0xff] %v378_v37  ;;  %v380_v38 = vld [vmem:[%s5577_s26 + $0x660] sm:$0xff]  ;;  %v382_v39 = vld [vmem:[%s5577_s26 + $0x668] sm:$0xff] }
  0x43   : > { %v384_v40 = vld [vmem:[%s5577_s26 + $0x680] sm:$0xff]  ;;  %381 = vst [vmem:[%s5585_s27 + $0x330] sm:$0xff] %v380_v38  ;;  %383 = vst [vmem:[%s5585_s27 + $0x338] sm:$0xff] %v382_v39  ;;  %v386_v41 = vld [vmem:[%s5577_s26 + $0x688] sm:$0xff] }
  0x44   : > { %385 = vst [vmem:[%s5585_s27 + $0x340] sm:$0xff] %v384_v40  ;;  %v388_v42 = vld [vmem:[%s5577_s26 + $0x6a0] sm:$0xff]  ;;  %v390_v43 = vld [vmem:[%s5577_s26 + $0x6a8] sm:$0xff]  ;;  %387 = vst [vmem:[%s5585_s27 + $0x348] sm:$0xff] %v386_v41 }
  0x45   : > { %389 = vst [vmem:[%s5585_s27 + $0x350] sm:$0xff] %v388_v42  ;;  %391 = vst [vmem:[%s5585_s27 + $0x358] sm:$0xff] %v390_v43  ;;  %v392_v44 = vld [vmem:[%s5577_s26 + $0x6c0] sm:$0xff]  ;;  %v394_v45 = vld [vmem:[%s5577_s26 + $0x6c8] sm:$0xff] }
  0x46   : > { %v396_v46 = vld [vmem:[%s5577_s26 + $0x6e0] sm:$0xff]  ;;  %393 = vst [vmem:[%s5585_s27 + $0x360] sm:$0xff] %v392_v44  ;;  %395 = vst [vmem:[%s5585_s27 + $0x368] sm:$0xff] %v394_v45  ;;  %v398_v47 = vld [vmem:[%s5577_s26 + $0x6e8] sm:$0xff] }
  0x47   : > { %397 = vst [vmem:[%s5585_s27 + $0x370] sm:$0xff] %v396_v46  ;;  %v400_v48 = vld [vmem:[%s5577_s26 + $0x700] sm:$0xff]  ;;  %v402_v49 = vld [vmem:[%s5577_s26 + $0x708] sm:$0xff]  ;;  %399 = vst [vmem:[%s5585_s27 + $0x378] sm:$0xff] %v398_v47 }
  0x48   : > { %401 = vst [vmem:[%s5585_s27 + $0x380] sm:$0xff] %v400_v48  ;;  %403 = vst [vmem:[%s5585_s27 + $0x388] sm:$0xff] %v402_v49  ;;  %v404_v50 = vld [vmem:[%s5577_s26 + $0x720] sm:$0xff]  ;;  %v406_v51 = vld [vmem:[%s5577_s26 + $0x728] sm:$0xff] }
  0x49   : > { %v408_v52 = vld [vmem:[%s5577_s26 + $0x740] sm:$0xff]  ;;  %405 = vst [vmem:[%s5585_s27 + $0x390] sm:$0xff] %v404_v50  ;;  %407 = vst [vmem:[%s5585_s27 + $0x398] sm:$0xff] %v406_v51  ;;  %v410_v53 = vld [vmem:[%s5577_s26 + $0x748] sm:$0xff] }
  0x4a   : > { %409 = vst [vmem:[%s5585_s27 + $0x3a0] sm:$0xff] %v408_v52  ;;  %v412_v54 = vld [vmem:[%s5577_s26 + $0x760] sm:$0xff]  ;;  %v414_v55 = vld [vmem:[%s5577_s26 + $0x768] sm:$0xff]  ;;  %411 = vst [vmem:[%s5585_s27 + $0x3a8] sm:$0xff] %v410_v53 }
  0x4b   : > { %413 = vst [vmem:[%s5585_s27 + $0x3b0] sm:$0xff] %v412_v54  ;;  %415 = vst [vmem:[%s5585_s27 + $0x3b8] sm:$0xff] %v414_v55  ;;  %v416_v56 = vld [vmem:[%s5577_s26 + $0x780] sm:$0xff]  ;;  %v418_v57 = vld [vmem:[%s5577_s26 + $0x788] sm:$0xff] }
  0x4c   : > { %v420_v58 = vld [vmem:[%s5577_s26 + $0x7a0] sm:$0xff]  ;;  %417 = vst [vmem:[%s5585_s27 + $0x3c0] sm:$0xff] %v416_v56  ;;  %419 = vst [vmem:[%s5585_s27 + $0x3c8] sm:$0xff] %v418_v57  ;;  %v422_v59 = vld [vmem:[%s5577_s26 + $0x7a8] sm:$0xff] }
  0x4d   : > { %421 = vst [vmem:[%s5585_s27 + $0x3d0] sm:$0xff] %v420_v58  ;;  %v424_v60 = vld [vmem:[%s5577_s26 + $0x7c0] sm:$0xff]  ;;  %v426_v61 = vld [vmem:[%s5577_s26 + $0x7c8] sm:$0xff]  ;;  %423 = vst [vmem:[%s5585_s27 + $0x3d8] sm:$0xff] %v422_v59 }
  0x4e   : > { %425 = vst [vmem:[%s5585_s27 + $0x3e0] sm:$0xff] %v424_v60  ;;  %427 = vst [vmem:[%s5585_s27 + $0x3e8] sm:$0xff] %v426_v61  ;;  %v428_v62 = vld [vmem:[%s5577_s26 + $0x7e0] sm:$0xff]  ;;  %v430_v63 = vld [vmem:[%s5577_s26 + $0x7e8] sm:$0xff] }
  0x4f   : > { %v432_v0 = vld [vmem:[%s5577_s26 + $0x800] sm:$0xff]  ;;  %429 = vst [vmem:[%s5585_s27 + $0x3f0] sm:$0xff] %v428_v62  ;;  %431 = vst [vmem:[%s5585_s27 + $0x3f8] sm:$0xff] %v430_v63  ;;  %v434_v1 = vld [vmem:[%s5577_s26 + $0x808] sm:$0xff] }
  0x50   : > { %433 = vst [vmem:[%s5585_s27 + $0x400] sm:$0xff] %v432_v0  ;;  %v436_v2 = vld [vmem:[%s5577_s26 + $0x820] sm:$0xff]  ;;  %v438_v3 = vld [vmem:[%s5577_s26 + $0x828] sm:$0xff]  ;;  %435 = vst [vmem:[%s5585_s27 + $0x408] sm:$0xff] %v434_v1 }
  0x51   : > { %437 = vst [vmem:[%s5585_s27 + $0x410] sm:$0xff] %v436_v2  ;;  %439 = vst [vmem:[%s5585_s27 + $0x418] sm:$0xff] %v438_v3  ;;  %v440_v4 = vld [vmem:[%s5577_s26 + $0x840] sm:$0xff]  ;;  %v442_v5 = vld [vmem:[%s5577_s26 + $0x848] sm:$0xff] }
  0x52   : > { %v444_v6 = vld [vmem:[%s5577_s26 + $0x860] sm:$0xff]  ;;  %441 = vst [vmem:[%s5585_s27 + $0x420] sm:$0xff] %v440_v4  ;;  %443 = vst [vmem:[%s5585_s27 + $0x428] sm:$0xff] %v442_v5  ;;  %v446_v7 = vld [vmem:[%s5577_s26 + $0x868] sm:$0xff] }
  0x53   : > { %445 = vst [vmem:[%s5585_s27 + $0x430] sm:$0xff] %v444_v6  ;;  %v448_v8 = vld [vmem:[%s5577_s26 + $0x880] sm:$0xff]  ;;  %v450_v9 = vld [vmem:[%s5577_s26 + $0x888] sm:$0xff]  ;;  %447 = vst [vmem:[%s5585_s27 + $0x438] sm:$0xff] %v446_v7 }
  0x54   : > { %449 = vst [vmem:[%s5585_s27 + $0x440] sm:$0xff] %v448_v8  ;;  %451 = vst [vmem:[%s5585_s27 + $0x448] sm:$0xff] %v450_v9  ;;  %v452_v10 = vld [vmem:[%s5577_s26 + $0x8a0] sm:$0xff]  ;;  %v454_v11 = vld [vmem:[%s5577_s26 + $0x8a8] sm:$0xff] }
  0x55   : > { %v456_v12 = vld [vmem:[%s5577_s26 + $0x8c0] sm:$0xff]  ;;  %453 = vst [vmem:[%s5585_s27 + $0x450] sm:$0xff] %v452_v10  ;;  %455 = vst [vmem:[%s5585_s27 + $0x458] sm:$0xff] %v454_v11  ;;  %v458_v13 = vld [vmem:[%s5577_s26 + $0x8c8] sm:$0xff] }
  0x56   : > { %457 = vst [vmem:[%s5585_s27 + $0x460] sm:$0xff] %v456_v12  ;;  %v460_v14 = vld [vmem:[%s5577_s26 + $0x8e0] sm:$0xff]  ;;  %v462_v15 = vld [vmem:[%s5577_s26 + $0x8e8] sm:$0xff]  ;;  %459 = vst [vmem:[%s5585_s27 + $0x468] sm:$0xff] %v458_v13 }
  0x57   : > { %461 = vst [vmem:[%s5585_s27 + $0x470] sm:$0xff] %v460_v14  ;;  %463 = vst [vmem:[%s5585_s27 + $0x478] sm:$0xff] %v462_v15  ;;  %v464_v16 = vld [vmem:[%s5577_s26 + $0x900] sm:$0xff]  ;;  %v466_v17 = vld [vmem:[%s5577_s26 + $0x908] sm:$0xff] }
  0x58   : > { %v468_v18 = vld [vmem:[%s5577_s26 + $0x920] sm:$0xff]  ;;  %465 = vst [vmem:[%s5585_s27 + $0x480] sm:$0xff] %v464_v16  ;;  %467 = vst [vmem:[%s5585_s27 + $0x488] sm:$0xff] %v466_v17  ;;  %v470_v19 = vld [vmem:[%s5577_s26 + $0x928] sm:$0xff] }
  0x59   : > { %469 = vst [vmem:[%s5585_s27 + $0x490] sm:$0xff] %v468_v18  ;;  %v472_v20 = vld [vmem:[%s5577_s26 + $0x940] sm:$0xff]  ;;  %v474_v21 = vld [vmem:[%s5577_s26 + $0x948] sm:$0xff]  ;;  %471 = vst [vmem:[%s5585_s27 + $0x498] sm:$0xff] %v470_v19 }
  0x5a   : > { %473 = vst [vmem:[%s5585_s27 + $0x4a0] sm:$0xff] %v472_v20  ;;  %475 = vst [vmem:[%s5585_s27 + $0x4a8] sm:$0xff] %v474_v21  ;;  %v476_v22 = vld [vmem:[%s5577_s26 + $0x960] sm:$0xff]  ;;  %v478_v23 = vld [vmem:[%s5577_s26 + $0x968] sm:$0xff] }
  0x5b   : > { %v480_v24 = vld [vmem:[%s5577_s26 + $0x980] sm:$0xff]  ;;  %477 = vst [vmem:[%s5585_s27 + $0x4b0] sm:$0xff] %v476_v22  ;;  %479 = vst [vmem:[%s5585_s27 + $0x4b8] sm:$0xff] %v478_v23  ;;  %v482_v25 = vld [vmem:[%s5577_s26 + $0x988] sm:$0xff] }
  0x5c   : > { %481 = vst [vmem:[%s5585_s27 + $0x4c0] sm:$0xff] %v480_v24  ;;  %v484_v26 = vld [vmem:[%s5577_s26 + $0x9a0] sm:$0xff]  ;;  %v486_v27 = vld [vmem:[%s5577_s26 + $0x9a8] sm:$0xff]  ;;  %483 = vst [vmem:[%s5585_s27 + $0x4c8] sm:$0xff] %v482_v25 }
  0x5d   : > { %485 = vst [vmem:[%s5585_s27 + $0x4d0] sm:$0xff] %v484_v26  ;;  %487 = vst [vmem:[%s5585_s27 + $0x4d8] sm:$0xff] %v486_v27  ;;  %v488_v28 = vld [vmem:[%s5577_s26 + $0x9c0] sm:$0xff]  ;;  %v490_v29 = vld [vmem:[%s5577_s26 + $0x9c8] sm:$0xff] }
  0x5e   : > { %v492_v30 = vld [vmem:[%s5577_s26 + $0x9e0] sm:$0xff]  ;;  %489 = vst [vmem:[%s5585_s27 + $0x4e0] sm:$0xff] %v488_v28  ;;  %491 = vst [vmem:[%s5585_s27 + $0x4e8] sm:$0xff] %v490_v29  ;;  %v494_v31 = vld [vmem:[%s5577_s26 + $0x9e8] sm:$0xff] }
  0x5f   : > { %493 = vst [vmem:[%s5585_s27 + $0x4f0] sm:$0xff] %v492_v30  ;;  %v496_v32 = vld [vmem:[%s5577_s26 + $0xa00] sm:$0xff]  ;;  %v498_v33 = vld [vmem:[%s5577_s26 + $0xa08] sm:$0xff]  ;;  %495 = vst [vmem:[%s5585_s27 + $0x4f8] sm:$0xff] %v494_v31 }
  0x60   : > { %497 = vst [vmem:[%s5585_s27 + $0x500] sm:$0xff] %v496_v32  ;;  %499 = vst [vmem:[%s5585_s27 + $0x508] sm:$0xff] %v498_v33  ;;  %v500_v34 = vld [vmem:[%s5577_s26 + $0xa20] sm:$0xff]  ;;  %v502_v35 = vld [vmem:[%s5577_s26 + $0xa28] sm:$0xff] }
  0x61   : > { %v504_v36 = vld [vmem:[%s5577_s26 + $0xa40] sm:$0xff]  ;;  %501 = vst [vmem:[%s5585_s27 + $0x510] sm:$0xff] %v500_v34  ;;  %503 = vst [vmem:[%s5585_s27 + $0x518] sm:$0xff] %v502_v35  ;;  %v506_v37 = vld [vmem:[%s5577_s26 + $0xa48] sm:$0xff] }
  0x62   : > { %505 = vst [vmem:[%s5585_s27 + $0x520] sm:$0xff] %v504_v36  ;;  %v508_v38 = vld [vmem:[%s5577_s26 + $0xa60] sm:$0xff]  ;;  %v510_v39 = vld [vmem:[%s5577_s26 + $0xa68] sm:$0xff]  ;;  %507 = vst [vmem:[%s5585_s27 + $0x528] sm:$0xff] %v506_v37 }
  0x63   : > { %509 = vst [vmem:[%s5585_s27 + $0x530] sm:$0xff] %v508_v38  ;;  %511 = vst [vmem:[%s5585_s27 + $0x538] sm:$0xff] %v510_v39  ;;  %v512_v40 = vld [vmem:[%s5577_s26 + $0xa80] sm:$0xff]  ;;  %v514_v41 = vld [vmem:[%s5577_s26 + $0xa88] sm:$0xff] }
  0x64   : > { %v516_v42 = vld [vmem:[%s5577_s26 + $0xaa0] sm:$0xff]  ;;  %513 = vst [vmem:[%s5585_s27 + $0x540] sm:$0xff] %v512_v40  ;;  %515 = vst [vmem:[%s5585_s27 + $0x548] sm:$0xff] %v514_v41  ;;  %v518_v43 = vld [vmem:[%s5577_s26 + $0xaa8] sm:$0xff] }
  0x65   : > { %517 = vst [vmem:[%s5585_s27 + $0x550] sm:$0xff] %v516_v42  ;;  %v520_v44 = vld [vmem:[%s5577_s26 + $0xac0] sm:$0xff]  ;;  %v522_v45 = vld [vmem:[%s5577_s26 + $0xac8] sm:$0xff]  ;;  %519 = vst [vmem:[%s5585_s27 + $0x558] sm:$0xff] %v518_v43 }
  0x66   : > { %521 = vst [vmem:[%s5585_s27 + $0x560] sm:$0xff] %v520_v44  ;;  %523 = vst [vmem:[%s5585_s27 + $0x568] sm:$0xff] %v522_v45  ;;  %v524_v46 = vld [vmem:[%s5577_s26 + $0xae0] sm:$0xff]  ;;  %v526_v47 = vld [vmem:[%s5577_s26 + $0xae8] sm:$0xff] }
  0x67   : > { %v528_v48 = vld [vmem:[%s5577_s26 + $0xb00] sm:$0xff]  ;;  %525 = vst [vmem:[%s5585_s27 + $0x570] sm:$0xff] %v524_v46  ;;  %527 = vst [vmem:[%s5585_s27 + $0x578] sm:$0xff] %v526_v47  ;;  %v530_v49 = vld [vmem:[%s5577_s26 + $0xb08] sm:$0xff] }
  0x68   : > { %529 = vst [vmem:[%s5585_s27 + $0x580] sm:$0xff] %v528_v48  ;;  %v532_v50 = vld [vmem:[%s5577_s26 + $0xb20] sm:$0xff]  ;;  %v534_v51 = vld [vmem:[%s5577_s26 + $0xb28] sm:$0xff]  ;;  %531 = vst [vmem:[%s5585_s27 + $0x588] sm:$0xff] %v530_v49 }
  0x69   : > { %533 = vst [vmem:[%s5585_s27 + $0x590] sm:$0xff] %v532_v50  ;;  %535 = vst [vmem:[%s5585_s27 + $0x598] sm:$0xff] %v534_v51  ;;  %v536_v52 = vld [vmem:[%s5577_s26 + $0xb40] sm:$0xff]  ;;  %v538_v53 = vld [vmem:[%s5577_s26 + $0xb48] sm:$0xff] }
  0x6a   : > { %v540_v54 = vld [vmem:[%s5577_s26 + $0xb60] sm:$0xff]  ;;  %537 = vst [vmem:[%s5585_s27 + $0x5a0] sm:$0xff] %v536_v52  ;;  %539 = vst [vmem:[%s5585_s27 + $0x5a8] sm:$0xff] %v538_v53  ;;  %v542_v55 = vld [vmem:[%s5577_s26 + $0xb68] sm:$0xff] }
  0x6b   : > { %541 = vst [vmem:[%s5585_s27 + $0x5b0] sm:$0xff] %v540_v54  ;;  %v544_v56 = vld [vmem:[%s5577_s26 + $0xb80] sm:$0xff]  ;;  %v546_v57 = vld [vmem:[%s5577_s26 + $0xb88] sm:$0xff]  ;;  %543 = vst [vmem:[%s5585_s27 + $0x5b8] sm:$0xff] %v542_v55 }
  0x6c   : > { %545 = vst [vmem:[%s5585_s27 + $0x5c0] sm:$0xff] %v544_v56  ;;  %547 = vst [vmem:[%s5585_s27 + $0x5c8] sm:$0xff] %v546_v57  ;;  %v548_v58 = vld [vmem:[%s5577_s26 + $0xba0] sm:$0xff]  ;;  %v550_v59 = vld [vmem:[%s5577_s26 + $0xba8] sm:$0xff] }
  0x6d   : > { %v552_v60 = vld [vmem:[%s5577_s26 + $0xbc0] sm:$0xff]  ;;  %549 = vst [vmem:[%s5585_s27 + $0x5d0] sm:$0xff] %v548_v58  ;;  %551 = vst [vmem:[%s5585_s27 + $0x5d8] sm:$0xff] %v550_v59  ;;  %v554_v61 = vld [vmem:[%s5577_s26 + $0xbc8] sm:$0xff] }
  0x6e   : > { %553 = vst [vmem:[%s5585_s27 + $0x5e0] sm:$0xff] %v552_v60  ;;  %v556_v62 = vld [vmem:[%s5577_s26 + $0xbe0] sm:$0xff]  ;;  %v558_v63 = vld [vmem:[%s5577_s26 + $0xbe8] sm:$0xff]  ;;  %555 = vst [vmem:[%s5585_s27 + $0x5e8] sm:$0xff] %v554_v61 }
  0x6f   : > { %557 = vst [vmem:[%s5585_s27 + $0x5f0] sm:$0xff] %v556_v62  ;;  %559 = vst [vmem:[%s5585_s27 + $0x5f8] sm:$0xff] %v558_v63  ;;  %v560_v0 = vld [vmem:[%s5577_s26 + $0xc00] sm:$0xff]  ;;  %v562_v1 = vld [vmem:[%s5577_s26 + $0xc08] sm:$0xff] }
  0x70   : > { %v564_v2 = vld [vmem:[%s5577_s26 + $0xc20] sm:$0xff]  ;;  %561 = vst [vmem:[%s5585_s27 + $0x600] sm:$0xff] %v560_v0  ;;  %563 = vst [vmem:[%s5585_s27 + $0x608] sm:$0xff] %v562_v1  ;;  %v566_v3 = vld [vmem:[%s5577_s26 + $0xc28] sm:$0xff] }
  0x71   : > { %565 = vst [vmem:[%s5585_s27 + $0x610] sm:$0xff] %v564_v2  ;;  %v568_v4 = vld [vmem:[%s5577_s26 + $0xc40] sm:$0xff]  ;;  %v570_v5 = vld [vmem:[%s5577_s26 + $0xc48] sm:$0xff]  ;;  %567 = vst [vmem:[%s5585_s27 + $0x618] sm:$0xff] %v566_v3 }
  0x72   : > { %569 = vst [vmem:[%s5585_s27 + $0x620] sm:$0xff] %v568_v4  ;;  %571 = vst [vmem:[%s5585_s27 + $0x628] sm:$0xff] %v570_v5  ;;  %v572_v6 = vld [vmem:[%s5577_s26 + $0xc60] sm:$0xff]  ;;  %v574_v7 = vld [vmem:[%s5577_s26 + $0xc68] sm:$0xff] }
  0x73   : > { %v576_v8 = vld [vmem:[%s5577_s26 + $0xc80] sm:$0xff]  ;;  %573 = vst [vmem:[%s5585_s27 + $0x630] sm:$0xff] %v572_v6  ;;  %575 = vst [vmem:[%s5585_s27 + $0x638] sm:$0xff] %v574_v7  ;;  %v578_v9 = vld [vmem:[%s5577_s26 + $0xc88] sm:$0xff] }
  0x74   : > { %577 = vst [vmem:[%s5585_s27 + $0x640] sm:$0xff] %v576_v8  ;;  %v580_v10 = vld [vmem:[%s5577_s26 + $0xca0] sm:$0xff]  ;;  %v582_v11 = vld [vmem:[%s5577_s26 + $0xca8] sm:$0xff]  ;;  %579 = vst [vmem:[%s5585_s27 + $0x648] sm:$0xff] %v578_v9 }
  0x75   : > { %581 = vst [vmem:[%s5585_s27 + $0x650] sm:$0xff] %v580_v10  ;;  %583 = vst [vmem:[%s5585_s27 + $0x658] sm:$0xff] %v582_v11  ;;  %v584_v12 = vld [vmem:[%s5577_s26 + $0xcc0] sm:$0xff]  ;;  %v586_v13 = vld [vmem:[%s5577_s26 + $0xcc8] sm:$0xff] }
  0x76   : > { %v588_v14 = vld [vmem:[%s5577_s26 + $0xce0] sm:$0xff]  ;;  %585 = vst [vmem:[%s5585_s27 + $0x660] sm:$0xff] %v584_v12  ;;  %587 = vst [vmem:[%s5585_s27 + $0x668] sm:$0xff] %v586_v13  ;;  %v590_v15 = vld [vmem:[%s5577_s26 + $0xce8] sm:$0xff] }
  0x77   : > { %589 = vst [vmem:[%s5585_s27 + $0x670] sm:$0xff] %v588_v14  ;;  %v592_v16 = vld [vmem:[%s5577_s26 + $0xd00] sm:$0xff]  ;;  %v594_v17 = vld [vmem:[%s5577_s26 + $0xd08] sm:$0xff]  ;;  %591 = vst [vmem:[%s5585_s27 + $0x678] sm:$0xff] %v590_v15 }
  0x78   : > { %593 = vst [vmem:[%s5585_s27 + $0x680] sm:$0xff] %v592_v16  ;;  %595 = vst [vmem:[%s5585_s27 + $0x688] sm:$0xff] %v594_v17  ;;  %v596_v18 = vld [vmem:[%s5577_s26 + $0xd20] sm:$0xff]  ;;  %v598_v19 = vld [vmem:[%s5577_s26 + $0xd28] sm:$0xff] }
  0x79   : > { %v600_v20 = vld [vmem:[%s5577_s26 + $0xd40] sm:$0xff]  ;;  %597 = vst [vmem:[%s5585_s27 + $0x690] sm:$0xff] %v596_v18  ;;  %599 = vst [vmem:[%s5585_s27 + $0x698] sm:$0xff] %v598_v19  ;;  %v602_v21 = vld [vmem:[%s5577_s26 + $0xd48] sm:$0xff] }
  0x7a   : > { %601 = vst [vmem:[%s5585_s27 + $0x6a0] sm:$0xff] %v600_v20  ;;  %v604_v22 = vld [vmem:[%s5577_s26 + $0xd60] sm:$0xff]  ;;  %v606_v23 = vld [vmem:[%s5577_s26 + $0xd68] sm:$0xff]  ;;  %603 = vst [vmem:[%s5585_s27 + $0x6a8] sm:$0xff] %v602_v21 }
  0x7b   : > { %605 = vst [vmem:[%s5585_s27 + $0x6b0] sm:$0xff] %v604_v22  ;;  %607 = vst [vmem:[%s5585_s27 + $0x6b8] sm:$0xff] %v606_v23  ;;  %v608_v24 = vld [vmem:[%s5577_s26 + $0xd80] sm:$0xff]  ;;  %v610_v25 = vld [vmem:[%s5577_s26 + $0xd88] sm:$0xff] }
  0x7c   : > { %v612_v26 = vld [vmem:[%s5577_s26 + $0xda0] sm:$0xff]  ;;  %609 = vst [vmem:[%s5585_s27 + $0x6c0] sm:$0xff] %v608_v24  ;;  %611 = vst [vmem:[%s5585_s27 + $0x6c8] sm:$0xff] %v610_v25  ;;  %v614_v27 = vld [vmem:[%s5577_s26 + $0xda8] sm:$0xff] }
  0x7d   : > { %613 = vst [vmem:[%s5585_s27 + $0x6d0] sm:$0xff] %v612_v26  ;;  %v616_v28 = vld [vmem:[%s5577_s26 + $0xdc0] sm:$0xff]  ;;  %v618_v29 = vld [vmem:[%s5577_s26 + $0xdc8] sm:$0xff]  ;;  %615 = vst [vmem:[%s5585_s27 + $0x6d8] sm:$0xff] %v614_v27 }
  0x7e   : > { %617 = vst [vmem:[%s5585_s27 + $0x6e0] sm:$0xff] %v616_v28  ;;  %619 = vst [vmem:[%s5585_s27 + $0x6e8] sm:$0xff] %v618_v29  ;;  %v620_v30 = vld [vmem:[%s5577_s26 + $0xde0] sm:$0xff]  ;;  %v622_v31 = vld [vmem:[%s5577_s26 + $0xde8] sm:$0xff] }
  0x7f   : > { %v624_v32 = vld [vmem:[%s5577_s26 + $0xe00] sm:$0xff]  ;;  %621 = vst [vmem:[%s5585_s27 + $0x6f0] sm:$0xff] %v620_v30  ;;  %623 = vst [vmem:[%s5585_s27 + $0x6f8] sm:$0xff] %v622_v31  ;;  %v626_v33 = vld [vmem:[%s5577_s26 + $0xe08] sm:$0xff] }
  0x80   : > { %625 = vst [vmem:[%s5585_s27 + $0x700] sm:$0xff] %v624_v32  ;;  %v628_v34 = vld [vmem:[%s5577_s26 + $0xe20] sm:$0xff]  ;;  %v630_v35 = vld [vmem:[%s5577_s26 + $0xe28] sm:$0xff]  ;;  %627 = vst [vmem:[%s5585_s27 + $0x708] sm:$0xff] %v626_v33 }
  0x81   : > { %629 = vst [vmem:[%s5585_s27 + $0x710] sm:$0xff] %v628_v34  ;;  %631 = vst [vmem:[%s5585_s27 + $0x718] sm:$0xff] %v630_v35  ;;  %v632_v36 = vld [vmem:[%s5577_s26 + $0xe40] sm:$0xff]  ;;  %v634_v37 = vld [vmem:[%s5577_s26 + $0xe48] sm:$0xff] }
  0x82   : > { %v636_v38 = vld [vmem:[%s5577_s26 + $0xe60] sm:$0xff]  ;;  %633 = vst [vmem:[%s5585_s27 + $0x720] sm:$0xff] %v632_v36  ;;  %635 = vst [vmem:[%s5585_s27 + $0x728] sm:$0xff] %v634_v37  ;;  %v638_v39 = vld [vmem:[%s5577_s26 + $0xe68] sm:$0xff] }
  0x83   : > { %637 = vst [vmem:[%s5585_s27 + $0x730] sm:$0xff] %v636_v38  ;;  %v640_v40 = vld [vmem:[%s5577_s26 + $0xe80] sm:$0xff]  ;;  %v642_v41 = vld [vmem:[%s5577_s26 + $0xe88] sm:$0xff]  ;;  %639 = vst [vmem:[%s5585_s27 + $0x738] sm:$0xff] %v638_v39 }
  0x84   : > { %641 = vst [vmem:[%s5585_s27 + $0x740] sm:$0xff] %v640_v40  ;;  %643 = vst [vmem:[%s5585_s27 + $0x748] sm:$0xff] %v642_v41  ;;  %v644_v42 = vld [vmem:[%s5577_s26 + $0xea0] sm:$0xff]  ;;  %v646_v43 = vld [vmem:[%s5577_s26 + $0xea8] sm:$0xff] }
  0x85   : > { %v648_v44 = vld [vmem:[%s5577_s26 + $0xec0] sm:$0xff]  ;;  %645 = vst [vmem:[%s5585_s27 + $0x750] sm:$0xff] %v644_v42  ;;  %647 = vst [vmem:[%s5585_s27 + $0x758] sm:$0xff] %v646_v43  ;;  %v650_v45 = vld [vmem:[%s5577_s26 + $0xec8] sm:$0xff] }
  0x86   : > { %649 = vst [vmem:[%s5585_s27 + $0x760] sm:$0xff] %v648_v44  ;;  %v652_v46 = vld [vmem:[%s5577_s26 + $0xee0] sm:$0xff]  ;;  %v654_v47 = vld [vmem:[%s5577_s26 + $0xee8] sm:$0xff]  ;;  %651 = vst [vmem:[%s5585_s27 + $0x768] sm:$0xff] %v650_v45 }
  0x87   : > { %653 = vst [vmem:[%s5585_s27 + $0x770] sm:$0xff] %v652_v46  ;;  %655 = vst [vmem:[%s5585_s27 + $0x778] sm:$0xff] %v654_v47  ;;  %v656_v48 = vld [vmem:[%s5577_s26 + $0xf00] sm:$0xff]  ;;  %v658_v49 = vld [vmem:[%s5577_s26 + $0xf08] sm:$0xff] }
  0x88   : > { %v660_v50 = vld [vmem:[%s5577_s26 + $0xf20] sm:$0xff]  ;;  %657 = vst [vmem:[%s5585_s27 + $0x780] sm:$0xff] %v656_v48  ;;  %659 = vst [vmem:[%s5585_s27 + $0x788] sm:$0xff] %v658_v49  ;;  %v662_v51 = vld [vmem:[%s5577_s26 + $0xf28] sm:$0xff] }
  0x89   : > { %661 = vst [vmem:[%s5585_s27 + $0x790] sm:$0xff] %v660_v50  ;;  %v664_v52 = vld [vmem:[%s5577_s26 + $0xf40] sm:$0xff]  ;;  %v666_v53 = vld [vmem:[%s5577_s26 + $0xf48] sm:$0xff]  ;;  %663 = vst [vmem:[%s5585_s27 + $0x798] sm:$0xff] %v662_v51 }
  0x8a   : > { %665 = vst [vmem:[%s5585_s27 + $0x7a0] sm:$0xff] %v664_v52  ;;  %667 = vst [vmem:[%s5585_s27 + $0x7a8] sm:$0xff] %v666_v53  ;;  %v668_v54 = vld [vmem:[%s5577_s26 + $0xf60] sm:$0xff]  ;;  %v670_v55 = vld [vmem:[%s5577_s26 + $0xf68] sm:$0xff] }
  0x8b   : > { %v672_v56 = vld [vmem:[%s5577_s26 + $0xf80] sm:$0xff]  ;;  %669 = vst [vmem:[%s5585_s27 + $0x7b0] sm:$0xff] %v668_v54  ;;  %671 = vst [vmem:[%s5585_s27 + $0x7b8] sm:$0xff] %v670_v55  ;;  %v674_v57 = vld [vmem:[%s5577_s26 + $0xf88] sm:$0xff] }
  0x8c   : > { %673 = vst [vmem:[%s5585_s27 + $0x7c0] sm:$0xff] %v672_v56  ;;  %v676_v58 = vld [vmem:[%s5577_s26 + $0xfa0] sm:$0xff]  ;;  %v678_v59 = vld [vmem:[%s5577_s26 + $0xfa8] sm:$0xff]  ;;  %675 = vst [vmem:[%s5585_s27 + $0x7c8] sm:$0xff] %v674_v57 }
  0x8d   : > { %677 = vst [vmem:[%s5585_s27 + $0x7d0] sm:$0xff] %v676_v58  ;;  %679 = vst [vmem:[%s5585_s27 + $0x7d8] sm:$0xff] %v678_v59  ;;  %v680_v60 = vld [vmem:[%s5577_s26 + $0xfc0] sm:$0xff]  ;;  %v682_v61 = vld [vmem:[%s5577_s26 + $0xfc8] sm:$0xff] }
  0x8e   : > { %v684_v62 = vld [vmem:[%s5577_s26 + $0xfe0] sm:$0xff]  ;;  %681 = vst [vmem:[%s5585_s27 + $0x7e0] sm:$0xff] %v680_v60  ;;  %683 = vst [vmem:[%s5585_s27 + $0x7e8] sm:$0xff] %v682_v61  ;;  %v686_v63 = vld [vmem:[%s5577_s26 + $0xfe8] sm:$0xff] }
  0x8f   : > { %685 = vst [vmem:[%s5585_s27 + $0x7f0] sm:$0xff] %v684_v62  ;;  %v688_v0 = vld [vmem:[%s5577_s26 + $0x1000] sm:$0xff]  ;;  %v690_v1 = vld [vmem:[%s5577_s26 + $0x1008] sm:$0xff]  ;;  %687 = vst [vmem:[%s5585_s27 + $0x7f8] sm:$0xff] %v686_v63 }
  0x90   : > { %689 = vst [vmem:[%s5585_s27 + $0x800] sm:$0xff] %v688_v0  ;;  %691 = vst [vmem:[%s5585_s27 + $0x808] sm:$0xff] %v690_v1  ;;  %v692_v2 = vld [vmem:[%s5577_s26 + $0x1020] sm:$0xff]  ;;  %v694_v3 = vld [vmem:[%s5577_s26 + $0x1028] sm:$0xff] }
  0x91   : > { %v696_v4 = vld [vmem:[%s5577_s26 + $0x1040] sm:$0xff]  ;;  %693 = vst [vmem:[%s5585_s27 + $0x810] sm:$0xff] %v692_v2  ;;  %695 = vst [vmem:[%s5585_s27 + $0x818] sm:$0xff] %v694_v3  ;;  %v698_v5 = vld [vmem:[%s5577_s26 + $0x1048] sm:$0xff] }
  0x92   : > { %697 = vst [vmem:[%s5585_s27 + $0x820] sm:$0xff] %v696_v4  ;;  %v700_v6 = vld [vmem:[%s5577_s26 + $0x1060] sm:$0xff]  ;;  %v702_v7 = vld [vmem:[%s5577_s26 + $0x1068] sm:$0xff]  ;;  %699 = vst [vmem:[%s5585_s27 + $0x828] sm:$0xff] %v698_v5 }
  0x93   : > { %701 = vst [vmem:[%s5585_s27 + $0x830] sm:$0xff] %v700_v6  ;;  %703 = vst [vmem:[%s5585_s27 + $0x838] sm:$0xff] %v702_v7  ;;  %v704_v8 = vld [vmem:[%s5577_s26 + $0x1080] sm:$0xff]  ;;  %v706_v9 = vld [vmem:[%s5577_s26 + $0x1088] sm:$0xff] }
  0x94   : > { %v708_v10 = vld [vmem:[%s5577_s26 + $0x10a0] sm:$0xff]  ;;  %705 = vst [vmem:[%s5585_s27 + $0x840] sm:$0xff] %v704_v8  ;;  %707 = vst [vmem:[%s5585_s27 + $0x848] sm:$0xff] %v706_v9  ;;  %v710_v11 = vld [vmem:[%s5577_s26 + $0x10a8] sm:$0xff] }
  0x95   : > { %709 = vst [vmem:[%s5585_s27 + $0x850] sm:$0xff] %v708_v10  ;;  %v712_v12 = vld [vmem:[%s5577_s26 + $0x10c0] sm:$0xff]  ;;  %v714_v13 = vld [vmem:[%s5577_s26 + $0x10c8] sm:$0xff]  ;;  %711 = vst [vmem:[%s5585_s27 + $0x858] sm:$0xff] %v710_v11 }
  0x96   : > { %713 = vst [vmem:[%s5585_s27 + $0x860] sm:$0xff] %v712_v12  ;;  %715 = vst [vmem:[%s5585_s27 + $0x868] sm:$0xff] %v714_v13  ;;  %v716_v14 = vld [vmem:[%s5577_s26 + $0x10e0] sm:$0xff]  ;;  %v718_v15 = vld [vmem:[%s5577_s26 + $0x10e8] sm:$0xff] }
  0x97   : > { %v720_v16 = vld [vmem:[%s5577_s26 + $0x1100] sm:$0xff]  ;;  %717 = vst [vmem:[%s5585_s27 + $0x870] sm:$0xff] %v716_v14  ;;  %719 = vst [vmem:[%s5585_s27 + $0x878] sm:$0xff] %v718_v15  ;;  %v722_v17 = vld [vmem:[%s5577_s26 + $0x1108] sm:$0xff] }
  0x98   : > { %721 = vst [vmem:[%s5585_s27 + $0x880] sm:$0xff] %v720_v16  ;;  %v724_v18 = vld [vmem:[%s5577_s26 + $0x1120] sm:$0xff]  ;;  %v726_v19 = vld [vmem:[%s5577_s26 + $0x1128] sm:$0xff]  ;;  %723 = vst [vmem:[%s5585_s27 + $0x888] sm:$0xff] %v722_v17 }
  0x99   : > { %725 = vst [vmem:[%s5585_s27 + $0x890] sm:$0xff] %v724_v18  ;;  %727 = vst [vmem:[%s5585_s27 + $0x898] sm:$0xff] %v726_v19  ;;  %v728_v20 = vld [vmem:[%s5577_s26 + $0x1140] sm:$0xff]  ;;  %v730_v21 = vld [vmem:[%s5577_s26 + $0x1148] sm:$0xff] }
  0x9a   : > { %v732_v22 = vld [vmem:[%s5577_s26 + $0x1160] sm:$0xff]  ;;  %729 = vst [vmem:[%s5585_s27 + $0x8a0] sm:$0xff] %v728_v20  ;;  %731 = vst [vmem:[%s5585_s27 + $0x8a8] sm:$0xff] %v730_v21  ;;  %v734_v23 = vld [vmem:[%s5577_s26 + $0x1168] sm:$0xff] }
  0x9b   : > { %733 = vst [vmem:[%s5585_s27 + $0x8b0] sm:$0xff] %v732_v22  ;;  %v736_v24 = vld [vmem:[%s5577_s26 + $0x1180] sm:$0xff]  ;;  %v738_v25 = vld [vmem:[%s5577_s26 + $0x1188] sm:$0xff]  ;;  %735 = vst [vmem:[%s5585_s27 + $0x8b8] sm:$0xff] %v734_v23 }
  0x9c   : > { %737 = vst [vmem:[%s5585_s27 + $0x8c0] sm:$0xff] %v736_v24  ;;  %739 = vst [vmem:[%s5585_s27 + $0x8c8] sm:$0xff] %v738_v25  ;;  %v740_v26 = vld [vmem:[%s5577_s26 + $0x11a0] sm:$0xff]  ;;  %v742_v27 = vld [vmem:[%s5577_s26 + $0x11a8] sm:$0xff] }
  0x9d   : > { %v744_v28 = vld [vmem:[%s5577_s26 + $0x11c0] sm:$0xff]  ;;  %741 = vst [vmem:[%s5585_s27 + $0x8d0] sm:$0xff] %v740_v26  ;;  %743 = vst [vmem:[%s5585_s27 + $0x8d8] sm:$0xff] %v742_v27  ;;  %v746_v29 = vld [vmem:[%s5577_s26 + $0x11c8] sm:$0xff] }
  0x9e   : > { %745 = vst [vmem:[%s5585_s27 + $0x8e0] sm:$0xff] %v744_v28  ;;  %v748_v30 = vld [vmem:[%s5577_s26 + $0x11e0] sm:$0xff]  ;;  %v750_v31 = vld [vmem:[%s5577_s26 + $0x11e8] sm:$0xff]  ;;  %747 = vst [vmem:[%s5585_s27 + $0x8e8] sm:$0xff] %v746_v29 }
  0x9f   : > { %749 = vst [vmem:[%s5585_s27 + $0x8f0] sm:$0xff] %v748_v30  ;;  %751 = vst [vmem:[%s5585_s27 + $0x8f8] sm:$0xff] %v750_v31  ;;  %v752_v32 = vld [vmem:[%s5577_s26 + $0x1200] sm:$0xff]  ;;  %v754_v33 = vld [vmem:[%s5577_s26 + $0x1208] sm:$0xff] }
  0xa0   : > { %v756_v34 = vld [vmem:[%s5577_s26 + $0x1220] sm:$0xff]  ;;  %753 = vst [vmem:[%s5585_s27 + $0x900] sm:$0xff] %v752_v32  ;;  %755 = vst [vmem:[%s5585_s27 + $0x908] sm:$0xff] %v754_v33  ;;  %v758_v35 = vld [vmem:[%s5577_s26 + $0x1228] sm:$0xff] }
  0xa1   : > { %757 = vst [vmem:[%s5585_s27 + $0x910] sm:$0xff] %v756_v34  ;;  %v760_v36 = vld [vmem:[%s5577_s26 + $0x1240] sm:$0xff]  ;;  %v762_v37 = vld [vmem:[%s5577_s26 + $0x1248] sm:$0xff]  ;;  %759 = vst [vmem:[%s5585_s27 + $0x918] sm:$0xff] %v758_v35 }
  0xa2   : > { %761 = vst [vmem:[%s5585_s27 + $0x920] sm:$0xff] %v760_v36  ;;  %763 = vst [vmem:[%s5585_s27 + $0x928] sm:$0xff] %v762_v37  ;;  %v764_v38 = vld [vmem:[%s5577_s26 + $0x1260] sm:$0xff]  ;;  %v766_v39 = vld [vmem:[%s5577_s26 + $0x1268] sm:$0xff] }
  0xa3   : > { %v768_v40 = vld [vmem:[%s5577_s26 + $0x1280] sm:$0xff]  ;;  %765 = vst [vmem:[%s5585_s27 + $0x930] sm:$0xff] %v764_v38  ;;  %767 = vst [vmem:[%s5585_s27 + $0x938] sm:$0xff] %v766_v39  ;;  %v770_v41 = vld [vmem:[%s5577_s26 + $0x1288] sm:$0xff] }
  0xa4   : > { %769 = vst [vmem:[%s5585_s27 + $0x940] sm:$0xff] %v768_v40  ;;  %v772_v42 = vld [vmem:[%s5577_s26 + $0x12a0] sm:$0xff]  ;;  %v774_v43 = vld [vmem:[%s5577_s26 + $0x12a8] sm:$0xff]  ;;  %771 = vst [vmem:[%s5585_s27 + $0x948] sm:$0xff] %v770_v41 }
  0xa5   : > { %773 = vst [vmem:[%s5585_s27 + $0x950] sm:$0xff] %v772_v42  ;;  %775 = vst [vmem:[%s5585_s27 + $0x958] sm:$0xff] %v774_v43  ;;  %v776_v44 = vld [vmem:[%s5577_s26 + $0x12c0] sm:$0xff]  ;;  %v778_v45 = vld [vmem:[%s5577_s26 + $0x12c8] sm:$0xff] }
  0xa6   : > { %v780_v46 = vld [vmem:[%s5577_s26 + $0x12e0] sm:$0xff]  ;;  %777 = vst [vmem:[%s5585_s27 + $0x960] sm:$0xff] %v776_v44  ;;  %779 = vst [vmem:[%s5585_s27 + $0x968] sm:$0xff] %v778_v45  ;;  %v782_v47 = vld [vmem:[%s5577_s26 + $0x12e8] sm:$0xff] }
  0xa7   : > { %781 = vst [vmem:[%s5585_s27 + $0x970] sm:$0xff] %v780_v46  ;;  %v784_v48 = vld [vmem:[%s5577_s26 + $0x1300] sm:$0xff]  ;;  %v786_v49 = vld [vmem:[%s5577_s26 + $0x1308] sm:$0xff]  ;;  %783 = vst [vmem:[%s5585_s27 + $0x978] sm:$0xff] %v782_v47 }
  0xa8   : > { %785 = vst [vmem:[%s5585_s27 + $0x980] sm:$0xff] %v784_v48  ;;  %787 = vst [vmem:[%s5585_s27 + $0x988] sm:$0xff] %v786_v49  ;;  %v788_v50 = vld [vmem:[%s5577_s26 + $0x1320] sm:$0xff]  ;;  %v790_v51 = vld [vmem:[%s5577_s26 + $0x1328] sm:$0xff] }
  0xa9   : > { %v792_v52 = vld [vmem:[%s5577_s26 + $0x1340] sm:$0xff]  ;;  %789 = vst [vmem:[%s5585_s27 + $0x990] sm:$0xff] %v788_v50  ;;  %791 = vst [vmem:[%s5585_s27 + $0x998] sm:$0xff] %v790_v51  ;;  %v794_v53 = vld [vmem:[%s5577_s26 + $0x1348] sm:$0xff] }
  0xaa   : > { %793 = vst [vmem:[%s5585_s27 + $0x9a0] sm:$0xff] %v792_v52  ;;  %v796_v54 = vld [vmem:[%s5577_s26 + $0x1360] sm:$0xff]  ;;  %v798_v55 = vld [vmem:[%s5577_s26 + $0x1368] sm:$0xff]  ;;  %795 = vst [vmem:[%s5585_s27 + $0x9a8] sm:$0xff] %v794_v53 }
  0xab   : > { %797 = vst [vmem:[%s5585_s27 + $0x9b0] sm:$0xff] %v796_v54  ;;  %799 = vst [vmem:[%s5585_s27 + $0x9b8] sm:$0xff] %v798_v55  ;;  %v800_v56 = vld [vmem:[%s5577_s26 + $0x1380] sm:$0xff]  ;;  %v802_v57 = vld [vmem:[%s5577_s26 + $0x1388] sm:$0xff] }
  0xac   : > { %v804_v58 = vld [vmem:[%s5577_s26 + $0x13a0] sm:$0xff]  ;;  %801 = vst [vmem:[%s5585_s27 + $0x9c0] sm:$0xff] %v800_v56  ;;  %803 = vst [vmem:[%s5585_s27 + $0x9c8] sm:$0xff] %v802_v57  ;;  %v806_v59 = vld [vmem:[%s5577_s26 + $0x13a8] sm:$0xff] }
  0xad   : > { %805 = vst [vmem:[%s5585_s27 + $0x9d0] sm:$0xff] %v804_v58  ;;  %v808_v60 = vld [vmem:[%s5577_s26 + $0x13c0] sm:$0xff]  ;;  %v810_v61 = vld [vmem:[%s5577_s26 + $0x13c8] sm:$0xff]  ;;  %807 = vst [vmem:[%s5585_s27 + $0x9d8] sm:$0xff] %v806_v59 }
  0xae   : > { %809 = vst [vmem:[%s5585_s27 + $0x9e0] sm:$0xff] %v808_v60  ;;  %811 = vst [vmem:[%s5585_s27 + $0x9e8] sm:$0xff] %v810_v61  ;;  %v812_v62 = vld [vmem:[%s5577_s26 + $0x13e0] sm:$0xff]  ;;  %v814_v63 = vld [vmem:[%s5577_s26 + $0x13e8] sm:$0xff] }
  0xaf   : > { %v816_v0 = vld [vmem:[%s5577_s26 + $0x1400] sm:$0xff]  ;;  %813 = vst [vmem:[%s5585_s27 + $0x9f0] sm:$0xff] %v812_v62  ;;  %815 = vst [vmem:[%s5585_s27 + $0x9f8] sm:$0xff] %v814_v63  ;;  %v818_v1 = vld [vmem:[%s5577_s26 + $0x1408] sm:$0xff] }
  0xb0   : > { %817 = vst [vmem:[%s5585_s27 + $0xa00] sm:$0xff] %v816_v0  ;;  %v820_v2 = vld [vmem:[%s5577_s26 + $0x1420] sm:$0xff]  ;;  %v822_v3 = vld [vmem:[%s5577_s26 + $0x1428] sm:$0xff]  ;;  %819 = vst [vmem:[%s5585_s27 + $0xa08] sm:$0xff] %v818_v1 }
  0xb1   : > { %821 = vst [vmem:[%s5585_s27 + $0xa10] sm:$0xff] %v820_v2  ;;  %823 = vst [vmem:[%s5585_s27 + $0xa18] sm:$0xff] %v822_v3  ;;  %v824_v4 = vld [vmem:[%s5577_s26 + $0x1440] sm:$0xff]  ;;  %v826_v5 = vld [vmem:[%s5577_s26 + $0x1448] sm:$0xff] }
  0xb2   : > { %v828_v6 = vld [vmem:[%s5577_s26 + $0x1460] sm:$0xff]  ;;  %825 = vst [vmem:[%s5585_s27 + $0xa20] sm:$0xff] %v824_v4  ;;  %827 = vst [vmem:[%s5585_s27 + $0xa28] sm:$0xff] %v826_v5  ;;  %v830_v7 = vld [vmem:[%s5577_s26 + $0x1468] sm:$0xff] }
  0xb3   : > { %829 = vst [vmem:[%s5585_s27 + $0xa30] sm:$0xff] %v828_v6  ;;  %v832_v8 = vld [vmem:[%s5577_s26 + $0x1480] sm:$0xff]  ;;  %v834_v9 = vld [vmem:[%s5577_s26 + $0x1488] sm:$0xff]  ;;  %831 = vst [vmem:[%s5585_s27 + $0xa38] sm:$0xff] %v830_v7 }
  0xb4   : > { %833 = vst [vmem:[%s5585_s27 + $0xa40] sm:$0xff] %v832_v8  ;;  %835 = vst [vmem:[%s5585_s27 + $0xa48] sm:$0xff] %v834_v9  ;;  %v836_v10 = vld [vmem:[%s5577_s26 + $0x14a0] sm:$0xff]  ;;  %v838_v11 = vld [vmem:[%s5577_s26 + $0x14a8] sm:$0xff] }
  0xb5   : > { %v840_v12 = vld [vmem:[%s5577_s26 + $0x14c0] sm:$0xff]  ;;  %837 = vst [vmem:[%s5585_s27 + $0xa50] sm:$0xff] %v836_v10  ;;  %839 = vst [vmem:[%s5585_s27 + $0xa58] sm:$0xff] %v838_v11  ;;  %v842_v13 = vld [vmem:[%s5577_s26 + $0x14c8] sm:$0xff] }
  0xb6   : > { %841 = vst [vmem:[%s5585_s27 + $0xa60] sm:$0xff] %v840_v12  ;;  %v844_v14 = vld [vmem:[%s5577_s26 + $0x14e0] sm:$0xff]  ;;  %v846_v15 = vld [vmem:[%s5577_s26 + $0x14e8] sm:$0xff]  ;;  %843 = vst [vmem:[%s5585_s27 + $0xa68] sm:$0xff] %v842_v13 }
  0xb7   : > { %845 = vst [vmem:[%s5585_s27 + $0xa70] sm:$0xff] %v844_v14  ;;  %847 = vst [vmem:[%s5585_s27 + $0xa78] sm:$0xff] %v846_v15  ;;  %v848_v16 = vld [vmem:[%s5577_s26 + $0x1500] sm:$0xff]  ;;  %v850_v17 = vld [vmem:[%s5577_s26 + $0x1508] sm:$0xff] }
  0xb8   : > { %v852_v18 = vld [vmem:[%s5577_s26 + $0x1520] sm:$0xff]  ;;  %849 = vst [vmem:[%s5585_s27 + $0xa80] sm:$0xff] %v848_v16  ;;  %851 = vst [vmem:[%s5585_s27 + $0xa88] sm:$0xff] %v850_v17  ;;  %v854_v19 = vld [vmem:[%s5577_s26 + $0x1528] sm:$0xff] }
  0xb9   : > { %853 = vst [vmem:[%s5585_s27 + $0xa90] sm:$0xff] %v852_v18  ;;  %v856_v20 = vld [vmem:[%s5577_s26 + $0x1540] sm:$0xff]  ;;  %v858_v21 = vld [vmem:[%s5577_s26 + $0x1548] sm:$0xff]  ;;  %855 = vst [vmem:[%s5585_s27 + $0xa98] sm:$0xff] %v854_v19 }
  0xba   : > { %857 = vst [vmem:[%s5585_s27 + $0xaa0] sm:$0xff] %v856_v20  ;;  %859 = vst [vmem:[%s5585_s27 + $0xaa8] sm:$0xff] %v858_v21  ;;  %v860_v22 = vld [vmem:[%s5577_s26 + $0x1560] sm:$0xff]  ;;  %v862_v23 = vld [vmem:[%s5577_s26 + $0x1568] sm:$0xff] }
  0xbb   : > { %v864_v24 = vld [vmem:[%s5577_s26 + $0x1580] sm:$0xff]  ;;  %861 = vst [vmem:[%s5585_s27 + $0xab0] sm:$0xff] %v860_v22  ;;  %863 = vst [vmem:[%s5585_s27 + $0xab8] sm:$0xff] %v862_v23  ;;  %v866_v25 = vld [vmem:[%s5577_s26 + $0x1588] sm:$0xff] }
  0xbc   : > { %865 = vst [vmem:[%s5585_s27 + $0xac0] sm:$0xff] %v864_v24  ;;  %v868_v26 = vld [vmem:[%s5577_s26 + $0x15a0] sm:$0xff]  ;;  %v870_v27 = vld [vmem:[%s5577_s26 + $0x15a8] sm:$0xff]  ;;  %867 = vst [vmem:[%s5585_s27 + $0xac8] sm:$0xff] %v866_v25 }
  0xbd   : > { %869 = vst [vmem:[%s5585_s27 + $0xad0] sm:$0xff] %v868_v26  ;;  %871 = vst [vmem:[%s5585_s27 + $0xad8] sm:$0xff] %v870_v27  ;;  %v872_v28 = vld [vmem:[%s5577_s26 + $0x15c0] sm:$0xff]  ;;  %v874_v29 = vld [vmem:[%s5577_s26 + $0x15c8] sm:$0xff] }
  0xbe   : > { %v876_v30 = vld [vmem:[%s5577_s26 + $0x15e0] sm:$0xff]  ;;  %873 = vst [vmem:[%s5585_s27 + $0xae0] sm:$0xff] %v872_v28  ;;  %875 = vst [vmem:[%s5585_s27 + $0xae8] sm:$0xff] %v874_v29  ;;  %v878_v31 = vld [vmem:[%s5577_s26 + $0x15e8] sm:$0xff] }
  0xbf   : > { %877 = vst [vmem:[%s5585_s27 + $0xaf0] sm:$0xff] %v876_v30  ;;  %v880_v32 = vld [vmem:[%s5577_s26 + $0x1600] sm:$0xff]  ;;  %v882_v33 = vld [vmem:[%s5577_s26 + $0x1608] sm:$0xff]  ;;  %879 = vst [vmem:[%s5585_s27 + $0xaf8] sm:$0xff] %v878_v31 }
  0xc0   : > { %881 = vst [vmem:[%s5585_s27 + $0xb00] sm:$0xff] %v880_v32  ;;  %883 = vst [vmem:[%s5585_s27 + $0xb08] sm:$0xff] %v882_v33  ;;  %v884_v34 = vld [vmem:[%s5577_s26 + $0x1620] sm:$0xff]  ;;  %v886_v35 = vld [vmem:[%s5577_s26 + $0x1628] sm:$0xff] }
  0xc1   : > { %v888_v36 = vld [vmem:[%s5577_s26 + $0x1640] sm:$0xff]  ;;  %885 = vst [vmem:[%s5585_s27 + $0xb10] sm:$0xff] %v884_v34  ;;  %887 = vst [vmem:[%s5585_s27 + $0xb18] sm:$0xff] %v886_v35  ;;  %v890_v37 = vld [vmem:[%s5577_s26 + $0x1648] sm:$0xff] }
  0xc2   : > { %889 = vst [vmem:[%s5585_s27 + $0xb20] sm:$0xff] %v888_v36  ;;  %v892_v38 = vld [vmem:[%s5577_s26 + $0x1660] sm:$0xff]  ;;  %v894_v39 = vld [vmem:[%s5577_s26 + $0x1668] sm:$0xff]  ;;  %891 = vst [vmem:[%s5585_s27 + $0xb28] sm:$0xff] %v890_v37 }
  0xc3   : > { %893 = vst [vmem:[%s5585_s27 + $0xb30] sm:$0xff] %v892_v38  ;;  %895 = vst [vmem:[%s5585_s27 + $0xb38] sm:$0xff] %v894_v39  ;;  %v896_v40 = vld [vmem:[%s5577_s26 + $0x1680] sm:$0xff]  ;;  %v898_v41 = vld [vmem:[%s5577_s26 + $0x1688] sm:$0xff] }
  0xc4   : > { %v900_v42 = vld [vmem:[%s5577_s26 + $0x16a0] sm:$0xff]  ;;  %897 = vst [vmem:[%s5585_s27 + $0xb40] sm:$0xff] %v896_v40  ;;  %899 = vst [vmem:[%s5585_s27 + $0xb48] sm:$0xff] %v898_v41  ;;  %v902_v43 = vld [vmem:[%s5577_s26 + $0x16a8] sm:$0xff] }
  0xc5   : > { %901 = vst [vmem:[%s5585_s27 + $0xb50] sm:$0xff] %v900_v42  ;;  %v904_v44 = vld [vmem:[%s5577_s26 + $0x16c0] sm:$0xff]  ;;  %v906_v45 = vld [vmem:[%s5577_s26 + $0x16c8] sm:$0xff]  ;;  %903 = vst [vmem:[%s5585_s27 + $0xb58] sm:$0xff] %v902_v43 }
  0xc6   : > { %905 = vst [vmem:[%s5585_s27 + $0xb60] sm:$0xff] %v904_v44  ;;  %907 = vst [vmem:[%s5585_s27 + $0xb68] sm:$0xff] %v906_v45  ;;  %v908_v46 = vld [vmem:[%s5577_s26 + $0x16e0] sm:$0xff]  ;;  %v910_v47 = vld [vmem:[%s5577_s26 + $0x16e8] sm:$0xff] }
  0xc7   : > { %v912_v48 = vld [vmem:[%s5577_s26 + $0x1700] sm:$0xff]  ;;  %909 = vst [vmem:[%s5585_s27 + $0xb70] sm:$0xff] %v908_v46  ;;  %911 = vst [vmem:[%s5585_s27 + $0xb78] sm:$0xff] %v910_v47  ;;  %v914_v49 = vld [vmem:[%s5577_s26 + $0x1708] sm:$0xff] }
  0xc8   : > { %913 = vst [vmem:[%s5585_s27 + $0xb80] sm:$0xff] %v912_v48  ;;  %v916_v50 = vld [vmem:[%s5577_s26 + $0x1720] sm:$0xff]  ;;  %v918_v51 = vld [vmem:[%s5577_s26 + $0x1728] sm:$0xff]  ;;  %915 = vst [vmem:[%s5585_s27 + $0xb88] sm:$0xff] %v914_v49 }
  0xc9   : > { %917 = vst [vmem:[%s5585_s27 + $0xb90] sm:$0xff] %v916_v50  ;;  %919 = vst [vmem:[%s5585_s27 + $0xb98] sm:$0xff] %v918_v51  ;;  %v920_v52 = vld [vmem:[%s5577_s26 + $0x1740] sm:$0xff]  ;;  %v922_v53 = vld [vmem:[%s5577_s26 + $0x1748] sm:$0xff] }
  0xca   : > { %v924_v54 = vld [vmem:[%s5577_s26 + $0x1760] sm:$0xff]  ;;  %921 = vst [vmem:[%s5585_s27 + $0xba0] sm:$0xff] %v920_v52  ;;  %923 = vst [vmem:[%s5585_s27 + $0xba8] sm:$0xff] %v922_v53  ;;  %v926_v55 = vld [vmem:[%s5577_s26 + $0x1768] sm:$0xff] }
  0xcb   : > { %925 = vst [vmem:[%s5585_s27 + $0xbb0] sm:$0xff] %v924_v54  ;;  %v928_v56 = vld [vmem:[%s5577_s26 + $0x1780] sm:$0xff]  ;;  %v930_v57 = vld [vmem:[%s5577_s26 + $0x1788] sm:$0xff]  ;;  %927 = vst [vmem:[%s5585_s27 + $0xbb8] sm:$0xff] %v926_v55 }
  0xcc   : > { %929 = vst [vmem:[%s5585_s27 + $0xbc0] sm:$0xff] %v928_v56  ;;  %931 = vst [vmem:[%s5585_s27 + $0xbc8] sm:$0xff] %v930_v57  ;;  %v932_v58 = vld [vmem:[%s5577_s26 + $0x17a0] sm:$0xff]  ;;  %v934_v59 = vld [vmem:[%s5577_s26 + $0x17a8] sm:$0xff] }
  0xcd   : > { %v936_v60 = vld [vmem:[%s5577_s26 + $0x17c0] sm:$0xff]  ;;  %933 = vst [vmem:[%s5585_s27 + $0xbd0] sm:$0xff] %v932_v58  ;;  %935 = vst [vmem:[%s5585_s27 + $0xbd8] sm:$0xff] %v934_v59  ;;  %v938_v61 = vld [vmem:[%s5577_s26 + $0x17c8] sm:$0xff] }
  0xce   : > { %937 = vst [vmem:[%s5585_s27 + $0xbe0] sm:$0xff] %v936_v60  ;;  %v940_v62 = vld [vmem:[%s5577_s26 + $0x17e0] sm:$0xff]  ;;  %v942_v63 = vld [vmem:[%s5577_s26 + $0x17e8] sm:$0xff]  ;;  %939 = vst [vmem:[%s5585_s27 + $0xbe8] sm:$0xff] %v938_v61 }
  0xcf   : > { %941 = vst [vmem:[%s5585_s27 + $0xbf0] sm:$0xff] %v940_v62  ;;  %943 = vst [vmem:[%s5585_s27 + $0xbf8] sm:$0xff] %v942_v63  ;;  %v944_v0 = vld [vmem:[%s5577_s26 + $0x1800] sm:$0xff]  ;;  %v946_v1 = vld [vmem:[%s5577_s26 + $0x1808] sm:$0xff] }
  0xd0   : > { %v948_v2 = vld [vmem:[%s5577_s26 + $0x1820] sm:$0xff]  ;;  %945 = vst [vmem:[%s5585_s27 + $0xc00] sm:$0xff] %v944_v0  ;;  %947 = vst [vmem:[%s5585_s27 + $0xc08] sm:$0xff] %v946_v1  ;;  %v950_v3 = vld [vmem:[%s5577_s26 + $0x1828] sm:$0xff] }
  0xd1   : > { %949 = vst [vmem:[%s5585_s27 + $0xc10] sm:$0xff] %v948_v2  ;;  %v952_v4 = vld [vmem:[%s5577_s26 + $0x1840] sm:$0xff]  ;;  %v954_v5 = vld [vmem:[%s5577_s26 + $0x1848] sm:$0xff]  ;;  %951 = vst [vmem:[%s5585_s27 + $0xc18] sm:$0xff] %v950_v3 }
  0xd2   : > { %953 = vst [vmem:[%s5585_s27 + $0xc20] sm:$0xff] %v952_v4  ;;  %955 = vst [vmem:[%s5585_s27 + $0xc28] sm:$0xff] %v954_v5  ;;  %v956_v6 = vld [vmem:[%s5577_s26 + $0x1860] sm:$0xff]  ;;  %v958_v7 = vld [vmem:[%s5577_s26 + $0x1868] sm:$0xff] }
  0xd3   : > { %v960_v8 = vld [vmem:[%s5577_s26 + $0x1880] sm:$0xff]  ;;  %957 = vst [vmem:[%s5585_s27 + $0xc30] sm:$0xff] %v956_v6  ;;  %959 = vst [vmem:[%s5585_s27 + $0xc38] sm:$0xff] %v958_v7  ;;  %v962_v9 = vld [vmem:[%s5577_s26 + $0x1888] sm:$0xff] }
  0xd4   : > { %961 = vst [vmem:[%s5585_s27 + $0xc40] sm:$0xff] %v960_v8  ;;  %v964_v10 = vld [vmem:[%s5577_s26 + $0x18a0] sm:$0xff]  ;;  %v966_v11 = vld [vmem:[%s5577_s26 + $0x18a8] sm:$0xff]  ;;  %963 = vst [vmem:[%s5585_s27 + $0xc48] sm:$0xff] %v962_v9 }
  0xd5   : > { %965 = vst [vmem:[%s5585_s27 + $0xc50] sm:$0xff] %v964_v10  ;;  %967 = vst [vmem:[%s5585_s27 + $0xc58] sm:$0xff] %v966_v11  ;;  %v968_v12 = vld [vmem:[%s5577_s26 + $0x18c0] sm:$0xff]  ;;  %v970_v13 = vld [vmem:[%s5577_s26 + $0x18c8] sm:$0xff] }
  0xd6   : > { %v972_v14 = vld [vmem:[%s5577_s26 + $0x18e0] sm:$0xff]  ;;  %969 = vst [vmem:[%s5585_s27 + $0xc60] sm:$0xff] %v968_v12  ;;  %971 = vst [vmem:[%s5585_s27 + $0xc68] sm:$0xff] %v970_v13  ;;  %v974_v15 = vld [vmem:[%s5577_s26 + $0x18e8] sm:$0xff] }
  0xd7   : > { %973 = vst [vmem:[%s5585_s27 + $0xc70] sm:$0xff] %v972_v14  ;;  %v976_v16 = vld [vmem:[%s5577_s26 + $0x1900] sm:$0xff]  ;;  %v978_v17 = vld [vmem:[%s5577_s26 + $0x1908] sm:$0xff]  ;;  %975 = vst [vmem:[%s5585_s27 + $0xc78] sm:$0xff] %v974_v15 }
  0xd8   : > { %977 = vst [vmem:[%s5585_s27 + $0xc80] sm:$0xff] %v976_v16  ;;  %979 = vst [vmem:[%s5585_s27 + $0xc88] sm:$0xff] %v978_v17  ;;  %v980_v18 = vld [vmem:[%s5577_s26 + $0x1920] sm:$0xff]  ;;  %v982_v19 = vld [vmem:[%s5577_s26 + $0x1928] sm:$0xff] }
  0xd9   : > { %v984_v20 = vld [vmem:[%s5577_s26 + $0x1940] sm:$0xff]  ;;  %981 = vst [vmem:[%s5585_s27 + $0xc90] sm:$0xff] %v980_v18  ;;  %983 = vst [vmem:[%s5585_s27 + $0xc98] sm:$0xff] %v982_v19  ;;  %v986_v21 = vld [vmem:[%s5577_s26 + $0x1948] sm:$0xff] }
  0xda   : > { %985 = vst [vmem:[%s5585_s27 + $0xca0] sm:$0xff] %v984_v20  ;;  %v988_v22 = vld [vmem:[%s5577_s26 + $0x1960] sm:$0xff]  ;;  %v990_v23 = vld [vmem:[%s5577_s26 + $0x1968] sm:$0xff]  ;;  %987 = vst [vmem:[%s5585_s27 + $0xca8] sm:$0xff] %v986_v21 }
  0xdb   : > { %989 = vst [vmem:[%s5585_s27 + $0xcb0] sm:$0xff] %v988_v22  ;;  %991 = vst [vmem:[%s5585_s27 + $0xcb8] sm:$0xff] %v990_v23  ;;  %v992_v24 = vld [vmem:[%s5577_s26 + $0x1980] sm:$0xff]  ;;  %v994_v25 = vld [vmem:[%s5577_s26 + $0x1988] sm:$0xff] }
  0xdc   : > { %v996_v26 = vld [vmem:[%s5577_s26 + $0x19a0] sm:$0xff]  ;;  %993 = vst [vmem:[%s5585_s27 + $0xcc0] sm:$0xff] %v992_v24  ;;  %995 = vst [vmem:[%s5585_s27 + $0xcc8] sm:$0xff] %v994_v25  ;;  %v998_v27 = vld [vmem:[%s5577_s26 + $0x19a8] sm:$0xff] }
  0xdd   : > { %997 = vst [vmem:[%s5585_s27 + $0xcd0] sm:$0xff] %v996_v26  ;;  %v1000_v28 = vld [vmem:[%s5577_s26 + $0x19c0] sm:$0xff]  ;;  %v1002_v29 = vld [vmem:[%s5577_s26 + $0x19c8] sm:$0xff]  ;;  %999 = vst [vmem:[%s5585_s27 + $0xcd8] sm:$0xff] %v998_v27 }
  0xde   : > { %1001 = vst [vmem:[%s5585_s27 + $0xce0] sm:$0xff] %v1000_v28  ;;  %1003 = vst [vmem:[%s5585_s27 + $0xce8] sm:$0xff] %v1002_v29  ;;  %v1004_v30 = vld [vmem:[%s5577_s26 + $0x19e0] sm:$0xff]  ;;  %v1006_v31 = vld [vmem:[%s5577_s26 + $0x19e8] sm:$0xff] }
  0xdf   : > { %1005 = vst [vmem:[%s5585_s27 + $0xcf0] sm:$0xff] %v1004_v30  ;;  %1007 = vst [vmem:[%s5585_s27 + $0xcf8] sm:$0xff] %v1006_v31 }
  0xe0 PF: > { %p4356_p6 = scmp.ge.s32.totalorder %s5511_s16, 1  ;;  %p1020_p7 = scmp.lt.s32.totalorder %s5511_s16, 3 }
  0xe2   : > { %p1021_p8 = pnand %p4356_p6, %p1020_p7 }
  0xe3   : > { %s1027_s28 = sand.u32 (!%p1021_p8), 1, %s5495_s12   ;;  %s4357_s24 = sshll.u32 (!%p1021_p8), %s5503_s14, 2 }
  0xe4   : > { %1024 = sbr.rel (%p1021_p8) target bundleno = 854 (0x356), region = 51  ;;  %p1070_p9 = scmp.lt.s32.totalorder (!%p1021_p8), %s4357_s24, 7 }
  0xe5   : > { %s4793_s6 = smul.u32 (!%p1021_p8), 3328, %s1027_s28 }
  0xe7   : > { %s6436_s7 = scalar_lea.vmem (!%p1021_p8), [#allocation2], %s4793_s6 }
  0xe9   : > { %v6419_v32 = vld [vmem:[%s7009_s0] sm:$0xff]  ;;  %v6424_v33 = vld [vmem:[%s7009_s0 + $0x8] sm:$0xff]  ;;  %s7020_s24 = smov (!%p1070_p9, %s4357_s24), 7 }
  0xea   : > { %v6428_v34 = vcombine.high %v6419_v32, %v6419_v32  ;;  %v6432_v35 = vcombine.high %v6424_v33, %v6424_v33  ;;  %v4835_v36 = vld [vmem:[%s6436_s7 + $0xe4] ss:$16 sps:$4 sm:$0xff]   ;;  %v4839_v38 = vld [vmem:[%s6436_s7 + $0xe0] ss:$16 sps:$4 sm:$0xff]   ;;  %s1072_s26 = scalar_lea.vmem %s7011_s2, %s7020_s24  ;;  %s4359_s27 = sshll.u32 %s7020_s24, 3 }
  0xeb   : > { %v4837_v37 = vld [vmem:[%s6436_s7 + $0x2e4] ss:$16 sps:$4 sm:$0xff]   ;;  %3656 = vmatprep.subr.bf16.mxu0 %v4835_v36  ;;  %v4840_v39 = vld [vmem:[%s6436_s7 + $0x2e0] ss:$16 sps:$4 sm:$0xff]   ;;  %s6984_s5 = scalar_lea.vmem %s7012_s3, %s4359_s27 }
  0xec   : > { %3688 = vmatprep.mubr.bf16.mxu0 %v6428_v34  ;;  %3729 = vmatprep.mubr.bf16.mxu1 %v6432_v35  ;;  %v4841_v40 = vld [vmem:[%s6436_s7 + $0xc4] ss:$16 sps:$4 sm:$0xff]   ;;  %v4845_v42 = vld [vmem:[%s6436_s7 + $0xc0] ss:$16 sps:$4 sm:$0xff]  }
  0xed   : > { %3697 = vmatprep.subr.bf16.mxu1 %v4837_v37  ;;  %3657 = vmatpush1.bf16.msra.mxu0 %v4839_v38  ;;  %v4843_v41 = vld [vmem:[%s6436_s7 + $0x2c4] ss:$16 sps:$4 sm:$0xff]   ;;  %v4846_v43 = vld [vmem:[%s6436_s7 + $0x2c0] ss:$16 sps:$4 sm:$0xff]  }
  0xee   : > { %3698 = vmatpush1.bf16.msra.mxu1 %v4840_v39  ;;  %3658 = vmatprep.subr.bf16.mxu0 %v4841_v40  ;;  %v4847_v44 = vld [vmem:[%s6436_s7 + $0xa4] ss:$16 sps:$4 sm:$0xff]   ;;  %v4851_v46 = vld [vmem:[%s6436_s7 + $0xa0] ss:$16 sps:$4 sm:$0xff]  }
  0xef   : > { %3699 = vmatprep.subr.bf16.mxu1 %v4843_v41  ;;  %v4849_v45 = vld [vmem:[%s6436_s7 + $0x2a4] ss:$16 sps:$4 sm:$0xff]   ;;  %v4852_v47 = vld [vmem:[%s6436_s7 + $0x2a0] ss:$16 sps:$4 sm:$0xff]  }
  0xf0   : > { %v4853_v48 = vld [vmem:[%s6436_s7 + $0x84] ss:$16 sps:$4 sm:$0xff]   ;;  %v4857_v50 = vld [vmem:[%s6436_s7 + $0x80] ss:$16 sps:$4 sm:$0xff]  }
  0xf1   : > { %3659 = vmatpush1.bf16.msra.mxu0 %v4845_v42  ;;  %v4855_v49 = vld [vmem:[%s6436_s7 + $0x284] ss:$16 sps:$4 sm:$0xff]   ;;  %v4858_v51 = vld [vmem:[%s6436_s7 + $0x280] ss:$16 sps:$4 sm:$0xff]  }
  0xf2   : > { %3700 = vmatpush1.bf16.msra.mxu1 %v4846_v43  ;;  %3660 = vmatprep.subr.bf16.mxu0 %v4847_v44  ;;  %v4859_v52 = vld [vmem:[%s6436_s7 + $0x64] ss:$16 sps:$4 sm:$0xff]   ;;  %v4863_v54 = vld [vmem:[%s6436_s7 + $0x60] ss:$16 sps:$4 sm:$0xff]   ;;  %v6512_v43 = vld [vmem:[%s7009_s0 + $0x18] sm:$0xff]  ;;  %v6516_v44 = vcombine.low %v6419_v32, %v6419_v32 }
  0xf3   : > { %3701 = vmatprep.subr.bf16.mxu1 %v4849_v45  ;;  %v4861_v53 = vld [vmem:[%s6436_s7 + $0x264] ss:$16 sps:$4 sm:$0xff]   ;;  %v4864_v55 = vld [vmem:[%s6436_s7 + $0x260] ss:$16 sps:$4 sm:$0xff]   ;;  %v6520_v45 = vcombine.low %v6424_v33, %v6424_v33  ;;  %v6532_v33 = vcombine.high %v6512_v43, %v6512_v43 }
  0xf4   : > { %v4865_v56 = vld [vmem:[%s6436_s7 + $0x44] ss:$16 sps:$4 sm:$0xff]   ;;  %v4869_v58 = vld [vmem:[%s6436_s7 + $0x40] ss:$16 sps:$4 sm:$0xff]  }
  0xf5   : > { %3661 = vmatpush1.bf16.msra.mxu0 %v4851_v46  ;;  %v4867_v57 = vld [vmem:[%s6436_s7 + $0x244] ss:$16 sps:$4 sm:$0xff]   ;;  %v4870_v59 = vld [vmem:[%s6436_s7 + $0x240] ss:$16 sps:$4 sm:$0xff]  }
  0xf6   : > { %3702 = vmatpush1.bf16.msra.mxu1 %v4852_v47  ;;  %3662 = vmatprep.subr.bf16.mxu0 %v4853_v48  ;;  %v4871_v60 = vld [vmem:[%s6436_s7 + $0x24] ss:$16 sps:$4 sm:$0xff]   ;;  %v4875_v62 = vld [vmem:[%s6436_s7 + $0x20] ss:$16 sps:$4 sm:$0xff]  }
  0xf7   : > { %3703 = vmatprep.subr.bf16.mxu1 %v4855_v49  ;;  %v4873_v61 = vld [vmem:[%s6436_s7 + $0x224] ss:$16 sps:$4 sm:$0xff]   ;;  %v4876_v63 = vld [vmem:[%s6436_s7 + $0x220] ss:$16 sps:$4 sm:$0xff]  }
  0xf8   : > { %v4877_v0 = vld [vmem:[%s6436_s7 + $0x4] ss:$16 sps:$4 sm:$0xff]   ;;  %v4881_v2 = vld [vmem:[%s6436_s7] ss:$16 sps:$4 sm:$0xff]  }
  0xf9   : > { %3663 = vmatpush1.bf16.msra.mxu0 %v4857_v50  ;;  %v4879_v1 = vld [vmem:[%s6436_s7 + $0x204] ss:$16 sps:$4 sm:$0xff]   ;;  %v4882_v3 = vld [vmem:[%s6436_s7 + $0x200] ss:$16 sps:$4 sm:$0xff]  }
  0xfa   : > { %3704 = vmatpush1.bf16.msra.mxu1 %v4858_v51  ;;  %3664 = vmatprep.subr.bf16.mxu0 %v4859_v52  ;;  %v4883_v4 = vld [vmem:[%s6436_s7 + $0x1e4] ss:$16 sps:$4 sm:$0xff]   ;;  %v4887_v6 = vld [vmem:[%s6436_s7 + $0x1e0] ss:$16 sps:$4 sm:$0xff]  }
  0xfb   : > { %3705 = vmatprep.subr.bf16.mxu1 %v4861_v53  ;;  %v4885_v5 = vld [vmem:[%s6436_s7 + $0x3e4] ss:$16 sps:$4 sm:$0xff]   ;;  %v4888_v7 = vld [vmem:[%s6436_s7 + $0x3e0] ss:$16 sps:$4 sm:$0xff]  }
  0xfc   : > { %v4889_v8 = vld [vmem:[%s6436_s7 + $0x1c4] ss:$16 sps:$4 sm:$0xff]   ;;  %v4893_v10 = vld [vmem:[%s6436_s7 + $0x1c0] ss:$16 sps:$4 sm:$0xff]  }
  0xfd   : > { %3665 = vmatpush1.bf16.msra.mxu0 %v4863_v54  ;;  %v4891_v9 = vld [vmem:[%s6436_s7 + $0x3c4] ss:$16 sps:$4 sm:$0xff]   ;;  %v4894_v11 = vld [vmem:[%s6436_s7 + $0x3c0] ss:$16 sps:$4 sm:$0xff]  }
  0xfe   : > { %3706 = vmatpush1.bf16.msra.mxu1 %v4864_v55  ;;  %3666 = vmatprep.subr.bf16.mxu0 %v4865_v56  ;;  %v4895_v12 = vld [vmem:[%s6436_s7 + $0x1a4] ss:$16 sps:$4 sm:$0xff]   ;;  %v4899_v14 = vld [vmem:[%s6436_s7 + $0x1a0] ss:$16 sps:$4 sm:$0xff]  }
  0xff   : > { %3707 = vmatprep.subr.bf16.mxu1 %v4867_v57  ;;  %v4897_v13 = vld [vmem:[%s6436_s7 + $0x3a4] ss:$16 sps:$4 sm:$0xff]   ;;  %v4900_v15 = vld [vmem:[%s6436_s7 + $0x3a0] ss:$16 sps:$4 sm:$0xff]  }
 0x100   : > { %v4901_v16 = vld [vmem:[%s6436_s7 + $0x184] ss:$16 sps:$4 sm:$0xff]   ;;  %v4905_v18 = vld [vmem:[%s6436_s7 + $0x180] ss:$16 sps:$4 sm:$0xff]  }
 0x101   : > { %3667 = vmatpush1.bf16.msra.mxu0 %v4869_v58  ;;  %v4903_v17 = vld [vmem:[%s6436_s7 + $0x384] ss:$16 sps:$4 sm:$0xff]   ;;  %v4906_v19 = vld [vmem:[%s6436_s7 + $0x380] ss:$16 sps:$4 sm:$0xff]  }
 0x102   : > { %3708 = vmatpush1.bf16.msra.mxu1 %v4870_v59  ;;  %3668 = vmatprep.subr.bf16.mxu0 %v4871_v60  ;;  %v4907_v20 = vld [vmem:[%s6436_s7 + $0x164] ss:$16 sps:$4 sm:$0xff]   ;;  %v4911_v22 = vld [vmem:[%s6436_s7 + $0x160] ss:$16 sps:$4 sm:$0xff]  }
 0x103   : > { %3709 = vmatprep.subr.bf16.mxu1 %v4873_v61  ;;  %v4909_v21 = vld [vmem:[%s6436_s7 + $0x364] ss:$16 sps:$4 sm:$0xff]   ;;  %v4912_v23 = vld [vmem:[%s6436_s7 + $0x360] ss:$16 sps:$4 sm:$0xff]  }
 0x104   : > { %v4913_v24 = vld [vmem:[%s6436_s7 + $0x144] ss:$16 sps:$4 sm:$0xff]   ;;  %v4917_v26 = vld [vmem:[%s6436_s7 + $0x140] ss:$16 sps:$4 sm:$0xff]  }
 0x105   : > { %3669 = vmatpush1.bf16.msra.mxu0 %v4875_v62  ;;  %v4915_v25 = vld [vmem:[%s6436_s7 + $0x344] ss:$16 sps:$4 sm:$0xff]   ;;  %v4918_v27 = vld [vmem:[%s6436_s7 + $0x340] ss:$16 sps:$4 sm:$0xff]  }
 0x106   : > { %3710 = vmatpush1.bf16.msra.mxu1 %v4876_v63  ;;  %3670 = vmatprep.subr.bf16.mxu0 %v4877_v0  ;;  %v4919_v28 = vld [vmem:[%s6436_s7 + $0x124] ss:$16 sps:$4 sm:$0xff]   ;;  %v4923_v30 = vld [vmem:[%s6436_s7 + $0x120] ss:$16 sps:$4 sm:$0xff]  }
 0x107   : > { %3711 = vmatprep.subr.bf16.mxu1 %v4879_v1  ;;  %v4921_v29 = vld [vmem:[%s6436_s7 + $0x324] ss:$16 sps:$4 sm:$0xff]   ;;  %v4924_v31 = vld [vmem:[%s6436_s7 + $0x320] ss:$16 sps:$4 sm:$0xff]  }
 0x108   : > { %v4925_v36 = vld [vmem:[%s6436_s7 + $0x104] ss:$16 sps:$4 sm:$0xff]   ;;  %v4929_v38 = vld [vmem:[%s6436_s7 + $0x100] ss:$16 sps:$4 sm:$0xff]  }
 0x109   : > { %3671 = vmatpush1.bf16.msra.mxu0 %v4881_v2  ;;  %v4927_v37 = vld [vmem:[%s6436_s7 + $0x304] ss:$16 sps:$4 sm:$0xff]   ;;  %v4930_v39 = vld [vmem:[%s6436_s7 + $0x300] ss:$16 sps:$4 sm:$0xff]  }
 0x10a   : > { %3712 = vmatpush1.bf16.msra.mxu1 %v4882_v3  ;;  %3672 = vmatprep.subr.bf16.mxu0 %v4883_v4  ;;  %v4937_v40 = vld [vmem:[%s6436_s7 + $0x4e4] ss:$16 sps:$4 sm:$0xff]   ;;  %v4935_v46 = vld [vmem:[%s6436_s7 + $0x4e0] ss:$16 sps:$4 sm:$0xff]  }
 0x10b   : > { %3713 = vmatprep.subr.bf16.mxu1 %v4885_v5  ;;  %v4940_v41 = vld [vmem:[%s6436_s7 + $0x6e4] ss:$16 sps:$4 sm:$0xff]   ;;  %v4938_v47 = vld [vmem:[%s6436_s7 + $0x6e0] ss:$16 sps:$4 sm:$0xff]  }
 0x10c   : > { %v6507_v42 = vld [vmem:[%s7009_s0 + $0x10] sm:$0xff] }
 0x10d   : > { %3673 = vmatpush2.bf16.msra.mxu0 %v4887_v6  ;;  %v4943_v48 = vld [vmem:[%s6436_s7 + $0x4c4] ss:$16 sps:$4 sm:$0xff]   ;;  %v6528_v32 = vcombine.high %v6507_v42, %v6507_v42  ;;  %v4941_v50 = vld [vmem:[%s6436_s7 + $0x4c0] ss:$16 sps:$4 sm:$0xff]  }
 0x10e   : > { %3714 = vmatpush2.bf16.msra.mxu1 %v4888_v7  ;;  %3674 = vmatprep.subr.bf16.mxu0 %v4889_v8  ;;  %v4946_v49 = vld [vmem:[%s6436_s7 + $0x6c4] ss:$16 sps:$4 sm:$0xff]   ;;  %v4944_v51 = vld [vmem:[%s6436_s7 + $0x6c0] ss:$16 sps:$4 sm:$0xff]  }
 0x10f   : > { %3715 = vmatprep.subr.bf16.mxu1 %v4891_v9  ;;  %v4949_v52 = vld [vmem:[%s6436_s7 + $0x4a4] ss:$16 sps:$4 sm:$0xff]   ;;  %v4947_v54 = vld [vmem:[%s6436_s7 + $0x4a0] ss:$16 sps:$4 sm:$0xff]  }
 0x110   : > { %v4952_v53 = vld [vmem:[%s6436_s7 + $0x6a4] ss:$16 sps:$4 sm:$0xff]   ;;  %v4950_v55 = vld [vmem:[%s6436_s7 + $0x6a0] ss:$16 sps:$4 sm:$0xff]  }
 0x111   : > { %3675 = vmatpush2.bf16.msra.mxu0 %v4893_v10  ;;  %v4955_v56 = vld [vmem:[%s6436_s7 + $0x484] ss:$16 sps:$4 sm:$0xff]   ;;  %v4953_v58 = vld [vmem:[%s6436_s7 + $0x480] ss:$16 sps:$4 sm:$0xff]  }
 0x112   : > { %3716 = vmatpush2.bf16.msra.mxu1 %v4894_v11  ;;  %3676 = vmatprep.subr.bf16.mxu0 %v4895_v12  ;;  %v4958_v57 = vld [vmem:[%s6436_s7 + $0x684] ss:$16 sps:$4 sm:$0xff]   ;;  %v4956_v59 = vld [vmem:[%s6436_s7 + $0x680] ss:$16 sps:$4 sm:$0xff]  }
 0x113   : > { %3717 = vmatprep.subr.bf16.mxu1 %v4897_v13  ;;  %v4961_v60 = vld [vmem:[%s6436_s7 + $0x464] ss:$16 sps:$4 sm:$0xff]   ;;  %v4959_v62 = vld [vmem:[%s6436_s7 + $0x460] ss:$16 sps:$4 sm:$0xff]  }
 0x114   : > { %v4964_v61 = vld [vmem:[%s6436_s7 + $0x664] ss:$16 sps:$4 sm:$0xff]   ;;  %v4962_v63 = vld [vmem:[%s6436_s7 + $0x660] ss:$16 sps:$4 sm:$0xff]  }
 0x115   : > { %3677 = vmatpush2.bf16.msra.mxu0 %v4899_v14  ;;  %v4967_v0 = vld [vmem:[%s6436_s7 + $0x444] ss:$16 sps:$4 sm:$0xff]   ;;  %v4965_v2 = vld [vmem:[%s6436_s7 + $0x440] ss:$16 sps:$4 sm:$0xff]  }
 0x116   : > { %3718 = vmatpush2.bf16.msra.mxu1 %v4900_v15  ;;  %3678 = vmatprep.subr.bf16.mxu0 %v4901_v16  ;;  %v4970_v1 = vld [vmem:[%s6436_s7 + $0x644] ss:$16 sps:$4 sm:$0xff]   ;;  %v4968_v3 = vld [vmem:[%s6436_s7 + $0x640] ss:$16 sps:$4 sm:$0xff]  }
 0x117   : > { %3719 = vmatprep.subr.bf16.mxu1 %v4903_v17  ;;  %v4973_v4 = vld [vmem:[%s6436_s7 + $0x424] ss:$16 sps:$4 sm:$0xff]   ;;  %v4971_v6 = vld [vmem:[%s6436_s7 + $0x420] ss:$16 sps:$4 sm:$0xff]  }
 0x118   : > { %v4976_v5 = vld [vmem:[%s6436_s7 + $0x624] ss:$16 sps:$4 sm:$0xff]   ;;  %v4974_v7 = vld [vmem:[%s6436_s7 + $0x620] ss:$16 sps:$4 sm:$0xff]  }
 0x119   : > { %3679 = vmatpush2.bf16.msra.mxu0 %v4905_v18  ;;  %v4979_v8 = vld [vmem:[%s6436_s7 + $0x404] ss:$16 sps:$4 sm:$0xff]   ;;  %v4977_v10 = vld [vmem:[%s6436_s7 + $0x400] ss:$16 sps:$4 sm:$0xff]  }
 0x11a   : > { %3720 = vmatpush2.bf16.msra.mxu1 %v4906_v19  ;;  %3680 = vmatprep.subr.bf16.mxu0 %v4907_v20  ;;  %v4982_v9 = vld [vmem:[%s6436_s7 + $0x604] ss:$16 sps:$4 sm:$0xff]   ;;  %v4980_v11 = vld [vmem:[%s6436_s7 + $0x600] ss:$16 sps:$4 sm:$0xff]  }
 0x11b   : > { %3721 = vmatprep.subr.bf16.mxu1 %v4909_v21  ;;  %v4985_v12 = vld [vmem:[%s6436_s7 + $0x5e4] ss:$16 sps:$4 sm:$0xff]   ;;  %v4983_v14 = vld [vmem:[%s6436_s7 + $0x5e0] ss:$16 sps:$4 sm:$0xff]  }
 0x11c   : > { %v4988_v13 = vld [vmem:[%s6436_s7 + $0x7e4] ss:$16 sps:$4 sm:$0xff]   ;;  %v4986_v15 = vld [vmem:[%s6436_s7 + $0x7e0] ss:$16 sps:$4 sm:$0xff]  }
 0x11d   : > { %3681 = vmatpush2.bf16.msra.mxu0 %v4911_v22  ;;  %v4991_v16 = vld [vmem:[%s6436_s7 + $0x5c4] ss:$16 sps:$4 sm:$0xff]   ;;  %v4989_v18 = vld [vmem:[%s6436_s7 + $0x5c0] ss:$16 sps:$4 sm:$0xff]  }
 0x11e   : > { %3722 = vmatpush2.bf16.msra.mxu1 %v4912_v23  ;;  %3682 = vmatprep.subr.bf16.mxu0 %v4913_v24  ;;  %v4994_v17 = vld [vmem:[%s6436_s7 + $0x7c4] ss:$16 sps:$4 sm:$0xff]   ;;  %v4992_v19 = vld [vmem:[%s6436_s7 + $0x7c0] ss:$16 sps:$4 sm:$0xff]  }
 0x11f   : > { %3723 = vmatprep.subr.bf16.mxu1 %v4915_v25  ;;  %v4997_v20 = vld [vmem:[%s6436_s7 + $0x5a4] ss:$16 sps:$4 sm:$0xff]   ;;  %v4995_v22 = vld [vmem:[%s6436_s7 + $0x5a0] ss:$16 sps:$4 sm:$0xff]  }
 0x120   : > { %v5000_v21 = vld [vmem:[%s6436_s7 + $0x7a4] ss:$16 sps:$4 sm:$0xff]   ;;  %v4998_v23 = vld [vmem:[%s6436_s7 + $0x7a0] ss:$16 sps:$4 sm:$0xff]  }
 0x121   : > { %3683 = vmatpush2.bf16.msra.mxu0 %v4917_v26  ;;  %v5003_v24 = vld [vmem:[%s6436_s7 + $0x584] ss:$16 sps:$4 sm:$0xff]   ;;  %v5001_v26 = vld [vmem:[%s6436_s7 + $0x580] ss:$16 sps:$4 sm:$0xff]  }
 0x122   : > { %3724 = vmatpush2.bf16.msra.mxu1 %v4918_v27  ;;  %3684 = vmatprep.subr.bf16.mxu0 %v4919_v28  ;;  %v5006_v25 = vld [vmem:[%s6436_s7 + $0x784] ss:$16 sps:$4 sm:$0xff]   ;;  %v5004_v27 = vld [vmem:[%s6436_s7 + $0x780] ss:$16 sps:$4 sm:$0xff]  }
 0x123   : > { %3725 = vmatprep.subr.bf16.mxu1 %v4921_v29  ;;  %v5009_v28 = vld [vmem:[%s6436_s7 + $0x564] ss:$16 sps:$4 sm:$0xff]  }
 0x124   : > { %v5012_v29 = vld [vmem:[%s6436_s7 + $0x764] ss:$16 sps:$4 sm:$0xff]  }
 0x125   : > { %3685 = vmatpush2.bf16.msra.mxu0 %v4923_v30  ;;  %v5007_v30 = vld [vmem:[%s6436_s7 + $0x560] ss:$16 sps:$4 sm:$0xff]  }
 0x126   : > { %3726 = vmatpush2.bf16.msra.mxu1 %v4924_v31  ;;  %3686 = vmatprep.subr.bf16.mxu0 %v4925_v36  ;;  %v5010_v31 = vld [vmem:[%s6436_s7 + $0x760] ss:$16 sps:$4 sm:$0xff]   ;;  %v5015_v36 = vld [vmem:[%s6436_s7 + $0x544] ss:$16 sps:$4 sm:$0xff]  }
 0x127   : > { %3727 = vmatprep.subr.bf16.mxu1 %v4927_v37  ;;  %v5018_v37 = vld [vmem:[%s6436_s7 + $0x744] ss:$16 sps:$4 sm:$0xff]  }
 0x129   : > { %3687 = vmatpush2.bf16.msra.mxu0 %v4929_v38  ;;  %v5013_v38 = vld [vmem:[%s6436_s7 + $0x540] ss:$16 sps:$4 sm:$0xff]  }
 0x12a   : > { %3728 = vmatpush2.bf16.msra.mxu1 %v4930_v39  ;;  %3738 = vmatprep.subr.bf16.mxu0 %v4937_v40  ;;  %v5016_v39 = vld [vmem:[%s6436_s7 + $0x740] ss:$16 sps:$4 sm:$0xff]   ;;  %v5021_v40 = vld [vmem:[%s6436_s7 + $0x524] ss:$16 sps:$4 sm:$0xff]  }
 0x12b   : > { %3779 = vmatprep.subr.bf16.mxu1 %v4940_v41  ;;  %v5024_v41 = vld [vmem:[%s6436_s7 + $0x724] ss:$16 sps:$4 sm:$0xff]  }
 0x12c   : > { %3689 = vmatmul.mubr.bf16.vlgmr.msra.gmra.mxu0 %v6516_v44 }
 0x12d   : > { %3730 = vmatmul.mubr.bf16.vlgmr.msra.gmra.mxu1 %v6520_v45  ;;  %3739 = vmatpush1.bf16.msra.mxu0 %v4935_v46  ;;  %v5019_v46 = vld [vmem:[%s6436_s7 + $0x520] ss:$16 sps:$4 sm:$0xff]  }
 0x12e   : > { %3780 = vmatpush1.bf16.msra.mxu1 %v4938_v47  ;;  %3740 = vmatprep.subr.bf16.mxu0 %v4943_v48  ;;  %v5022_v47 = vld [vmem:[%s6436_s7 + $0x720] ss:$16 sps:$4 sm:$0xff]   ;;  %v5027_v48 = vld [vmem:[%s6436_s7 + $0x504] ss:$16 sps:$4 sm:$0xff]  }
 0x12f   : > { %3781 = vmatprep.subr.bf16.mxu1 %v4946_v49  ;;  %3770 = vmatprep.mubr.bf16.mxu0 %v6528_v32  ;;  %v5030_v49 = vld [vmem:[%s6436_s7 + $0x704] ss:$16 sps:$4 sm:$0xff]  }
 0x130   : > { %3811 = vmatprep.mubr.bf16.mxu1 %v6532_v33 }
 0x131   : > { %3741 = vmatpush1.bf16.msra.mxu0 %v4941_v50  ;;  %v5025_v50 = vld [vmem:[%s6436_s7 + $0x500] ss:$16 sps:$4 sm:$0xff]  }
 0x132   : > { %3782 = vmatpush1.bf16.msra.mxu1 %v4944_v51  ;;  %3742 = vmatprep.subr.bf16.mxu0 %v4949_v52  ;;  %v5028_v51 = vld [vmem:[%s6436_s7 + $0x700] ss:$16 sps:$4 sm:$0xff]   ;;  %v5037_v52 = vld [vmem:[%s6436_s7 + $0x8e4] ss:$16 sps:$4 sm:$0xff]  }
 0x133   : > { %3783 = vmatprep.subr.bf16.mxu1 %v4952_v53  ;;  %v5040_v53 = vld [vmem:[%s6436_s7 + $0xae4] ss:$16 sps:$4 sm:$0xff]  }
 0x135   : > { %3743 = vmatpush1.bf16.msra.mxu0 %v4947_v54  ;;  %v6600_v54 = vcombine.low %v6507_v42, %v6507_v42  ;;  %v6616_v42 = vld [vmem:[%s7009_s0 + $0x28] sm:$0xff] }
 0x136   : > { %3784 = vmatpush1.bf16.msra.mxu1 %v4950_v55  ;;  %3744 = vmatprep.subr.bf16.mxu0 %v4955_v56  ;;  %v6604_v55 = vcombine.low %v6512_v43, %v6512_v43  ;;  %v5035_v56 = vld [vmem:[%s6436_s7 + $0x8e0] ss:$16 sps:$4 sm:$0xff]   ;;  %v5043_v43 = vld [vmem:[%s6436_s7 + $0x8c4] ss:$16 sps:$4 sm:$0xff]  }
 0x137   : > { %3785 = vmatprep.subr.bf16.mxu1 %v4958_v57  ;;  %v5038_v57 = vld [vmem:[%s6436_s7 + $0xae0] ss:$16 sps:$4 sm:$0xff]  }
 0x139   : > { %3745 = vmatpush1.bf16.msra.mxu0 %v4953_v58  ;;  %v6611_v58 = vld [vmem:[%s7009_s0 + $0x20] sm:$0xff] }
 0x13a   : > { %3786 = vmatpush1.bf16.msra.mxu1 %v4956_v59  ;;  %3746 = vmatprep.subr.bf16.mxu0 %v4961_v60  ;;  %v5046_v59 = vld [vmem:[%s6436_s7 + $0xac4] ss:$16 sps:$4 sm:$0xff]   ;;  %v6622_v60 = vcombine.high %v6611_v58, %v6611_v58 }
 0x13b   : > { %3787 = vmatprep.subr.bf16.mxu1 %v4964_v61  ;;  %v6626_v61 = vcombine.high %v6616_v42, %v6616_v42 }
 0x13d   : > { %3747 = vmatpush1.bf16.msra.mxu0 %v4959_v62  ;;  %v5041_v62 = vld [vmem:[%s6436_s7 + $0x8c0] ss:$16 sps:$4 sm:$0xff]  }
 0x13e   : > { %3788 = vmatpush1.bf16.msra.mxu1 %v4962_v63  ;;  %3748 = vmatprep.subr.bf16.mxu0 %v4967_v0  ;;  %v5044_v63 = vld [vmem:[%s6436_s7 + $0xac0] ss:$16 sps:$4 sm:$0xff]   ;;  %v5049_v0 = vld [vmem:[%s6436_s7 + $0x8a4] ss:$16 sps:$4 sm:$0xff]  }
 0x13f   : > { %3789 = vmatprep.subr.bf16.mxu1 %v4970_v1  ;;  %v5052_v1 = vld [vmem:[%s6436_s7 + $0xaa4] ss:$16 sps:$4 sm:$0xff]  }
 0x141   : > { %3749 = vmatpush1.bf16.msra.mxu0 %v4965_v2  ;;  %v5047_v2 = vld [vmem:[%s6436_s7 + $0x8a0] ss:$16 sps:$4 sm:$0xff]  }
 0x142   : > { %3790 = vmatpush1.bf16.msra.mxu1 %v4968_v3  ;;  %3750 = vmatprep.subr.bf16.mxu0 %v4973_v4  ;;  %v5050_v3 = vld [vmem:[%s6436_s7 + $0xaa0] ss:$16 sps:$4 sm:$0xff]   ;;  %v5055_v4 = vld [vmem:[%s6436_s7 + $0x884] ss:$16 sps:$4 sm:$0xff]  }
 0x143   : > { %3791 = vmatprep.subr.bf16.mxu1 %v4976_v5  ;;  %v5058_v5 = vld [vmem:[%s6436_s7 + $0xa84] ss:$16 sps:$4 sm:$0xff]  }
 0x145   : > { %3751 = vmatpush1.bf16.msra.mxu0 %v4971_v6  ;;  %v5053_v6 = vld [vmem:[%s6436_s7 + $0x880] ss:$16 sps:$4 sm:$0xff]  }
 0x146   : > { %3792 = vmatpush1.bf16.msra.mxu1 %v4974_v7  ;;  %3752 = vmatprep.subr.bf16.mxu0 %v4979_v8  ;;  %v5056_v7 = vld [vmem:[%s6436_s7 + $0xa80] ss:$16 sps:$4 sm:$0xff]   ;;  %v5061_v8 = vld [vmem:[%s6436_s7 + $0x864] ss:$16 sps:$4 sm:$0xff]  }
 0x147   : > { %3793 = vmatprep.subr.bf16.mxu1 %v4982_v9  ;;  %v5064_v9 = vld [vmem:[%s6436_s7 + $0xa64] ss:$16 sps:$4 sm:$0xff]  }
 0x149   : > { %3753 = vmatpush1.bf16.msra.mxu0 %v4977_v10  ;;  %v5059_v10 = vld [vmem:[%s6436_s7 + $0x860] ss:$16 sps:$4 sm:$0xff]  }
 0x14a   : > { %3794 = vmatpush1.bf16.msra.mxu1 %v4980_v11  ;;  %3754 = vmatprep.subr.bf16.mxu0 %v4985_v12  ;;  %v5062_v11 = vld [vmem:[%s6436_s7 + $0xa60] ss:$16 sps:$4 sm:$0xff]   ;;  %v5067_v12 = vld [vmem:[%s6436_s7 + $0x844] ss:$16 sps:$4 sm:$0xff]  }
 0x14b   : > { %3795 = vmatprep.subr.bf16.mxu1 %v4988_v13  ;;  %v5070_v13 = vld [vmem:[%s6436_s7 + $0xa44] ss:$16 sps:$4 sm:$0xff]  }
 0x14d   : > { %3755 = vmatpush2.bf16.msra.mxu0 %v4983_v14  ;;  %v5065_v14 = vld [vmem:[%s6436_s7 + $0x840] ss:$16 sps:$4 sm:$0xff]  }
 0x14e   : > { %3796 = vmatpush2.bf16.msra.mxu1 %v4986_v15  ;;  %3756 = vmatprep.subr.bf16.mxu0 %v4991_v16  ;;  %v5068_v15 = vld [vmem:[%s6436_s7 + $0xa40] ss:$16 sps:$4 sm:$0xff]   ;;  %v5073_v16 = vld [vmem:[%s6436_s7 + $0x824] ss:$16 sps:$4 sm:$0xff]  }
 0x14f   : > { %3797 = vmatprep.subr.bf16.mxu1 %v4994_v17  ;;  %v5076_v17 = vld [vmem:[%s6436_s7 + $0xa24] ss:$16 sps:$4 sm:$0xff]  }
 0x151   : > { %3757 = vmatpush2.bf16.msra.mxu0 %v4989_v18  ;;  %v5071_v18 = vld [vmem:[%s6436_s7 + $0x820] ss:$16 sps:$4 sm:$0xff]  }
 0x152   : > { %3798 = vmatpush2.bf16.msra.mxu1 %v4992_v19  ;;  %3758 = vmatprep.subr.bf16.mxu0 %v4997_v20  ;;  %v5074_v19 = vld [vmem:[%s6436_s7 + $0xa20] ss:$16 sps:$4 sm:$0xff]   ;;  %v5079_v20 = vld [vmem:[%s6436_s7 + $0x804] ss:$16 sps:$4 sm:$0xff]  }
 0x153   : > { %3799 = vmatprep.subr.bf16.mxu1 %v5000_v21  ;;  %v5082_v21 = vld [vmem:[%s6436_s7 + $0xa04] ss:$16 sps:$4 sm:$0xff]  }
 0x155   : > { %3759 = vmatpush2.bf16.msra.mxu0 %v4995_v22  ;;  %v5077_v22 = vld [vmem:[%s6436_s7 + $0x800] ss:$16 sps:$4 sm:$0xff]  }
 0x156   : > { %3800 = vmatpush2.bf16.msra.mxu1 %v4998_v23  ;;  %3760 = vmatprep.subr.bf16.mxu0 %v5003_v24  ;;  %v5080_v23 = vld [vmem:[%s6436_s7 + $0xa00] ss:$16 sps:$4 sm:$0xff]   ;;  %v5085_v24 = vld [vmem:[%s6436_s7 + $0x9e4] ss:$16 sps:$4 sm:$0xff]  }
 0x157   : > { %3801 = vmatprep.subr.bf16.mxu1 %v5006_v25  ;;  %v5088_v25 = vld [vmem:[%s6436_s7 + $0xbe4] ss:$16 sps:$4 sm:$0xff]  }
 0x159   : > { %3761 = vmatpush2.bf16.msra.mxu0 %v5001_v26  ;;  %v5083_v26 = vld [vmem:[%s6436_s7 + $0x9e0] ss:$16 sps:$4 sm:$0xff]  }
 0x15a   : > { %3802 = vmatpush2.bf16.msra.mxu1 %v5004_v27  ;;  %3762 = vmatprep.subr.bf16.mxu0 %v5009_v28  ;;  %v5086_v27 = vld [vmem:[%s6436_s7 + $0xbe0] ss:$16 sps:$4 sm:$0xff]   ;;  %v5091_v28 = vld [vmem:[%s6436_s7 + $0x9c4] ss:$16 sps:$4 sm:$0xff]  }
 0x15b   : > { %3803 = vmatprep.subr.bf16.mxu1 %v5012_v29  ;;  %v5094_v29 = vld [vmem:[%s6436_s7 + $0xbc4] ss:$16 sps:$4 sm:$0xff]  }
 0x15d   : > { %3763 = vmatpush2.bf16.msra.mxu0 %v5007_v30  ;;  %v5089_v30 = vld [vmem:[%s6436_s7 + $0x9c0] ss:$16 sps:$4 sm:$0xff]  }
 0x15e   : > { %3804 = vmatpush2.bf16.msra.mxu1 %v5010_v31  ;;  %3764 = vmatprep.subr.bf16.mxu0 %v5015_v36  ;;  %v5092_v31 = vld [vmem:[%s6436_s7 + $0xbc0] ss:$16 sps:$4 sm:$0xff]   ;;  %v5097_v36 = vld [vmem:[%s6436_s7 + $0x9a4] ss:$16 sps:$4 sm:$0xff]  }
 0x15f   : > { %3805 = vmatprep.subr.bf16.mxu1 %v5018_v37  ;;  %v5100_v37 = vld [vmem:[%s6436_s7 + $0xba4] ss:$16 sps:$4 sm:$0xff]  }
 0x161   : > { %3765 = vmatpush2.bf16.msra.mxu0 %v5013_v38  ;;  %v5095_v38 = vld [vmem:[%s6436_s7 + $0x9a0] ss:$16 sps:$4 sm:$0xff]  }
 0x162   : > { %3806 = vmatpush2.bf16.msra.mxu1 %v5016_v39  ;;  %3766 = vmatprep.subr.bf16.mxu0 %v5021_v40  ;;  %v5098_v39 = vld [vmem:[%s6436_s7 + $0xba0] ss:$16 sps:$4 sm:$0xff]   ;;  %v5103_v40 = vld [vmem:[%s6436_s7 + $0x984] ss:$16 sps:$4 sm:$0xff]  }
 0x163   : > { %3807 = vmatprep.subr.bf16.mxu1 %v5024_v41  ;;  %v5106_v41 = vld [vmem:[%s6436_s7 + $0xb84] ss:$16 sps:$4 sm:$0xff]  }
 0x165   : > { %3767 = vmatpush2.bf16.msra.mxu0 %v5019_v46  ;;  %v5101_v46 = vld [vmem:[%s6436_s7 + $0x980] ss:$16 sps:$4 sm:$0xff]  }
 0x166   : > { %3808 = vmatpush2.bf16.msra.mxu1 %v5022_v47  ;;  %3768 = vmatprep.subr.bf16.mxu0 %v5027_v48  ;;  %v5104_v47 = vld [vmem:[%s6436_s7 + $0xb80] ss:$16 sps:$4 sm:$0xff]   ;;  %v5109_v48 = vld [vmem:[%s6436_s7 + $0x964] ss:$16 sps:$4 sm:$0xff]  }
 0x167   : > { %3809 = vmatprep.subr.bf16.mxu1 %v5030_v49  ;;  %v5112_v49 = vld [vmem:[%s6436_s7 + $0xb64] ss:$16 sps:$4 sm:$0xff]  }
 0x169   : > { %3769 = vmatpush2.bf16.msra.mxu0 %v5025_v50  ;;  %v5107_v50 = vld [vmem:[%s6436_s7 + $0x960] ss:$16 sps:$4 sm:$0xff]  }
 0x16a   : > { %3810 = vmatpush2.bf16.msra.mxu1 %v5028_v51  ;;  %3820 = vmatprep.subr.bf16.mxu0 %v5037_v52  ;;  %v5110_v51 = vld [vmem:[%s6436_s7 + $0xb60] ss:$16 sps:$4 sm:$0xff]   ;;  %v5115_v52 = vld [vmem:[%s6436_s7 + $0x944] ss:$16 sps:$4 sm:$0xff]  }
 0x16b   : > { %3861 = vmatprep.subr.bf16.mxu1 %v5040_v53  ;;  %v5118_v53 = vld [vmem:[%s6436_s7 + $0xb44] ss:$16 sps:$4 sm:$0xff]  }
 0x16c   : > { %3771 = vmatmul.mubr.bf16.vlgmr.msra.gmra.mxu0 %v6600_v54 }
 0x16d   : > { %3812 = vmatmul.mubr.bf16.vlgmr.msra.gmra.mxu1 %v6604_v55  ;;  %3821 = vmatpush1.bf16.msra.mxu0 %v5035_v56  ;;  %v5113_v56 = vld [vmem:[%s6436_s7 + $0x940] ss:$16 sps:$4 sm:$0xff]  }
 0x16e   : > { %3862 = vmatpush1.bf16.msra.mxu1 %v5038_v57  ;;  %3822 = vmatprep.subr.bf16.mxu0 %v5043_v43  ;;  %v5116_v57 = vld [vmem:[%s6436_s7 + $0xb40] ss:$16 sps:$4 sm:$0xff]   ;;  %v5121_v43 = vld [vmem:[%s6436_s7 + $0x924] ss:$16 sps:$4 sm:$0xff]  }
 0x16f   : > { %3863 = vmatprep.subr.bf16.mxu1 %v5046_v59  ;;  %3852 = vmatprep.mubr.bf16.mxu0 %v6622_v60  ;;  %v5124_v59 = vld [vmem:[%s6436_s7 + $0xb24] ss:$16 sps:$4 sm:$0xff]  }
 0x170   : > { %3893 = vmatprep.mubr.bf16.mxu1 %v6626_v61 }
 0x171   : > { %3823 = vmatpush1.bf16.msra.mxu0 %v5041_v62  ;;  %v5119_v62 = vld [vmem:[%s6436_s7 + $0x920] ss:$16 sps:$4 sm:$0xff]  }
 0x172   : > { %3864 = vmatpush1.bf16.msra.mxu1 %v5044_v63  ;;  %3824 = vmatprep.subr.bf16.mxu0 %v5049_v0  ;;  %v5122_v63 = vld [vmem:[%s6436_s7 + $0xb20] ss:$16 sps:$4 sm:$0xff]   ;;  %v5127_v0 = vld [vmem:[%s6436_s7 + $0x904] ss:$16 sps:$4 sm:$0xff]  }
 0x173   : > { %3865 = vmatprep.subr.bf16.mxu1 %v5052_v1  ;;  %v5130_v1 = vld [vmem:[%s6436_s7 + $0xb04] ss:$16 sps:$4 sm:$0xff]  }
 0x175   : > { %3825 = vmatpush1.bf16.msra.mxu0 %v5047_v2  ;;  %v5125_v2 = vld [vmem:[%s6436_s7 + $0x900] ss:$16 sps:$4 sm:$0xff]  }
 0x176   : > { %3866 = vmatpush1.bf16.msra.mxu1 %v5050_v3  ;;  %3826 = vmatprep.subr.bf16.mxu0 %v5055_v4  ;;  %v5128_v3 = vld [vmem:[%s6436_s7 + $0xb00] ss:$16 sps:$4 sm:$0xff]   ;;  %v5137_v4 = vld [vmem:[%s6436_s7 + $0xce4] ss:$16 sps:$4 sm:$0xff]  }
 0x177   : > { %3867 = vmatprep.subr.bf16.mxu1 %v5058_v5  ;;  %v5140_v5 = vld [vmem:[%s6436_s7 + $0xec] ss:$16 sps:$4 sm:$0xff]  }
 0x179   : > { %3827 = vmatpush1.bf16.msra.mxu0 %v5053_v6  ;;  %v6694_v6 = vcombine.low %v6611_v58, %v6611_v58  ;;  %v5141_v58 = vld [vmem:[%s6436_s7 + $0xcc0] ss:$16 sps:$4 sm:$0xff]  }
 0x17a   : > { %3868 = vmatpush1.bf16.msra.mxu1 %v5056_v7  ;;  %3828 = vmatprep.subr.bf16.mxu0 %v5061_v8  ;;  %v6698_v7 = vcombine.low %v6616_v42, %v6616_v42  ;;  %v5135_v8 = vld [vmem:[%s6436_s7 + $0xce0] ss:$16 sps:$4 sm:$0xff]   ;;  %v5149_v42 = vld [vmem:[%s6436_s7 + $0xca4] ss:$16 sps:$4 sm:$0xff]  }
 0x17b   : > { %3869 = vmatprep.subr.bf16.mxu1 %v5064_v9  ;;  %v5138_v9 = vld [vmem:[%s6436_s7 + $0xe8] ss:$16 sps:$4 sm:$0xff]  }
 0x17d   : > { %3829 = vmatpush1.bf16.msra.mxu0 %v5059_v10  ;;  %v5143_v10 = vld [vmem:[%s6436_s7 + $0xcc4] ss:$16 sps:$4 sm:$0xff]  }
 0x17e   : > { %3870 = vmatpush1.bf16.msra.mxu1 %v5062_v11  ;;  %3830 = vmatprep.subr.bf16.mxu0 %v5067_v12  ;;  %v5146_v11 = vld [vmem:[%s6436_s7 + $0xcc] ss:$16 sps:$4 sm:$0xff]   ;;  %v5144_v12 = vld [vmem:[%s6436_s7 + $0xc8] ss:$16 sps:$4 sm:$0xff]  }
 0x17f   : > { %3871 = vmatprep.subr.bf16.mxu1 %v5070_v13  ;;  %v5152_v13 = vld [vmem:[%s6436_s7 + $0xac] ss:$16 sps:$4 sm:$0xff]  }
 0x181   : > { %3831 = vmatpush1.bf16.msra.mxu0 %v5065_v14  ;;  %v5513_v14 = vmov 0  }
 0x182   : > { %3872 = vmatpush1.bf16.msra.mxu1 %v5068_v15  ;;  %3832 = vmatprep.subr.bf16.mxu0 %v5073_v16  ;;  %v5147_v15 = vld [vmem:[%s6436_s7 + $0xca0] ss:$16 sps:$4 sm:$0xff]   ;;  %v5150_v16 = vld [vmem:[%s6436_s7 + $0xa8] ss:$16 sps:$4 sm:$0xff]  }
 0x183   : > { %3873 = vmatprep.subr.bf16.mxu1 %v5076_v17  ;;  %v5155_v17 = vld [vmem:[%s6436_s7 + $0xc84] ss:$16 sps:$4 sm:$0xff]  }
 0x185   : > { %3833 = vmatpush1.bf16.msra.mxu0 %v5071_v18  ;;  %v5158_v18 = vld [vmem:[%s6436_s7 + $0x8c] ss:$16 sps:$4 sm:$0xff]  }
 0x186   : > { %3874 = vmatpush1.bf16.msra.mxu1 %v5074_v19  ;;  %3834 = vmatprep.subr.bf16.mxu0 %v5079_v20  ;;  %v5153_v19 = vld [vmem:[%s6436_s7 + $0xc80] ss:$16 sps:$4 sm:$0xff]   ;;  %v5156_v20 = vld [vmem:[%s6436_s7 + $0x88] ss:$16 sps:$4 sm:$0xff]  }
 0x187   : > { %3875 = vmatprep.subr.bf16.mxu1 %v5082_v21  ;;  %v5164_v21 = vld [vmem:[%s6436_s7 + $0x6c] ss:$16 sps:$4 sm:$0xff]  }
 0x189   : > { %3835 = vmatpush1.bf16.msra.mxu0 %v5077_v22  ;;  %v5159_v22 = vld [vmem:[%s6436_s7 + $0xc60] ss:$16 sps:$4 sm:$0xff]  }
 0x18a   : > { %3876 = vmatpush1.bf16.msra.mxu1 %v5080_v23  ;;  %3836 = vmatprep.subr.bf16.mxu0 %v5085_v24  ;;  %v5162_v23 = vld [vmem:[%s6436_s7 + $0x68] ss:$16 sps:$4 sm:$0xff]   ;;  %v5167_v24 = vld [vmem:[%s6436_s7 + $0xc44] ss:$16 sps:$4 sm:$0xff]  }
 0x18b   : > { %3877 = vmatprep.subr.bf16.mxu1 %v5088_v25  ;;  %v5170_v25 = vld [vmem:[%s6436_s7 + $0x4c] ss:$16 sps:$4 sm:$0xff]  }
 0x18d   : > { %3837 = vmatpush2.bf16.msra.mxu0 %v5083_v26  ;;  %v5165_v26 = vld [vmem:[%s6436_s7 + $0xc40] ss:$16 sps:$4 sm:$0xff]  }
 0x18e   : > { %3878 = vmatpush2.bf16.msra.mxu1 %v5086_v27  ;;  %3838 = vmatprep.subr.bf16.mxu0 %v5091_v28  ;;  %v5168_v27 = vld [vmem:[%s6436_s7 + $0x48] ss:$16 sps:$4 sm:$0xff]   ;;  %v5173_v28 = vld [vmem:[%s6436_s7 + $0xc24] ss:$16 sps:$4 sm:$0xff]  }
 0x18f   : > { %3879 = vmatprep.subr.bf16.mxu1 %v5094_v29  ;;  %v5176_v29 = vld [vmem:[%s6436_s7 + $0x2c] ss:$16 sps:$4 sm:$0xff]  }
 0x191   : > { %3839 = vmatpush2.bf16.msra.mxu0 %v5089_v30  ;;  %v5171_v30 = vld [vmem:[%s6436_s7 + $0xc20] ss:$16 sps:$4 sm:$0xff]  }
 0x192   : > { %3880 = vmatpush2.bf16.msra.mxu1 %v5092_v31  ;;  %3840 = vmatprep.subr.bf16.mxu0 %v5097_v36  ;;  %v5174_v31 = vld [vmem:[%s6436_s7 + $0x28] ss:$16 sps:$4 sm:$0xff]   ;;  %v5179_v36 = vld [vmem:[%s6436_s7 + $0xc04] ss:$16 sps:$4 sm:$0xff]  }
 0x193   : > { %3881 = vmatprep.subr.bf16.mxu1 %v5100_v37  ;;  %v5182_v37 = vld [vmem:[%s6436_s7 + $0xc] ss:$16 sps:$4 sm:$0xff]  }
 0x195   : > { %3841 = vmatpush2.bf16.msra.mxu0 %v5095_v38  ;;  %v5177_v38 = vld [vmem:[%s6436_s7 + $0xc00] ss:$16 sps:$4 sm:$0xff]  }
 0x196   : > { %3882 = vmatpush2.bf16.msra.mxu1 %v5098_v39  ;;  %3842 = vmatprep.subr.bf16.mxu0 %v5103_v40  ;;  %v5180_v39 = vld [vmem:[%s6436_s7 + $0x8] ss:$16 sps:$4 sm:$0xff]   ;;  %v5186_v40 = vld [vmem:[%s6436_s7 + $0x1ec] ss:$16 sps:$4 sm:$0xff]  }
 0x197   : > { %3883 = vmatprep.subr.bf16.mxu1 %v5106_v41  ;;  %v5189_v41 = vld [vmem:[%s6436_s7 + $0x2ec] ss:$16 sps:$4 sm:$0xff]  }
 0x199   : > { %3843 = vmatpush2.bf16.msra.mxu0 %v5101_v46  ;;  %v5183_v46 = vld [vmem:[%s7009_s0 + $0x30] ss:$0 sps:$4 sm:$0xff]  }
 0x19a   : > { %3884 = vmatpush2.bf16.msra.mxu1 %v5104_v47  ;;  %3844 = vmatprep.subr.bf16.mxu0 %v5109_v48  ;;  %v5184_v47 = vld [vmem:[%s6436_s7 + $0x1e8] ss:$16 sps:$4 sm:$0xff]  }
 0x19b   : > { %3885 = vmatprep.subr.bf16.mxu1 %v5112_v49  ;;  %v5187_v48 = vld [vmem:[%s6436_s7 + $0x2e8] ss:$16 sps:$4 sm:$0xff]   ;;  %v5192_v49 = vld [vmem:[%s6436_s7 + $0x1cc] ss:$16 sps:$4 sm:$0xff]  }
 0x19d   : > { %3845 = vmatpush2.bf16.msra.mxu0 %v5107_v50  ;;  %v5195_v50 = vld [vmem:[%s6436_s7 + $0x2cc] ss:$16 sps:$4 sm:$0xff]  }
 0x19e   : > { %3886 = vmatpush2.bf16.msra.mxu1 %v5110_v51  ;;  %3846 = vmatprep.subr.bf16.mxu0 %v5115_v52  ;;  %v5190_v51 = vld [vmem:[%s6436_s7 + $0x1c8] ss:$16 sps:$4 sm:$0xff]  }
 0x19f   : > { %3887 = vmatprep.subr.bf16.mxu1 %v5118_v53  ;;  %v5193_v52 = vld [vmem:[%s6436_s7 + $0x2c8] ss:$16 sps:$4 sm:$0xff]   ;;  %v5198_v53 = vld [vmem:[%s6436_s7 + $0x1ac] ss:$16 sps:$4 sm:$0xff]  }
 0x1a1   : > { %3847 = vmatpush2.bf16.msra.mxu0 %v5113_v56  ;;  %v5201_v56 = vld [vmem:[%s6436_s7 + $0x2ac] ss:$16 sps:$4 sm:$0xff]  }
 0x1a2   : > { %3888 = vmatpush2.bf16.msra.mxu1 %v5116_v57  ;;  %3848 = vmatprep.subr.bf16.mxu0 %v5121_v43  ;;  %v5196_v57 = vld [vmem:[%s6436_s7 + $0x1a8] ss:$16 sps:$4 sm:$0xff]  }
 0x1a3   : > { %3889 = vmatprep.subr.bf16.mxu1 %v5124_v59  ;;  %v5199_v43 = vld [vmem:[%s6436_s7 + $0x2a8] ss:$16 sps:$4 sm:$0xff]   ;;  %v5204_v59 = vld [vmem:[%s6436_s7 + $0x18c] ss:$16 sps:$4 sm:$0xff]  }
 0x1a5   : > { %3849 = vmatpush2.bf16.msra.mxu0 %v5119_v62  ;;  %v5207_v62 = vld [vmem:[%s6436_s7 + $0x28c] ss:$16 sps:$4 sm:$0xff]  }
 0x1a6   : > { %3890 = vmatpush2.bf16.msra.mxu1 %v5122_v63  ;;  %3850 = vmatprep.subr.bf16.mxu0 %v5127_v0  ;;  %v5202_v63 = vld [vmem:[%s6436_s7 + $0x188] ss:$16 sps:$4 sm:$0xff]  }
 0x1a7   : > { %3891 = vmatprep.subr.bf16.mxu1 %v5130_v1  ;;  %v5205_v0 = vld [vmem:[%s6436_s7 + $0x288] ss:$16 sps:$4 sm:$0xff]   ;;  %v5213_v1 = vld [vmem:[%s6436_s7 + $0x26c] ss:$16 sps:$4 sm:$0xff]  }
 0x1a9   : > { %3851 = vmatpush2.bf16.msra.mxu0 %v5125_v2  ;;  %v5208_v2 = vld [vmem:[%s6436_s7 + $0x168] ss:$16 sps:$4 sm:$0xff]  }
 0x1aa   : > { %3892 = vmatpush2.bf16.msra.mxu1 %v5128_v3  ;;  %3902 = vmatprep.subr.bf16.mxu0 %v5137_v4  ;;  %v5211_v3 = vld [vmem:[%s6436_s7 + $0x268] ss:$16 sps:$4 sm:$0xff]   ;;  %v5216_v4 = vld [vmem:[%s6436_s7 + $0x14c] ss:$16 sps:$4 sm:$0xff]  }
 0x1ab   : > { %3943 = vmatprep.subr.bf16.mxu1 %v5140_v5  ;;  %v5219_v5 = vld [vmem:[%s6436_s7 + $0x24c] ss:$16 sps:$4 sm:$0xff]  }
 0x1ac   : > { %3853 = vmatmul.mubr.bf16.vlgmr.msra.gmra.mxu0 %v6694_v6 }
 0x1ad   : > { %3894 = vmatmul.mubr.bf16.vlgmr.msra.gmra.mxu1 %v6698_v7  ;;  %3903 = vmatpush1.bf16.msra.mxu0 %v5135_v8  ;;  %v5214_v8 = vld [vmem:[%s6436_s7 + $0x148] ss:$16 sps:$4 sm:$0xff]  }
 0x1ae   : > { %3944 = vmatpush1.bf16.msra.mxu1 %v5138_v9  ;;  %3904 = vmatprep.subr.bf16.mxu0 %v5143_v10  ;;  %v5217_v9 = vld [vmem:[%s6436_s7 + $0x248] ss:$16 sps:$4 sm:$0xff]   ;;  %v5222_v10 = vld [vmem:[%s6436_s7 + $0x12c] ss:$16 sps:$4 sm:$0xff]  }
 0x1af   : > { %3945 = vmatprep.subr.bf16.mxu1 %v5146_v11  ;;  %3934 = vmatprep.mubr.bf16.mxu0 %v5513_v14  ;;  %v1510_v11 = vlaneseq }
 0x1b0   : > { %3975 = vmatprep.mubr.bf16.mxu1 %v6428_v34  ;;  %v5161_v34 = vld [vmem:[%s6436_s7 + $0xc64] ss:$16 sps:$4 sm:$0xff]  }
 0x1b1   : > { %3905 = vmatpush1.bf16.msra.mxu0 %v5141_v58  ;;  %v5225_v58 = vld [vmem:[%s6436_s7 + $0x22c] ss:$16 sps:$4 sm:$0xff]  }
 0x1b2   : > { %3946 = vmatpush1.bf16.msra.mxu1 %v5144_v12  ;;  %3906 = vmatprep.subr.bf16.mxu0 %v5149_v42  ;;  %v5220_v12 = vld [vmem:[%s6436_s7 + $0x128] ss:$16 sps:$4 sm:$0xff]  }
 0x1b3   : > { %3947 = vmatprep.subr.bf16.mxu1 %v5152_v13  ;;  %v5223_v42 = vld [vmem:[%s6436_s7 + $0x228] ss:$16 sps:$4 sm:$0xff]   ;;  %v5228_v13 = vld [vmem:[%s6436_s7 + $0x10c] ss:$16 sps:$4 sm:$0xff]  }
 0x1b5   : > { %3907 = vmatpush1.bf16.msra.mxu0 %v5147_v15  ;;  %v6774_v15 = vshrl.u32 %v1510_v11, 7  ;;  %v5279_v11 = vld [vmem:[%s6436_s7 + $0x40c] ss:$16 sps:$4 sm:$0xff]  }
 0x1b6   : > { %3948 = vmatpush1.bf16.msra.mxu1 %v5150_v16  ;;  %3908 = vmatprep.subr.bf16.mxu0 %v5155_v17  ;;  %v5231_v16 = vld [vmem:[%s6436_s7 + $0x20c] ss:$16 sps:$4 sm:$0xff]   ;;  %v5226_v17 = vld [vmem:[%s6436_s7 + $0x108] ss:$16 sps:$4 sm:$0xff]  }
 0x1b7   : > { %3949 = vmatprep.subr.bf16.mxu1 %v5158_v18  ;;  %v5229_v18 = vld [vmem:[%s6436_s7 + $0x208] ss:$16 sps:$4 sm:$0xff]  }
 0x1b9   : > { %3909 = vmatpush1.bf16.msra.mxu0 %v5153_v19  ;;  %v6779_v19 = vld [vmem:[%s1072_s26] sm:$0xf] }
 0x1ba   : > { %3950 = vmatpush1.bf16.msra.mxu1 %v5156_v20  ;;  %3910 = vmatprep.subr.bf16.mxu0 %v5161_v34  ;;  %v1512_v20 = vsub.s32 0, %v6774_v15  ;;  %v5234_v34 = vld [vmem:[%s6436_s7 + $0x3ec] ss:$16 sps:$4 sm:$0xff]  }
 0x1bb   : > { %3951 = vmatprep.subr.bf16.mxu1 %v5164_v21  ;;  %v5237_v21 = vld [vmem:[%s6436_s7 + $0x4ec] ss:$16 sps:$4 sm:$0xff]  }
 0x1bd   : > { %3911 = vmatpush1.bf16.msra.mxu0 %v5159_v22  ;;  %v1516_v22 = vsub.s32 1, %v6774_v15 }
 0x1be   : > { %3952 = vmatpush1.bf16.msra.mxu1 %v5162_v23  ;;  %3912 = vmatprep.subr.bf16.mxu0 %v5167_v24  ;;  %v5232_v23 = vld [vmem:[%s6436_s7 + $0x3e8] ss:$16 sps:$4 sm:$0xff]  }
 0x1bf   : > { %3953 = vmatprep.subr.bf16.mxu1 %v5170_v25  ;;  %v5235_v24 = vld [vmem:[%s6436_s7 + $0x4e8] ss:$16 sps:$4 sm:$0xff]   ;;  %v1513_v25 = vrot.slane %v6779_v19, %v1512_v20  ;;  %v5291_v20 = vld [vmem:[%s6436_s7 + $0x6cc] ss:$16 sps:$4 sm:$0xff]  }
 0x1c1   : > { %3913 = vmatpush1.bf16.msra.mxu0 %v5165_v26  ;;  %v5240_v26 = vld [vmem:[%s6436_s7 + $0x3cc] ss:$16 sps:$4 sm:$0xff]  }
 0x1c2   : > { %3954 = vmatpush1.bf16.msra.mxu1 %v5168_v27  ;;  %3914 = vmatprep.subr.bf16.mxu0 %v5173_v28  ;;  %v5243_v27 = vld [vmem:[%s6436_s7 + $0x4cc] ss:$16 sps:$4 sm:$0xff]   ;;  %v1517_v28 = vrot.slane %v6779_v19, %v1516_v22 }
 0x1c3   : > { %3955 = vmatprep.subr.bf16.mxu1 %v5176_v29  ;;  %v5294_v22 = vld [vmem:[%s6436_s7 + $0x5ac] ss:$16 sps:$4 sm:$0xff]  }
 0x1c5   : > { %3915 = vmatpush1.bf16.msra.mxu0 %v5171_v30 }
 0x1c6   : > { %3956 = vmatpush1.bf16.msra.mxu1 %v5174_v31  ;;  %3916 = vmatprep.subr.bf16.mxu0 %v5179_v36  ;;  %v5238_v31 = vld [vmem:[%s6436_s7 + $0x3c8] ss:$16 sps:$4 sm:$0xff]  }
 0x1c7   : > { %3957 = vmatprep.subr.bf16.mxu1 %v5182_v37  ;;  %v5241_v36 = vld [vmem:[%s6436_s7 + $0x4c8] ss:$16 sps:$4 sm:$0xff]  }
 0x1c9   : > { %3917 = vmatpush1.bf16.msra.mxu0 %v5177_v38 }
 0x1ca   : > { %3958 = vmatpush1.bf16.msra.mxu1 %v5180_v39  ;;  %3984 = vmatprep.subr.bf16.mxu0 %v5189_v41  ;;  %v5249_v41 = vld [vmem:[%s6436_s7 + $0x4ac] ss:$16 sps:$4 sm:$0xff]  }
 0x1cb   : > { %3959 = vmatprep.subr.bf16.mxu1 %v5186_v40  ;;  %v5246_v40 = vld [vmem:[%s6436_s7 + $0x3ac] ss:$16 sps:$4 sm:$0xff]  }
 0x1cc   : > { %3935 = vmatmul.mubr.bf16.vlgmr.msra.gmra.mxu0 %v5183_v46 }
 0x1cd   : > { %3985 = vmatpush1.bf16.msra.mxu0 %v5187_v48  ;;  %4016 = vmatprep.mubr.bf16.mxu0 %v6432_v35  ;;  %v5210_v35 = vld [vmem:[%s6436_s7 + $0x16c] ss:$16 sps:$4 sm:$0xff]   ;;  %v5244_v48 = vld [vmem:[%s6436_s7 + $0x3a8] ss:$16 sps:$4 sm:$0xff]  }
 0x1ce   : > { %3960 = vmatpush2.bf16.msra.mxu1 %v5184_v47  ;;  %3986 = vmatprep.subr.bf16.mxu0 %v5195_v50 }
 0x1cf   : > { %3961 = vmatprep.subr.bf16.mxu1 %v5192_v49  ;;  %v5247_v49 = vld [vmem:[%s6436_s7 + $0x4a8] ss:$16 sps:$4 sm:$0xff]  }
 0x1d1   : > { %3987 = vmatpush1.bf16.msra.mxu0 %v5193_v52 }
 0x1d2   : > { %3962 = vmatpush2.bf16.msra.mxu1 %v5190_v51  ;;  %3988 = vmatprep.subr.bf16.mxu0 %v5201_v56  ;;  %v5252_v56 = vld [vmem:[%s6436_s7 + $0x38c] ss:$16 sps:$4 sm:$0xff]  }
 0x1d3   : > { %3963 = vmatprep.subr.bf16.mxu1 %v5198_v53 }
 0x1d5   : > { %3989 = vmatpush1.bf16.msra.mxu0 %v5199_v43  ;;  %v5253_v43 = vld [vmem:[%s6436_s7 + $0x488] ss:$16 sps:$4 sm:$0xff]  }
 0x1d6   : > { %3964 = vmatpush2.bf16.msra.mxu1 %v5196_v57  ;;  %3990 = vmatprep.subr.bf16.mxu0 %v5207_v62  ;;  %v5255_v57 = vld [vmem:[%s6436_s7 + $0x48c] ss:$16 sps:$4 sm:$0xff]  }
 0x1d7   : > { %3965 = vmatprep.subr.bf16.mxu1 %v5204_v59  ;;  %v5258_v59 = vld [vmem:[%s6436_s7 + $0x36c] ss:$16 sps:$4 sm:$0xff]  }
 0x1d8   : > { %v5261_v62 = vld [vmem:[%s6436_s7 + $0x46c] ss:$16 sps:$4 sm:$0xff]  }
 0x1d9   : > { %3991 = vmatpush1.bf16.msra.mxu0 %v5205_v0  ;;  %v5259_v0 = vld [vmem:[%s6436_s7 + $0x468] ss:$16 sps:$4 sm:$0xff]  }
 0x1da   : > { %3966 = vmatpush2.bf16.msra.mxu1 %v5202_v63  ;;  %3992 = vmatprep.subr.bf16.mxu0 %v5213_v1  ;;  %v5256_v63 = vld [vmem:[%s6436_s7 + $0x368] ss:$16 sps:$4 sm:$0xff]   ;;  %v5267_v1 = vld [vmem:[%s6436_s7 + $0x44c] ss:$16 sps:$4 sm:$0xff]  }
 0x1db   : > { %3967 = vmatprep.subr.bf16.mxu1 %v5210_v35  ;;  %v5264_v35 = vld [vmem:[%s6436_s7 + $0x34c] ss:$16 sps:$4 sm:$0xff]  }
 0x1dd   : > { %3993 = vmatpush1.bf16.msra.mxu0 %v5211_v3  ;;  %v5265_v3 = vld [vmem:[%s6436_s7 + $0x448] ss:$16 sps:$4 sm:$0xff]  }
 0x1de   : > { %3968 = vmatpush2.bf16.msra.mxu1 %v5208_v2  ;;  %3994 = vmatprep.subr.bf16.mxu0 %v5219_v5  ;;  %v5262_v2 = vld [vmem:[%s6436_s7 + $0x348] ss:$16 sps:$4 sm:$0xff]   ;;  %v5273_v5 = vld [vmem:[%s6436_s7 + $0x42c] ss:$16 sps:$4 sm:$0xff]  }
 0x1df   : > { %3969 = vmatprep.subr.bf16.mxu1 %v5216_v4  ;;  %v5270_v4 = vld [vmem:[%s6436_s7 + $0x32c] ss:$16 sps:$4 sm:$0xff]  }
 0x1e1   : > { %3995 = vmatpush1.bf16.msra.mxu0 %v5217_v9  ;;  %v5271_v9 = vld [vmem:[%s6436_s7 + $0x428] ss:$16 sps:$4 sm:$0xff]  }
 0x1e2   : > { %3970 = vmatpush2.bf16.msra.mxu1 %v5214_v8  ;;  %3996 = vmatprep.subr.bf16.mxu0 %v5225_v58  ;;  %v5268_v8 = vld [vmem:[%s6436_s7 + $0x328] ss:$16 sps:$4 sm:$0xff]  }
 0x1e3   : > { %3971 = vmatprep.subr.bf16.mxu1 %v5222_v10  ;;  %v5276_v10 = vld [vmem:[%s6436_s7 + $0x30c] ss:$16 sps:$4 sm:$0xff]   ;;  %v5274_v58 = vld [vmem:[%s6436_s7 + $0x308] ss:$16 sps:$4 sm:$0xff]  }
 0x1e5   : > { %3997 = vmatpush1.bf16.msra.mxu0 %v5223_v42  ;;  %v5282_v42 = vld [vmem:[%s6436_s7 + $0x5ec] ss:$16 sps:$4 sm:$0xff]  }
 0x1e6   : > { %3972 = vmatpush2.bf16.msra.mxu1 %v5220_v12  ;;  %3998 = vmatprep.subr.bf16.mxu0 %v5231_v16  ;;  %v5277_v12 = vld [vmem:[%s6436_s7 + $0x408] ss:$16 sps:$4 sm:$0xff]  }
 0x1e7   : > { %3973 = vmatprep.subr.bf16.mxu1 %v5228_v13  ;;  %v5285_v13 = vld [vmem:[%s6436_s7 + $0x6ec] ss:$16 sps:$4 sm:$0xff]   ;;  %v5280_v16 = vld [vmem:[%s6436_s7 + $0x5e8] ss:$16 sps:$4 sm:$0xff]  }
 0x1e9   : > { %3999 = vmatpush1.bf16.msra.mxu0 %v5229_v18  ;;  %v5288_v18 = vld [vmem:[%s6436_s7 + $0x5cc] ss:$16 sps:$4 sm:$0xff]  }
 0x1ea   : > { %3974 = vmatpush2.bf16.msra.mxu1 %v5226_v17  ;;  %4000 = vmatprep.subr.bf16.mxu0 %v5234_v34  ;;  %v5283_v17 = vld [vmem:[%s6436_s7 + $0x6e8] ss:$16 sps:$4 sm:$0xff]  }
 0x1eb   : > { %4025 = vmatprep.subr.bf16.mxu1 %v5237_v21  ;;  %v5286_v34 = vld [vmem:[%s6436_s7 + $0x5c8] ss:$16 sps:$4 sm:$0xff]  }
 0x1ec   : > { %v3690_v29 = vpop.f32.mrf.mxu0  ;;  %v5289_v21 = vld [vmem:[%s6436_s7 + $0x6c8] ss:$16 sps:$4 sm:$0xff]  }
 0x1ed   : > { %v3731_v30 = vpop.f32.mrf.mxu1  ;;  %3976 = vmatmul.mubr.bf16.vlgmr.msra.gmra.mxu1 %v6516_v44  ;;  %v3691_v37 = vadd.f32 %v3690_v29, %v1513_v25  ;;  %4001 = vmatpush2.bf16.msra.mxu0 %v5232_v23  ;;  %v5297_v23 = vld [vmem:[%s6436_s7 + $0x6ac] ss:$16 sps:$4 sm:$0xff]  }
 0x1ee   : > { %4026 = vmatpush1.bf16.msra.mxu1 %v5235_v24  ;;  %v3692_v38 = vpop.f32.mrf.mxu0  ;;  %4002 = vmatprep.subr.bf16.mxu0 %v5240_v26  ;;  %v5292_v24 = vld [vmem:[%s6436_s7 + $0x5a8] ss:$16 sps:$4 sm:$0xff]   ;;  %v5300_v25 = vld [vmem:[%s6436_s7 + $0x58c] ss:$16 sps:$4 sm:$0xff]  }
 0x1ef   : > { %v3733_v39 = vpop.f32.mrf.mxu1  ;;  %4027 = vmatprep.subr.bf16.mxu1 %v5243_v27  ;;  %v6796_v46 = vadd.f32 %v3731_v30, %v3691_v37  ;;  %v3693_v47 = vadd.f32 %v3692_v38, %v1517_v28  ;;  %4057 = vmatprep.mubr.bf16.mxu1 %v6528_v32  ;;  %v5250_v32 = vld [vmem:[%s6436_s7 + $0x388] ss:$16 sps:$4 sm:$0xff]   ;;  %v5303_v26 = vld [vmem:[%s6436_s7 + $0x68c] ss:$16 sps:$4 sm:$0xff]  }
 0x1f0   : > { %v3694_v44 = vpop.f32.mrf.mxu0  ;;  %v5298_v27 = vld [vmem:[%s6436_s7 + $0x588] ss:$16 sps:$4 sm:$0xff]   ;;  %v5309_v29 = vld [vmem:[%s6436_s7 + $0x66c] ss:$16 sps:$4 sm:$0xff]  }
 0x1f1   : > { %v3735_v50 = vpop.f32.mrf.mxu1  ;;  %v6801_v51 = vadd.f32 %v3733_v39, %v3693_v47  ;;  %4003 = vmatpush2.bf16.msra.mxu0 %v5238_v31  ;;  %v5301_v28 = vld [vmem:[%s6436_s7 + $0x688] ss:$16 sps:$4 sm:$0xff]   ;;  %v5315_v37 = vld [vmem:[%s6436_s7 + $0x64c] ss:$16 sps:$4 sm:$0xff]  }
 0x1f2   : > { %4028 = vmatpush1.bf16.msra.mxu1 %v5241_v36  ;;  %v3695_v52 = vpop.f32.mrf.mxu0  ;;  %4004 = vmatprep.subr.bf16.mxu0 %v5246_v40  ;;  %v5304_v30 = vld [vmem:[%s6436_s7 + $0x568] ss:$16 sps:$4 sm:$0xff]   ;;  %v5312_v36 = vld [vmem:[%s6436_s7 + $0x54c] ss:$16 sps:$4 sm:$0xff]  }
 0x1f3   : > { %v3736_v53 = vpop.f32.mrf.mxu1  ;;  %4029 = vmatprep.subr.bf16.mxu1 %v5249_v41  ;;  %v5307_v31 = vld [vmem:[%s6436_s7 + $0x668] ss:$16 sps:$4 sm:$0xff]   ;;  %v5318_v40 = vld [vmem:[%s6436_s7 + $0x52c] ss:$16 sps:$4 sm:$0xff]  }
 0x1f4   : > { %v5310_v38 = vld [vmem:[%s6436_s7 + $0x548] ss:$16 sps:$4 sm:$0xff]   ;;  %v5321_v41 = vld [vmem:[%s6436_s7 + $0x62c] ss:$16 sps:$4 sm:$0xff]  }
 0x1f5   : > { %4005 = vmatpush2.bf16.msra.mxu0 %v5244_v48  ;;  %v5313_v39 = vld [vmem:[%s6436_s7 + $0x648] ss:$16 sps:$4 sm:$0xff]   ;;  %v5327_v44 = vld [vmem:[%s6436_s7 + $0x60c] ss:$16 sps:$4 sm:$0xff]  }
 0x1f6   : > { %4030 = vmatpush1.bf16.msra.mxu1 %v5247_v49  ;;  %4006 = vmatprep.subr.bf16.mxu0 %v5252_v56  ;;  %v5316_v47 = vld [vmem:[%s6436_s7 + $0x528] ss:$16 sps:$4 sm:$0xff]   ;;  %v5324_v49 = vld [vmem:[%s6436_s7 + $0x50c] ss:$16 sps:$4 sm:$0xff]  }
 0x1f7   : > { %4031 = vmatprep.subr.bf16.mxu1 %v5255_v57  ;;  %v5319_v48 = vld [vmem:[%s6436_s7 + $0x628] ss:$16 sps:$4 sm:$0xff]   ;;  %v5330_v53 = vld [vmem:[%s6436_s7 + $0x7ec] ss:$16 sps:$4 sm:$0xff]  }
 0x1f8   : > { %v5322_v50 = vld [vmem:[%s6436_s7 + $0x508] ss:$16 sps:$4 sm:$0xff]   ;;  %v5333_v56 = vld [vmem:[%s6436_s7 + $0x8ec] ss:$16 sps:$4 sm:$0xff]  }
 0x1f9   : > { %4007 = vmatpush2.bf16.msra.mxu0 %v5250_v32  ;;  %v5325_v52 = vld [vmem:[%s6436_s7 + $0x608] ss:$16 sps:$4 sm:$0xff]  }
 0x1fa   : > { %4032 = vmatpush1.bf16.msra.mxu1 %v5253_v43  ;;  %4008 = vmatprep.subr.bf16.mxu0 %v5258_v59  ;;  %v5328_v57 = vld [vmem:[%s6436_s7 + $0x7e8] ss:$16 sps:$4 sm:$0xff]   ;;  %v5336_v43 = vld [vmem:[%s6436_s7 + $0x7cc] ss:$16 sps:$4 sm:$0xff]  }
 0x1fb   : > { %4033 = vmatprep.subr.bf16.mxu1 %v5261_v62  ;;  %v5331_v32 = vld [vmem:[%s6436_s7 + $0x8e8] ss:$16 sps:$4 sm:$0xff]   ;;  %v5339_v59 = vld [vmem:[%s6436_s7 + $0x8cc] ss:$16 sps:$4 sm:$0xff]  }
 0x1fd   : > { %4009 = vmatpush2.bf16.msra.mxu0 %v5256_v63 }
 0x1fe   : > { %4034 = vmatpush1.bf16.msra.mxu1 %v5259_v0  ;;  %4010 = vmatprep.subr.bf16.mxu0 %v5264_v35  ;;  %v5334_v35 = vld [vmem:[%s6436_s7 + $0x7c8] ss:$16 sps:$4 sm:$0xff]  }
 0x1ff   : > { %4035 = vmatprep.subr.bf16.mxu1 %v5267_v1  ;;  %v5337_v1 = vld [vmem:[%s6436_s7 + $0x8c8] ss:$16 sps:$4 sm:$0xff]  }
 0x201   : > { %4011 = vmatpush2.bf16.msra.mxu0 %v5262_v2 }
 0x202   : > { %4036 = vmatpush1.bf16.msra.mxu1 %v5265_v3  ;;  %4012 = vmatprep.subr.bf16.mxu0 %v5270_v4  ;;  %v5342_v4 = vld [vmem:[%s6436_s7 + $0x7ac] ss:$16 sps:$4 sm:$0xff]  }
 0x203   : > { %4037 = vmatprep.subr.bf16.mxu1 %v5273_v5  ;;  %v5345_v5 = vld [vmem:[%s6436_s7 + $0x8ac] ss:$16 sps:$4 sm:$0xff]  }
 0x205   : > { %4013 = vmatpush2.bf16.msra.mxu0 %v5268_v8 }
 0x206   : > { %4038 = vmatpush1.bf16.msra.mxu1 %v5271_v9  ;;  %4014 = vmatprep.subr.bf16.mxu0 %v5276_v10 }
 0x207   : > { %4039 = vmatprep.subr.bf16.mxu1 %v5279_v11  ;;  %v5340_v11 = vld [vmem:[%s6436_s7 + $0x7a8] ss:$16 sps:$4 sm:$0xff]  }
 0x209   : > { %4015 = vmatpush2.bf16.msra.mxu0 %v5274_v58  ;;  %v5343_v58 = vld [vmem:[%s6436_s7 + $0x8a8] ss:$16 sps:$4 sm:$0xff]  }
 0x20a   : > { %4040 = vmatpush1.bf16.msra.mxu1 %v5277_v12  ;;  %4066 = vmatprep.subr.bf16.mxu0 %v5285_v13  ;;  %v5346_v13 = vld [vmem:[%s6436_s7 + $0x788] ss:$16 sps:$4 sm:$0xff]  }
 0x20b   : > { %4041 = vmatprep.subr.bf16.mxu1 %v5282_v42 }
 0x20c   : > { %4017 = vmatmul.mubr.bf16.vlgmr.msra.gmra.mxu0 %v6520_v45  ;;  %v5295_v45 = vld [vmem:[%s6436_s7 + $0x6a8] ss:$16 sps:$4 sm:$0xff]  }
 0x20d   : > { %4067 = vmatpush1.bf16.msra.mxu0 %v5283_v17  ;;  %4098 = vmatprep.mubr.bf16.mxu0 %v6532_v33  ;;  %v5306_v33 = vld [vmem:[%s6436_s7 + $0x56c] ss:$16 sps:$4 sm:$0xff]  }
 0x20e   : > { %4042 = vmatpush2.bf16.msra.mxu1 %v5280_v16  ;;  %4068 = vmatprep.subr.bf16.mxu0 %v5291_v20  ;;  %v5349_v16 = vld [vmem:[%s6436_s7 + $0x888] ss:$16 sps:$4 sm:$0xff]   ;;  %v5354_v17 = vld [vmem:[%s6436_s7 + $0x76c] ss:$16 sps:$4 sm:$0xff]  }
 0x20f   : > { %4043 = vmatprep.subr.bf16.mxu1 %v5288_v18  ;;  %v5357_v18 = vld [vmem:[%s6436_s7 + $0x86c] ss:$16 sps:$4 sm:$0xff]   ;;  %v5352_v20 = vld [vmem:[%s6436_s7 + $0x768] ss:$16 sps:$4 sm:$0xff]  }
 0x211   : > { %4069 = vmatpush1.bf16.msra.mxu0 %v5289_v21  ;;  %v5360_v21 = vld [vmem:[%s6436_s7 + $0x74c] ss:$16 sps:$4 sm:$0xff]  }
 0x212   : > { %4044 = vmatpush2.bf16.msra.mxu1 %v5286_v34  ;;  %4070 = vmatprep.subr.bf16.mxu0 %v5297_v23  ;;  %v5355_v34 = vld [vmem:[%s6436_s7 + $0x868] ss:$16 sps:$4 sm:$0xff]  }
 0x213   : > { %4045 = vmatprep.subr.bf16.mxu1 %v5294_v22  ;;  %v5363_v22 = vld [vmem:[%s6436_s7 + $0x84c] ss:$16 sps:$4 sm:$0xff]   ;;  %v5358_v23 = vld [vmem:[%s6436_s7 + $0x748] ss:$16 sps:$4 sm:$0xff]  }
 0x215   : > { %4071 = vmatpush1.bf16.msra.mxu0 %v5295_v45  ;;  %v5366_v45 = vld [vmem:[%s6436_s7 + $0x72c] ss:$16 sps:$4 sm:$0xff]  }
 0x216   : > { %4046 = vmatpush2.bf16.msra.mxu1 %v5292_v24  ;;  %4072 = vmatprep.subr.bf16.mxu0 %v5303_v26  ;;  %v5361_v24 = vld [vmem:[%s6436_s7 + $0x848] ss:$16 sps:$4 sm:$0xff]  }
 0x217   : > { %4047 = vmatprep.subr.bf16.mxu1 %v5300_v25  ;;  %v5369_v25 = vld [vmem:[%s6436_s7 + $0x82c] ss:$16 sps:$4 sm:$0xff]   ;;  %v5364_v26 = vld [vmem:[%s6436_s7 + $0x728] ss:$16 sps:$4 sm:$0xff]  }
 0x219   : > { %4073 = vmatpush1.bf16.msra.mxu0 %v5301_v28  ;;  %v5372_v28 = vld [vmem:[%s6436_s7 + $0x70c] ss:$16 sps:$4 sm:$0xff]  }
 0x21a   : > { %4048 = vmatpush2.bf16.msra.mxu1 %v5298_v27  ;;  %4074 = vmatprep.subr.bf16.mxu0 %v5309_v29  ;;  %v5367_v27 = vld [vmem:[%s6436_s7 + $0x828] ss:$16 sps:$4 sm:$0xff]  }
 0x21b   : > { %4049 = vmatprep.subr.bf16.mxu1 %v5306_v33  ;;  %v5375_v33 = vld [vmem:[%s6436_s7 + $0x80c] ss:$16 sps:$4 sm:$0xff]   ;;  %v5370_v29 = vld [vmem:[%s6436_s7 + $0x708] ss:$16 sps:$4 sm:$0xff]  }
 0x21d   : > { %4075 = vmatpush1.bf16.msra.mxu0 %v5307_v31  ;;  %v5378_v31 = vld [vmem:[%s6436_s7 + $0x9ec] ss:$16 sps:$4 sm:$0xff]  }
 0x21e   : > { %4050 = vmatpush2.bf16.msra.mxu1 %v5304_v30  ;;  %4076 = vmatprep.subr.bf16.mxu0 %v5315_v37  ;;  %v5373_v30 = vld [vmem:[%s6436_s7 + $0x808] ss:$16 sps:$4 sm:$0xff]  }
 0x21f   : > { %4051 = vmatprep.subr.bf16.mxu1 %v5312_v36  ;;  %v5381_v36 = vld [vmem:[%s6436_s7 + $0xaec] ss:$16 sps:$4 sm:$0xff]   ;;  %v5376_v37 = vld [vmem:[%s6436_s7 + $0x9e8] ss:$16 sps:$4 sm:$0xff]  }
 0x221   : > { %4077 = vmatpush1.bf16.msra.mxu0 %v5313_v39  ;;  %v5384_v39 = vld [vmem:[%s6436_s7 + $0x9cc] ss:$16 sps:$4 sm:$0xff]  }
 0x222   : > { %4052 = vmatpush2.bf16.msra.mxu1 %v5310_v38  ;;  %4078 = vmatprep.subr.bf16.mxu0 %v5321_v41  ;;  %v5379_v38 = vld [vmem:[%s6436_s7 + $0xae8] ss:$16 sps:$4 sm:$0xff]  }
 0x223   : > { %4053 = vmatprep.subr.bf16.mxu1 %v5318_v40  ;;  %v5387_v40 = vld [vmem:[%s6436_s7 + $0xacc] ss:$16 sps:$4 sm:$0xff]   ;;  %v5382_v41 = vld [vmem:[%s6436_s7 + $0x9c8] ss:$16 sps:$4 sm:$0xff]  }
 0x225   : > { %4079 = vmatpush1.bf16.msra.mxu0 %v5319_v48  ;;  %v5390_v48 = vld [vmem:[%s6436_s7 + $0x9ac] ss:$16 sps:$4 sm:$0xff]  }
 0x226   : > { %4054 = vmatpush2.bf16.msra.mxu1 %v5316_v47  ;;  %4080 = vmatprep.subr.bf16.mxu0 %v5327_v44  ;;  %v5385_v47 = vld [vmem:[%s6436_s7 + $0xac8] ss:$16 sps:$4 sm:$0xff]  }
 0x227   : > { %4055 = vmatprep.subr.bf16.mxu1 %v5324_v49  ;;  %v5393_v49 = vld [vmem:[%s6436_s7 + $0xaac] ss:$16 sps:$4 sm:$0xff]   ;;  %v5388_v44 = vld [vmem:[%s6436_s7 + $0x9a8] ss:$16 sps:$4 sm:$0xff]  }
 0x229   : > { %4081 = vmatpush1.bf16.msra.mxu0 %v5325_v52  ;;  %v5399_v52 = vld [vmem:[%s6436_s7 + $0xa8c] ss:$16 sps:$4 sm:$0xff]  }
 0x22a   : > { %4056 = vmatpush2.bf16.msra.mxu1 %v5322_v50  ;;  %4082 = vmatprep.subr.bf16.mxu0 %v5330_v53  ;;  %v5396_v50 = vld [vmem:[%s6436_s7 + $0x98c] ss:$16 sps:$4 sm:$0xff]   ;;  %v5394_v53 = vld [vmem:[%s6436_s7 + $0x988] ss:$16 sps:$4 sm:$0xff]  }
 0x22b   : > { %4107 = vmatprep.subr.bf16.mxu1 %v5333_v56  ;;  %v5397_v56 = vld [vmem:[%s6436_s7 + $0xa88] ss:$16 sps:$4 sm:$0xff]  }
 0x22c   : > { %v3772_v62 = vpop.f32.mrf.mxu0 }
 0x22d   : > { %v3813_v63 = vpop.f32.mrf.mxu1  ;;  %4058 = vmatmul.mubr.bf16.vlgmr.msra.gmra.mxu1 %v6600_v54  ;;  %v3773_v0 = vadd.f32 %v3772_v62, %v6796_v46  ;;  %4083 = vmatpush2.bf16.msra.mxu0 %v5328_v57  ;;  %v5405_v57 = vld [vmem:[%s6436_s7 + $0xa6c] ss:$16 sps:$4 sm:$0xff]  }
 0x22e   : > { %4108 = vmatpush1.bf16.msra.mxu1 %v5331_v32  ;;  %v3774_v2 = vpop.f32.mrf.mxu0  ;;  %4084 = vmatprep.subr.bf16.mxu0 %v5336_v43  ;;  %v5400_v32 = vld [vmem:[%s6436_s7 + $0x968] ss:$16 sps:$4 sm:$0xff]   ;;  %v5411_v62 = vld [vmem:[%s6436_s7 + $0xa4c] ss:$16 sps:$4 sm:$0xff]  }
 0x22f   : > { %v3815_v3 = vpop.f32.mrf.mxu1  ;;  %4109 = vmatprep.subr.bf16.mxu1 %v5339_v59  ;;  %v6869_v8 = vadd.f32 %v3813_v63, %v3773_v0  ;;  %v3775_v54 = vadd.f32 %v3774_v2, %v6801_v51  ;;  %4139 = vmatprep.mubr.bf16.mxu1 %v6622_v60  ;;  %v5348_v51 = vld [vmem:[%s6436_s7 + $0x78c] ss:$16 sps:$4 sm:$0xff]   ;;  %v5403_v43 = vld [vmem:[%s6436_s7 + $0xa68] ss:$16 sps:$4 sm:$0xff]  }
 0x230   : > { %v3776_v46 = vpop.f32.mrf.mxu0  ;;  %v5351_v60 = vld [vmem:[%s6436_s7 + $0x88c] ss:$16 sps:$4 sm:$0xff]   ;;  %v5406_v63 = vld [vmem:[%s6436_s7 + $0x948] ss:$16 sps:$4 sm:$0xff]  }
 0x231   : > { %v3817_v9 = vpop.f32.mrf.mxu1  ;;  %v6873_v10 = vadd.f32 %v3815_v3, %v3775_v54  ;;  %4085 = vmatpush2.bf16.msra.mxu0 %v5334_v35  ;;  %v5408_v59 = vld [vmem:[%s6436_s7 + $0x94c] ss:$16 sps:$4 sm:$0xff]   ;;  %v5409_v0 = vld [vmem:[%s6436_s7 + $0xa48] ss:$16 sps:$4 sm:$0xff]  }
 0x232   : > { %4110 = vmatpush1.bf16.msra.mxu1 %v5337_v1  ;;  %v3777_v12 = vpop.f32.mrf.mxu0  ;;  %4086 = vmatprep.subr.bf16.mxu0 %v5342_v4  ;;  %v5414_v35 = vld [vmem:[%s6436_s7 + $0x92c] ss:$16 sps:$4 sm:$0xff]   ;;  %v5412_v2 = vld [vmem:[%s6436_s7 + $0x928] ss:$16 sps:$4 sm:$0xff]  }
 0x233   : > { %v3818_v42 = vpop.f32.mrf.mxu1  ;;  %4111 = vmatprep.subr.bf16.mxu1 %v5345_v5  ;;  %v5417_v1 = vld [vmem:[%s6436_s7 + $0xa2c] ss:$16 sps:$4 sm:$0xff]   ;;  %v5415_v3 = vld [vmem:[%s6436_s7 + $0xa28] ss:$16 sps:$4 sm:$0xff]  }
 0x234   : > { %v5420_v4 = vld [vmem:[%s6436_s7 + $0x90c] ss:$16 sps:$4 sm:$0xff]   ;;  %v5418_v54 = vld [vmem:[%s6436_s7 + $0x908] ss:$16 sps:$4 sm:$0xff]  }
 0x235   : > { %4087 = vmatpush2.bf16.msra.mxu0 %v5340_v11  ;;  %v5423_v5 = vld [vmem:[%s6436_s7 + $0xa0c] ss:$16 sps:$4 sm:$0xff]   ;;  %v5421_v46 = vld [vmem:[%s6436_s7 + $0xa08] ss:$16 sps:$4 sm:$0xff]  }
 0x236   : > { %4112 = vmatpush1.bf16.msra.mxu1 %v5343_v58  ;;  %4088 = vmatprep.subr.bf16.mxu0 %v5348_v51  ;;  %v5426_v9 = vld [vmem:[%s6436_s7 + $0xbec] ss:$16 sps:$4 sm:$0xff]   ;;  %v5424_v58 = vld [vmem:[%s6436_s7 + $0xbe8] ss:$16 sps:$4 sm:$0xff]  }
 0x237   : > { %4113 = vmatprep.subr.bf16.mxu1 %v5351_v60  ;;  %v5429_v11 = vld [vmem:[%s6436_s7 + $0xcec] ss:$16 sps:$4 sm:$0xff]   ;;  %v5427_v12 = vld [vmem:[%s6436_s7 + $0xce8] ss:$16 sps:$4 sm:$0xff]  }
 0x238   : > { %v5432_v42 = vld [vmem:[%s6436_s7 + $0xbcc] ss:$16 sps:$4 sm:$0xff]  }
 0x239   : > { %4089 = vmatpush2.bf16.msra.mxu0 %v5346_v13  ;;  %v5435_v51 = vld [vmem:[%s6436_s7 + $0xccc] ss:$16 sps:$4 sm:$0xff]  }
 0x23a   : > { %4114 = vmatpush1.bf16.msra.mxu1 %v5349_v16  ;;  %4090 = vmatprep.subr.bf16.mxu0 %v5354_v17  ;;  %v5430_v16 = vld [vmem:[%s6436_s7 + $0xbc8] ss:$16 sps:$4 sm:$0xff]  }
 0x23b   : > { %4115 = vmatprep.subr.bf16.mxu1 %v5357_v18  ;;  %v5433_v17 = vld [vmem:[%s6436_s7 + $0xcc8] ss:$16 sps:$4 sm:$0xff]  }
 0x23d   : > { %4091 = vmatpush2.bf16.msra.mxu0 %v5352_v20 }
 0x23e   : > { %4116 = vmatpush1.bf16.msra.mxu1 %v5355_v34  ;;  %4092 = vmatprep.subr.bf16.mxu0 %v5360_v21  ;;  %v5438_v34 = vld [vmem:[%s6436_s7 + $0xbac] ss:$16 sps:$4 sm:$0xff]  }
 0x23f   : > { %4117 = vmatprep.subr.bf16.mxu1 %v5363_v22  ;;  %v5441_v21 = vld [vmem:[%s6436_s7 + $0xcac] ss:$16 sps:$4 sm:$0xff]  }
 0x241   : > { %4093 = vmatpush2.bf16.msra.mxu0 %v5358_v23  ;;  %v5436_v23 = vld [vmem:[%s6436_s7 + $0xba8] ss:$16 sps:$4 sm:$0xff]  }
 0x242   : > { %4118 = vmatpush1.bf16.msra.mxu1 %v5361_v24  ;;  %4094 = vmatprep.subr.bf16.mxu0 %v5366_v45  ;;  %v5439_v24 = vld [vmem:[%s6436_s7 + $0xca8] ss:$16 sps:$4 sm:$0xff]  }
 0x243   : > { %4119 = vmatprep.subr.bf16.mxu1 %v5369_v25 }
 0x245   : > { %4095 = vmatpush2.bf16.msra.mxu0 %v5364_v26  ;;  %v5444_v26 = vld [vmem:[%s6436_s7 + $0xb8c] ss:$16 sps:$4 sm:$0xff]  }
 0x246   : > { %4120 = vmatpush1.bf16.msra.mxu1 %v5367_v27  ;;  %4096 = vmatprep.subr.bf16.mxu0 %v5372_v28  ;;  %v5447_v27 = vld [vmem:[%s6436_s7 + $0xc8c] ss:$16 sps:$4 sm:$0xff]   ;;  %v5445_v28 = vld [vmem:[%s6436_s7 + $0xc88] ss:$16 sps:$4 sm:$0xff]  }
 0x247   : > { %4121 = vmatprep.subr.bf16.mxu1 %v5375_v33  ;;  %v5450_v33 = vld [vmem:[%s6436_s7 + $0xb6c] ss:$16 sps:$4 sm:$0xff]  }
 0x249   : > { %4097 = vmatpush2.bf16.msra.mxu0 %v5370_v29  ;;  %v5453_v29 = vld [vmem:[%s6436_s7 + $0xc6c] ss:$16 sps:$4 sm:$0xff]  }
 0x24a   : > { %4122 = vmatpush1.bf16.msra.mxu1 %v5373_v30  ;;  %4148 = vmatprep.subr.bf16.mxu0 %v5381_v36  ;;  %v5448_v30 = vld [vmem:[%s6436_s7 + $0xb68] ss:$16 sps:$4 sm:$0xff]   ;;  %v5456_v36 = vld [vmem:[%s6436_s7 + $0xb4c] ss:$16 sps:$4 sm:$0xff]  }
 0x24b   : > { %4123 = vmatprep.subr.bf16.mxu1 %v5378_v31  ;;  %v5451_v31 = vld [vmem:[%s6436_s7 + $0xc68] ss:$16 sps:$4 sm:$0xff]  }
 0x24c   : > { %4099 = vmatmul.mubr.bf16.vlgmr.msra.gmra.mxu0 %v6604_v55  ;;  %v5391_v55 = vld [vmem:[%s6436_s7 + $0xaa8] ss:$16 sps:$4 sm:$0xff]  }
 0x24d   : > { %4149 = vmatpush1.bf16.msra.mxu0 %v5379_v38  ;;  %4180 = vmatprep.mubr.bf16.mxu0 %v6626_v61  ;;  %v5402_v61 = vld [vmem:[%s6436_s7 + $0x96c] ss:$16 sps:$4 sm:$0xff]   ;;  %v5454_v38 = vld [vmem:[%s6436_s7 + $0xb48] ss:$16 sps:$4 sm:$0xff]  }
 0x24e   : > { %4124 = vmatpush2.bf16.msra.mxu1 %v5376_v37  ;;  %4150 = vmatprep.subr.bf16.mxu0 %v5387_v40  ;;  %v5459_v37 = vld [vmem:[%s6436_s7 + $0xc4c] ss:$16 sps:$4 sm:$0xff]  }
 0x24f   : > { %4125 = vmatprep.subr.bf16.mxu1 %v5384_v39  ;;  %v5457_v39 = vld [vmem:[%s6436_s7 + $0xc48] ss:$16 sps:$4 sm:$0xff]   ;;  %v5462_v40 = vld [vmem:[%s6436_s7 + $0xb2c] ss:$16 sps:$4 sm:$0xff]  }
 0x251   : > { %4151 = vmatpush1.bf16.msra.mxu0 %v5385_v47  ;;  %v5460_v47 = vld [vmem:[%s6436_s7 + $0xb28] ss:$16 sps:$4 sm:$0xff]  }
 0x252   : > { %4126 = vmatpush2.bf16.msra.mxu1 %v5382_v41  ;;  %4152 = vmatprep.subr.bf16.mxu0 %v5393_v49  ;;  %v5465_v41 = vld [vmem:[%s6436_s7 + $0xc2c] ss:$16 sps:$4 sm:$0xff]  }
 0x253   : > { %4127 = vmatprep.subr.bf16.mxu1 %v5390_v48  ;;  %v5463_v48 = vld [vmem:[%s6436_s7 + $0xc28] ss:$16 sps:$4 sm:$0xff]   ;;  %v5468_v49 = vld [vmem:[%s6436_s7 + $0xb0c] ss:$16 sps:$4 sm:$0xff]  }
 0x255   : > { %4153 = vmatpush1.bf16.msra.mxu0 %v5391_v55  ;;  %v5466_v55 = vld [vmem:[%s6436_s7 + $0xb08] ss:$16 sps:$4 sm:$0xff]  }
 0x256   : > { %4128 = vmatpush2.bf16.msra.mxu1 %v5388_v44  ;;  %4154 = vmatprep.subr.bf16.mxu0 %v5399_v52  ;;  %v5471_v44 = vld [vmem:[%s6436_s7 + $0xc0c] ss:$16 sps:$4 sm:$0xff]  }
 0x257   : > { %4129 = vmatprep.subr.bf16.mxu1 %v5396_v50  ;;  %v5469_v50 = vld [vmem:[%s6436_s7 + $0xc08] ss:$16 sps:$4 sm:$0xff]  }
 0x259   : > { %4155 = vmatpush1.bf16.msra.mxu0 %v5397_v56 }
 0x25a   : > { %4130 = vmatpush2.bf16.msra.mxu1 %v5394_v53  ;;  %4156 = vmatprep.subr.bf16.mxu0 %v5405_v57  ;;  %v5472_v57 = vld [vmem:[%s7009_s0 + $0x30] ss:$0 sps:$4 sm:$0xff]  }
 0x25b   : > { %4131 = vmatprep.subr.bf16.mxu1 %v5402_v61 }
 0x25d   : > { %4157 = vmatpush1.bf16.msra.mxu0 %v5403_v43 }
 0x25e   : > { %4132 = vmatpush2.bf16.msra.mxu1 %v5400_v32  ;;  %4158 = vmatprep.subr.bf16.mxu0 %v5411_v62 }
 0x25f   : > { %4133 = vmatprep.subr.bf16.mxu1 %v5408_v59 }
 0x261   : > { %4159 = vmatpush1.bf16.msra.mxu0 %v5409_v0 }
 0x262   : > { %4134 = vmatpush2.bf16.msra.mxu1 %v5406_v63  ;;  %4160 = vmatprep.subr.bf16.mxu0 %v5417_v1 }
 0x263   : > { %4135 = vmatprep.subr.bf16.mxu1 %v5414_v35 }
 0x265   : > { %4161 = vmatpush1.bf16.msra.mxu0 %v5415_v3  ;;  %v1520_v3 = vsub.s32 2, %v6774_v15 }
 0x266   : > { %4136 = vmatpush2.bf16.msra.mxu1 %v5412_v2  ;;  %4162 = vmatprep.subr.bf16.mxu0 %v5423_v5 }
 0x267   : > { %4137 = vmatprep.subr.bf16.mxu1 %v5420_v4  ;;  %v1524_v4 = vsub.s32 3, %v6774_v15  ;;  %v1521_v5 = vrot.slane %v6779_v19, %v1520_v3 }
 0x269   : > { %4163 = vmatpush1.bf16.msra.mxu0 %v5421_v46 }
 0x26a   : > { %4138 = vmatpush2.bf16.msra.mxu1 %v5418_v54  ;;  %4164 = vmatprep.subr.bf16.mxu0 %v5426_v9  ;;  %v1525_v54 = vrot.slane %v6779_v19, %v1524_v4 }
 0x26b   : > { %4189 = vmatprep.subr.bf16.mxu1 %v5429_v11 }
 0x26c   : > { %v6937_v60 = vpop.f32.mrf.mxu0 }
 0x26d   : > { %v6939_v13 = vpop.f32.mrf.mxu1  ;;  %4140 = vmatmul.mubr.bf16.vlgmr.msra.gmra.mxu1 %v6694_v6  ;;  %4165 = vmatpush2.bf16.msra.mxu0 %v5424_v58  ;;  %v3855_v52 = vadd.f32 %v6937_v60, %v6869_v8 }
 0x26e   : > { %4190 = vmatpush1.bf16.msra.mxu1 %v5427_v12  ;;  %v3856_v18 = vpop.f32.mrf.mxu0  ;;  %4166 = vmatprep.subr.bf16.mxu0 %v5432_v42 }
 0x26f   : > { %v6944_v20 = vpop.f32.mrf.mxu1  ;;  %4191 = vmatprep.subr.bf16.mxu1 %v5435_v51  ;;  %4221 = vmatprep.mubr.bf16.mxu1 %v5513_v14  ;;  %v5442_v14 = vld [vmem:[%s6436_s7 + $0xb88] ss:$16 sps:$4 sm:$0xff]   ;;  %v3857_v53 = vadd.f32 %v3856_v18, %v6873_v10  ;;  %v3896_v56 = vadd.f32 %v6939_v13, %v3855_v52 }
 0x270   : > { %v3858_v6 = vpop.f32.mrf.mxu0 }
 0x271   : > { %v3899_v22 = vpop.f32.mrf.mxu1  ;;  %4167 = vmatpush2.bf16.msra.mxu0 %v5430_v16  ;;  %v3898_v32 = vadd.f32 %v6944_v20, %v3857_v53 }
 0x272   : > { %4192 = vmatpush1.bf16.msra.mxu1 %v5433_v17  ;;  %v3859_v45 = vpop.f32.mrf.mxu0  ;;  %4168 = vmatprep.subr.bf16.mxu0 %v5438_v34 }
 0x273   : > { %v3900_v25 = vpop.f32.mrf.mxu1  ;;  %4193 = vmatprep.subr.bf16.mxu1 %v5441_v21 }
 0x275   : > { %4169 = vmatpush2.bf16.msra.mxu0 %v5436_v23 }
 0x276   : > { %4194 = vmatpush1.bf16.msra.mxu1 %v5439_v24  ;;  %4170 = vmatprep.subr.bf16.mxu0 %v5444_v26 }
 0x277   : > { %4195 = vmatprep.subr.bf16.mxu1 %v5447_v27 }
 0x279   : > { %4171 = vmatpush2.bf16.msra.mxu0 %v5442_v14 }
 0x27a   : > { %4196 = vmatpush1.bf16.msra.mxu1 %v5445_v28  ;;  %4172 = vmatprep.subr.bf16.mxu0 %v5450_v33 }
 0x27b   : > { %4197 = vmatprep.subr.bf16.mxu1 %v5453_v29 }
 0x27d   : > { %4173 = vmatpush2.bf16.msra.mxu0 %v5448_v30 }
 0x27e   : > { %4198 = vmatpush1.bf16.msra.mxu1 %v5451_v31  ;;  %4174 = vmatprep.subr.bf16.mxu0 %v5456_v36 }
 0x27f   : > { %4199 = vmatprep.subr.bf16.mxu1 %v5459_v37 }
 0x281   : > { %4175 = vmatpush2.bf16.msra.mxu0 %v5454_v38 }
 0x282   : > { %4200 = vmatpush1.bf16.msra.mxu1 %v5457_v39  ;;  %4176 = vmatprep.subr.bf16.mxu0 %v5462_v40 }
 0x283   : > { %4201 = vmatprep.subr.bf16.mxu1 %v5465_v41 }
 0x285   : > { %4177 = vmatpush2.bf16.msra.mxu0 %v5460_v47 }
 0x286   : > { %4202 = vmatpush1.bf16.msra.mxu1 %v5463_v48  ;;  %4178 = vmatprep.subr.bf16.mxu0 %v5468_v49 }
 0x287   : > { %4203 = vmatprep.subr.bf16.mxu1 %v5471_v44 }
 0x289   : > { %4179 = vmatpush2.bf16.msra.mxu0 %v5466_v55 }
 0x28a   : > { %4204 = vmatpush1.bf16.msra.mxu1 %v5469_v50 }
 0x28c   : > { %v3936_v61 = vpop.f32.mrf.mxu0  ;;  %4181 = vmatmul.mubr.bf16.vlgmr.msra.gmra.mxu0 %v6698_v7 }
 0x28d   : > { %4222 = vmatmul.mubr.bf16.vlgmr.msra.gmra.mxu1 %v5472_v57  ;;  %v3937_v43 = vadd.f32 %v3936_v61, %v3896_v56 }
 0x28e   : > { %v3938_v8 = vpop.f32.mrf.mxu0 }
 0x28f   : > { %v4230_v10 = vmax.f32 %v3937_v43, 0.0  ;;  %v3939_v59 = vadd.f32 %v3938_v8, %v3898_v32 }
 0x290   : > { %v3940_v62 = vpop.f32.mrf.mxu0 }
 0x291   : > { %4234 = vst [vmem:[%s6984_s5] sm:$0xff] %v4230_v10  ;;  %v4231_v7 = vmax.f32 %v3939_v59, 0.0 }
 0x292   : > { %v3941_v63 = vpop.f32.mrf.mxu0 }
 0x293   : > { %4235 = vst [vmem:[%s6984_s5 + $0x8] sm:$0xff] %v4231_v7 }
 0x2ad   : > { %v3977_v0 = vpop.f32.mrf.mxu1 }
 0x2ae   : > { %v3978_v46 = vadd.f32 %v3977_v0, %v1521_v5 }
 0x2af   : > { %v3979_v35 = vpop.f32.mrf.mxu1 }
 0x2b0   : > { %v3980_v11 = vadd.f32 %v3979_v35, %v1525_v54 }
 0x2b1   : > { %v3981_v1 = vpop.f32.mrf.mxu1 }
 0x2b3   : > { %v3982_v2 = vpop.f32.mrf.mxu1 }
 0x2cc   : > { %v4018_v9 = vpop.f32.mrf.mxu0 }
 0x2cd   : > { %v4019_v58 = vadd.f32 %v4018_v9, %v3978_v46 }
 0x2ce   : > { %v4020_v12 = vpop.f32.mrf.mxu0 }
 0x2cf   : > { %v4021_v42 = vadd.f32 %v4020_v12, %v3980_v11 }
 0x2d0   : > { %v4022_v51 = vpop.f32.mrf.mxu0 }
 0x2d2   : > { %v4023_v60 = vpop.f32.mrf.mxu0 }
 0x2ed   : > { %v4059_v13 = vpop.f32.mrf.mxu1 }
 0x2ee   : > { %v4060_v16 = vadd.f32 %v4059_v13, %v4019_v58 }
 0x2ef   : > { %v4061_v17 = vpop.f32.mrf.mxu1 }
 0x2f0   : > { %v4062_v18 = vadd.f32 %v4061_v17, %v4021_v42 }
 0x2f1   : > { %v4063_v20 = vpop.f32.mrf.mxu1 }
 0x2f3   : > { %v4064_v34 = vpop.f32.mrf.mxu1 }
 0x30c   : > { %v4100_v21 = vpop.f32.mrf.mxu0 }
 0x30d   : > { %v4101_v25 = vadd.f32 %v4100_v21, %v4060_v16 }
 0x30e   : > { %v4102_v15 = vpop.f32.mrf.mxu0 }
 0x30f   : > { %v4103_v26 = vadd.f32 %v4102_v15, %v4062_v18 }
 0x310   : > { %v4104_v6 = vpop.f32.mrf.mxu0 }
 0x312   : > { %v4105_v22 = vpop.f32.mrf.mxu0 }
 0x32d   : > { %v4141_v23 = vpop.f32.mrf.mxu1 }
 0x32e   : > { %v4142_v27 = vadd.f32 %v4141_v23, %v4101_v25 }
 0x32f   : > { %v4143_v19 = vpop.f32.mrf.mxu1 }
 0x330   : > { %v4144_v33 = vadd.f32 %v4143_v19, %v4103_v26 }
 0x331   : > { %v4145_v24 = vpop.f32.mrf.mxu1 }
 0x333   : > { %v4146_v45 = vpop.f32.mrf.mxu1 }
 0x34c   : > { %v4182_v14 = vpop.f32.mrf.mxu0 }
 0x34d   : > { %v4223_v28 = vpop.f32.mrf.mxu1  ;;  %v4183_v29 = vadd.f32 %v4182_v14, %v4142_v27 }
 0x34e   : > { %v4184_v30 = vpop.f32.mrf.mxu0 }
 0x34f   : > { %v4225_v31 = vpop.f32.mrf.mxu1  ;;  %v4224_v36 = vadd.f32 %v4223_v28, %v4183_v29  ;;  %v4185_v37 = vadd.f32 %v4184_v30, %v4144_v33 }
 0x350   : > { %v4186_v38 = vpop.f32.mrf.mxu0 }
 0x351   : > { %v4227_v39 = vpop.f32.mrf.mxu1  ;;  %v4232_v40 = vmax.f32 %v4224_v36, 0.0  ;;  %v4226_v41 = vadd.f32 %v4225_v31, %v4185_v37 }
 0x352   : > { %v4187_v47 = vpop.f32.mrf.mxu0 }
 0x353   : > { %v4228_v48 = vpop.f32.mrf.mxu1  ;;  %4236 = vst [vmem:[%s6984_s5 + $0x10] sm:$0xff] %v4232_v40  ;;  %v4233_v49 = vmax.f32 %v4226_v41, 0.0 }
 0x355   : > { %4237 = vst [vmem:[%s6984_s5 + $0x18] sm:$0xff] %v4233_v49 }
 0x356 PF: > { %s13_s16 = sadd.s32 1, %s5511_s16   ;;  %s7013_s12 = smov %s5499_s13 }
 0x357   : > { %p10_p10 = scmp.ge.s32.totalorder %s13_s16, 4   ;;  %s7014_s13 = smov %s5569_s20 }
 0x358   : > { %s7015_s14 = smov %s5507_s15  ;;  %s7016_s15 = smov %s7018_s17 }
 0x359   :  { %12 = sbr.rel (!%p10_p10) target bundleno = 3 (0x3), region = 96 }

// kernel: model_net_forward.13
= control target key start
LH: loop header
LB: loop body
LE: loop exit
PB: predicated region body
PF: predicated region fallthrough
CT: control target
= control target key end

     0   :  { %s1194_s1 = inlined_call_operand.vmem [shape: bf16[1024,128], index: 1, kind: input, shape index: {}]   ;;  %s1195_s0 = inlined_call_operand.vmem [shape: bf16[8,1024], index: 0, kind: input, shape index: {}]   ;;  %s1196_s2 = inlined_call_operand.vmem [shape: f32[1,128], index: 2, kind: input, shape index: {}]   ;;  %s1197_s3 = inlined_call_operand.vmem [shape: f32[8,128], index: 3, kind: output, shape index: {}]  }
   0x1   :  { %v892_v0 = vld [vmem:[%s1194_s1 + $0x78] sm:$0xff]   ;;  %v896_v4 = vld [vmem:[%s1194_s1 + $0x70] sm:$0xff]   ;;  %v900_v8 = vld [vmem:[%s1194_s1 + $0x68] sm:$0xff]  }
   0x2   :  { %v893_v1 = vld [vmem:[%s1194_s1 + $0xf8] sm:$0xff]   ;;  %804 = vmatprep.subr.bf16.mxu0 %v892_v0  ;;  %v897_v5 = vld [vmem:[%s1194_s1 + $0xf0] sm:$0xff]   ;;  %v901_v9 = vld [vmem:[%s1194_s1 + $0xe8] sm:$0xff]  }
   0x3   :  { %v894_v2 = vld [vmem:[%s1194_s1 + $0x38] sm:$0xff]   ;;  %826 = vmatprep.subr.bf16.mxu1 %v893_v1  ;;  %v898_v6 = vld [vmem:[%s1194_s1 + $0x30] sm:$0xff]   ;;  %v902_v10 = vld [vmem:[%s1194_s1 + $0x28] sm:$0xff]  }
   0x4   :  { %v895_v3 = vld [vmem:[%s1194_s1 + $0xb8] sm:$0xff]   ;;  %805 = vmatpush3.bf16.msra.mxu0 %v894_v2  ;;  %v899_v7 = vld [vmem:[%s1194_s1 + $0xb0] sm:$0xff]   ;;  %v903_v11 = vld [vmem:[%s1194_s1 + $0xa8] sm:$0xff]  }
   0x5   :  { %827 = vmatpush3.bf16.msra.mxu1 %v895_v3  ;;  %806 = vmatprep.subr.bf16.mxu0 %v896_v4  ;;  %v904_v12 = vld [vmem:[%s1194_s1 + $0x60] sm:$0xff]   ;;  %v908_v16 = vld [vmem:[%s1194_s1 + $0x58] sm:$0xff]   ;;  %v912_v20 = vld [vmem:[%s1194_s1 + $0x50] sm:$0xff]  }
   0x6   :  { %828 = vmatprep.subr.bf16.mxu1 %v897_v5  ;;  %v905_v13 = vld [vmem:[%s1194_s1 + $0xe0] sm:$0xff]   ;;  %v909_v17 = vld [vmem:[%s1194_s1 + $0xd8] sm:$0xff]   ;;  %v913_v21 = vld [vmem:[%s1194_s1 + $0xd0] sm:$0xff]  }
   0x7   :  { %v906_v14 = vld [vmem:[%s1194_s1 + $0x20] sm:$0xff]   ;;  %v910_v18 = vld [vmem:[%s1194_s1 + $0x18] sm:$0xff]   ;;  %v914_v22 = vld [vmem:[%s1194_s1 + $0x10] sm:$0xff]  }
   0x8   :  { %807 = vmatpush3.bf16.msra.mxu0 %v898_v6  ;;  %v907_v15 = vld [vmem:[%s1194_s1 + $0xa0] sm:$0xff]   ;;  %v911_v19 = vld [vmem:[%s1194_s1 + $0x98] sm:$0xff]   ;;  %v915_v23 = vld [vmem:[%s1194_s1 + $0x90] sm:$0xff]  }
   0x9   :  { %829 = vmatpush3.bf16.msra.mxu1 %v899_v7  ;;  %808 = vmatprep.subr.bf16.mxu0 %v900_v8  ;;  %v916_v24 = vld [vmem:[%s1194_s1 + $0x48] sm:$0xff]   ;;  %v920_v28 = vld [vmem:[%s1194_s1 + $0x40] sm:$0xff]   ;;  %v928_v38 = vld [vmem:[%s1194_s1 + $0x178] sm:$0xff]  }
   0xa   :  { %830 = vmatprep.subr.bf16.mxu1 %v901_v9  ;;  %v917_v25 = vld [vmem:[%s1194_s1 + $0xc8] sm:$0xff]   ;;  %v921_v29 = vld [vmem:[%s1194_s1 + $0xc0] sm:$0xff]   ;;  %v929_v39 = vld [vmem:[%s1194_s1 + $0x1f8] sm:$0xff]  }
   0xb   :  { %v918_v26 = vld [vmem:[%s1194_s1 + $0x8] sm:$0xff]   ;;  %v922_v30 = vld [vmem:[%s1194_s1] sm:$0xff]   ;;  %v930_v40 = vld [vmem:[%s1194_s1 + $0x138] sm:$0xff]  }
   0xc   :  { %809 = vmatpush3.bf16.msra.mxu0 %v902_v10  ;;  %v919_v27 = vld [vmem:[%s1194_s1 + $0x88] sm:$0xff]   ;;  %v923_v31 = vld [vmem:[%s1194_s1 + $0x80] sm:$0xff]   ;;  %v931_v41 = vld [vmem:[%s1194_s1 + $0x1b8] sm:$0xff]  }
   0xd   :  { %831 = vmatpush3.bf16.msra.mxu1 %v903_v11  ;;  %810 = vmatprep.subr.bf16.mxu0 %v904_v12  ;;  %v15_v32 = vld [vmem:[%s1195_s0] sm:$0xff]  ;;  %v16_v33 = vld [vmem:[%s1195_s0 + $0x8] sm:$0xff]  ;;  %v932_v42 = vld [vmem:[%s1194_s1 + $0x170] sm:$0xff]  }
   0xe   :  { %832 = vmatprep.subr.bf16.mxu1 %v905_v13  ;;  %v732_v34 = vcombine.low %v15_v32, %v15_v32  ;;  %v733_v35 = vcombine.high %v15_v32, %v15_v32  ;;  %v734_v36 = vcombine.low %v16_v33, %v16_v33  ;;  %v735_v37 = vcombine.high %v16_v33, %v16_v33  ;;  %v933_v43 = vld [vmem:[%s1194_s1 + $0x1f0] sm:$0xff]   ;;  %v936_v46 = vld [vmem:[%s1194_s1 + $0x168] sm:$0xff]   ;;  %v940_v50 = vld [vmem:[%s1194_s1 + $0x160] sm:$0xff]  }
   0xf   :  { %v934_v44 = vld [vmem:[%s1194_s1 + $0x130] sm:$0xff]   ;;  %v937_v47 = vld [vmem:[%s1194_s1 + $0x1e8] sm:$0xff]   ;;  %v941_v51 = vld [vmem:[%s1194_s1 + $0x1e0] sm:$0xff]  }
  0x10   :  { %811 = vmatpush3.bf16.msra.mxu0 %v906_v14  ;;  %598 = vmatprep.mubr.bf16.mxu0 %v733_v35  ;;  %v935_v45 = vld [vmem:[%s1194_s1 + $0x1b0] sm:$0xff]   ;;  %v938_v48 = vld [vmem:[%s1194_s1 + $0x128] sm:$0xff]   ;;  %v942_v52 = vld [vmem:[%s1194_s1 + $0x120] sm:$0xff]  }
  0x11   :  { %833 = vmatpush3.bf16.msra.mxu1 %v907_v15  ;;  %812 = vmatprep.subr.bf16.mxu0 %v908_v16  ;;  %v939_v49 = vld [vmem:[%s1194_s1 + $0x1a8] sm:$0xff]   ;;  %v943_v53 = vld [vmem:[%s1194_s1 + $0x1a0] sm:$0xff]   ;;  %v944_v54 = vld [vmem:[%s1194_s1 + $0x158] sm:$0xff]  }
  0x12   :  { %834 = vmatprep.subr.bf16.mxu1 %v909_v17  ;;  %638 = vmatprep.mubr.bf16.mxu1 %v735_v37  ;;  %v945_v55 = vld [vmem:[%s1194_s1 + $0x1d8] sm:$0xff]   ;;  %v948_v58 = vld [vmem:[%s1194_s1 + $0x150] sm:$0xff]   ;;  %v952_v62 = vld [vmem:[%s1194_s1 + $0x148] sm:$0xff]  }
  0x13   :  { %v946_v56 = vld [vmem:[%s1194_s1 + $0x118] sm:$0xff]   ;;  %v949_v59 = vld [vmem:[%s1194_s1 + $0x1d0] sm:$0xff]   ;;  %v953_v63 = vld [vmem:[%s1194_s1 + $0x1c8] sm:$0xff]  }
  0x14   :  { %813 = vmatpush3.bf16.msra.mxu0 %v910_v18  ;;  %v947_v57 = vld [vmem:[%s1194_s1 + $0x198] sm:$0xff]   ;;  %v950_v60 = vld [vmem:[%s1194_s1 + $0x110] sm:$0xff]   ;;  %v954_v0 = vld [vmem:[%s1194_s1 + $0x108] sm:$0xff]  }
  0x15   :  { %835 = vmatpush3.bf16.msra.mxu1 %v911_v19  ;;  %814 = vmatprep.subr.bf16.mxu0 %v912_v20  ;;  %v951_v61 = vld [vmem:[%s1194_s1 + $0x190] sm:$0xff]   ;;  %v955_v1 = vld [vmem:[%s1194_s1 + $0x188] sm:$0xff]   ;;  %v956_v2 = vld [vmem:[%s1194_s1 + $0x140] sm:$0xff]  }
  0x16   :  { %836 = vmatprep.subr.bf16.mxu1 %v913_v21  ;;  %v957_v3 = vld [vmem:[%s1194_s1 + $0x1c0] sm:$0xff]   ;;  %v17_v6 = vld [vmem:[%s1195_s0 + $0x10] sm:$0xff]  ;;  %v18_v9 = vld [vmem:[%s1195_s0 + $0x18] sm:$0xff] }
  0x17   :  { %v958_v4 = vld [vmem:[%s1194_s1 + $0x100] sm:$0xff]   ;;  %v736_v7 = vcombine.low %v17_v6, %v17_v6  ;;  %v737_v8 = vcombine.high %v17_v6, %v17_v6  ;;  %v738_v10 = vcombine.low %v18_v9, %v18_v9  ;;  %v739_v11 = vcombine.high %v18_v9, %v18_v9 }
  0x18   :  { %815 = vmatpush3.bf16.msra.mxu0 %v914_v22  ;;  %v959_v5 = vld [vmem:[%s1194_s1 + $0x180] sm:$0xff]  }
  0x19   :  { %837 = vmatpush3.bf16.msra.mxu1 %v915_v23  ;;  %816 = vmatprep.subr.bf16.mxu0 %v916_v24  ;;  %v731_v21 = vld [vmem:[%s1196_s2] ss:$0 sm:$0xff] }
  0x1a   :  { %838 = vmatprep.subr.bf16.mxu1 %v917_v25 }
  0x1c   :  { %817 = vmatpush3.bf16.msra.mxu0 %v918_v26 }
  0x1d   :  { %839 = vmatpush3.bf16.msra.mxu1 %v919_v27  ;;  %818 = vmatprep.subr.bf16.mxu0 %v920_v28 }
  0x1e   :  { %840 = vmatprep.subr.bf16.mxu1 %v921_v29 }
  0x20   :  { %819 = vmatpush3.bf16.msra.mxu0 %v922_v30 }
  0x21   :  { %841 = vmatpush3.bf16.msra.mxu1 %v923_v31  ;;  %848 = vmatprep.subr.bf16.mxu0 %v928_v38 }
  0x22   :  { %870 = vmatprep.subr.bf16.mxu1 %v929_v39 }
  0x23   :  { %599 = vmatmul.mubr.bf16.vlgmr.msra.gmra.mxu0 %v732_v34 }
  0x24   :  { %639 = vmatmul.mubr.bf16.vlgmr.msra.gmra.mxu1 %v734_v36  ;;  %849 = vmatpush3.bf16.msra.mxu0 %v930_v40 }
  0x25   :  { %871 = vmatpush3.bf16.msra.mxu1 %v931_v41  ;;  %850 = vmatprep.subr.bf16.mxu0 %v932_v42 }
  0x26   :  { %872 = vmatprep.subr.bf16.mxu1 %v933_v43  ;;  %678 = vmatprep.mubr.bf16.mxu0 %v737_v8 }
  0x27   :  { %718 = vmatprep.mubr.bf16.mxu1 %v739_v11 }
  0x28   :  { %851 = vmatpush3.bf16.msra.mxu0 %v934_v44 }
  0x29   :  { %873 = vmatpush3.bf16.msra.mxu1 %v935_v45  ;;  %852 = vmatprep.subr.bf16.mxu0 %v936_v46 }
  0x2a   :  { %874 = vmatprep.subr.bf16.mxu1 %v937_v47 }
  0x2c   :  { %853 = vmatpush3.bf16.msra.mxu0 %v938_v48 }
  0x2d   :  { %875 = vmatpush3.bf16.msra.mxu1 %v939_v49  ;;  %854 = vmatprep.subr.bf16.mxu0 %v940_v50 }
  0x2e   :  { %876 = vmatprep.subr.bf16.mxu1 %v941_v51 }
  0x30   :  { %855 = vmatpush3.bf16.msra.mxu0 %v942_v52 }
  0x31   :  { %877 = vmatpush3.bf16.msra.mxu1 %v943_v53  ;;  %856 = vmatprep.subr.bf16.mxu0 %v944_v54 }
  0x32   :  { %878 = vmatprep.subr.bf16.mxu1 %v945_v55 }
  0x34   :  { %857 = vmatpush3.bf16.msra.mxu0 %v946_v56 }
  0x35   :  { %879 = vmatpush3.bf16.msra.mxu1 %v947_v57  ;;  %858 = vmatprep.subr.bf16.mxu0 %v948_v58 }
  0x36   :  { %880 = vmatprep.subr.bf16.mxu1 %v949_v59 }
  0x38   :  { %859 = vmatpush3.bf16.msra.mxu0 %v950_v60 }
  0x39   :  { %881 = vmatpush3.bf16.msra.mxu1 %v951_v61  ;;  %860 = vmatprep.subr.bf16.mxu0 %v952_v62 }
  0x3a   :  { %882 = vmatprep.subr.bf16.mxu1 %v953_v63 }
  0x3c   :  { %861 = vmatpush3.bf16.msra.mxu0 %v954_v0 }
  0x3d   :  { %883 = vmatpush3.bf16.msra.mxu1 %v955_v1  ;;  %862 = vmatprep.subr.bf16.mxu0 %v956_v2 }
  0x3e   :  { %884 = vmatprep.subr.bf16.mxu1 %v957_v3 }
  0x40   :  { %863 = vmatpush3.bf16.msra.mxu0 %v958_v4 }
  0x41   :  { %885 = vmatpush3.bf16.msra.mxu1 %v959_v5 }
  0x43   :  { %679 = vmatmul.mubr.bf16.vlgmr.msra.gmra.mxu0 %v736_v7 }
  0x44   :  { %719 = vmatmul.mubr.bf16.vlgmr.msra.gmra.mxu1 %v738_v10 }
  0xe3   :  { %v820_v12 = vpop.f32.mrf.mxu0 }
  0xe4   :  { %v842_v13 = vpop.f32.mrf.mxu1 }
  0xe5   :  { %v821_v14 = vpop.f32.mrf.mxu0 }
  0xe6   :  { %v843_v15 = vpop.f32.mrf.mxu1  ;;  %v822_v20 = vadd.f32 %v821_v14, %v820_v12 }
  0xe7   :  { %v823_v16 = vpop.f32.mrf.mxu0  ;;  %v844_v23 = vadd.f32 %v843_v15, %v842_v13 }
  0xe8   :  { %v845_v17 = vpop.f32.mrf.mxu1  ;;  %v601_v22 = vadd.f32 %v822_v20, %v731_v21 }
  0xe9   :  { %v824_v18 = vpop.f32.mrf.mxu0 }
  0xea   :  { %v846_v19 = vpop.f32.mrf.mxu1  ;;  %v641_v28 = vadd.f32 %v844_v23, %v601_v22 }
 0x103   :  { %v864_v24 = vpop.f32.mrf.mxu0 }
 0x104   :  { %v886_v25 = vpop.f32.mrf.mxu1 }
 0x105   :  { %v865_v26 = vpop.f32.mrf.mxu0 }
 0x106   :  { %v887_v27 = vpop.f32.mrf.mxu1  ;;  %v866_v29 = vadd.f32 %v865_v26, %v864_v24 }
 0x107   :  { %v867_v30 = vpop.f32.mrf.mxu0  ;;  %v888_v33 = vadd.f32 %v887_v27, %v886_v25 }
 0x108   :  { %v889_v31 = vpop.f32.mrf.mxu1  ;;  %v681_v32 = vadd.f32 %v866_v29, %v641_v28 }
 0x109   :  { %v868_v34 = vpop.f32.mrf.mxu0 }
 0x10a   :  { %v890_v35 = vpop.f32.mrf.mxu1  ;;  %v721_v36 = vadd.f32 %v888_v33, %v681_v32 }
 0x10c   :  { %726 = vst [vmem:[%s1197_s3] sm:$0xff] %v721_v36 }

// kernel: model_net_forward.12
= control target key start
LH: loop header
LB: loop body
LE: loop exit
PB: predicated region body
PF: predicated region fallthrough
CT: control target
= control target key end

     0   :  { %s3573_s12 = smov 0   ;;  %s3575_s13 = smov 0   ;;  %s4489_s0 = inlined_call_operand.vmem [shape: bf16[8,1024], index: 0, kind: input, shape index: {}]   ;;  %s4490_s1 = inlined_call_operand.vmem [shape: bf16[1024,1024], index: 1, kind: input, shape index: {}]   ;;  %s4491_s2 = inlined_call_operand.vmem [shape: f32[1,1024], index: 2, kind: input, shape index: {}]   ;;  %s4492_s3 = inlined_call_operand.vmem [shape: f32[8,1024], index: 3, kind: output, shape index: {}]  }
   0x1   :  { %s3577_s14 = smov 0   ;;  %s3579_s15 = smov 0  }
   0x2   :  { %s3581_s16 = smov 0  }
   0x3 LB: > { %s22_s17 = sadd.s32 1, %s3547_s15  ;;  %p65_p1 = scmp.ne.s32.totalorder %s3539_s13, %s3535_s12  ;;  %s3551_s16 = sphi %s3581_s16, %s13_s16   ;;  %s3547_s15 = sphi %s3579_s15, %s4496_s15   ;;  %s3543_s14 = sphi %s3577_s14, %s4495_s14   ;;  %s3539_s13 = sphi %s3575_s13, %s4494_s13   ;;  %s3535_s12 = sphi %s3573_s12, %s4493_s12  }
   0x4   : > { %p23_p0 = scmp.ge.s32.totalorder %s22_s17, 2  ;;  %p66_p2 = scmp.eq.s32.totalorder %s3551_s16, 0 }
   0x5   : > { %s58_s19 = sadd.s32 1, %s3539_s13  ;;  %p2805_p5 = scmp.ge.s32.totalorder %s3551_s16, 2 }
   0x6   : > { %s4498_s17 = smov (%p23_p0, %s22_s17), 0  ;;  %p67_p3 = por %p66_p2, %p65_p1 }
   0x7   : > { %s55_s18 = ssub.s32 %s3547_s15, %s4498_s17  ;;  %153 = sbr.rel (%p2805_p5) target bundleno = 144 (0x90), region = 20 }
   0x8   : > { %p56_p4 = scmp.eq.s32.totalorder %s55_s18, 0 }
   0xa   : > { %s3608_s20 = scalar_select %p56_p4, %s3539_s13, %s58_s19  }
   0xc   : > { %156 = sbr.rel (!%p67_p3) target bundleno = 144 (0x90), region = 24  ;;  %s158_s21 = sand.u32 (%p67_p3), 1, %s3539_s13  }
   0xd   : > { %s3080_s22 = sshll.u32 (%p67_p3), %s3547_s15, 4  ;;  %s2806_s23 = sshll.u32 (%p67_p3), %s158_s21, 11 }
   0xe   : > { %s3616_s26 = scalar_lea.vmem (%p67_p3), %s4490_s1, %s3080_s22  ;;  %s3621_s27 = scalar_lea.vmem (%p67_p3), [#allocation2], %s2806_s23 }
   0xf   : > { %v176_v0 = vld [vmem:[%s3616_s26] sm:$0xff] (%p67_p3)  ;;  %v178_v1 = vld [vmem:[%s3616_s26 + $0x8] sm:$0xff] (%p67_p3) }
  0x10   : > { %v180_v2 = vld [vmem:[%s3616_s26 + $0x20] sm:$0xff] (%p67_p3)  ;;  %177 = vst [vmem:[%s3621_s27] sm:$0xff] (%p67_p3), %v176_v0  ;;  %179 = vst [vmem:[%s3621_s27 + $0x8] sm:$0xff] (%p67_p3), %v178_v1  ;;  %v182_v3 = vld [vmem:[%s3616_s26 + $0x28] sm:$0xff] (%p67_p3) }
  0x11   : > { %181 = vst [vmem:[%s3621_s27 + $0x10] sm:$0xff] %v180_v2  ;;  %v184_v4 = vld [vmem:[%s3616_s26 + $0x40] sm:$0xff]  ;;  %v186_v5 = vld [vmem:[%s3616_s26 + $0x48] sm:$0xff]  ;;  %183 = vst [vmem:[%s3621_s27 + $0x18] sm:$0xff] %v182_v3 }
  0x12   : > { %185 = vst [vmem:[%s3621_s27 + $0x20] sm:$0xff] %v184_v4  ;;  %187 = vst [vmem:[%s3621_s27 + $0x28] sm:$0xff] %v186_v5  ;;  %v188_v6 = vld [vmem:[%s3616_s26 + $0x60] sm:$0xff]  ;;  %v190_v7 = vld [vmem:[%s3616_s26 + $0x68] sm:$0xff] }
  0x13   : > { %v192_v8 = vld [vmem:[%s3616_s26 + $0x80] sm:$0xff]  ;;  %189 = vst [vmem:[%s3621_s27 + $0x30] sm:$0xff] %v188_v6  ;;  %191 = vst [vmem:[%s3621_s27 + $0x38] sm:$0xff] %v190_v7  ;;  %v194_v9 = vld [vmem:[%s3616_s26 + $0x88] sm:$0xff] }
  0x14   : > { %193 = vst [vmem:[%s3621_s27 + $0x40] sm:$0xff] %v192_v8  ;;  %v196_v10 = vld [vmem:[%s3616_s26 + $0xa0] sm:$0xff]  ;;  %v198_v11 = vld [vmem:[%s3616_s26 + $0xa8] sm:$0xff]  ;;  %195 = vst [vmem:[%s3621_s27 + $0x48] sm:$0xff] %v194_v9 }
  0x15   : > { %197 = vst [vmem:[%s3621_s27 + $0x50] sm:$0xff] %v196_v10  ;;  %199 = vst [vmem:[%s3621_s27 + $0x58] sm:$0xff] %v198_v11  ;;  %v200_v12 = vld [vmem:[%s3616_s26 + $0xc0] sm:$0xff]  ;;  %v202_v13 = vld [vmem:[%s3616_s26 + $0xc8] sm:$0xff] }
  0x16   : > { %v204_v14 = vld [vmem:[%s3616_s26 + $0xe0] sm:$0xff]  ;;  %201 = vst [vmem:[%s3621_s27 + $0x60] sm:$0xff] %v200_v12  ;;  %203 = vst [vmem:[%s3621_s27 + $0x68] sm:$0xff] %v202_v13  ;;  %v206_v15 = vld [vmem:[%s3616_s26 + $0xe8] sm:$0xff] }
  0x17   : > { %205 = vst [vmem:[%s3621_s27 + $0x70] sm:$0xff] %v204_v14  ;;  %v208_v16 = vld [vmem:[%s3616_s26 + $0x100] sm:$0xff]  ;;  %v210_v17 = vld [vmem:[%s3616_s26 + $0x108] sm:$0xff]  ;;  %207 = vst [vmem:[%s3621_s27 + $0x78] sm:$0xff] %v206_v15 }
  0x18   : > { %209 = vst [vmem:[%s3621_s27 + $0x80] sm:$0xff] %v208_v16  ;;  %211 = vst [vmem:[%s3621_s27 + $0x88] sm:$0xff] %v210_v17  ;;  %v212_v18 = vld [vmem:[%s3616_s26 + $0x120] sm:$0xff]  ;;  %v214_v19 = vld [vmem:[%s3616_s26 + $0x128] sm:$0xff] }
  0x19   : > { %v216_v20 = vld [vmem:[%s3616_s26 + $0x140] sm:$0xff]  ;;  %213 = vst [vmem:[%s3621_s27 + $0x90] sm:$0xff] %v212_v18  ;;  %215 = vst [vmem:[%s3621_s27 + $0x98] sm:$0xff] %v214_v19  ;;  %v218_v21 = vld [vmem:[%s3616_s26 + $0x148] sm:$0xff] }
  0x1a   : > { %217 = vst [vmem:[%s3621_s27 + $0xa0] sm:$0xff] %v216_v20  ;;  %v220_v22 = vld [vmem:[%s3616_s26 + $0x160] sm:$0xff]  ;;  %v222_v23 = vld [vmem:[%s3616_s26 + $0x168] sm:$0xff]  ;;  %219 = vst [vmem:[%s3621_s27 + $0xa8] sm:$0xff] %v218_v21 }
  0x1b   : > { %221 = vst [vmem:[%s3621_s27 + $0xb0] sm:$0xff] %v220_v22  ;;  %223 = vst [vmem:[%s3621_s27 + $0xb8] sm:$0xff] %v222_v23  ;;  %v224_v24 = vld [vmem:[%s3616_s26 + $0x180] sm:$0xff]  ;;  %v226_v25 = vld [vmem:[%s3616_s26 + $0x188] sm:$0xff] }
  0x1c   : > { %v228_v26 = vld [vmem:[%s3616_s26 + $0x1a0] sm:$0xff]  ;;  %225 = vst [vmem:[%s3621_s27 + $0xc0] sm:$0xff] %v224_v24  ;;  %227 = vst [vmem:[%s3621_s27 + $0xc8] sm:$0xff] %v226_v25  ;;  %v230_v27 = vld [vmem:[%s3616_s26 + $0x1a8] sm:$0xff] }
  0x1d   : > { %229 = vst [vmem:[%s3621_s27 + $0xd0] sm:$0xff] %v228_v26  ;;  %v232_v28 = vld [vmem:[%s3616_s26 + $0x1c0] sm:$0xff]  ;;  %v234_v29 = vld [vmem:[%s3616_s26 + $0x1c8] sm:$0xff]  ;;  %231 = vst [vmem:[%s3621_s27 + $0xd8] sm:$0xff] %v230_v27 }
  0x1e   : > { %233 = vst [vmem:[%s3621_s27 + $0xe0] sm:$0xff] %v232_v28  ;;  %235 = vst [vmem:[%s3621_s27 + $0xe8] sm:$0xff] %v234_v29  ;;  %v236_v30 = vld [vmem:[%s3616_s26 + $0x1e0] sm:$0xff]  ;;  %v238_v31 = vld [vmem:[%s3616_s26 + $0x1e8] sm:$0xff] }
  0x1f   : > { %v240_v32 = vld [vmem:[%s3616_s26 + $0x200] sm:$0xff]  ;;  %237 = vst [vmem:[%s3621_s27 + $0xf0] sm:$0xff] %v236_v30  ;;  %239 = vst [vmem:[%s3621_s27 + $0xf8] sm:$0xff] %v238_v31  ;;  %v242_v33 = vld [vmem:[%s3616_s26 + $0x208] sm:$0xff] }
  0x20   : > { %241 = vst [vmem:[%s3621_s27 + $0x100] sm:$0xff] %v240_v32  ;;  %v244_v34 = vld [vmem:[%s3616_s26 + $0x220] sm:$0xff]  ;;  %v246_v35 = vld [vmem:[%s3616_s26 + $0x228] sm:$0xff]  ;;  %243 = vst [vmem:[%s3621_s27 + $0x108] sm:$0xff] %v242_v33 }
  0x21   : > { %245 = vst [vmem:[%s3621_s27 + $0x110] sm:$0xff] %v244_v34  ;;  %247 = vst [vmem:[%s3621_s27 + $0x118] sm:$0xff] %v246_v35  ;;  %v248_v36 = vld [vmem:[%s3616_s26 + $0x240] sm:$0xff]  ;;  %v250_v37 = vld [vmem:[%s3616_s26 + $0x248] sm:$0xff] }
  0x22   : > { %v252_v38 = vld [vmem:[%s3616_s26 + $0x260] sm:$0xff]  ;;  %249 = vst [vmem:[%s3621_s27 + $0x120] sm:$0xff] %v248_v36  ;;  %251 = vst [vmem:[%s3621_s27 + $0x128] sm:$0xff] %v250_v37  ;;  %v254_v39 = vld [vmem:[%s3616_s26 + $0x268] sm:$0xff] }
  0x23   : > { %253 = vst [vmem:[%s3621_s27 + $0x130] sm:$0xff] %v252_v38  ;;  %v256_v40 = vld [vmem:[%s3616_s26 + $0x280] sm:$0xff]  ;;  %v258_v41 = vld [vmem:[%s3616_s26 + $0x288] sm:$0xff]  ;;  %255 = vst [vmem:[%s3621_s27 + $0x138] sm:$0xff] %v254_v39 }
  0x24   : > { %257 = vst [vmem:[%s3621_s27 + $0x140] sm:$0xff] %v256_v40  ;;  %259 = vst [vmem:[%s3621_s27 + $0x148] sm:$0xff] %v258_v41  ;;  %v260_v42 = vld [vmem:[%s3616_s26 + $0x2a0] sm:$0xff]  ;;  %v262_v43 = vld [vmem:[%s3616_s26 + $0x2a8] sm:$0xff] }
  0x25   : > { %v264_v44 = vld [vmem:[%s3616_s26 + $0x2c0] sm:$0xff]  ;;  %261 = vst [vmem:[%s3621_s27 + $0x150] sm:$0xff] %v260_v42  ;;  %263 = vst [vmem:[%s3621_s27 + $0x158] sm:$0xff] %v262_v43  ;;  %v266_v45 = vld [vmem:[%s3616_s26 + $0x2c8] sm:$0xff] }
  0x26   : > { %265 = vst [vmem:[%s3621_s27 + $0x160] sm:$0xff] %v264_v44  ;;  %v268_v46 = vld [vmem:[%s3616_s26 + $0x2e0] sm:$0xff]  ;;  %v270_v47 = vld [vmem:[%s3616_s26 + $0x2e8] sm:$0xff]  ;;  %267 = vst [vmem:[%s3621_s27 + $0x168] sm:$0xff] %v266_v45 }
  0x27   : > { %269 = vst [vmem:[%s3621_s27 + $0x170] sm:$0xff] %v268_v46  ;;  %271 = vst [vmem:[%s3621_s27 + $0x178] sm:$0xff] %v270_v47  ;;  %v272_v48 = vld [vmem:[%s3616_s26 + $0x300] sm:$0xff]  ;;  %v274_v49 = vld [vmem:[%s3616_s26 + $0x308] sm:$0xff] }
  0x28   : > { %v276_v50 = vld [vmem:[%s3616_s26 + $0x320] sm:$0xff]  ;;  %273 = vst [vmem:[%s3621_s27 + $0x180] sm:$0xff] %v272_v48  ;;  %275 = vst [vmem:[%s3621_s27 + $0x188] sm:$0xff] %v274_v49  ;;  %v278_v51 = vld [vmem:[%s3616_s26 + $0x328] sm:$0xff] }
  0x29   : > { %277 = vst [vmem:[%s3621_s27 + $0x190] sm:$0xff] %v276_v50  ;;  %v280_v52 = vld [vmem:[%s3616_s26 + $0x340] sm:$0xff]  ;;  %v282_v53 = vld [vmem:[%s3616_s26 + $0x348] sm:$0xff]  ;;  %279 = vst [vmem:[%s3621_s27 + $0x198] sm:$0xff] %v278_v51 }
  0x2a   : > { %281 = vst [vmem:[%s3621_s27 + $0x1a0] sm:$0xff] %v280_v52  ;;  %283 = vst [vmem:[%s3621_s27 + $0x1a8] sm:$0xff] %v282_v53  ;;  %v284_v54 = vld [vmem:[%s3616_s26 + $0x360] sm:$0xff]  ;;  %v286_v55 = vld [vmem:[%s3616_s26 + $0x368] sm:$0xff] }
  0x2b   : > { %v288_v56 = vld [vmem:[%s3616_s26 + $0x380] sm:$0xff]  ;;  %285 = vst [vmem:[%s3621_s27 + $0x1b0] sm:$0xff] %v284_v54  ;;  %287 = vst [vmem:[%s3621_s27 + $0x1b8] sm:$0xff] %v286_v55  ;;  %v290_v57 = vld [vmem:[%s3616_s26 + $0x388] sm:$0xff] }
  0x2c   : > { %289 = vst [vmem:[%s3621_s27 + $0x1c0] sm:$0xff] %v288_v56  ;;  %v292_v58 = vld [vmem:[%s3616_s26 + $0x3a0] sm:$0xff]  ;;  %v294_v59 = vld [vmem:[%s3616_s26 + $0x3a8] sm:$0xff]  ;;  %291 = vst [vmem:[%s3621_s27 + $0x1c8] sm:$0xff] %v290_v57 }
  0x2d   : > { %293 = vst [vmem:[%s3621_s27 + $0x1d0] sm:$0xff] %v292_v58  ;;  %295 = vst [vmem:[%s3621_s27 + $0x1d8] sm:$0xff] %v294_v59  ;;  %v296_v60 = vld [vmem:[%s3616_s26 + $0x3c0] sm:$0xff]  ;;  %v298_v61 = vld [vmem:[%s3616_s26 + $0x3c8] sm:$0xff] }
  0x2e   : > { %v300_v62 = vld [vmem:[%s3616_s26 + $0x3e0] sm:$0xff]  ;;  %297 = vst [vmem:[%s3621_s27 + $0x1e0] sm:$0xff] %v296_v60  ;;  %299 = vst [vmem:[%s3621_s27 + $0x1e8] sm:$0xff] %v298_v61  ;;  %v302_v63 = vld [vmem:[%s3616_s26 + $0x3e8] sm:$0xff] }
  0x2f   : > { %301 = vst [vmem:[%s3621_s27 + $0x1f0] sm:$0xff] %v300_v62  ;;  %v304_v0 = vld [vmem:[%s3616_s26 + $0x400] sm:$0xff]  ;;  %v306_v1 = vld [vmem:[%s3616_s26 + $0x408] sm:$0xff]  ;;  %303 = vst [vmem:[%s3621_s27 + $0x1f8] sm:$0xff] %v302_v63 }
  0x30   : > { %305 = vst [vmem:[%s3621_s27 + $0x200] sm:$0xff] %v304_v0  ;;  %307 = vst [vmem:[%s3621_s27 + $0x208] sm:$0xff] %v306_v1  ;;  %v308_v2 = vld [vmem:[%s3616_s26 + $0x420] sm:$0xff]  ;;  %v310_v3 = vld [vmem:[%s3616_s26 + $0x428] sm:$0xff] }
  0x31   : > { %v312_v4 = vld [vmem:[%s3616_s26 + $0x440] sm:$0xff]  ;;  %309 = vst [vmem:[%s3621_s27 + $0x210] sm:$0xff] %v308_v2  ;;  %311 = vst [vmem:[%s3621_s27 + $0x218] sm:$0xff] %v310_v3  ;;  %v314_v5 = vld [vmem:[%s3616_s26 + $0x448] sm:$0xff] }
  0x32   : > { %313 = vst [vmem:[%s3621_s27 + $0x220] sm:$0xff] %v312_v4  ;;  %v316_v6 = vld [vmem:[%s3616_s26 + $0x460] sm:$0xff]  ;;  %v318_v7 = vld [vmem:[%s3616_s26 + $0x468] sm:$0xff]  ;;  %315 = vst [vmem:[%s3621_s27 + $0x228] sm:$0xff] %v314_v5 }
  0x33   : > { %317 = vst [vmem:[%s3621_s27 + $0x230] sm:$0xff] %v316_v6  ;;  %319 = vst [vmem:[%s3621_s27 + $0x238] sm:$0xff] %v318_v7  ;;  %v320_v8 = vld [vmem:[%s3616_s26 + $0x480] sm:$0xff]  ;;  %v322_v9 = vld [vmem:[%s3616_s26 + $0x488] sm:$0xff] }
  0x34   : > { %v324_v10 = vld [vmem:[%s3616_s26 + $0x4a0] sm:$0xff]  ;;  %321 = vst [vmem:[%s3621_s27 + $0x240] sm:$0xff] %v320_v8  ;;  %323 = vst [vmem:[%s3621_s27 + $0x248] sm:$0xff] %v322_v9  ;;  %v326_v11 = vld [vmem:[%s3616_s26 + $0x4a8] sm:$0xff] }
  0x35   : > { %325 = vst [vmem:[%s3621_s27 + $0x250] sm:$0xff] %v324_v10  ;;  %v328_v12 = vld [vmem:[%s3616_s26 + $0x4c0] sm:$0xff]  ;;  %v330_v13 = vld [vmem:[%s3616_s26 + $0x4c8] sm:$0xff]  ;;  %327 = vst [vmem:[%s3621_s27 + $0x258] sm:$0xff] %v326_v11 }
  0x36   : > { %329 = vst [vmem:[%s3621_s27 + $0x260] sm:$0xff] %v328_v12  ;;  %331 = vst [vmem:[%s3621_s27 + $0x268] sm:$0xff] %v330_v13  ;;  %v332_v14 = vld [vmem:[%s3616_s26 + $0x4e0] sm:$0xff]  ;;  %v334_v15 = vld [vmem:[%s3616_s26 + $0x4e8] sm:$0xff] }
  0x37   : > { %v336_v16 = vld [vmem:[%s3616_s26 + $0x500] sm:$0xff]  ;;  %333 = vst [vmem:[%s3621_s27 + $0x270] sm:$0xff] %v332_v14  ;;  %335 = vst [vmem:[%s3621_s27 + $0x278] sm:$0xff] %v334_v15  ;;  %v338_v17 = vld [vmem:[%s3616_s26 + $0x508] sm:$0xff] }
  0x38   : > { %337 = vst [vmem:[%s3621_s27 + $0x280] sm:$0xff] %v336_v16  ;;  %v340_v18 = vld [vmem:[%s3616_s26 + $0x520] sm:$0xff]  ;;  %v342_v19 = vld [vmem:[%s3616_s26 + $0x528] sm:$0xff]  ;;  %339 = vst [vmem:[%s3621_s27 + $0x288] sm:$0xff] %v338_v17 }
  0x39   : > { %341 = vst [vmem:[%s3621_s27 + $0x290] sm:$0xff] %v340_v18  ;;  %343 = vst [vmem:[%s3621_s27 + $0x298] sm:$0xff] %v342_v19  ;;  %v344_v20 = vld [vmem:[%s3616_s26 + $0x540] sm:$0xff]  ;;  %v346_v21 = vld [vmem:[%s3616_s26 + $0x548] sm:$0xff] }
  0x3a   : > { %v348_v22 = vld [vmem:[%s3616_s26 + $0x560] sm:$0xff]  ;;  %345 = vst [vmem:[%s3621_s27 + $0x2a0] sm:$0xff] %v344_v20  ;;  %347 = vst [vmem:[%s3621_s27 + $0x2a8] sm:$0xff] %v346_v21  ;;  %v350_v23 = vld [vmem:[%s3616_s26 + $0x568] sm:$0xff] }
  0x3b   : > { %349 = vst [vmem:[%s3621_s27 + $0x2b0] sm:$0xff] %v348_v22  ;;  %v352_v24 = vld [vmem:[%s3616_s26 + $0x580] sm:$0xff]  ;;  %v354_v25 = vld [vmem:[%s3616_s26 + $0x588] sm:$0xff]  ;;  %351 = vst [vmem:[%s3621_s27 + $0x2b8] sm:$0xff] %v350_v23 }
  0x3c   : > { %353 = vst [vmem:[%s3621_s27 + $0x2c0] sm:$0xff] %v352_v24  ;;  %355 = vst [vmem:[%s3621_s27 + $0x2c8] sm:$0xff] %v354_v25  ;;  %v356_v26 = vld [vmem:[%s3616_s26 + $0x5a0] sm:$0xff]  ;;  %v358_v27 = vld [vmem:[%s3616_s26 + $0x5a8] sm:$0xff] }
  0x3d   : > { %v360_v28 = vld [vmem:[%s3616_s26 + $0x5c0] sm:$0xff]  ;;  %357 = vst [vmem:[%s3621_s27 + $0x2d0] sm:$0xff] %v356_v26  ;;  %359 = vst [vmem:[%s3621_s27 + $0x2d8] sm:$0xff] %v358_v27  ;;  %v362_v29 = vld [vmem:[%s3616_s26 + $0x5c8] sm:$0xff] }
  0x3e   : > { %361 = vst [vmem:[%s3621_s27 + $0x2e0] sm:$0xff] %v360_v28  ;;  %v364_v30 = vld [vmem:[%s3616_s26 + $0x5e0] sm:$0xff]  ;;  %v366_v31 = vld [vmem:[%s3616_s26 + $0x5e8] sm:$0xff]  ;;  %363 = vst [vmem:[%s3621_s27 + $0x2e8] sm:$0xff] %v362_v29 }
  0x3f   : > { %365 = vst [vmem:[%s3621_s27 + $0x2f0] sm:$0xff] %v364_v30  ;;  %367 = vst [vmem:[%s3621_s27 + $0x2f8] sm:$0xff] %v366_v31  ;;  %v368_v32 = vld [vmem:[%s3616_s26 + $0x600] sm:$0xff]  ;;  %v370_v33 = vld [vmem:[%s3616_s26 + $0x608] sm:$0xff] }
  0x40   : > { %v372_v34 = vld [vmem:[%s3616_s26 + $0x620] sm:$0xff]  ;;  %369 = vst [vmem:[%s3621_s27 + $0x300] sm:$0xff] %v368_v32  ;;  %371 = vst [vmem:[%s3621_s27 + $0x308] sm:$0xff] %v370_v33  ;;  %v374_v35 = vld [vmem:[%s3616_s26 + $0x628] sm:$0xff] }
  0x41   : > { %373 = vst [vmem:[%s3621_s27 + $0x310] sm:$0xff] %v372_v34  ;;  %v376_v36 = vld [vmem:[%s3616_s26 + $0x640] sm:$0xff]  ;;  %v378_v37 = vld [vmem:[%s3616_s26 + $0x648] sm:$0xff]  ;;  %375 = vst [vmem:[%s3621_s27 + $0x318] sm:$0xff] %v374_v35 }
  0x42   : > { %377 = vst [vmem:[%s3621_s27 + $0x320] sm:$0xff] %v376_v36  ;;  %379 = vst [vmem:[%s3621_s27 + $0x328] sm:$0xff] %v378_v37  ;;  %v380_v38 = vld [vmem:[%s3616_s26 + $0x660] sm:$0xff]  ;;  %v382_v39 = vld [vmem:[%s3616_s26 + $0x668] sm:$0xff] }
  0x43   : > { %v384_v40 = vld [vmem:[%s3616_s26 + $0x680] sm:$0xff]  ;;  %381 = vst [vmem:[%s3621_s27 + $0x330] sm:$0xff] %v380_v38  ;;  %383 = vst [vmem:[%s3621_s27 + $0x338] sm:$0xff] %v382_v39  ;;  %v386_v41 = vld [vmem:[%s3616_s26 + $0x688] sm:$0xff] }
  0x44   : > { %385 = vst [vmem:[%s3621_s27 + $0x340] sm:$0xff] %v384_v40  ;;  %v388_v42 = vld [vmem:[%s3616_s26 + $0x6a0] sm:$0xff]  ;;  %v390_v43 = vld [vmem:[%s3616_s26 + $0x6a8] sm:$0xff]  ;;  %387 = vst [vmem:[%s3621_s27 + $0x348] sm:$0xff] %v386_v41 }
  0x45   : > { %389 = vst [vmem:[%s3621_s27 + $0x350] sm:$0xff] %v388_v42  ;;  %391 = vst [vmem:[%s3621_s27 + $0x358] sm:$0xff] %v390_v43  ;;  %v392_v44 = vld [vmem:[%s3616_s26 + $0x6c0] sm:$0xff]  ;;  %v394_v45 = vld [vmem:[%s3616_s26 + $0x6c8] sm:$0xff] }
  0x46   : > { %v396_v46 = vld [vmem:[%s3616_s26 + $0x6e0] sm:$0xff]  ;;  %393 = vst [vmem:[%s3621_s27 + $0x360] sm:$0xff] %v392_v44  ;;  %395 = vst [vmem:[%s3621_s27 + $0x368] sm:$0xff] %v394_v45  ;;  %v398_v47 = vld [vmem:[%s3616_s26 + $0x6e8] sm:$0xff] }
  0x47   : > { %397 = vst [vmem:[%s3621_s27 + $0x370] sm:$0xff] %v396_v46  ;;  %v400_v48 = vld [vmem:[%s3616_s26 + $0x700] sm:$0xff]  ;;  %v402_v49 = vld [vmem:[%s3616_s26 + $0x708] sm:$0xff]  ;;  %399 = vst [vmem:[%s3621_s27 + $0x378] sm:$0xff] %v398_v47 }
  0x48   : > { %401 = vst [vmem:[%s3621_s27 + $0x380] sm:$0xff] %v400_v48  ;;  %403 = vst [vmem:[%s3621_s27 + $0x388] sm:$0xff] %v402_v49  ;;  %v404_v50 = vld [vmem:[%s3616_s26 + $0x720] sm:$0xff]  ;;  %v406_v51 = vld [vmem:[%s3616_s26 + $0x728] sm:$0xff] }
  0x49   : > { %v408_v52 = vld [vmem:[%s3616_s26 + $0x740] sm:$0xff]  ;;  %405 = vst [vmem:[%s3621_s27 + $0x390] sm:$0xff] %v404_v50  ;;  %407 = vst [vmem:[%s3621_s27 + $0x398] sm:$0xff] %v406_v51  ;;  %v410_v53 = vld [vmem:[%s3616_s26 + $0x748] sm:$0xff] }
  0x4a   : > { %409 = vst [vmem:[%s3621_s27 + $0x3a0] sm:$0xff] %v408_v52  ;;  %v412_v54 = vld [vmem:[%s3616_s26 + $0x760] sm:$0xff]  ;;  %v414_v55 = vld [vmem:[%s3616_s26 + $0x768] sm:$0xff]  ;;  %411 = vst [vmem:[%s3621_s27 + $0x3a8] sm:$0xff] %v410_v53 }
  0x4b   : > { %413 = vst [vmem:[%s3621_s27 + $0x3b0] sm:$0xff] %v412_v54  ;;  %415 = vst [vmem:[%s3621_s27 + $0x3b8] sm:$0xff] %v414_v55  ;;  %v416_v56 = vld [vmem:[%s3616_s26 + $0x780] sm:$0xff]  ;;  %v418_v57 = vld [vmem:[%s3616_s26 + $0x788] sm:$0xff] }
  0x4c   : > { %v420_v58 = vld [vmem:[%s3616_s26 + $0x7a0] sm:$0xff]  ;;  %417 = vst [vmem:[%s3621_s27 + $0x3c0] sm:$0xff] %v416_v56  ;;  %419 = vst [vmem:[%s3621_s27 + $0x3c8] sm:$0xff] %v418_v57  ;;  %v422_v59 = vld [vmem:[%s3616_s26 + $0x7a8] sm:$0xff] }
  0x4d   : > { %421 = vst [vmem:[%s3621_s27 + $0x3d0] sm:$0xff] %v420_v58  ;;  %v424_v60 = vld [vmem:[%s3616_s26 + $0x7c0] sm:$0xff]  ;;  %v426_v61 = vld [vmem:[%s3616_s26 + $0x7c8] sm:$0xff]  ;;  %423 = vst [vmem:[%s3621_s27 + $0x3d8] sm:$0xff] %v422_v59 }
  0x4e   : > { %425 = vst [vmem:[%s3621_s27 + $0x3e0] sm:$0xff] %v424_v60  ;;  %427 = vst [vmem:[%s3621_s27 + $0x3e8] sm:$0xff] %v426_v61  ;;  %v428_v62 = vld [vmem:[%s3616_s26 + $0x7e0] sm:$0xff]  ;;  %v430_v63 = vld [vmem:[%s3616_s26 + $0x7e8] sm:$0xff] }
  0x4f   : > { %v432_v0 = vld [vmem:[%s3616_s26 + $0x800] sm:$0xff]  ;;  %429 = vst [vmem:[%s3621_s27 + $0x3f0] sm:$0xff] %v428_v62  ;;  %431 = vst [vmem:[%s3621_s27 + $0x3f8] sm:$0xff] %v430_v63  ;;  %v434_v1 = vld [vmem:[%s3616_s26 + $0x808] sm:$0xff] }
  0x50   : > { %433 = vst [vmem:[%s3621_s27 + $0x400] sm:$0xff] %v432_v0  ;;  %v436_v2 = vld [vmem:[%s3616_s26 + $0x820] sm:$0xff]  ;;  %v438_v3 = vld [vmem:[%s3616_s26 + $0x828] sm:$0xff]  ;;  %435 = vst [vmem:[%s3621_s27 + $0x408] sm:$0xff] %v434_v1 }
  0x51   : > { %437 = vst [vmem:[%s3621_s27 + $0x410] sm:$0xff] %v436_v2  ;;  %439 = vst [vmem:[%s3621_s27 + $0x418] sm:$0xff] %v438_v3  ;;  %v440_v4 = vld [vmem:[%s3616_s26 + $0x840] sm:$0xff]  ;;  %v442_v5 = vld [vmem:[%s3616_s26 + $0x848] sm:$0xff] }
  0x52   : > { %v444_v6 = vld [vmem:[%s3616_s26 + $0x860] sm:$0xff]  ;;  %441 = vst [vmem:[%s3621_s27 + $0x420] sm:$0xff] %v440_v4  ;;  %443 = vst [vmem:[%s3621_s27 + $0x428] sm:$0xff] %v442_v5  ;;  %v446_v7 = vld [vmem:[%s3616_s26 + $0x868] sm:$0xff] }
  0x53   : > { %445 = vst [vmem:[%s3621_s27 + $0x430] sm:$0xff] %v444_v6  ;;  %v448_v8 = vld [vmem:[%s3616_s26 + $0x880] sm:$0xff]  ;;  %v450_v9 = vld [vmem:[%s3616_s26 + $0x888] sm:$0xff]  ;;  %447 = vst [vmem:[%s3621_s27 + $0x438] sm:$0xff] %v446_v7 }
  0x54   : > { %449 = vst [vmem:[%s3621_s27 + $0x440] sm:$0xff] %v448_v8  ;;  %451 = vst [vmem:[%s3621_s27 + $0x448] sm:$0xff] %v450_v9  ;;  %v452_v10 = vld [vmem:[%s3616_s26 + $0x8a0] sm:$0xff]  ;;  %v454_v11 = vld [vmem:[%s3616_s26 + $0x8a8] sm:$0xff] }
  0x55   : > { %v456_v12 = vld [vmem:[%s3616_s26 + $0x8c0] sm:$0xff]  ;;  %453 = vst [vmem:[%s3621_s27 + $0x450] sm:$0xff] %v452_v10  ;;  %455 = vst [vmem:[%s3621_s27 + $0x458] sm:$0xff] %v454_v11  ;;  %v458_v13 = vld [vmem:[%s3616_s26 + $0x8c8] sm:$0xff] }
  0x56   : > { %457 = vst [vmem:[%s3621_s27 + $0x460] sm:$0xff] %v456_v12  ;;  %v460_v14 = vld [vmem:[%s3616_s26 + $0x8e0] sm:$0xff]  ;;  %v462_v15 = vld [vmem:[%s3616_s26 + $0x8e8] sm:$0xff]  ;;  %459 = vst [vmem:[%s3621_s27 + $0x468] sm:$0xff] %v458_v13 }
  0x57   : > { %461 = vst [vmem:[%s3621_s27 + $0x470] sm:$0xff] %v460_v14  ;;  %463 = vst [vmem:[%s3621_s27 + $0x478] sm:$0xff] %v462_v15  ;;  %v464_v16 = vld [vmem:[%s3616_s26 + $0x900] sm:$0xff]  ;;  %v466_v17 = vld [vmem:[%s3616_s26 + $0x908] sm:$0xff] }
  0x58   : > { %v468_v18 = vld [vmem:[%s3616_s26 + $0x920] sm:$0xff]  ;;  %465 = vst [vmem:[%s3621_s27 + $0x480] sm:$0xff] %v464_v16  ;;  %467 = vst [vmem:[%s3621_s27 + $0x488] sm:$0xff] %v466_v17  ;;  %v470_v19 = vld [vmem:[%s3616_s26 + $0x928] sm:$0xff] }
  0x59   : > { %469 = vst [vmem:[%s3621_s27 + $0x490] sm:$0xff] %v468_v18  ;;  %v472_v20 = vld [vmem:[%s3616_s26 + $0x940] sm:$0xff]  ;;  %v474_v21 = vld [vmem:[%s3616_s26 + $0x948] sm:$0xff]  ;;  %471 = vst [vmem:[%s3621_s27 + $0x498] sm:$0xff] %v470_v19 }
  0x5a   : > { %473 = vst [vmem:[%s3621_s27 + $0x4a0] sm:$0xff] %v472_v20  ;;  %475 = vst [vmem:[%s3621_s27 + $0x4a8] sm:$0xff] %v474_v21  ;;  %v476_v22 = vld [vmem:[%s3616_s26 + $0x960] sm:$0xff]  ;;  %v478_v23 = vld [vmem:[%s3616_s26 + $0x968] sm:$0xff] }
  0x5b   : > { %v480_v24 = vld [vmem:[%s3616_s26 + $0x980] sm:$0xff]  ;;  %477 = vst [vmem:[%s3621_s27 + $0x4b0] sm:$0xff] %v476_v22  ;;  %479 = vst [vmem:[%s3621_s27 + $0x4b8] sm:$0xff] %v478_v23  ;;  %v482_v25 = vld [vmem:[%s3616_s26 + $0x988] sm:$0xff] }
  0x5c   : > { %481 = vst [vmem:[%s3621_s27 + $0x4c0] sm:$0xff] %v480_v24  ;;  %v484_v26 = vld [vmem:[%s3616_s26 + $0x9a0] sm:$0xff]  ;;  %v486_v27 = vld [vmem:[%s3616_s26 + $0x9a8] sm:$0xff]  ;;  %483 = vst [vmem:[%s3621_s27 + $0x4c8] sm:$0xff] %v482_v25 }
  0x5d   : > { %485 = vst [vmem:[%s3621_s27 + $0x4d0] sm:$0xff] %v484_v26  ;;  %487 = vst [vmem:[%s3621_s27 + $0x4d8] sm:$0xff] %v486_v27  ;;  %v488_v28 = vld [vmem:[%s3616_s26 + $0x9c0] sm:$0xff]  ;;  %v490_v29 = vld [vmem:[%s3616_s26 + $0x9c8] sm:$0xff] }
  0x5e   : > { %v492_v30 = vld [vmem:[%s3616_s26 + $0x9e0] sm:$0xff]  ;;  %489 = vst [vmem:[%s3621_s27 + $0x4e0] sm:$0xff] %v488_v28  ;;  %491 = vst [vmem:[%s3621_s27 + $0x4e8] sm:$0xff] %v490_v29  ;;  %v494_v31 = vld [vmem:[%s3616_s26 + $0x9e8] sm:$0xff] }
  0x5f   : > { %493 = vst [vmem:[%s3621_s27 + $0x4f0] sm:$0xff] %v492_v30  ;;  %v496_v32 = vld [vmem:[%s3616_s26 + $0xa00] sm:$0xff]  ;;  %v498_v33 = vld [vmem:[%s3616_s26 + $0xa08] sm:$0xff]  ;;  %495 = vst [vmem:[%s3621_s27 + $0x4f8] sm:$0xff] %v494_v31 }
  0x60   : > { %497 = vst [vmem:[%s3621_s27 + $0x500] sm:$0xff] %v496_v32  ;;  %499 = vst [vmem:[%s3621_s27 + $0x508] sm:$0xff] %v498_v33  ;;  %v500_v34 = vld [vmem:[%s3616_s26 + $0xa20] sm:$0xff]  ;;  %v502_v35 = vld [vmem:[%s3616_s26 + $0xa28] sm:$0xff] }
  0x61   : > { %v504_v36 = vld [vmem:[%s3616_s26 + $0xa40] sm:$0xff]  ;;  %501 = vst [vmem:[%s3621_s27 + $0x510] sm:$0xff] %v500_v34  ;;  %503 = vst [vmem:[%s3621_s27 + $0x518] sm:$0xff] %v502_v35  ;;  %v506_v37 = vld [vmem:[%s3616_s26 + $0xa48] sm:$0xff] }
  0x62   : > { %505 = vst [vmem:[%s3621_s27 + $0x520] sm:$0xff] %v504_v36  ;;  %v508_v38 = vld [vmem:[%s3616_s26 + $0xa60] sm:$0xff]  ;;  %v510_v39 = vld [vmem:[%s3616_s26 + $0xa68] sm:$0xff]  ;;  %507 = vst [vmem:[%s3621_s27 + $0x528] sm:$0xff] %v506_v37 }
  0x63   : > { %509 = vst [vmem:[%s3621_s27 + $0x530] sm:$0xff] %v508_v38  ;;  %511 = vst [vmem:[%s3621_s27 + $0x538] sm:$0xff] %v510_v39  ;;  %v512_v40 = vld [vmem:[%s3616_s26 + $0xa80] sm:$0xff]  ;;  %v514_v41 = vld [vmem:[%s3616_s26 + $0xa88] sm:$0xff] }
  0x64   : > { %v516_v42 = vld [vmem:[%s3616_s26 + $0xaa0] sm:$0xff]  ;;  %513 = vst [vmem:[%s3621_s27 + $0x540] sm:$0xff] %v512_v40  ;;  %515 = vst [vmem:[%s3621_s27 + $0x548] sm:$0xff] %v514_v41  ;;  %v518_v43 = vld [vmem:[%s3616_s26 + $0xaa8] sm:$0xff] }
  0x65   : > { %517 = vst [vmem:[%s3621_s27 + $0x550] sm:$0xff] %v516_v42  ;;  %v520_v44 = vld [vmem:[%s3616_s26 + $0xac0] sm:$0xff]  ;;  %v522_v45 = vld [vmem:[%s3616_s26 + $0xac8] sm:$0xff]  ;;  %519 = vst [vmem:[%s3621_s27 + $0x558] sm:$0xff] %v518_v43 }
  0x66   : > { %521 = vst [vmem:[%s3621_s27 + $0x560] sm:$0xff] %v520_v44  ;;  %523 = vst [vmem:[%s3621_s27 + $0x568] sm:$0xff] %v522_v45  ;;  %v524_v46 = vld [vmem:[%s3616_s26 + $0xae0] sm:$0xff]  ;;  %v526_v47 = vld [vmem:[%s3616_s26 + $0xae8] sm:$0xff] }
  0x67   : > { %v528_v48 = vld [vmem:[%s3616_s26 + $0xb00] sm:$0xff]  ;;  %525 = vst [vmem:[%s3621_s27 + $0x570] sm:$0xff] %v524_v46  ;;  %527 = vst [vmem:[%s3621_s27 + $0x578] sm:$0xff] %v526_v47  ;;  %v530_v49 = vld [vmem:[%s3616_s26 + $0xb08] sm:$0xff] }
  0x68   : > { %529 = vst [vmem:[%s3621_s27 + $0x580] sm:$0xff] %v528_v48  ;;  %v532_v50 = vld [vmem:[%s3616_s26 + $0xb20] sm:$0xff]  ;;  %v534_v51 = vld [vmem:[%s3616_s26 + $0xb28] sm:$0xff]  ;;  %531 = vst [vmem:[%s3621_s27 + $0x588] sm:$0xff] %v530_v49 }
  0x69   : > { %533 = vst [vmem:[%s3621_s27 + $0x590] sm:$0xff] %v532_v50  ;;  %535 = vst [vmem:[%s3621_s27 + $0x598] sm:$0xff] %v534_v51  ;;  %v536_v52 = vld [vmem:[%s3616_s26 + $0xb40] sm:$0xff]  ;;  %v538_v53 = vld [vmem:[%s3616_s26 + $0xb48] sm:$0xff] }
  0x6a   : > { %v540_v54 = vld [vmem:[%s3616_s26 + $0xb60] sm:$0xff]  ;;  %537 = vst [vmem:[%s3621_s27 + $0x5a0] sm:$0xff] %v536_v52  ;;  %539 = vst [vmem:[%s3621_s27 + $0x5a8] sm:$0xff] %v538_v53  ;;  %v542_v55 = vld [vmem:[%s3616_s26 + $0xb68] sm:$0xff] }
  0x6b   : > { %541 = vst [vmem:[%s3621_s27 + $0x5b0] sm:$0xff] %v540_v54  ;;  %v544_v56 = vld [vmem:[%s3616_s26 + $0xb80] sm:$0xff]  ;;  %v546_v57 = vld [vmem:[%s3616_s26 + $0xb88] sm:$0xff]  ;;  %543 = vst [vmem:[%s3621_s27 + $0x5b8] sm:$0xff] %v542_v55 }
  0x6c   : > { %545 = vst [vmem:[%s3621_s27 + $0x5c0] sm:$0xff] %v544_v56  ;;  %547 = vst [vmem:[%s3621_s27 + $0x5c8] sm:$0xff] %v546_v57  ;;  %v548_v58 = vld [vmem:[%s3616_s26 + $0xba0] sm:$0xff]  ;;  %v550_v59 = vld [vmem:[%s3616_s26 + $0xba8] sm:$0xff] }
  0x6d   : > { %v552_v60 = vld [vmem:[%s3616_s26 + $0xbc0] sm:$0xff]  ;;  %549 = vst [vmem:[%s3621_s27 + $0x5d0] sm:$0xff] %v548_v58  ;;  %551 = vst [vmem:[%s3621_s27 + $0x5d8] sm:$0xff] %v550_v59  ;;  %v554_v61 = vld [vmem:[%s3616_s26 + $0xbc8] sm:$0xff] }
  0x6e   : > { %553 = vst [vmem:[%s3621_s27 + $0x5e0] sm:$0xff] %v552_v60  ;;  %v556_v62 = vld [vmem:[%s3616_s26 + $0xbe0] sm:$0xff]  ;;  %v558_v63 = vld [vmem:[%s3616_s26 + $0xbe8] sm:$0xff]  ;;  %555 = vst [vmem:[%s3621_s27 + $0x5e8] sm:$0xff] %v554_v61 }
  0x6f   : > { %557 = vst [vmem:[%s3621_s27 + $0x5f0] sm:$0xff] %v556_v62  ;;  %559 = vst [vmem:[%s3621_s27 + $0x5f8] sm:$0xff] %v558_v63  ;;  %v560_v0 = vld [vmem:[%s3616_s26 + $0xc00] sm:$0xff]  ;;  %v562_v1 = vld [vmem:[%s3616_s26 + $0xc08] sm:$0xff] }
  0x70   : > { %v564_v2 = vld [vmem:[%s3616_s26 + $0xc20] sm:$0xff]  ;;  %561 = vst [vmem:[%s3621_s27 + $0x600] sm:$0xff] %v560_v0  ;;  %563 = vst [vmem:[%s3621_s27 + $0x608] sm:$0xff] %v562_v1  ;;  %v566_v3 = vld [vmem:[%s3616_s26 + $0xc28] sm:$0xff] }
  0x71   : > { %565 = vst [vmem:[%s3621_s27 + $0x610] sm:$0xff] %v564_v2  ;;  %v568_v4 = vld [vmem:[%s3616_s26 + $0xc40] sm:$0xff]  ;;  %v570_v5 = vld [vmem:[%s3616_s26 + $0xc48] sm:$0xff]  ;;  %567 = vst [vmem:[%s3621_s27 + $0x618] sm:$0xff] %v566_v3 }
  0x72   : > { %569 = vst [vmem:[%s3621_s27 + $0x620] sm:$0xff] %v568_v4  ;;  %571 = vst [vmem:[%s3621_s27 + $0x628] sm:$0xff] %v570_v5  ;;  %v572_v6 = vld [vmem:[%s3616_s26 + $0xc60] sm:$0xff]  ;;  %v574_v7 = vld [vmem:[%s3616_s26 + $0xc68] sm:$0xff] }
  0x73   : > { %v576_v8 = vld [vmem:[%s3616_s26 + $0xc80] sm:$0xff]  ;;  %573 = vst [vmem:[%s3621_s27 + $0x630] sm:$0xff] %v572_v6  ;;  %575 = vst [vmem:[%s3621_s27 + $0x638] sm:$0xff] %v574_v7  ;;  %v578_v9 = vld [vmem:[%s3616_s26 + $0xc88] sm:$0xff] }
  0x74   : > { %577 = vst [vmem:[%s3621_s27 + $0x640] sm:$0xff] %v576_v8  ;;  %v580_v10 = vld [vmem:[%s3616_s26 + $0xca0] sm:$0xff]  ;;  %v582_v11 = vld [vmem:[%s3616_s26 + $0xca8] sm:$0xff]  ;;  %579 = vst [vmem:[%s3621_s27 + $0x648] sm:$0xff] %v578_v9 }
  0x75   : > { %581 = vst [vmem:[%s3621_s27 + $0x650] sm:$0xff] %v580_v10  ;;  %583 = vst [vmem:[%s3621_s27 + $0x658] sm:$0xff] %v582_v11  ;;  %v584_v12 = vld [vmem:[%s3616_s26 + $0xcc0] sm:$0xff]  ;;  %v586_v13 = vld [vmem:[%s3616_s26 + $0xcc8] sm:$0xff] }
  0x76   : > { %v588_v14 = vld [vmem:[%s3616_s26 + $0xce0] sm:$0xff]  ;;  %585 = vst [vmem:[%s3621_s27 + $0x660] sm:$0xff] %v584_v12  ;;  %587 = vst [vmem:[%s3621_s27 + $0x668] sm:$0xff] %v586_v13  ;;  %v590_v15 = vld [vmem:[%s3616_s26 + $0xce8] sm:$0xff] }
  0x77   : > { %589 = vst [vmem:[%s3621_s27 + $0x670] sm:$0xff] %v588_v14  ;;  %v592_v16 = vld [vmem:[%s3616_s26 + $0xd00] sm:$0xff]  ;;  %v594_v17 = vld [vmem:[%s3616_s26 + $0xd08] sm:$0xff]  ;;  %591 = vst [vmem:[%s3621_s27 + $0x678] sm:$0xff] %v590_v15 }
  0x78   : > { %593 = vst [vmem:[%s3621_s27 + $0x680] sm:$0xff] %v592_v16  ;;  %595 = vst [vmem:[%s3621_s27 + $0x688] sm:$0xff] %v594_v17  ;;  %v596_v18 = vld [vmem:[%s3616_s26 + $0xd20] sm:$0xff]  ;;  %v598_v19 = vld [vmem:[%s3616_s26 + $0xd28] sm:$0xff] }
  0x79   : > { %v600_v20 = vld [vmem:[%s3616_s26 + $0xd40] sm:$0xff]  ;;  %597 = vst [vmem:[%s3621_s27 + $0x690] sm:$0xff] %v596_v18  ;;  %599 = vst [vmem:[%s3621_s27 + $0x698] sm:$0xff] %v598_v19  ;;  %v602_v21 = vld [vmem:[%s3616_s26 + $0xd48] sm:$0xff] }
  0x7a   : > { %601 = vst [vmem:[%s3621_s27 + $0x6a0] sm:$0xff] %v600_v20  ;;  %v604_v22 = vld [vmem:[%s3616_s26 + $0xd60] sm:$0xff]  ;;  %v606_v23 = vld [vmem:[%s3616_s26 + $0xd68] sm:$0xff]  ;;  %603 = vst [vmem:[%s3621_s27 + $0x6a8] sm:$0xff] %v602_v21 }
  0x7b   : > { %605 = vst [vmem:[%s3621_s27 + $0x6b0] sm:$0xff] %v604_v22  ;;  %607 = vst [vmem:[%s3621_s27 + $0x6b8] sm:$0xff] %v606_v23  ;;  %v608_v24 = vld [vmem:[%s3616_s26 + $0xd80] sm:$0xff]  ;;  %v610_v25 = vld [vmem:[%s3616_s26 + $0xd88] sm:$0xff] }
  0x7c   : > { %v612_v26 = vld [vmem:[%s3616_s26 + $0xda0] sm:$0xff]  ;;  %609 = vst [vmem:[%s3621_s27 + $0x6c0] sm:$0xff] %v608_v24  ;;  %611 = vst [vmem:[%s3621_s27 + $0x6c8] sm:$0xff] %v610_v25  ;;  %v614_v27 = vld [vmem:[%s3616_s26 + $0xda8] sm:$0xff] }
  0x7d   : > { %613 = vst [vmem:[%s3621_s27 + $0x6d0] sm:$0xff] %v612_v26  ;;  %v616_v28 = vld [vmem:[%s3616_s26 + $0xdc0] sm:$0xff]  ;;  %v618_v29 = vld [vmem:[%s3616_s26 + $0xdc8] sm:$0xff]  ;;  %615 = vst [vmem:[%s3621_s27 + $0x6d8] sm:$0xff] %v614_v27 }
  0x7e   : > { %617 = vst [vmem:[%s3621_s27 + $0x6e0] sm:$0xff] %v616_v28  ;;  %619 = vst [vmem:[%s3621_s27 + $0x6e8] sm:$0xff] %v618_v29  ;;  %v620_v30 = vld [vmem:[%s3616_s26 + $0xde0] sm:$0xff]  ;;  %v622_v31 = vld [vmem:[%s3616_s26 + $0xde8] sm:$0xff] }
  0x7f   : > { %v624_v32 = vld [vmem:[%s3616_s26 + $0xe00] sm:$0xff]  ;;  %621 = vst [vmem:[%s3621_s27 + $0x6f0] sm:$0xff] %v620_v30  ;;  %623 = vst [vmem:[%s3621_s27 + $0x6f8] sm:$0xff] %v622_v31  ;;  %v626_v33 = vld [vmem:[%s3616_s26 + $0xe08] sm:$0xff] }
  0x80   : > { %625 = vst [vmem:[%s3621_s27 + $0x700] sm:$0xff] %v624_v32  ;;  %v628_v34 = vld [vmem:[%s3616_s26 + $0xe20] sm:$0xff]  ;;  %v630_v35 = vld [vmem:[%s3616_s26 + $0xe28] sm:$0xff]  ;;  %627 = vst [vmem:[%s3621_s27 + $0x708] sm:$0xff] %v626_v33 }
  0x81   : > { %629 = vst [vmem:[%s3621_s27 + $0x710] sm:$0xff] %v628_v34  ;;  %631 = vst [vmem:[%s3621_s27 + $0x718] sm:$0xff] %v630_v35  ;;  %v632_v36 = vld [vmem:[%s3616_s26 + $0xe40] sm:$0xff]  ;;  %v634_v37 = vld [vmem:[%s3616_s26 + $0xe48] sm:$0xff] }
  0x82   : > { %v636_v38 = vld [vmem:[%s3616_s26 + $0xe60] sm:$0xff]  ;;  %633 = vst [vmem:[%s3621_s27 + $0x720] sm:$0xff] %v632_v36  ;;  %635 = vst [vmem:[%s3621_s27 + $0x728] sm:$0xff] %v634_v37  ;;  %v638_v39 = vld [vmem:[%s3616_s26 + $0xe68] sm:$0xff] }
  0x83   : > { %637 = vst [vmem:[%s3621_s27 + $0x730] sm:$0xff] %v636_v38  ;;  %v640_v40 = vld [vmem:[%s3616_s26 + $0xe80] sm:$0xff]  ;;  %v642_v41 = vld [vmem:[%s3616_s26 + $0xe88] sm:$0xff]  ;;  %639 = vst [vmem:[%s3621_s27 + $0x738] sm:$0xff] %v638_v39 }
  0x84   : > { %641 = vst [vmem:[%s3621_s27 + $0x740] sm:$0xff] %v640_v40  ;;  %643 = vst [vmem:[%s3621_s27 + $0x748] sm:$0xff] %v642_v41  ;;  %v644_v42 = vld [vmem:[%s3616_s26 + $0xea0] sm:$0xff]  ;;  %v646_v43 = vld [vmem:[%s3616_s26 + $0xea8] sm:$0xff] }
  0x85   : > { %v648_v44 = vld [vmem:[%s3616_s26 + $0xec0] sm:$0xff]  ;;  %645 = vst [vmem:[%s3621_s27 + $0x750] sm:$0xff] %v644_v42  ;;  %647 = vst [vmem:[%s3621_s27 + $0x758] sm:$0xff] %v646_v43  ;;  %v650_v45 = vld [vmem:[%s3616_s26 + $0xec8] sm:$0xff] }
  0x86   : > { %649 = vst [vmem:[%s3621_s27 + $0x760] sm:$0xff] %v648_v44  ;;  %v652_v46 = vld [vmem:[%s3616_s26 + $0xee0] sm:$0xff]  ;;  %v654_v47 = vld [vmem:[%s3616_s26 + $0xee8] sm:$0xff]  ;;  %651 = vst [vmem:[%s3621_s27 + $0x768] sm:$0xff] %v650_v45 }
  0x87   : > { %653 = vst [vmem:[%s3621_s27 + $0x770] sm:$0xff] %v652_v46  ;;  %655 = vst [vmem:[%s3621_s27 + $0x778] sm:$0xff] %v654_v47  ;;  %v656_v48 = vld [vmem:[%s3616_s26 + $0xf00] sm:$0xff]  ;;  %v658_v49 = vld [vmem:[%s3616_s26 + $0xf08] sm:$0xff] }
  0x88   : > { %v660_v50 = vld [vmem:[%s3616_s26 + $0xf20] sm:$0xff]  ;;  %657 = vst [vmem:[%s3621_s27 + $0x780] sm:$0xff] %v656_v48  ;;  %659 = vst [vmem:[%s3621_s27 + $0x788] sm:$0xff] %v658_v49  ;;  %v662_v51 = vld [vmem:[%s3616_s26 + $0xf28] sm:$0xff] }
  0x89   : > { %661 = vst [vmem:[%s3621_s27 + $0x790] sm:$0xff] %v660_v50  ;;  %v664_v52 = vld [vmem:[%s3616_s26 + $0xf40] sm:$0xff]  ;;  %v666_v53 = vld [vmem:[%s3616_s26 + $0xf48] sm:$0xff]  ;;  %663 = vst [vmem:[%s3621_s27 + $0x798] sm:$0xff] %v662_v51 }
  0x8a   : > { %665 = vst [vmem:[%s3621_s27 + $0x7a0] sm:$0xff] %v664_v52  ;;  %667 = vst [vmem:[%s3621_s27 + $0x7a8] sm:$0xff] %v666_v53  ;;  %v668_v54 = vld [vmem:[%s3616_s26 + $0xf60] sm:$0xff]  ;;  %v670_v55 = vld [vmem:[%s3616_s26 + $0xf68] sm:$0xff] }
  0x8b   : > { %v672_v56 = vld [vmem:[%s3616_s26 + $0xf80] sm:$0xff]  ;;  %669 = vst [vmem:[%s3621_s27 + $0x7b0] sm:$0xff] %v668_v54  ;;  %671 = vst [vmem:[%s3621_s27 + $0x7b8] sm:$0xff] %v670_v55  ;;  %v674_v57 = vld [vmem:[%s3616_s26 + $0xf88] sm:$0xff] }
  0x8c   : > { %673 = vst [vmem:[%s3621_s27 + $0x7c0] sm:$0xff] %v672_v56  ;;  %v676_v58 = vld [vmem:[%s3616_s26 + $0xfa0] sm:$0xff]  ;;  %v678_v59 = vld [vmem:[%s3616_s26 + $0xfa8] sm:$0xff]  ;;  %675 = vst [vmem:[%s3621_s27 + $0x7c8] sm:$0xff] %v674_v57 }
  0x8d   : > { %677 = vst [vmem:[%s3621_s27 + $0x7d0] sm:$0xff] %v676_v58  ;;  %679 = vst [vmem:[%s3621_s27 + $0x7d8] sm:$0xff] %v678_v59  ;;  %v680_v60 = vld [vmem:[%s3616_s26 + $0xfc0] sm:$0xff]  ;;  %v682_v61 = vld [vmem:[%s3616_s26 + $0xfc8] sm:$0xff] }
  0x8e   : > { %v684_v62 = vld [vmem:[%s3616_s26 + $0xfe0] sm:$0xff]  ;;  %681 = vst [vmem:[%s3621_s27 + $0x7e0] sm:$0xff] %v680_v60  ;;  %683 = vst [vmem:[%s3621_s27 + $0x7e8] sm:$0xff] %v682_v61  ;;  %v686_v63 = vld [vmem:[%s3616_s26 + $0xfe8] sm:$0xff] }
  0x8f   : > { %685 = vst [vmem:[%s3621_s27 + $0x7f0] sm:$0xff] %v684_v62  ;;  %687 = vst [vmem:[%s3621_s27 + $0x7f8] sm:$0xff] %v686_v63 }
  0x90 PF: > { %p2809_p6 = scmp.ge.s32.totalorder %s3551_s16, 1  ;;  %p700_p7 = scmp.lt.s32.totalorder %s3551_s16, 3 }
  0x92   : > { %p701_p8 = pnand %p2809_p6, %p700_p7 }
  0x93   : > { %s707_s28 = sand.u32 (!%p701_p8), 1, %s3535_s12   ;;  %s2811_s12 = sshll.u32 (!%p701_p8), %s3543_s14, 2 }
  0x94   : > { %704 = sbr.rel (%p701_p8) target bundleno = 614 (0x266), region = 51  ;;  %s2810_s6 = sshll.u32 (!%p701_p8), %s707_s28, 11 }
  0x95   : > { %s4153_s7 = scalar_lea.vmem (!%p701_p8), [#allocation2], %s2810_s6  ;;  %p750_p9 = scmp.lt.s32.totalorder (!%p701_p8), %s2811_s12, 7 }
  0x99   : > { %v4138_v0 = vld [vmem:[%s4489_s0] sm:$0xff]  ;;  %v4143_v1 = vld [vmem:[%s4489_s0 + $0x8] sm:$0xff]  ;;  %s4500_s12 = smov (!%p750_p9, %s2811_s12), 7 }
  0x9a   : > { %v4147_v2 = vcombine.high %v4138_v0, %v4138_v0  ;;  %v4151_v3 = vcombine.high %v4143_v1, %v4143_v1  ;;  %v3121_v4 = vld [vmem:[%s4153_s7 + $0xe4] ss:$16 sps:$4 sm:$0xff]   ;;  %v3125_v6 = vld [vmem:[%s4153_s7 + $0xe0] ss:$16 sps:$4 sm:$0xff]   ;;  %s752_s21 = scalar_lea.vmem %s4491_s2, %s4500_s12  ;;  %s2813_s14 = sshll.u32 %s4500_s12, 3 }
  0x9b   : > { %v3123_v5 = vld [vmem:[%s4153_s7 + $0x2e4] ss:$16 sps:$4 sm:$0xff]   ;;  %2354 = vmatprep.subr.bf16.mxu0 %v3121_v4  ;;  %v3126_v7 = vld [vmem:[%s4153_s7 + $0x2e0] ss:$16 sps:$4 sm:$0xff]   ;;  %s4468_s24 = scalar_lea.vmem %s4492_s3, %s2813_s14 }
  0x9c   : > { %2386 = vmatprep.mubr.bf16.mxu0 %v4147_v2  ;;  %2427 = vmatprep.mubr.bf16.mxu1 %v4151_v3  ;;  %v3127_v8 = vld [vmem:[%s4153_s7 + $0xc4] ss:$16 sps:$4 sm:$0xff]   ;;  %v3131_v10 = vld [vmem:[%s4153_s7 + $0xc0] ss:$16 sps:$4 sm:$0xff]  }
  0x9d   : > { %2395 = vmatprep.subr.bf16.mxu1 %v3123_v5  ;;  %2355 = vmatpush1.bf16.msra.mxu0 %v3125_v6  ;;  %v3129_v9 = vld [vmem:[%s4153_s7 + $0x2c4] ss:$16 sps:$4 sm:$0xff]   ;;  %v3132_v11 = vld [vmem:[%s4153_s7 + $0x2c0] ss:$16 sps:$4 sm:$0xff]  }
  0x9e   : > { %2396 = vmatpush1.bf16.msra.mxu1 %v3126_v7  ;;  %2356 = vmatprep.subr.bf16.mxu0 %v3127_v8  ;;  %v3133_v12 = vld [vmem:[%s4153_s7 + $0xa4] ss:$16 sps:$4 sm:$0xff]   ;;  %v3137_v14 = vld [vmem:[%s4153_s7 + $0xa0] ss:$16 sps:$4 sm:$0xff]  }
  0x9f   : > { %2397 = vmatprep.subr.bf16.mxu1 %v3129_v9  ;;  %v3135_v13 = vld [vmem:[%s4153_s7 + $0x2a4] ss:$16 sps:$4 sm:$0xff]   ;;  %v3138_v15 = vld [vmem:[%s4153_s7 + $0x2a0] ss:$16 sps:$4 sm:$0xff]  }
  0xa0   : > { %v3139_v16 = vld [vmem:[%s4153_s7 + $0x84] ss:$16 sps:$4 sm:$0xff]   ;;  %v3143_v18 = vld [vmem:[%s4153_s7 + $0x80] ss:$16 sps:$4 sm:$0xff]  }
  0xa1   : > { %2357 = vmatpush1.bf16.msra.mxu0 %v3131_v10  ;;  %v3141_v17 = vld [vmem:[%s4153_s7 + $0x284] ss:$16 sps:$4 sm:$0xff]   ;;  %v3144_v19 = vld [vmem:[%s4153_s7 + $0x280] ss:$16 sps:$4 sm:$0xff]  }
  0xa2   : > { %2398 = vmatpush1.bf16.msra.mxu1 %v3132_v11  ;;  %2358 = vmatprep.subr.bf16.mxu0 %v3133_v12  ;;  %v3145_v20 = vld [vmem:[%s4153_s7 + $0x64] ss:$16 sps:$4 sm:$0xff]   ;;  %v3149_v22 = vld [vmem:[%s4153_s7 + $0x60] ss:$16 sps:$4 sm:$0xff]   ;;  %v4231_v11 = vld [vmem:[%s4489_s0 + $0x18] sm:$0xff]  ;;  %v4235_v12 = vcombine.low %v4138_v0, %v4138_v0 }
  0xa3   : > { %2399 = vmatprep.subr.bf16.mxu1 %v3135_v13  ;;  %v3147_v21 = vld [vmem:[%s4153_s7 + $0x264] ss:$16 sps:$4 sm:$0xff]   ;;  %v3150_v23 = vld [vmem:[%s4153_s7 + $0x260] ss:$16 sps:$4 sm:$0xff]   ;;  %v4239_v13 = vcombine.low %v4143_v1, %v4143_v1  ;;  %v4251_v1 = vcombine.high %v4231_v11, %v4231_v11 }
  0xa4   : > { %v3151_v24 = vld [vmem:[%s4153_s7 + $0x44] ss:$16 sps:$4 sm:$0xff]   ;;  %v3155_v26 = vld [vmem:[%s4153_s7 + $0x40] ss:$16 sps:$4 sm:$0xff]  }
  0xa5   : > { %2359 = vmatpush1.bf16.msra.mxu0 %v3137_v14  ;;  %v3153_v25 = vld [vmem:[%s4153_s7 + $0x244] ss:$16 sps:$4 sm:$0xff]   ;;  %v3156_v27 = vld [vmem:[%s4153_s7 + $0x240] ss:$16 sps:$4 sm:$0xff]  }
  0xa6   : > { %2400 = vmatpush1.bf16.msra.mxu1 %v3138_v15  ;;  %2360 = vmatprep.subr.bf16.mxu0 %v3139_v16  ;;  %v3157_v28 = vld [vmem:[%s4153_s7 + $0x24] ss:$16 sps:$4 sm:$0xff]   ;;  %v3161_v30 = vld [vmem:[%s4153_s7 + $0x20] ss:$16 sps:$4 sm:$0xff]  }
  0xa7   : > { %2401 = vmatprep.subr.bf16.mxu1 %v3141_v17  ;;  %v3159_v29 = vld [vmem:[%s4153_s7 + $0x224] ss:$16 sps:$4 sm:$0xff]   ;;  %v3162_v31 = vld [vmem:[%s4153_s7 + $0x220] ss:$16 sps:$4 sm:$0xff]  }
  0xa8   : > { %v3163_v32 = vld [vmem:[%s4153_s7 + $0x4] ss:$16 sps:$4 sm:$0xff]   ;;  %v3167_v34 = vld [vmem:[%s4153_s7] ss:$16 sps:$4 sm:$0xff]  }
  0xa9   : > { %2361 = vmatpush1.bf16.msra.mxu0 %v3143_v18  ;;  %v3165_v33 = vld [vmem:[%s4153_s7 + $0x204] ss:$16 sps:$4 sm:$0xff]   ;;  %v3168_v35 = vld [vmem:[%s4153_s7 + $0x200] ss:$16 sps:$4 sm:$0xff]  }
  0xaa   : > { %2402 = vmatpush1.bf16.msra.mxu1 %v3144_v19  ;;  %2362 = vmatprep.subr.bf16.mxu0 %v3145_v20  ;;  %v3169_v36 = vld [vmem:[%s4153_s7 + $0x1e4] ss:$16 sps:$4 sm:$0xff]   ;;  %v3173_v38 = vld [vmem:[%s4153_s7 + $0x1e0] ss:$16 sps:$4 sm:$0xff]  }
  0xab   : > { %2403 = vmatprep.subr.bf16.mxu1 %v3147_v21  ;;  %v3171_v37 = vld [vmem:[%s4153_s7 + $0x3e4] ss:$16 sps:$4 sm:$0xff]   ;;  %v3174_v39 = vld [vmem:[%s4153_s7 + $0x3e0] ss:$16 sps:$4 sm:$0xff]  }
  0xac   : > { %v3175_v40 = vld [vmem:[%s4153_s7 + $0x1c4] ss:$16 sps:$4 sm:$0xff]   ;;  %v3179_v42 = vld [vmem:[%s4153_s7 + $0x1c0] ss:$16 sps:$4 sm:$0xff]  }
  0xad   : > { %2363 = vmatpush1.bf16.msra.mxu0 %v3149_v22  ;;  %v3177_v41 = vld [vmem:[%s4153_s7 + $0x3c4] ss:$16 sps:$4 sm:$0xff]   ;;  %v3180_v43 = vld [vmem:[%s4153_s7 + $0x3c0] ss:$16 sps:$4 sm:$0xff]  }
  0xae   : > { %2404 = vmatpush1.bf16.msra.mxu1 %v3150_v23  ;;  %2364 = vmatprep.subr.bf16.mxu0 %v3151_v24  ;;  %v3181_v44 = vld [vmem:[%s4153_s7 + $0x1a4] ss:$16 sps:$4 sm:$0xff]   ;;  %v3185_v46 = vld [vmem:[%s4153_s7 + $0x1a0] ss:$16 sps:$4 sm:$0xff]  }
  0xaf   : > { %2405 = vmatprep.subr.bf16.mxu1 %v3153_v25  ;;  %v3183_v45 = vld [vmem:[%s4153_s7 + $0x3a4] ss:$16 sps:$4 sm:$0xff]   ;;  %v3186_v47 = vld [vmem:[%s4153_s7 + $0x3a0] ss:$16 sps:$4 sm:$0xff]  }
  0xb0   : > { %v3187_v48 = vld [vmem:[%s4153_s7 + $0x184] ss:$16 sps:$4 sm:$0xff]   ;;  %v3191_v50 = vld [vmem:[%s4153_s7 + $0x180] ss:$16 sps:$4 sm:$0xff]  }
  0xb1   : > { %2365 = vmatpush1.bf16.msra.mxu0 %v3155_v26  ;;  %v3189_v49 = vld [vmem:[%s4153_s7 + $0x384] ss:$16 sps:$4 sm:$0xff]   ;;  %v3192_v51 = vld [vmem:[%s4153_s7 + $0x380] ss:$16 sps:$4 sm:$0xff]  }
  0xb2   : > { %2406 = vmatpush1.bf16.msra.mxu1 %v3156_v27  ;;  %2366 = vmatprep.subr.bf16.mxu0 %v3157_v28  ;;  %v3193_v52 = vld [vmem:[%s4153_s7 + $0x164] ss:$16 sps:$4 sm:$0xff]   ;;  %v3197_v54 = vld [vmem:[%s4153_s7 + $0x160] ss:$16 sps:$4 sm:$0xff]  }
  0xb3   : > { %2407 = vmatprep.subr.bf16.mxu1 %v3159_v29  ;;  %v3195_v53 = vld [vmem:[%s4153_s7 + $0x364] ss:$16 sps:$4 sm:$0xff]   ;;  %v3198_v55 = vld [vmem:[%s4153_s7 + $0x360] ss:$16 sps:$4 sm:$0xff]  }
  0xb4   : > { %v3199_v56 = vld [vmem:[%s4153_s7 + $0x144] ss:$16 sps:$4 sm:$0xff]   ;;  %v3203_v58 = vld [vmem:[%s4153_s7 + $0x140] ss:$16 sps:$4 sm:$0xff]  }
  0xb5   : > { %2367 = vmatpush1.bf16.msra.mxu0 %v3161_v30  ;;  %v3201_v57 = vld [vmem:[%s4153_s7 + $0x344] ss:$16 sps:$4 sm:$0xff]   ;;  %v3204_v59 = vld [vmem:[%s4153_s7 + $0x340] ss:$16 sps:$4 sm:$0xff]  }
  0xb6   : > { %2408 = vmatpush1.bf16.msra.mxu1 %v3162_v31  ;;  %2368 = vmatprep.subr.bf16.mxu0 %v3163_v32  ;;  %v3205_v60 = vld [vmem:[%s4153_s7 + $0x124] ss:$16 sps:$4 sm:$0xff]   ;;  %v3209_v62 = vld [vmem:[%s4153_s7 + $0x120] ss:$16 sps:$4 sm:$0xff]  }
  0xb7   : > { %2409 = vmatprep.subr.bf16.mxu1 %v3165_v33  ;;  %v3207_v61 = vld [vmem:[%s4153_s7 + $0x324] ss:$16 sps:$4 sm:$0xff]   ;;  %v3210_v63 = vld [vmem:[%s4153_s7 + $0x320] ss:$16 sps:$4 sm:$0xff]  }
  0xb8   : > { %v3211_v4 = vld [vmem:[%s4153_s7 + $0x104] ss:$16 sps:$4 sm:$0xff]   ;;  %v3215_v6 = vld [vmem:[%s4153_s7 + $0x100] ss:$16 sps:$4 sm:$0xff]  }
  0xb9   : > { %2369 = vmatpush1.bf16.msra.mxu0 %v3167_v34  ;;  %v3213_v5 = vld [vmem:[%s4153_s7 + $0x304] ss:$16 sps:$4 sm:$0xff]   ;;  %v3216_v7 = vld [vmem:[%s4153_s7 + $0x300] ss:$16 sps:$4 sm:$0xff]  }
  0xba   : > { %2410 = vmatpush1.bf16.msra.mxu1 %v3168_v35  ;;  %2370 = vmatprep.subr.bf16.mxu0 %v3169_v36  ;;  %v3223_v8 = vld [vmem:[%s4153_s7 + $0x4e4] ss:$16 sps:$4 sm:$0xff]   ;;  %v3221_v14 = vld [vmem:[%s4153_s7 + $0x4e0] ss:$16 sps:$4 sm:$0xff]  }
  0xbb   : > { %2411 = vmatprep.subr.bf16.mxu1 %v3171_v37  ;;  %v3226_v9 = vld [vmem:[%s4153_s7 + $0x6e4] ss:$16 sps:$4 sm:$0xff]   ;;  %v3224_v15 = vld [vmem:[%s4153_s7 + $0x6e0] ss:$16 sps:$4 sm:$0xff]  }
  0xbc   : > { %v4226_v10 = vld [vmem:[%s4489_s0 + $0x10] sm:$0xff] }
  0xbd   : > { %2371 = vmatpush2.bf16.msra.mxu0 %v3173_v38  ;;  %v3229_v16 = vld [vmem:[%s4153_s7 + $0x4c4] ss:$16 sps:$4 sm:$0xff]   ;;  %v4247_v0 = vcombine.high %v4226_v10, %v4226_v10  ;;  %v3227_v18 = vld [vmem:[%s4153_s7 + $0x4c0] ss:$16 sps:$4 sm:$0xff]  }
  0xbe   : > { %2412 = vmatpush2.bf16.msra.mxu1 %v3174_v39  ;;  %2372 = vmatprep.subr.bf16.mxu0 %v3175_v40  ;;  %v3232_v17 = vld [vmem:[%s4153_s7 + $0x6c4] ss:$16 sps:$4 sm:$0xff]   ;;  %v3230_v19 = vld [vmem:[%s4153_s7 + $0x6c0] ss:$16 sps:$4 sm:$0xff]  }
  0xbf   : > { %2413 = vmatprep.subr.bf16.mxu1 %v3177_v41  ;;  %v3235_v20 = vld [vmem:[%s4153_s7 + $0x4a4] ss:$16 sps:$4 sm:$0xff]   ;;  %v3233_v22 = vld [vmem:[%s4153_s7 + $0x4a0] ss:$16 sps:$4 sm:$0xff]  }
  0xc0   : > { %v3238_v21 = vld [vmem:[%s4153_s7 + $0x6a4] ss:$16 sps:$4 sm:$0xff]   ;;  %v3236_v23 = vld [vmem:[%s4153_s7 + $0x6a0] ss:$16 sps:$4 sm:$0xff]  }
  0xc1   : > { %2373 = vmatpush2.bf16.msra.mxu0 %v3179_v42  ;;  %v3241_v24 = vld [vmem:[%s4153_s7 + $0x484] ss:$16 sps:$4 sm:$0xff]   ;;  %v3239_v26 = vld [vmem:[%s4153_s7 + $0x480] ss:$16 sps:$4 sm:$0xff]  }
  0xc2   : > { %2414 = vmatpush2.bf16.msra.mxu1 %v3180_v43  ;;  %2374 = vmatprep.subr.bf16.mxu0 %v3181_v44  ;;  %v3244_v25 = vld [vmem:[%s4153_s7 + $0x684] ss:$16 sps:$4 sm:$0xff]   ;;  %v3242_v27 = vld [vmem:[%s4153_s7 + $0x680] ss:$16 sps:$4 sm:$0xff]  }
  0xc3   : > { %2415 = vmatprep.subr.bf16.mxu1 %v3183_v45  ;;  %v3247_v28 = vld [vmem:[%s4153_s7 + $0x464] ss:$16 sps:$4 sm:$0xff]   ;;  %v3245_v30 = vld [vmem:[%s4153_s7 + $0x460] ss:$16 sps:$4 sm:$0xff]  }
  0xc4   : > { %v3250_v29 = vld [vmem:[%s4153_s7 + $0x664] ss:$16 sps:$4 sm:$0xff]   ;;  %v3248_v31 = vld [vmem:[%s4153_s7 + $0x660] ss:$16 sps:$4 sm:$0xff]  }
  0xc5   : > { %2375 = vmatpush2.bf16.msra.mxu0 %v3185_v46  ;;  %v3253_v32 = vld [vmem:[%s4153_s7 + $0x444] ss:$16 sps:$4 sm:$0xff]   ;;  %v3251_v34 = vld [vmem:[%s4153_s7 + $0x440] ss:$16 sps:$4 sm:$0xff]  }
  0xc6   : > { %2416 = vmatpush2.bf16.msra.mxu1 %v3186_v47  ;;  %2376 = vmatprep.subr.bf16.mxu0 %v3187_v48  ;;  %v3256_v33 = vld [vmem:[%s4153_s7 + $0x644] ss:$16 sps:$4 sm:$0xff]   ;;  %v3254_v35 = vld [vmem:[%s4153_s7 + $0x640] ss:$16 sps:$4 sm:$0xff]  }
  0xc7   : > { %2417 = vmatprep.subr.bf16.mxu1 %v3189_v49  ;;  %v3259_v36 = vld [vmem:[%s4153_s7 + $0x424] ss:$16 sps:$4 sm:$0xff]   ;;  %v3257_v38 = vld [vmem:[%s4153_s7 + $0x420] ss:$16 sps:$4 sm:$0xff]  }
  0xc8   : > { %v3262_v37 = vld [vmem:[%s4153_s7 + $0x624] ss:$16 sps:$4 sm:$0xff]   ;;  %v3260_v39 = vld [vmem:[%s4153_s7 + $0x620] ss:$16 sps:$4 sm:$0xff]  }
  0xc9   : > { %2377 = vmatpush2.bf16.msra.mxu0 %v3191_v50  ;;  %v3265_v40 = vld [vmem:[%s4153_s7 + $0x404] ss:$16 sps:$4 sm:$0xff]   ;;  %v3263_v42 = vld [vmem:[%s4153_s7 + $0x400] ss:$16 sps:$4 sm:$0xff]  }
  0xca   : > { %2418 = vmatpush2.bf16.msra.mxu1 %v3192_v51  ;;  %2378 = vmatprep.subr.bf16.mxu0 %v3193_v52  ;;  %v3268_v41 = vld [vmem:[%s4153_s7 + $0x604] ss:$16 sps:$4 sm:$0xff]   ;;  %v3266_v43 = vld [vmem:[%s4153_s7 + $0x600] ss:$16 sps:$4 sm:$0xff]  }
  0xcb   : > { %2419 = vmatprep.subr.bf16.mxu1 %v3195_v53  ;;  %v3271_v44 = vld [vmem:[%s4153_s7 + $0x5e4] ss:$16 sps:$4 sm:$0xff]   ;;  %v3269_v46 = vld [vmem:[%s4153_s7 + $0x5e0] ss:$16 sps:$4 sm:$0xff]  }
  0xcc   : > { %v3274_v45 = vld [vmem:[%s4153_s7 + $0x7e4] ss:$16 sps:$4 sm:$0xff]   ;;  %v3272_v47 = vld [vmem:[%s4153_s7 + $0x7e0] ss:$16 sps:$4 sm:$0xff]  }
  0xcd   : > { %2379 = vmatpush2.bf16.msra.mxu0 %v3197_v54  ;;  %v3277_v48 = vld [vmem:[%s4153_s7 + $0x5c4] ss:$16 sps:$4 sm:$0xff]   ;;  %v3275_v50 = vld [vmem:[%s4153_s7 + $0x5c0] ss:$16 sps:$4 sm:$0xff]  }
  0xce   : > { %2420 = vmatpush2.bf16.msra.mxu1 %v3198_v55  ;;  %2380 = vmatprep.subr.bf16.mxu0 %v3199_v56  ;;  %v3280_v49 = vld [vmem:[%s4153_s7 + $0x7c4] ss:$16 sps:$4 sm:$0xff]   ;;  %v3278_v51 = vld [vmem:[%s4153_s7 + $0x7c0] ss:$16 sps:$4 sm:$0xff]  }
  0xcf   : > { %2421 = vmatprep.subr.bf16.mxu1 %v3201_v57  ;;  %v3283_v52 = vld [vmem:[%s4153_s7 + $0x5a4] ss:$16 sps:$4 sm:$0xff]   ;;  %v3281_v54 = vld [vmem:[%s4153_s7 + $0x5a0] ss:$16 sps:$4 sm:$0xff]  }
  0xd0   : > { %v3286_v53 = vld [vmem:[%s4153_s7 + $0x7a4] ss:$16 sps:$4 sm:$0xff]   ;;  %v3284_v55 = vld [vmem:[%s4153_s7 + $0x7a0] ss:$16 sps:$4 sm:$0xff]  }
  0xd1   : > { %2381 = vmatpush2.bf16.msra.mxu0 %v3203_v58  ;;  %v3289_v56 = vld [vmem:[%s4153_s7 + $0x584] ss:$16 sps:$4 sm:$0xff]   ;;  %v3287_v58 = vld [vmem:[%s4153_s7 + $0x580] ss:$16 sps:$4 sm:$0xff]  }
  0xd2   : > { %2422 = vmatpush2.bf16.msra.mxu1 %v3204_v59  ;;  %2382 = vmatprep.subr.bf16.mxu0 %v3205_v60  ;;  %v3292_v57 = vld [vmem:[%s4153_s7 + $0x784] ss:$16 sps:$4 sm:$0xff]   ;;  %v3290_v59 = vld [vmem:[%s4153_s7 + $0x780] ss:$16 sps:$4 sm:$0xff]  }
  0xd3   : > { %2423 = vmatprep.subr.bf16.mxu1 %v3207_v61  ;;  %v3295_v60 = vld [vmem:[%s4153_s7 + $0x564] ss:$16 sps:$4 sm:$0xff]  }
  0xd4   : > { %v3298_v61 = vld [vmem:[%s4153_s7 + $0x764] ss:$16 sps:$4 sm:$0xff]  }
  0xd5   : > { %2383 = vmatpush2.bf16.msra.mxu0 %v3209_v62  ;;  %v3293_v62 = vld [vmem:[%s4153_s7 + $0x560] ss:$16 sps:$4 sm:$0xff]  }
  0xd6   : > { %2424 = vmatpush2.bf16.msra.mxu1 %v3210_v63  ;;  %2384 = vmatprep.subr.bf16.mxu0 %v3211_v4  ;;  %v3296_v63 = vld [vmem:[%s4153_s7 + $0x760] ss:$16 sps:$4 sm:$0xff]   ;;  %v3301_v4 = vld [vmem:[%s4153_s7 + $0x544] ss:$16 sps:$4 sm:$0xff]  }
  0xd7   : > { %2425 = vmatprep.subr.bf16.mxu1 %v3213_v5  ;;  %v3304_v5 = vld [vmem:[%s4153_s7 + $0x744] ss:$16 sps:$4 sm:$0xff]  }
  0xd9   : > { %2385 = vmatpush2.bf16.msra.mxu0 %v3215_v6  ;;  %v3299_v6 = vld [vmem:[%s4153_s7 + $0x540] ss:$16 sps:$4 sm:$0xff]  }
  0xda   : > { %2426 = vmatpush2.bf16.msra.mxu1 %v3216_v7  ;;  %2436 = vmatprep.subr.bf16.mxu0 %v3223_v8  ;;  %v3302_v7 = vld [vmem:[%s4153_s7 + $0x740] ss:$16 sps:$4 sm:$0xff]   ;;  %v3307_v8 = vld [vmem:[%s4153_s7 + $0x524] ss:$16 sps:$4 sm:$0xff]  }
  0xdb   : > { %2477 = vmatprep.subr.bf16.mxu1 %v3226_v9  ;;  %v3310_v9 = vld [vmem:[%s4153_s7 + $0x724] ss:$16 sps:$4 sm:$0xff]  }
  0xdc   : > { %2387 = vmatmul.mubr.bf16.vlgmr.msra.gmra.mxu0 %v4235_v12 }
  0xdd   : > { %2428 = vmatmul.mubr.bf16.vlgmr.msra.gmra.mxu1 %v4239_v13  ;;  %2437 = vmatpush1.bf16.msra.mxu0 %v3221_v14  ;;  %v3305_v14 = vld [vmem:[%s4153_s7 + $0x520] ss:$16 sps:$4 sm:$0xff]  }
  0xde   : > { %2478 = vmatpush1.bf16.msra.mxu1 %v3224_v15  ;;  %2438 = vmatprep.subr.bf16.mxu0 %v3229_v16  ;;  %v3308_v15 = vld [vmem:[%s4153_s7 + $0x720] ss:$16 sps:$4 sm:$0xff]   ;;  %v3313_v16 = vld [vmem:[%s4153_s7 + $0x504] ss:$16 sps:$4 sm:$0xff]  }
  0xdf   : > { %2479 = vmatprep.subr.bf16.mxu1 %v3232_v17  ;;  %2468 = vmatprep.mubr.bf16.mxu0 %v4247_v0  ;;  %v3316_v17 = vld [vmem:[%s4153_s7 + $0x704] ss:$16 sps:$4 sm:$0xff]  }
  0xe0   : > { %2509 = vmatprep.mubr.bf16.mxu1 %v4251_v1 }
  0xe1   : > { %2439 = vmatpush1.bf16.msra.mxu0 %v3227_v18  ;;  %v3311_v18 = vld [vmem:[%s4153_s7 + $0x500] ss:$16 sps:$4 sm:$0xff]  }
  0xe2   : > { %2480 = vmatpush1.bf16.msra.mxu1 %v3230_v19  ;;  %2440 = vmatprep.subr.bf16.mxu0 %v3235_v20  ;;  %v3314_v19 = vld [vmem:[%s4153_s7 + $0x700] ss:$16 sps:$4 sm:$0xff]   ;;  %v3323_v20 = vld [vmem:[%s4153_s7 + $0xec] ss:$16 sps:$4 sm:$0xff]  }
  0xe3   : > { %2481 = vmatprep.subr.bf16.mxu1 %v3238_v21  ;;  %v3326_v21 = vld [vmem:[%s4153_s7 + $0x2ec] ss:$16 sps:$4 sm:$0xff]  }
  0xe5   : > { %2441 = vmatpush1.bf16.msra.mxu0 %v3233_v22  ;;  %v4319_v22 = vcombine.low %v4226_v10, %v4226_v10  ;;  %v3327_v10 = vld [vmem:[%s4153_s7 + $0xc8] ss:$16 sps:$4 sm:$0xff]  }
  0xe6   : > { %2482 = vmatpush1.bf16.msra.mxu1 %v3236_v23  ;;  %2442 = vmatprep.subr.bf16.mxu0 %v3241_v24  ;;  %v4323_v23 = vcombine.low %v4231_v11, %v4231_v11  ;;  %v3321_v24 = vld [vmem:[%s4153_s7 + $0xe8] ss:$16 sps:$4 sm:$0xff]   ;;  %v3335_v11 = vld [vmem:[%s4153_s7 + $0xac] ss:$16 sps:$4 sm:$0xff]  }
  0xe7   : > { %2483 = vmatprep.subr.bf16.mxu1 %v3244_v25  ;;  %v3324_v25 = vld [vmem:[%s4153_s7 + $0x2e8] ss:$16 sps:$4 sm:$0xff]  }
  0xe9   : > { %2443 = vmatpush1.bf16.msra.mxu0 %v3239_v26  ;;  %v3329_v26 = vld [vmem:[%s4153_s7 + $0xcc] ss:$16 sps:$4 sm:$0xff]  }
  0xea   : > { %2484 = vmatpush1.bf16.msra.mxu1 %v3242_v27  ;;  %2444 = vmatprep.subr.bf16.mxu0 %v3247_v28  ;;  %v3332_v27 = vld [vmem:[%s4153_s7 + $0x2cc] ss:$16 sps:$4 sm:$0xff]   ;;  %v3330_v28 = vld [vmem:[%s4153_s7 + $0x2c8] ss:$16 sps:$4 sm:$0xff]  }
  0xeb   : > { %2485 = vmatprep.subr.bf16.mxu1 %v3250_v29  ;;  %v3338_v29 = vld [vmem:[%s4153_s7 + $0x2ac] ss:$16 sps:$4 sm:$0xff]  }
  0xed   : > { %2445 = vmatpush1.bf16.msra.mxu0 %v3245_v30  ;;  %v3333_v30 = vld [vmem:[%s4153_s7 + $0xa8] ss:$16 sps:$4 sm:$0xff]  }
  0xee   : > { %2486 = vmatpush1.bf16.msra.mxu1 %v3248_v31  ;;  %2446 = vmatprep.subr.bf16.mxu0 %v3253_v32  ;;  %v3336_v31 = vld [vmem:[%s4153_s7 + $0x2a8] ss:$16 sps:$4 sm:$0xff]   ;;  %v3341_v32 = vld [vmem:[%s4153_s7 + $0x8c] ss:$16 sps:$4 sm:$0xff]  }
  0xef   : > { %2487 = vmatprep.subr.bf16.mxu1 %v3256_v33  ;;  %v3344_v33 = vld [vmem:[%s4153_s7 + $0x28c] ss:$16 sps:$4 sm:$0xff]  }
  0xf1   : > { %2447 = vmatpush1.bf16.msra.mxu0 %v3251_v34  ;;  %v3339_v34 = vld [vmem:[%s4153_s7 + $0x88] ss:$16 sps:$4 sm:$0xff]  }
  0xf2   : > { %2488 = vmatpush1.bf16.msra.mxu1 %v3254_v35  ;;  %2448 = vmatprep.subr.bf16.mxu0 %v3259_v36  ;;  %v3342_v35 = vld [vmem:[%s4153_s7 + $0x288] ss:$16 sps:$4 sm:$0xff]  }
  0xf3   : > { %2489 = vmatprep.subr.bf16.mxu1 %v3262_v37  ;;  %v3345_v36 = vld [vmem:[%s4153_s7 + $0x68] ss:$16 sps:$4 sm:$0xff]  }
  0xf4   : > { %v3348_v37 = vld [vmem:[%s4153_s7 + $0x268] ss:$16 sps:$4 sm:$0xff]  }
  0xf5   : > { %2449 = vmatpush1.bf16.msra.mxu0 %v3257_v38  ;;  %v3353_v38 = vld [vmem:[%s4153_s7 + $0x4c] ss:$16 sps:$4 sm:$0xff]  }
  0xf6   : > { %2490 = vmatpush1.bf16.msra.mxu1 %v3260_v39  ;;  %2450 = vmatprep.subr.bf16.mxu0 %v3265_v40  ;;  %v3356_v39 = vld [vmem:[%s4153_s7 + $0x24c] ss:$16 sps:$4 sm:$0xff]   ;;  %v3351_v40 = vld [vmem:[%s4153_s7 + $0x48] ss:$16 sps:$4 sm:$0xff]  }
  0xf7   : > { %2491 = vmatprep.subr.bf16.mxu1 %v3268_v41  ;;  %v3354_v41 = vld [vmem:[%s4153_s7 + $0x248] ss:$16 sps:$4 sm:$0xff]  }
  0xf9   : > { %2451 = vmatpush1.bf16.msra.mxu0 %v3263_v42  ;;  %v3359_v42 = vld [vmem:[%s4153_s7 + $0x2c] ss:$16 sps:$4 sm:$0xff]  }
  0xfa   : > { %2492 = vmatpush1.bf16.msra.mxu1 %v3266_v43  ;;  %2452 = vmatprep.subr.bf16.mxu0 %v3271_v44  ;;  %v3362_v43 = vld [vmem:[%s4153_s7 + $0x22c] ss:$16 sps:$4 sm:$0xff]   ;;  %v3357_v44 = vld [vmem:[%s4153_s7 + $0x28] ss:$16 sps:$4 sm:$0xff]  }
  0xfb   : > { %2493 = vmatprep.subr.bf16.mxu1 %v3274_v45  ;;  %v3360_v45 = vld [vmem:[%s4153_s7 + $0x228] ss:$16 sps:$4 sm:$0xff]  }
  0xfd   : > { %2453 = vmatpush2.bf16.msra.mxu0 %v3269_v46  ;;  %v3365_v46 = vld [vmem:[%s4153_s7 + $0xc] ss:$16 sps:$4 sm:$0xff]  }
  0xfe   : > { %2494 = vmatpush2.bf16.msra.mxu1 %v3272_v47  ;;  %2454 = vmatprep.subr.bf16.mxu0 %v3277_v48  ;;  %v3368_v47 = vld [vmem:[%s4153_s7 + $0x20c] ss:$16 sps:$4 sm:$0xff]   ;;  %v3363_v48 = vld [vmem:[%s4153_s7 + $0x8] ss:$16 sps:$4 sm:$0xff]  }
  0xff   : > { %2495 = vmatprep.subr.bf16.mxu1 %v3280_v49  ;;  %v3366_v49 = vld [vmem:[%s4153_s7 + $0x208] ss:$16 sps:$4 sm:$0xff]  }
 0x101   : > { %2455 = vmatpush2.bf16.msra.mxu0 %v3275_v50  ;;  %v3371_v50 = vld [vmem:[%s4153_s7 + $0x1ec] ss:$16 sps:$4 sm:$0xff]  }
 0x102   : > { %2496 = vmatpush2.bf16.msra.mxu1 %v3278_v51  ;;  %2456 = vmatprep.subr.bf16.mxu0 %v3283_v52  ;;  %v3374_v51 = vld [vmem:[%s4153_s7 + $0x3ec] ss:$16 sps:$4 sm:$0xff]   ;;  %v3369_v52 = vld [vmem:[%s4153_s7 + $0x1e8] ss:$16 sps:$4 sm:$0xff]  }
 0x103   : > { %2497 = vmatprep.subr.bf16.mxu1 %v3286_v53  ;;  %v3372_v53 = vld [vmem:[%s4153_s7 + $0x3e8] ss:$16 sps:$4 sm:$0xff]  }
 0x105   : > { %2457 = vmatpush2.bf16.msra.mxu0 %v3281_v54  ;;  %v3377_v54 = vld [vmem:[%s4153_s7 + $0x1cc] ss:$16 sps:$4 sm:$0xff]  }
 0x106   : > { %2498 = vmatpush2.bf16.msra.mxu1 %v3284_v55  ;;  %2458 = vmatprep.subr.bf16.mxu0 %v3289_v56  ;;  %v3380_v55 = vld [vmem:[%s4153_s7 + $0x3cc] ss:$16 sps:$4 sm:$0xff]   ;;  %v3375_v56 = vld [vmem:[%s4153_s7 + $0x1c8] ss:$16 sps:$4 sm:$0xff]  }
 0x107   : > { %2499 = vmatprep.subr.bf16.mxu1 %v3292_v57  ;;  %v3378_v57 = vld [vmem:[%s4153_s7 + $0x3c8] ss:$16 sps:$4 sm:$0xff]  }
 0x109   : > { %2459 = vmatpush2.bf16.msra.mxu0 %v3287_v58  ;;  %v3383_v58 = vld [vmem:[%s4153_s7 + $0x1ac] ss:$16 sps:$4 sm:$0xff]  }
 0x10a   : > { %2500 = vmatpush2.bf16.msra.mxu1 %v3290_v59  ;;  %2460 = vmatprep.subr.bf16.mxu0 %v3295_v60  ;;  %v3386_v59 = vld [vmem:[%s4153_s7 + $0x3ac] ss:$16 sps:$4 sm:$0xff]   ;;  %v3381_v60 = vld [vmem:[%s4153_s7 + $0x1a8] ss:$16 sps:$4 sm:$0xff]  }
 0x10b   : > { %2501 = vmatprep.subr.bf16.mxu1 %v3298_v61  ;;  %v3384_v61 = vld [vmem:[%s4153_s7 + $0x3a8] ss:$16 sps:$4 sm:$0xff]  }
 0x10d   : > { %2461 = vmatpush2.bf16.msra.mxu0 %v3293_v62  ;;  %v3389_v62 = vld [vmem:[%s4153_s7 + $0x18c] ss:$16 sps:$4 sm:$0xff]  }
 0x10e   : > { %2502 = vmatpush2.bf16.msra.mxu1 %v3296_v63  ;;  %2462 = vmatprep.subr.bf16.mxu0 %v3301_v4  ;;  %v3392_v63 = vld [vmem:[%s4153_s7 + $0x38c] ss:$16 sps:$4 sm:$0xff]   ;;  %v3387_v4 = vld [vmem:[%s4153_s7 + $0x188] ss:$16 sps:$4 sm:$0xff]  }
 0x10f   : > { %2503 = vmatprep.subr.bf16.mxu1 %v3304_v5  ;;  %v3390_v5 = vld [vmem:[%s4153_s7 + $0x388] ss:$16 sps:$4 sm:$0xff]  }
 0x111   : > { %2463 = vmatpush2.bf16.msra.mxu0 %v3299_v6  ;;  %v3395_v6 = vld [vmem:[%s4153_s7 + $0x16c] ss:$16 sps:$4 sm:$0xff]  }
 0x112   : > { %2504 = vmatpush2.bf16.msra.mxu1 %v3302_v7  ;;  %2464 = vmatprep.subr.bf16.mxu0 %v3307_v8  ;;  %v3398_v7 = vld [vmem:[%s4153_s7 + $0x36c] ss:$16 sps:$4 sm:$0xff]   ;;  %v3393_v8 = vld [vmem:[%s4153_s7 + $0x168] ss:$16 sps:$4 sm:$0xff]  }
 0x113   : > { %2505 = vmatprep.subr.bf16.mxu1 %v3310_v9  ;;  %v3396_v9 = vld [vmem:[%s4153_s7 + $0x368] ss:$16 sps:$4 sm:$0xff]  }
 0x115   : > { %2465 = vmatpush2.bf16.msra.mxu0 %v3305_v14  ;;  %v3401_v14 = vld [vmem:[%s4153_s7 + $0x14c] ss:$16 sps:$4 sm:$0xff]  }
 0x116   : > { %2506 = vmatpush2.bf16.msra.mxu1 %v3308_v15  ;;  %2466 = vmatprep.subr.bf16.mxu0 %v3313_v16  ;;  %v3404_v15 = vld [vmem:[%s4153_s7 + $0x34c] ss:$16 sps:$4 sm:$0xff]   ;;  %v3399_v16 = vld [vmem:[%s4153_s7 + $0x148] ss:$16 sps:$4 sm:$0xff]  }
 0x117   : > { %2507 = vmatprep.subr.bf16.mxu1 %v3316_v17  ;;  %v3402_v17 = vld [vmem:[%s4153_s7 + $0x348] ss:$16 sps:$4 sm:$0xff]  }
 0x119   : > { %2467 = vmatpush2.bf16.msra.mxu0 %v3311_v18  ;;  %v3407_v18 = vld [vmem:[%s4153_s7 + $0x12c] ss:$16 sps:$4 sm:$0xff]  }
 0x11a   : > { %2508 = vmatpush2.bf16.msra.mxu1 %v3314_v19  ;;  %2518 = vmatprep.subr.bf16.mxu0 %v3323_v20  ;;  %v3410_v19 = vld [vmem:[%s4153_s7 + $0x32c] ss:$16 sps:$4 sm:$0xff]   ;;  %v3405_v20 = vld [vmem:[%s4153_s7 + $0x128] ss:$16 sps:$4 sm:$0xff]  }
 0x11b   : > { %2559 = vmatprep.subr.bf16.mxu1 %v3326_v21  ;;  %v3408_v21 = vld [vmem:[%s4153_s7 + $0x328] ss:$16 sps:$4 sm:$0xff]  }
 0x11c   : > { %2469 = vmatmul.mubr.bf16.vlgmr.msra.gmra.mxu0 %v4319_v22 }
 0x11d   : > { %2510 = vmatmul.mubr.bf16.vlgmr.msra.gmra.mxu1 %v4323_v23  ;;  %2519 = vmatpush1.bf16.msra.mxu0 %v3321_v24  ;;  %v3413_v24 = vld [vmem:[%s4153_s7 + $0x10c] ss:$16 sps:$4 sm:$0xff]  }
 0x11e   : > { %2560 = vmatpush1.bf16.msra.mxu1 %v3324_v25  ;;  %2520 = vmatprep.subr.bf16.mxu0 %v3329_v26  ;;  %v3416_v25 = vld [vmem:[%s4153_s7 + $0x30c] ss:$16 sps:$4 sm:$0xff]   ;;  %v3411_v26 = vld [vmem:[%s4153_s7 + $0x108] ss:$16 sps:$4 sm:$0xff]  }
 0x11f   : > { %2561 = vmatprep.subr.bf16.mxu1 %v3332_v27  ;;  %2550 = vmatprep.mubr.bf16.mxu0 %v4147_v2  ;;  %v3347_v2 = vld [vmem:[%s4153_s7 + $0x6c] ss:$16 sps:$4 sm:$0xff]   ;;  %v3414_v27 = vld [vmem:[%s4153_s7 + $0x308] ss:$16 sps:$4 sm:$0xff]  }
 0x120   : > { %2591 = vmatprep.mubr.bf16.mxu1 %v4151_v3  ;;  %v3350_v3 = vld [vmem:[%s4153_s7 + $0x26c] ss:$16 sps:$4 sm:$0xff]  }
 0x121   : > { %2521 = vmatpush1.bf16.msra.mxu0 %v3327_v10  ;;  %v3419_v10 = vld [vmem:[%s4153_s7 + $0x4ec] ss:$16 sps:$4 sm:$0xff]  }
 0x122   : > { %2562 = vmatpush1.bf16.msra.mxu1 %v3330_v28  ;;  %2522 = vmatprep.subr.bf16.mxu0 %v3335_v11  ;;  %v3422_v28 = vld [vmem:[%s4153_s7 + $0x6ec] ss:$16 sps:$4 sm:$0xff]   ;;  %v3417_v11 = vld [vmem:[%s4153_s7 + $0x4e8] ss:$16 sps:$4 sm:$0xff]  }
 0x123   : > { %2563 = vmatprep.subr.bf16.mxu1 %v3338_v29  ;;  %v3420_v29 = vld [vmem:[%s4153_s7 + $0x6e8] ss:$16 sps:$4 sm:$0xff]  }
 0x125   : > { %2523 = vmatpush1.bf16.msra.mxu0 %v3333_v30  ;;  %v3425_v30 = vld [vmem:[%s4153_s7 + $0x4cc] ss:$16 sps:$4 sm:$0xff]  }
 0x126   : > { %2564 = vmatpush1.bf16.msra.mxu1 %v3336_v31  ;;  %2524 = vmatprep.subr.bf16.mxu0 %v3341_v32  ;;  %v3428_v31 = vld [vmem:[%s4153_s7 + $0x6cc] ss:$16 sps:$4 sm:$0xff]   ;;  %v3423_v32 = vld [vmem:[%s4153_s7 + $0x4c8] ss:$16 sps:$4 sm:$0xff]  }
 0x127   : > { %2565 = vmatprep.subr.bf16.mxu1 %v3344_v33  ;;  %v3426_v33 = vld [vmem:[%s4153_s7 + $0x6c8] ss:$16 sps:$4 sm:$0xff]  }
 0x129   : > { %2525 = vmatpush1.bf16.msra.mxu0 %v3339_v34  ;;  %v3431_v34 = vld [vmem:[%s4153_s7 + $0x4ac] ss:$16 sps:$4 sm:$0xff]  }
 0x12a   : > { %2566 = vmatpush1.bf16.msra.mxu1 %v3342_v35  ;;  %2526 = vmatprep.subr.bf16.mxu0 %v3347_v2  ;;  %v3434_v35 = vld [vmem:[%s4153_s7 + $0x6ac] ss:$16 sps:$4 sm:$0xff]  }
 0x12b   : > { %2567 = vmatprep.subr.bf16.mxu1 %v3350_v3  ;;  %v3437_v2 = vld [vmem:[%s4153_s7 + $0x48c] ss:$16 sps:$4 sm:$0xff]  }
 0x12c   : > { %v3440_v3 = vld [vmem:[%s4153_s7 + $0x68c] ss:$16 sps:$4 sm:$0xff]  }
 0x12d   : > { %2527 = vmatpush1.bf16.msra.mxu0 %v3345_v36  ;;  %v3435_v36 = vld [vmem:[%s4153_s7 + $0x488] ss:$16 sps:$4 sm:$0xff]  }
 0x12e   : > { %2568 = vmatpush1.bf16.msra.mxu1 %v3348_v37  ;;  %2528 = vmatprep.subr.bf16.mxu0 %v3353_v38  ;;  %v3446_v37 = vld [vmem:[%s4153_s7 + $0x66c] ss:$16 sps:$4 sm:$0xff]   ;;  %v3441_v38 = vld [vmem:[%s4153_s7 + $0x468] ss:$16 sps:$4 sm:$0xff]  }
 0x12f   : > { %2569 = vmatprep.subr.bf16.mxu1 %v3356_v39  ;;  %v3444_v39 = vld [vmem:[%s4153_s7 + $0x668] ss:$16 sps:$4 sm:$0xff]  }
 0x131   : > { %2529 = vmatpush1.bf16.msra.mxu0 %v3351_v40  ;;  %v3449_v40 = vld [vmem:[%s4153_s7 + $0x44c] ss:$16 sps:$4 sm:$0xff]  }
 0x132   : > { %2570 = vmatpush1.bf16.msra.mxu1 %v3354_v41  ;;  %2530 = vmatprep.subr.bf16.mxu0 %v3359_v42  ;;  %v3452_v41 = vld [vmem:[%s4153_s7 + $0x64c] ss:$16 sps:$4 sm:$0xff]   ;;  %v3447_v42 = vld [vmem:[%s4153_s7 + $0x448] ss:$16 sps:$4 sm:$0xff]  }
 0x133   : > { %2571 = vmatprep.subr.bf16.mxu1 %v3362_v43  ;;  %v3450_v43 = vld [vmem:[%s4153_s7 + $0x648] ss:$16 sps:$4 sm:$0xff]  }
 0x135   : > { %2531 = vmatpush1.bf16.msra.mxu0 %v3357_v44  ;;  %v3455_v44 = vld [vmem:[%s4153_s7 + $0x42c] ss:$16 sps:$4 sm:$0xff]  }
 0x136   : > { %2572 = vmatpush1.bf16.msra.mxu1 %v3360_v45  ;;  %2532 = vmatprep.subr.bf16.mxu0 %v3365_v46  ;;  %v3458_v45 = vld [vmem:[%s4153_s7 + $0x62c] ss:$16 sps:$4 sm:$0xff]   ;;  %v3453_v46 = vld [vmem:[%s4153_s7 + $0x428] ss:$16 sps:$4 sm:$0xff]  }
 0x137   : > { %2573 = vmatprep.subr.bf16.mxu1 %v3368_v47  ;;  %v3456_v47 = vld [vmem:[%s4153_s7 + $0x628] ss:$16 sps:$4 sm:$0xff]  }
 0x139   : > { %2533 = vmatpush1.bf16.msra.mxu0 %v3363_v48  ;;  %v3461_v48 = vld [vmem:[%s4153_s7 + $0x40c] ss:$16 sps:$4 sm:$0xff]  }
 0x13a   : > { %2574 = vmatpush1.bf16.msra.mxu1 %v3366_v49  ;;  %2534 = vmatprep.subr.bf16.mxu0 %v3371_v50  ;;  %v3464_v49 = vld [vmem:[%s4153_s7 + $0x60c] ss:$16 sps:$4 sm:$0xff]   ;;  %v3459_v50 = vld [vmem:[%s4153_s7 + $0x408] ss:$16 sps:$4 sm:$0xff]  }
 0x13b   : > { %2575 = vmatprep.subr.bf16.mxu1 %v3374_v51  ;;  %v3462_v51 = vld [vmem:[%s4153_s7 + $0x608] ss:$16 sps:$4 sm:$0xff]  }
 0x13d   : > { %2535 = vmatpush2.bf16.msra.mxu0 %v3369_v52  ;;  %v3467_v52 = vld [vmem:[%s4153_s7 + $0x5ec] ss:$16 sps:$4 sm:$0xff]  }
 0x13e   : > { %2576 = vmatpush2.bf16.msra.mxu1 %v3372_v53  ;;  %2536 = vmatprep.subr.bf16.mxu0 %v3377_v54  ;;  %v3470_v53 = vld [vmem:[%s4153_s7 + $0x7ec] ss:$16 sps:$4 sm:$0xff]   ;;  %v3465_v54 = vld [vmem:[%s4153_s7 + $0x5e8] ss:$16 sps:$4 sm:$0xff]  }
 0x13f   : > { %2577 = vmatprep.subr.bf16.mxu1 %v3380_v55  ;;  %v3468_v55 = vld [vmem:[%s4153_s7 + $0x7e8] ss:$16 sps:$4 sm:$0xff]  }
 0x141   : > { %2537 = vmatpush2.bf16.msra.mxu0 %v3375_v56  ;;  %v3473_v56 = vld [vmem:[%s4153_s7 + $0x5cc] ss:$16 sps:$4 sm:$0xff]  }
 0x142   : > { %2578 = vmatpush2.bf16.msra.mxu1 %v3378_v57  ;;  %2538 = vmatprep.subr.bf16.mxu0 %v3383_v58  ;;  %v3476_v57 = vld [vmem:[%s4153_s7 + $0x7cc] ss:$16 sps:$4 sm:$0xff]   ;;  %v3471_v58 = vld [vmem:[%s4153_s7 + $0x5c8] ss:$16 sps:$4 sm:$0xff]  }
 0x143   : > { %2579 = vmatprep.subr.bf16.mxu1 %v3386_v59  ;;  %v3474_v59 = vld [vmem:[%s4153_s7 + $0x7c8] ss:$16 sps:$4 sm:$0xff]  }
 0x145   : > { %2539 = vmatpush2.bf16.msra.mxu0 %v3381_v60  ;;  %v3479_v60 = vld [vmem:[%s4153_s7 + $0x5ac] ss:$16 sps:$4 sm:$0xff]  }
 0x146   : > { %2580 = vmatpush2.bf16.msra.mxu1 %v3384_v61  ;;  %2540 = vmatprep.subr.bf16.mxu0 %v3389_v62  ;;  %v3482_v61 = vld [vmem:[%s4153_s7 + $0x7ac] ss:$16 sps:$4 sm:$0xff]   ;;  %v3477_v62 = vld [vmem:[%s4153_s7 + $0x5a8] ss:$16 sps:$4 sm:$0xff]  }
 0x147   : > { %2581 = vmatprep.subr.bf16.mxu1 %v3392_v63  ;;  %v3480_v63 = vld [vmem:[%s4153_s7 + $0x7a8] ss:$16 sps:$4 sm:$0xff]  }
 0x149   : > { %2541 = vmatpush2.bf16.msra.mxu0 %v3387_v4  ;;  %v3485_v4 = vld [vmem:[%s4153_s7 + $0x58c] ss:$16 sps:$4 sm:$0xff]  }
 0x14a   : > { %2582 = vmatpush2.bf16.msra.mxu1 %v3390_v5  ;;  %2542 = vmatprep.subr.bf16.mxu0 %v3395_v6  ;;  %v3488_v5 = vld [vmem:[%s4153_s7 + $0x78c] ss:$16 sps:$4 sm:$0xff]   ;;  %v3483_v6 = vld [vmem:[%s4153_s7 + $0x588] ss:$16 sps:$4 sm:$0xff]  }
 0x14b   : > { %2583 = vmatprep.subr.bf16.mxu1 %v3398_v7  ;;  %v3486_v7 = vld [vmem:[%s4153_s7 + $0x788] ss:$16 sps:$4 sm:$0xff]  }
 0x14d   : > { %2543 = vmatpush2.bf16.msra.mxu0 %v3393_v8  ;;  %v3491_v8 = vld [vmem:[%s4153_s7 + $0x56c] ss:$16 sps:$4 sm:$0xff]  }
 0x14e   : > { %2584 = vmatpush2.bf16.msra.mxu1 %v3396_v9  ;;  %2544 = vmatprep.subr.bf16.mxu0 %v3401_v14  ;;  %v3494_v9 = vld [vmem:[%s4153_s7 + $0x76c] ss:$16 sps:$4 sm:$0xff]   ;;  %v3489_v14 = vld [vmem:[%s4153_s7 + $0x568] ss:$16 sps:$4 sm:$0xff]  }
 0x14f   : > { %2585 = vmatprep.subr.bf16.mxu1 %v3404_v15  ;;  %v3492_v15 = vld [vmem:[%s4153_s7 + $0x768] ss:$16 sps:$4 sm:$0xff]  }
 0x151   : > { %2545 = vmatpush2.bf16.msra.mxu0 %v3399_v16  ;;  %v3497_v16 = vld [vmem:[%s4153_s7 + $0x54c] ss:$16 sps:$4 sm:$0xff]  }
 0x152   : > { %2586 = vmatpush2.bf16.msra.mxu1 %v3402_v17  ;;  %2546 = vmatprep.subr.bf16.mxu0 %v3407_v18  ;;  %v3500_v17 = vld [vmem:[%s4153_s7 + $0x74c] ss:$16 sps:$4 sm:$0xff]   ;;  %v3495_v18 = vld [vmem:[%s4153_s7 + $0x548] ss:$16 sps:$4 sm:$0xff]  }
 0x153   : > { %2587 = vmatprep.subr.bf16.mxu1 %v3410_v19  ;;  %v3498_v19 = vld [vmem:[%s4153_s7 + $0x748] ss:$16 sps:$4 sm:$0xff]  }
 0x155   : > { %2547 = vmatpush2.bf16.msra.mxu0 %v3405_v20  ;;  %v3503_v20 = vld [vmem:[%s4153_s7 + $0x52c] ss:$16 sps:$4 sm:$0xff]  }
 0x156   : > { %2588 = vmatpush2.bf16.msra.mxu1 %v3408_v21  ;;  %2548 = vmatprep.subr.bf16.mxu0 %v3413_v24  ;;  %v3506_v21 = vld [vmem:[%s4153_s7 + $0x72c] ss:$16 sps:$4 sm:$0xff]   ;;  %v3501_v24 = vld [vmem:[%s4153_s7 + $0x528] ss:$16 sps:$4 sm:$0xff]  }
 0x157   : > { %2589 = vmatprep.subr.bf16.mxu1 %v3416_v25  ;;  %v3504_v25 = vld [vmem:[%s4153_s7 + $0x728] ss:$16 sps:$4 sm:$0xff]  }
 0x159   : > { %2549 = vmatpush2.bf16.msra.mxu0 %v3411_v26  ;;  %v3509_v26 = vld [vmem:[%s4153_s7 + $0x50c] ss:$16 sps:$4 sm:$0xff]  }
 0x15a   : > { %2590 = vmatpush2.bf16.msra.mxu1 %v3414_v27  ;;  %2600 = vmatprep.subr.bf16.mxu0 %v3419_v10  ;;  %v3512_v27 = vld [vmem:[%s4153_s7 + $0x70c] ss:$16 sps:$4 sm:$0xff]   ;;  %v3507_v10 = vld [vmem:[%s4153_s7 + $0x508] ss:$16 sps:$4 sm:$0xff]  }
 0x15b   : > { %2641 = vmatprep.subr.bf16.mxu1 %v3422_v28  ;;  %v3510_v28 = vld [vmem:[%s4153_s7 + $0x708] ss:$16 sps:$4 sm:$0xff]  }
 0x15c   : > { %2551 = vmatmul.mubr.bf16.vlgmr.msra.gmra.mxu0 %v4235_v12  ;;  %v3429_v12 = vld [vmem:[%s4153_s7 + $0x4a8] ss:$16 sps:$4 sm:$0xff]  }
 0x15d   : > { %2592 = vmatmul.mubr.bf16.vlgmr.msra.gmra.mxu1 %v4239_v13  ;;  %2601 = vmatpush1.bf16.msra.mxu0 %v3417_v11  ;;  %v3432_v13 = vld [vmem:[%s4153_s7 + $0x6a8] ss:$16 sps:$4 sm:$0xff]  }
 0x15e   : > { %2642 = vmatpush1.bf16.msra.mxu1 %v3420_v29  ;;  %2602 = vmatprep.subr.bf16.mxu0 %v3425_v30 }
 0x15f   : > { %2643 = vmatprep.subr.bf16.mxu1 %v3428_v31  ;;  %2632 = vmatprep.mubr.bf16.mxu0 %v4247_v0  ;;  %v3438_v0 = vld [vmem:[%s4153_s7 + $0x688] ss:$16 sps:$4 sm:$0xff]  }
 0x160   : > { %2673 = vmatprep.mubr.bf16.mxu1 %v4251_v1  ;;  %v3443_v1 = vld [vmem:[%s4153_s7 + $0x46c] ss:$16 sps:$4 sm:$0xff]  }
 0x161   : > { %2603 = vmatpush1.bf16.msra.mxu0 %v3423_v32 }
 0x162   : > { %2644 = vmatpush1.bf16.msra.mxu1 %v3426_v33  ;;  %2604 = vmatprep.subr.bf16.mxu0 %v3431_v34 }
 0x163   : > { %2645 = vmatprep.subr.bf16.mxu1 %v3434_v35 }
 0x165   : > { %2605 = vmatpush1.bf16.msra.mxu0 %v3429_v12  ;;  %v1026_v12 = vlaneseq }
 0x166   : > { %2646 = vmatpush1.bf16.msra.mxu1 %v3432_v13  ;;  %2606 = vmatprep.subr.bf16.mxu0 %v3437_v2 }
 0x167   : > { %2647 = vmatprep.subr.bf16.mxu1 %v3440_v3  ;;  %v1027_v13 = vshrl.u32 %v1026_v12, 7  ;;  %v1024_v3 = vld [vmem:[%s752_s21] sm:$0xf] }
 0x169   : > { %2607 = vmatpush1.bf16.msra.mxu0 %v3435_v36  ;;  %v1028_v2 = vsub.s32 0, %v1027_v13 }
 0x16a   : > { %2648 = vmatpush1.bf16.msra.mxu1 %v3438_v0  ;;  %2608 = vmatprep.subr.bf16.mxu0 %v3443_v1 }
 0x16b   : > { %2649 = vmatprep.subr.bf16.mxu1 %v3446_v37  ;;  %v1029_v36 = vrot.slane %v1024_v3, %v1028_v2 }
 0x16d   : > { %2609 = vmatpush1.bf16.msra.mxu0 %v3441_v38 }
 0x16e   : > { %2650 = vmatpush1.bf16.msra.mxu1 %v3444_v39  ;;  %2610 = vmatprep.subr.bf16.mxu0 %v3449_v40 }
 0x16f   : > { %2651 = vmatprep.subr.bf16.mxu1 %v3452_v41 }
 0x171   : > { %2611 = vmatpush1.bf16.msra.mxu0 %v3447_v42 }
 0x172   : > { %2652 = vmatpush1.bf16.msra.mxu1 %v3450_v43  ;;  %2612 = vmatprep.subr.bf16.mxu0 %v3455_v44 }
 0x173   : > { %2653 = vmatprep.subr.bf16.mxu1 %v3458_v45 }
 0x175   : > { %2613 = vmatpush1.bf16.msra.mxu0 %v3453_v46 }
 0x176   : > { %2654 = vmatpush1.bf16.msra.mxu1 %v3456_v47  ;;  %2614 = vmatprep.subr.bf16.mxu0 %v3461_v48 }
 0x177   : > { %2655 = vmatprep.subr.bf16.mxu1 %v3464_v49 }
 0x179   : > { %2615 = vmatpush1.bf16.msra.mxu0 %v3459_v50 }
 0x17a   : > { %2656 = vmatpush1.bf16.msra.mxu1 %v3462_v51  ;;  %2616 = vmatprep.subr.bf16.mxu0 %v3467_v52 }
 0x17b   : > { %2657 = vmatprep.subr.bf16.mxu1 %v3470_v53 }
 0x17d   : > { %2617 = vmatpush2.bf16.msra.mxu0 %v3465_v54 }
 0x17e   : > { %2658 = vmatpush2.bf16.msra.mxu1 %v3468_v55  ;;  %2618 = vmatprep.subr.bf16.mxu0 %v3473_v56 }
 0x17f   : > { %2659 = vmatprep.subr.bf16.mxu1 %v3476_v57 }
 0x181   : > { %2619 = vmatpush2.bf16.msra.mxu0 %v3471_v58 }
 0x182   : > { %2660 = vmatpush2.bf16.msra.mxu1 %v3474_v59  ;;  %2620 = vmatprep.subr.bf16.mxu0 %v3479_v60 }
 0x183   : > { %2661 = vmatprep.subr.bf16.mxu1 %v3482_v61  ;;  %v1036_v61 = vsub.s32 2, %v1027_v13 }
 0x185   : > { %2621 = vmatpush2.bf16.msra.mxu0 %v3477_v62  ;;  %v1040_v62 = vsub.s32 3, %v1027_v13 }
 0x186   : > { %2662 = vmatpush2.bf16.msra.mxu1 %v3480_v63  ;;  %2622 = vmatprep.subr.bf16.mxu0 %v3485_v4  ;;  %v1037_v63 = vrot.slane %v1024_v3, %v1036_v61 }
 0x187   : > { %2663 = vmatprep.subr.bf16.mxu1 %v3488_v5  ;;  %v1041_v4 = vrot.slane %v1024_v3, %v1040_v62 }
 0x189   : > { %2623 = vmatpush2.bf16.msra.mxu0 %v3483_v6 }
 0x18a   : > { %2664 = vmatpush2.bf16.msra.mxu1 %v3486_v7  ;;  %2624 = vmatprep.subr.bf16.mxu0 %v3491_v8 }
 0x18b   : > { %2665 = vmatprep.subr.bf16.mxu1 %v3494_v9 }
 0x18d   : > { %2625 = vmatpush2.bf16.msra.mxu0 %v3489_v14 }
 0x18e   : > { %2666 = vmatpush2.bf16.msra.mxu1 %v3492_v15  ;;  %2626 = vmatprep.subr.bf16.mxu0 %v3497_v16 }
 0x18f   : > { %2667 = vmatprep.subr.bf16.mxu1 %v3500_v17 }
 0x191   : > { %2627 = vmatpush2.bf16.msra.mxu0 %v3495_v18 }
 0x192   : > { %2668 = vmatpush2.bf16.msra.mxu1 %v3498_v19  ;;  %2628 = vmatprep.subr.bf16.mxu0 %v3503_v20 }
 0x193   : > { %2669 = vmatprep.subr.bf16.mxu1 %v3506_v21 }
 0x195   : > { %2629 = vmatpush2.bf16.msra.mxu0 %v3501_v24 }
 0x196   : > { %2670 = vmatpush2.bf16.msra.mxu1 %v3504_v25  ;;  %2630 = vmatprep.subr.bf16.mxu0 %v3509_v26 }
 0x197   : > { %2671 = vmatprep.subr.bf16.mxu1 %v3512_v27 }
 0x199   : > { %2631 = vmatpush2.bf16.msra.mxu0 %v3507_v10 }
 0x19a   : > { %2672 = vmatpush2.bf16.msra.mxu1 %v3510_v28 }
 0x19c   : > { %v2388_v11 = vpop.f32.mrf.mxu0  ;;  %2633 = vmatmul.mubr.bf16.vlgmr.msra.gmra.mxu0 %v4319_v22  ;;  %v1032_v22 = vsub.s32 1, %v1027_v13 }
 0x19d   : > { %v2429_v29 = vpop.f32.mrf.mxu1  ;;  %2674 = vmatmul.mubr.bf16.vlgmr.msra.gmra.mxu1 %v4323_v23  ;;  %v2389_v0 = vadd.f32 %v2388_v11, %v1029_v36 }
 0x19e   : > { %v2390_v30 = vpop.f32.mrf.mxu0  ;;  %v1033_v23 = vrot.slane %v1024_v3, %v1032_v22 }
 0x19f   : > { %v2431_v31 = vpop.f32.mrf.mxu1  ;;  %v2430_v37 = vadd.f32 %v2429_v29, %v2389_v0 }
 0x1a0   : > { %v2392_v32 = vpop.f32.mrf.mxu0  ;;  %v2391_v1 = vadd.f32 %v2390_v30, %v1033_v23 }
 0x1a1   : > { %v2433_v33 = vpop.f32.mrf.mxu1 }
 0x1a2   : > { %v2393_v34 = vpop.f32.mrf.mxu0  ;;  %v2432_v40 = vadd.f32 %v2431_v31, %v2391_v1 }
 0x1a3   : > { %v2434_v35 = vpop.f32.mrf.mxu1 }
 0x1dc   : > { %v2470_v38 = vpop.f32.mrf.mxu0 }
 0x1dd   : > { %v2511_v39 = vpop.f32.mrf.mxu1  ;;  %v2471_v41 = vadd.f32 %v2470_v38, %v2430_v37 }
 0x1de   : > { %v2472_v42 = vpop.f32.mrf.mxu0 }
 0x1df   : > { %v2513_v43 = vpop.f32.mrf.mxu1  ;;  %v2512_v44 = vadd.f32 %v2511_v39, %v2471_v41  ;;  %v2473_v45 = vadd.f32 %v2472_v42, %v2432_v40 }
 0x1e0   : > { %v2474_v46 = vpop.f32.mrf.mxu0 }
 0x1e1   : > { %v2515_v47 = vpop.f32.mrf.mxu1  ;;  %v2682_v48 = vmax.f32 %v2512_v44, 0.0  ;;  %v2514_v49 = vadd.f32 %v2513_v43, %v2473_v45 }
 0x1e2   : > { %v2475_v50 = vpop.f32.mrf.mxu0 }
 0x1e3   : > { %v2516_v51 = vpop.f32.mrf.mxu1  ;;  %2686 = vst [vmem:[%s4468_s24] sm:$0xff] %v2682_v48  ;;  %v2683_v52 = vmax.f32 %v2514_v49, 0.0 }
 0x1e5   : > { %2687 = vst [vmem:[%s4468_s24 + $0x8] sm:$0xff] %v2683_v52 }
 0x21c   : > { %v2552_v53 = vpop.f32.mrf.mxu0 }
 0x21d   : > { %v2593_v54 = vpop.f32.mrf.mxu1  ;;  %v2553_v5 = vadd.f32 %v2552_v53, %v1037_v63 }
 0x21e   : > { %v2554_v55 = vpop.f32.mrf.mxu0 }
 0x21f   : > { %v2595_v56 = vpop.f32.mrf.mxu1  ;;  %v2555_v6 = vadd.f32 %v2554_v55, %v1041_v4  ;;  %v2594_v7 = vadd.f32 %v2593_v54, %v2553_v5 }
 0x220   : > { %v2556_v57 = vpop.f32.mrf.mxu0 }
 0x221   : > { %v2597_v58 = vpop.f32.mrf.mxu1  ;;  %v2596_v14 = vadd.f32 %v2595_v56, %v2555_v6 }
 0x222   : > { %v2557_v59 = vpop.f32.mrf.mxu0 }
 0x223   : > { %v2598_v60 = vpop.f32.mrf.mxu1 }
 0x25c   : > { %v2634_v8 = vpop.f32.mrf.mxu0 }
 0x25d   : > { %v2675_v9 = vpop.f32.mrf.mxu1  ;;  %v2635_v15 = vadd.f32 %v2634_v8, %v2594_v7 }
 0x25e   : > { %v2636_v16 = vpop.f32.mrf.mxu0 }
 0x25f   : > { %v2677_v17 = vpop.f32.mrf.mxu1  ;;  %v2676_v18 = vadd.f32 %v2675_v9, %v2635_v15  ;;  %v2637_v19 = vadd.f32 %v2636_v16, %v2596_v14 }
 0x260   : > { %v2638_v20 = vpop.f32.mrf.mxu0 }
 0x261   : > { %v2679_v21 = vpop.f32.mrf.mxu1  ;;  %v2684_v24 = vmax.f32 %v2676_v18, 0.0  ;;  %v2678_v25 = vadd.f32 %v2677_v17, %v2637_v19 }
 0x262   : > { %v2639_v26 = vpop.f32.mrf.mxu0 }
 0x263   : > { %v2680_v27 = vpop.f32.mrf.mxu1  ;;  %2688 = vst [vmem:[%s4468_s24 + $0x10] sm:$0xff] %v2684_v24  ;;  %v2685_v10 = vmax.f32 %v2678_v25, 0.0 }
 0x265   : > { %2689 = vst [vmem:[%s4468_s24 + $0x18] sm:$0xff] %v2685_v10 }
 0x266 PF: > { %s13_s16 = sadd.s32 1, %s3551_s16   ;;  %s4493_s12 = smov %s3539_s13 }
 0x267   : > { %p10_p10 = scmp.ge.s32.totalorder %s13_s16, 4   ;;  %s4494_s13 = smov %s3608_s20 }
 0x268   : > { %s4495_s14 = smov %s3547_s15  ;;  %s4496_s15 = smov %s4498_s17 }
 0x269   :  { %12 = sbr.rel (!%p10_p10) target bundleno = 3 (0x3), region = 96 }

</bundles_post_ra>
